<compile_context>
chip_gen: v7x
topology: tpu7x:2x2x1
jax: 0.10.0
libtpu: 0.0.40
codegen_flags: <defaults>
</compile_context>

<pallas_src>
import functools
import math

import jax
import jax.numpy as jnp
from jax import lax
from jax.experimental import pallas as pl
from jax.experimental.pallas import tpu as pltpu

GN_EPS = 1e-5
NUM_GROUPS = 32


def _attention_block_kernel(x_ref, gn_g_ref, gn_b_ref, wqkv_ref, bqkv_ref,
                            wproj_ref, bproj_ref, o_ref, *,
                            num_heads, num_groups, eps):
    """Fused GroupNorm + QKV attention + proj + residual for one batch element."""
    x = x_ref[...][0]                                  # (C, T), T on lanes
    C, T = x.shape
    G = num_groups
    Cg = C // G

    # ---- GroupNorm(32, C), biased variance (matches torch.nn.GroupNorm) ----
    # Per-channel lane reductions in native layout, then tiny per-group sums.
    inv_n = 1.0 / (Cg * T)
    row_sum = jnp.sum(x, axis=-1, keepdims=True)             # (C, 1)
    row_sq = jnp.sum(x * x, axis=-1, keepdims=True)          # (C, 1)
    grp_sum = jnp.sum(row_sum.reshape(G, Cg, 1), axis=1, keepdims=True)  # (G,1,1)
    grp_sq = jnp.sum(row_sq.reshape(G, Cg, 1), axis=1, keepdims=True)    # (G,1,1)
    mean_g = grp_sum * inv_n
    var_g = grp_sq * inv_n - mean_g * mean_g
    inv_g = lax.rsqrt(var_g + eps)
    mean_c = jnp.broadcast_to(mean_g, (G, Cg, 1)).reshape(C, 1)
    inv_c = jnp.broadcast_to(inv_g, (G, Cg, 1)).reshape(C, 1)
    a_c = inv_c * gn_g_ref[...]                              # fused affine scale (C,1)
    b_c = gn_b_ref[...] - mean_c * a_c                       # fused affine shift (C,1)
    xn = x * a_c + b_c                                       # single pass over (C,T)

    # ---- qkv = Conv1d(C, 3C, k=1): single MXU matmul, N = T (lane dense) ----
    qkv = jnp.dot(wqkv_ref[...], xn, preferred_element_type=jnp.float32)
    qkv = qkv + bqkv_ref[...]                                # (3C, T)

    # ---- per-head scaled dot-product attention (heads statically unrolled) ---
    ch = C // num_heads
    inv_sqrt_ch = 1.0 / math.sqrt(ch)                        # == (ch**-0.25)**2
    head_outs = []
    for h in range(num_heads):
        base = 3 * ch * h                                    # head-major qkv layout
        q = qkv[base:base + ch] * inv_sqrt_ch                # (ch, T)
        k = qkv[base + ch:base + 2 * ch]                     # (ch, T)
        v = qkv[base + 2 * ch:base + 3 * ch]                 # (ch, T)
        # scores[t, s] = sum_c q[c, t] * k[c, s]
        s = lax.dot_general(q, k, (((0,), (0,)), ((), ())),
                            preferred_element_type=jnp.float32)       # (T, T)
        s = s - jnp.max(s, axis=-1, keepdims=True)
        p = jnp.exp(s)
        p = p * pl.reciprocal(jnp.sum(p, axis=-1, keepdims=True), approx=True)
        # out[c, t] = sum_s v[c, s] * p[t, s]
        o = lax.dot_general(v, p, (((1,), (1,)), ((), ())),
                            preferred_element_type=jnp.float32)       # (ch, T)
        head_outs.append(o)
    attn = head_outs[0] if num_heads == 1 else jnp.concatenate(head_outs, axis=0)

    # ---- proj_out (1x1 conv) + residual ----
    proj = jnp.dot(wproj_ref[...], attn, preferred_element_type=jnp.float32)
    proj = proj + bproj_ref[...]                             # (C, T)
    o_ref[...] = ((x + proj)[None, :, :]).astype(o_ref.dtype)


def attention_block_forward(x, params, num_heads=1,
                            num_groups=NUM_GROUPS, eps=GN_EPS):
    """x: (B, C, *spatial) NCHW-style, params dict. Returns same shape."""
    B, C = x.shape[0], x.shape[1]
    spatial = x.shape[2:]
    T = 1
    for s in spatial:
        T *= int(s)
    xf = x.reshape(B, C, T)

    gn_g = params["gn_gamma"].reshape(C, 1)
    gn_b = params["gn_beta"].reshape(C, 1)
    w_qkv = params["w_qkv"]                            # (3C, C)
    b_qkv = params["b_qkv"].reshape(3 * C, 1)
    w_proj = params["w_proj"]                          # (C, C)
    b_proj = params["b_proj"].reshape(C, 1)

    kern = functools.partial(_attention_block_kernel, num_heads=num_heads,
                             num_groups=num_groups, eps=eps)
    out = pl.pallas_call(
        kern,
        grid=(B,),
        in_specs=[
            pl.BlockSpec((1, C, T), lambda b: (b, 0, 0)),
            pl.BlockSpec((C, 1), lambda b: (0, 0)),
            pl.BlockSpec((C, 1), lambda b: (0, 0)),
            pl.BlockSpec((3 * C, C), lambda b: (0, 0)),
            pl.BlockSpec((3 * C, 1), lambda b: (0, 0)),
            pl.BlockSpec((C, C), lambda b: (0, 0)),
            pl.BlockSpec((C, 1), lambda b: (0, 0)),
        ],
        out_specs=pl.BlockSpec((1, C, T), lambda b: (b, 0, 0)),
        out_shape=jax.ShapeDtypeStruct((B, C, T), x.dtype),
        compiler_params=pltpu.CompilerParams(dimension_semantics=("parallel",)),
    )(xf, gn_g, gn_b, w_qkv, b_qkv, w_proj, b_proj)
    return out.reshape(B, C, *spatial)


def init_params(key, channels):
    C = channels
    ks = jax.random.split(key, 6)
    return {
        "gn_gamma": 1.0 + 0.1 * jax.random.normal(ks[0], (C,), jnp.float32),
        "gn_beta": 0.1 * jax.random.normal(ks[1], (C,), jnp.float32),
        "w_qkv": 0.1 * jax.random.normal(ks[2], (3 * C, C), jnp.float32),
        "b_qkv": 0.1 * jax.random.normal(ks[3], (3 * C,), jnp.float32),
        # PyTorch zero_module() inits these to zero; use small random values so
        # the correctness check exercises the attention + projection path.
        "w_proj": 0.1 * jax.random.normal(ks[4], (C, C), jnp.float32),
        "b_proj": 0.1 * jax.random.normal(ks[5], (C,), jnp.float32),
    }


def _ref_forward(x, p, num_heads=1, num_groups=NUM_GROUPS, eps=GN_EPS):
    """Plain-JAX reference (HIGHEST precision) for the correctness check."""
    B, C = x.shape[0], x.shape[1]
    spatial = x.shape[2:]
    T = 1
    for s in spatial:
        T *= int(s)
    xf = x.reshape(B, C, T)
    G = num_groups
    xg = xf.reshape(B, G, C // G, T)
    mean = jnp.mean(xg, axis=(2, 3), keepdims=True)
    var = jnp.mean(jnp.square(xg - mean), axis=(2, 3), keepdims=True)
    xn = ((xg - mean) / jnp.sqrt(var + eps)).reshape(B, C, T)
    xn = xn * p["gn_gamma"][None, :, None] + p["gn_beta"][None, :, None]
    qkv = jnp.einsum("oc,bct->bot", p["w_qkv"], xn,
                     precision=lax.Precision.HIGHEST) + p["b_qkv"][None, :, None]
    ch = C // num_heads
    qkv = qkv.reshape(B * num_heads, 3 * ch, T)
    q, k, v = jnp.split(qkv, 3, axis=1)
    scale = 1.0 / math.sqrt(math.sqrt(ch))
    w = jnp.einsum("bct,bcs->bts", q * scale, k * scale,
                   precision=lax.Precision.HIGHEST)
    w = jax.nn.softmax(w, axis=-1)
    h = jnp.einsum("bts,bcs->bct", w, v, precision=lax.Precision.HIGHEST)
    h = h.reshape(B, C, T)
    h = jnp.einsum("oc,bct->bot", p["w_proj"], h,
                   precision=lax.Precision.HIGHEST) + p["b_proj"][None, :, None]
    return (xf + h).reshape(B, C, *spatial)


if __name__ == "__main__":
    B, C, H, W = 2, 64, 16, 16       # T = 256 spatial positions (lane-dense)
    num_heads = 4                    # head dim 16

    key = jax.random.PRNGKey(0)
    kx, kp = jax.random.split(key)
    x = jax.random.normal(kx, (B, C, H, W), jnp.float32)
    params = init_params(kp, C)

    fwd = jax.jit(functools.partial(attention_block_forward, num_heads=num_heads))
    out = jax.block_until_ready(fwd(x, params))
    assert out.shape == (B, C, H, W), out.shape

    ref = _ref_forward(x, params, num_heads=num_heads)
    err = float(jnp.max(jnp.abs(out - ref)))
    assert err < 3e-2, err           # kernel uses default MXU precision (bf16 passes)
    print("KERNEL_OK")
</pallas_src>

<mosaic_0001>
module attributes {stable_mosaic.version = 11 : i64} {
  func.func @_attention_block_kernel(%arg0: i32, %arg1: memref<1x64x256xf32, #tpu.memory_space<vmem>>, %arg2: memref<64x1xf32, #tpu.memory_space<vmem>>, %arg3: memref<64x1xf32, #tpu.memory_space<vmem>>, %arg4: memref<192x64xf32, #tpu.memory_space<vmem>>, %arg5: memref<192x1xf32, #tpu.memory_space<vmem>>, %arg6: memref<64x64xf32, #tpu.memory_space<vmem>>, %arg7: memref<64x1xf32, #tpu.memory_space<vmem>>, %arg8: memref<1x64x256xf32, #tpu.memory_space<vmem>>) attributes {dimension_semantics = [#tpu.dimension_semantics<parallel>], iteration_bounds = array<i64: 2>, scalar_prefetch = 0 : i64, scratch_operands = 0 : i64, tpu.core_type = #tpu.core_type<tc>, window_params = [{transform_indices = @transform_0, window_bounds = array<i64: 1, 64, 256>}, {pipeline_mode = #tpu.pipeline_mode<synchronous>, transform_indices = @transform_1, window_bounds = array<i64: 64, 1>}, {pipeline_mode = #tpu.pipeline_mode<synchronous>, transform_indices = @transform_2, window_bounds = array<i64: 64, 1>}, {pipeline_mode = #tpu.pipeline_mode<synchronous>, transform_indices = @transform_3, window_bounds = array<i64: 192, 64>}, {pipeline_mode = #tpu.pipeline_mode<synchronous>, transform_indices = @transform_4, window_bounds = array<i64: 192, 1>}, {pipeline_mode = #tpu.pipeline_mode<synchronous>, transform_indices = @transform_5, window_bounds = array<i64: 64, 64>}, {pipeline_mode = #tpu.pipeline_mode<synchronous>, transform_indices = @transform_6, window_bounds = array<i64: 64, 1>}, {transform_indices = @transform_7, window_bounds = array<i64: 1, 64, 256>}]} {
    %c0 = arith.constant 0 : index
    %c0_0 = arith.constant 0 : index
    %c0_1 = arith.constant 0 : index
    %0 = vector.load %arg1[%c0, %c0_0, %c0_1] : memref<1x64x256xf32, #tpu.memory_space<vmem>>, vector<1x64x256xf32>
    %1 = vector.shape_cast %0 : vector<1x64x256xf32> to vector<64x256xf32>
    %cst = arith.constant dense<0.000000e+00> : vector<64xf32>
    %2 = vector.multi_reduction <add>, %1, %cst [1] : vector<64x256xf32> to vector<64xf32>
    %3 = vector.shape_cast %2 : vector<64xf32> to vector<64x1xf32>
    %4 = arith.mulf %1, %1 : vector<64x256xf32>
    %cst_2 = arith.constant dense<0.000000e+00> : vector<64xf32>
    %5 = vector.multi_reduction <add>, %4, %cst_2 [1] : vector<64x256xf32> to vector<64xf32>
    %6 = vector.shape_cast %5 : vector<64xf32> to vector<64x1xf32>
    %7 = vector.shape_cast %3 : vector<64x1xf32> to vector<32x2x1xf32>
    %cst_3 = arith.constant dense<0.000000e+00> : vector<32x1xf32>
    %8 = vector.multi_reduction <add>, %7, %cst_3 [1] : vector<32x2x1xf32> to vector<32x1xf32>
    %9 = vector.shape_cast %8 : vector<32x1xf32> to vector<32x1x1xf32>
    %10 = vector.shape_cast %6 : vector<64x1xf32> to vector<32x2x1xf32>
    %cst_4 = arith.constant dense<0.000000e+00> : vector<32x1xf32>
    %11 = vector.multi_reduction <add>, %10, %cst_4 [1] : vector<32x2x1xf32> to vector<32x1xf32>
    %12 = vector.shape_cast %11 : vector<32x1xf32> to vector<32x1x1xf32>
    %cst_5 = arith.constant 0.001953125 : f32
    %13 = vector.broadcast %cst_5 : f32 to vector<32x1x1xf32>
    %14 = arith.mulf %9, %13 : vector<32x1x1xf32>
    %cst_6 = arith.constant 0.001953125 : f32
    %15 = vector.broadcast %cst_6 : f32 to vector<32x1x1xf32>
    %16 = arith.mulf %12, %15 : vector<32x1x1xf32>
    %17 = arith.mulf %14, %14 : vector<32x1x1xf32>
    %18 = arith.subf %16, %17 : vector<32x1x1xf32>
    %cst_7 = arith.constant 9.99999974E-6 : f32
    %19 = vector.broadcast %cst_7 : f32 to vector<32x1x1xf32>
    %20 = arith.addf %18, %19 : vector<32x1x1xf32>
    %21 = math.rsqrt %20 : vector<32x1x1xf32>
    %22 = vector.shape_cast %14 : vector<32x1x1xf32> to vector<32x1x1xf32>
    %23 = vector.broadcast %22 : vector<32x1x1xf32> to vector<32x2x1xf32>
    %24 = vector.shape_cast %23 : vector<32x2x1xf32> to vector<64x1xf32>
    %25 = vector.shape_cast %21 : vector<32x1x1xf32> to vector<32x1x1xf32>
    %26 = vector.broadcast %25 : vector<32x1x1xf32> to vector<32x2x1xf32>
    %27 = vector.shape_cast %26 : vector<32x2x1xf32> to vector<64x1xf32>
    %c0_8 = arith.constant 0 : index
    %c0_9 = arith.constant 0 : index
    %28 = vector.load %arg2[%c0_8, %c0_9] : memref<64x1xf32, #tpu.memory_space<vmem>>, vector<64x1xf32>
    %29 = arith.mulf %27, %28 : vector<64x1xf32>
    %c0_10 = arith.constant 0 : index
    %c0_11 = arith.constant 0 : index
    %30 = vector.load %arg3[%c0_10, %c0_11] : memref<64x1xf32, #tpu.memory_space<vmem>>, vector<64x1xf32>
    %31 = arith.mulf %24, %29 : vector<64x1xf32>
    %32 = arith.subf %30, %31 : vector<64x1xf32>
    %33 = vector.broadcast %29 : vector<64x1xf32> to vector<64x256xf32>
    %34 = arith.mulf %1, %33 : vector<64x256xf32>
    %35 = vector.broadcast %32 : vector<64x1xf32> to vector<64x256xf32>
    %36 = arith.addf %34, %35 : vector<64x256xf32>
    %c0_12 = arith.constant 0 : index
    %c0_13 = arith.constant 0 : index
    %37 = vector.load %arg4[%c0_12, %c0_13] : memref<192x64xf32, #tpu.memory_space<vmem>>, vector<192x64xf32>
    %cst_14 = arith.constant dense<0.000000e+00> : vector<192x256xf32>
    %38 = tpu.matmul %37, %36, %cst_14 {dimension_numbers = #tpu.dot_dimension_numbers<[1], [0], [0], [1], [0, 0, 1, 1], [], []>} : vector<192x64xf32>, vector<64x256xf32>, vector<192x256xf32> -> vector<192x256xf32>
    %c0_15 = arith.constant 0 : index
    %c0_16 = arith.constant 0 : index
    %39 = vector.load %arg5[%c0_15, %c0_16] : memref<192x1xf32, #tpu.memory_space<vmem>>, vector<192x1xf32>
    %40 = vector.broadcast %39 : vector<192x1xf32> to vector<192x256xf32>
    %41 = arith.addf %38, %40 : vector<192x256xf32>
    %42 = vector.extract_strided_slice %41 {offsets = [0, 0], sizes = [16, 256], strides = [1, 1]} : vector<192x256xf32> to vector<16x256xf32>
    %cst_17 = arith.constant 2.500000e-01 : f32
    %43 = vector.broadcast %cst_17 : f32 to vector<16x256xf32>
    %44 = arith.mulf %42, %43 : vector<16x256xf32>
    %45 = vector.extract_strided_slice %41 {offsets = [16, 0], sizes = [16, 256], strides = [1, 1]} : vector<192x256xf32> to vector<16x256xf32>
    %46 = vector.extract_strided_slice %41 {offsets = [32, 0], sizes = [16, 256], strides = [1, 1]} : vector<192x256xf32> to vector<16x256xf32>
    %cst_18 = arith.constant dense<0.000000e+00> : vector<256x256xf32>
    %47 = tpu.matmul %44, %45, %cst_18 {dimension_numbers = #tpu.dot_dimension_numbers<[0], [0], [1], [1], [0, 1, 1, 1], [], []>} : vector<16x256xf32>, vector<16x256xf32>, vector<256x256xf32> -> vector<256x256xf32>
    %cst_19 = arith.constant dense<0xFF800000> : vector<256xf32>
    %48 = vector.multi_reduction <maximumf>, %47, %cst_19 [1] : vector<256x256xf32> to vector<256xf32>
    %49 = vector.shape_cast %48 : vector<256xf32> to vector<256x1xf32>
    %50 = vector.broadcast %49 : vector<256x1xf32> to vector<256x256xf32>
    %51 = arith.subf %47, %50 : vector<256x256xf32>
    %52 = math.exp %51 : vector<256x256xf32>
    %cst_20 = arith.constant dense<0.000000e+00> : vector<256xf32>
    %53 = vector.multi_reduction <add>, %52, %cst_20 [1] : vector<256x256xf32> to vector<256xf32>
    %54 = vector.shape_cast %53 : vector<256xf32> to vector<256x1xf32>
    %55 = tpu.reciprocal %54 {approx = true} : vector<256x1xf32> -> vector<256x1xf32>
    %56 = vector.broadcast %55 : vector<256x1xf32> to vector<256x256xf32>
    %57 = arith.mulf %52, %56 : vector<256x256xf32>
    %cst_21 = arith.constant dense<0.000000e+00> : vector<16x256xf32>
    %58 = tpu.matmul %46, %57, %cst_21 {dimension_numbers = #tpu.dot_dimension_numbers<[1], [1], [0], [0], [0, 0, 1, 0], [], []>} : vector<16x256xf32>, vector<256x256xf32>, vector<16x256xf32> -> vector<16x256xf32>
    %59 = vector.extract_strided_slice %41 {offsets = [48, 0], sizes = [16, 256], strides = [1, 1]} : vector<192x256xf32> to vector<16x256xf32>
    %cst_22 = arith.constant 2.500000e-01 : f32
    %60 = vector.broadcast %cst_22 : f32 to vector<16x256xf32>
    %61 = arith.mulf %59, %60 : vector<16x256xf32>
    %62 = vector.extract_strided_slice %41 {offsets = [64, 0], sizes = [16, 256], strides = [1, 1]} : vector<192x256xf32> to vector<16x256xf32>
    %63 = vector.extract_strided_slice %41 {offsets = [80, 0], sizes = [16, 256], strides = [1, 1]} : vector<192x256xf32> to vector<16x256xf32>
    %cst_23 = arith.constant dense<0.000000e+00> : vector<256x256xf32>
    %64 = tpu.matmul %61, %62, %cst_23 {dimension_numbers = #tpu.dot_dimension_numbers<[0], [0], [1], [1], [0, 1, 1, 1], [], []>} : vector<16x256xf32>, vector<16x256xf32>, vector<256x256xf32> -> vector<256x256xf32>
    %cst_24 = arith.constant dense<0xFF800000> : vector<256xf32>
    %65 = vector.multi_reduction <maximumf>, %64, %cst_24 [1] : vector<256x256xf32> to vector<256xf32>
    %66 = vector.shape_cast %65 : vector<256xf32> to vector<256x1xf32>
    %67 = vector.broadcast %66 : vector<256x1xf32> to vector<256x256xf32>
    %68 = arith.subf %64, %67 : vector<256x256xf32>
    %69 = math.exp %68 : vector<256x256xf32>
    %cst_25 = arith.constant dense<0.000000e+00> : vector<256xf32>
    %70 = vector.multi_reduction <add>, %69, %cst_25 [1] : vector<256x256xf32> to vector<256xf32>
    %71 = vector.shape_cast %70 : vector<256xf32> to vector<256x1xf32>
    %72 = tpu.reciprocal %71 {approx = true} : vector<256x1xf32> -> vector<256x1xf32>
    %73 = vector.broadcast %72 : vector<256x1xf32> to vector<256x256xf32>
    %74 = arith.mulf %69, %73 : vector<256x256xf32>
    %cst_26 = arith.constant dense<0.000000e+00> : vector<16x256xf32>
    %75 = tpu.matmul %63, %74, %cst_26 {dimension_numbers = #tpu.dot_dimension_numbers<[1], [1], [0], [0], [0, 0, 1, 0], [], []>} : vector<16x256xf32>, vector<256x256xf32>, vector<16x256xf32> -> vector<16x256xf32>
    %76 = vector.extract_strided_slice %41 {offsets = [96, 0], sizes = [16, 256], strides = [1, 1]} : vector<192x256xf32> to vector<16x256xf32>
    %cst_27 = arith.constant 2.500000e-01 : f32
    %77 = vector.broadcast %cst_27 : f32 to vector<16x256xf32>
    %78 = arith.mulf %76, %77 : vector<16x256xf32>
    %79 = vector.extract_strided_slice %41 {offsets = [112, 0], sizes = [16, 256], strides = [1, 1]} : vector<192x256xf32> to vector<16x256xf32>
    %80 = vector.extract_strided_slice %41 {offsets = [128, 0], sizes = [16, 256], strides = [1, 1]} : vector<192x256xf32> to vector<16x256xf32>
    %cst_28 = arith.constant dense<0.000000e+00> : vector<256x256xf32>
    %81 = tpu.matmul %78, %79, %cst_28 {dimension_numbers = #tpu.dot_dimension_numbers<[0], [0], [1], [1], [0, 1, 1, 1], [], []>} : vector<16x256xf32>, vector<16x256xf32>, vector<256x256xf32> -> vector<256x256xf32>
    %cst_29 = arith.constant dense<0xFF800000> : vector<256xf32>
    %82 = vector.multi_reduction <maximumf>, %81, %cst_29 [1] : vector<256x256xf32> to vector<256xf32>
    %83 = vector.shape_cast %82 : vector<256xf32> to vector<256x1xf32>
    %84 = vector.broadcast %83 : vector<256x1xf32> to vector<256x256xf32>
    %85 = arith.subf %81, %84 : vector<256x256xf32>
    %86 = math.exp %85 : vector<256x256xf32>
    %cst_30 = arith.constant dense<0.000000e+00> : vector<256xf32>
    %87 = vector.multi_reduction <add>, %86, %cst_30 [1] : vector<256x256xf32> to vector<256xf32>
    %88 = vector.shape_cast %87 : vector<256xf32> to vector<256x1xf32>
    %89 = tpu.reciprocal %88 {approx = true} : vector<256x1xf32> -> vector<256x1xf32>
    %90 = vector.broadcast %89 : vector<256x1xf32> to vector<256x256xf32>
    %91 = arith.mulf %86, %90 : vector<256x256xf32>
    %cst_31 = arith.constant dense<0.000000e+00> : vector<16x256xf32>
    %92 = tpu.matmul %80, %91, %cst_31 {dimension_numbers = #tpu.dot_dimension_numbers<[1], [1], [0], [0], [0, 0, 1, 0], [], []>} : vector<16x256xf32>, vector<256x256xf32>, vector<16x256xf32> -> vector<16x256xf32>
    %93 = vector.extract_strided_slice %41 {offsets = [144, 0], sizes = [16, 256], strides = [1, 1]} : vector<192x256xf32> to vector<16x256xf32>
    %cst_32 = arith.constant 2.500000e-01 : f32
    %94 = vector.broadcast %cst_32 : f32 to vector<16x256xf32>
    %95 = arith.mulf %93, %94 : vector<16x256xf32>
    %96 = vector.extract_strided_slice %41 {offsets = [160, 0], sizes = [16, 256], strides = [1, 1]} : vector<192x256xf32> to vector<16x256xf32>
    %97 = vector.extract_strided_slice %41 {offsets = [176, 0], sizes = [16, 256], strides = [1, 1]} : vector<192x256xf32> to vector<16x256xf32>
    %cst_33 = arith.constant dense<0.000000e+00> : vector<256x256xf32>
    %98 = tpu.matmul %95, %96, %cst_33 {dimension_numbers = #tpu.dot_dimension_numbers<[0], [0], [1], [1], [0, 1, 1, 1], [], []>} : vector<16x256xf32>, vector<16x256xf32>, vector<256x256xf32> -> vector<256x256xf32>
    %cst_34 = arith.constant dense<0xFF800000> : vector<256xf32>
    %99 = vector.multi_reduction <maximumf>, %98, %cst_34 [1] : vector<256x256xf32> to vector<256xf32>
    %100 = vector.shape_cast %99 : vector<256xf32> to vector<256x1xf32>
    %101 = vector.broadcast %100 : vector<256x1xf32> to vector<256x256xf32>
    %102 = arith.subf %98, %101 : vector<256x256xf32>
    %103 = math.exp %102 : vector<256x256xf32>
    %cst_35 = arith.constant dense<0.000000e+00> : vector<256xf32>
    %104 = vector.multi_reduction <add>, %103, %cst_35 [1] : vector<256x256xf32> to vector<256xf32>
    %105 = vector.shape_cast %104 : vector<256xf32> to vector<256x1xf32>
    %106 = tpu.reciprocal %105 {approx = true} : vector<256x1xf32> -> vector<256x1xf32>
    %107 = vector.broadcast %106 : vector<256x1xf32> to vector<256x256xf32>
    %108 = arith.mulf %103, %107 : vector<256x256xf32>
    %cst_36 = arith.constant dense<0.000000e+00> : vector<16x256xf32>
    %109 = tpu.matmul %97, %108, %cst_36 {dimension_numbers = #tpu.dot_dimension_numbers<[1], [1], [0], [0], [0, 0, 1, 0], [], []>} : vector<16x256xf32>, vector<256x256xf32>, vector<16x256xf32> -> vector<16x256xf32>
    %110 = tpu.concatenate %58, %75, %92, %109 in 0 : vector<16x256xf32>, vector<16x256xf32>, vector<16x256xf32>, vector<16x256xf32> -> vector<64x256xf32>
    %c0_37 = arith.constant 0 : index
    %c0_38 = arith.constant 0 : index
    %111 = vector.load %arg6[%c0_37, %c0_38] : memref<64x64xf32, #tpu.memory_space<vmem>>, vector<64x64xf32>
    %cst_39 = arith.constant dense<0.000000e+00> : vector<64x256xf32>
    %112 = tpu.matmul %111, %110, %cst_39 {dimension_numbers = #tpu.dot_dimension_numbers<[1], [0], [0], [1], [0, 0, 1, 1], [], []>} : vector<64x64xf32>, vector<64x256xf32>, vector<64x256xf32> -> vector<64x256xf32>
    %c0_40 = arith.constant 0 : index
    %c0_41 = arith.constant 0 : index
    %113 = vector.load %arg7[%c0_40, %c0_41] : memref<64x1xf32, #tpu.memory_space<vmem>>, vector<64x1xf32>
    %114 = vector.broadcast %113 : vector<64x1xf32> to vector<64x256xf32>
    %115 = arith.addf %112, %114 : vector<64x256xf32>
    %116 = arith.addf %1, %115 : vector<64x256xf32>
    %117 = vector.shape_cast %116 : vector<64x256xf32> to vector<1x64x256xf32>
    %c0_42 = arith.constant 0 : index
    %c0_43 = arith.constant 0 : index
    %c0_44 = arith.constant 0 : index
    %118 = vector.load %arg8[%c0_42, %c0_43, %c0_44] : memref<1x64x256xf32, #tpu.memory_space<vmem>>, vector<1x64x256xf32>
    tpu.vector_store %arg8[%c0_42, %c0_43, %c0_44], %117 {strides = array<i32>} : memref<1x64x256xf32, #tpu.memory_space<vmem>>, vector<1x64x256xf32>,
    return
  }
  func.func @transform_0(%arg0: i32) -> (i32, i32, i32) {
    %c0_i32 = arith.constant 0 : i32
    %c0_i32_0 = arith.constant 0 : i32
    %c0_i32_1 = arith.constant 0 : i32
    return %arg0, %c0_i32, %c0_i32_0 : i32, i32, i32
  }
  func.func @transform_1(%arg0: i32) -> (i32, i32) {
    %c0_i32 = arith.constant 0 : i32
    %c0_i32_0 = arith.constant 0 : i32
    %c0_i32_1 = arith.constant 0 : i32
    return %c0_i32, %c0_i32_0 : i32, i32
  }
  func.func @transform_2(%arg0: i32) -> (i32, i32) {
    %c0_i32 = arith.constant 0 : i32
    %c0_i32_0 = arith.constant 0 : i32
    %c0_i32_1 = arith.constant 0 : i32
    return %c0_i32, %c0_i32_0 : i32, i32
  }
  func.func @transform_3(%arg0: i32) -> (i32, i32) {
    %c0_i32 = arith.constant 0 : i32
    %c0_i32_0 = arith.constant 0 : i32
    %c0_i32_1 = arith.constant 0 : i32
    return %c0_i32, %c0_i32_0 : i32, i32
  }
  func.func @transform_4(%arg0: i32) -> (i32, i32) {
    %c0_i32 = arith.constant 0 : i32
    %c0_i32_0 = arith.constant 0 : i32
    %c0_i32_1 = arith.constant 0 : i32
    return %c0_i32, %c0_i32_0 : i32, i32
  }
  func.func @transform_5(%arg0: i32) -> (i32, i32) {
    %c0_i32 = arith.constant 0 : i32
    %c0_i32_0 = arith.constant 0 : i32
    %c0_i32_1 = arith.constant 0 : i32
    return %c0_i32, %c0_i32_0 : i32, i32
  }
  func.func @transform_6(%arg0: i32) -> (i32, i32) {
    %c0_i32 = arith.constant 0 : i32
    %c0_i32_0 = arith.constant 0 : i32
    %c0_i32_1 = arith.constant 0 : i32
    return %c0_i32, %c0_i32_0 : i32, i32
  }
  func.func @transform_7(%arg0: i32) -> (i32, i32, i32) {
    %c0_i32 = arith.constant 0 : i32
    %c0_i32_0 = arith.constant 0 : i32
    %c0_i32_1 = arith.constant 0 : i32
    return %arg0, %c0_i32, %c0_i32_0 : i32, i32, i32
  }
}

</mosaic_0001>

<bundles_post_ra>
// kernel: attention_block_forward.1
= control target key start
LH: loop header
LB: loop body
LE: loop exit
PB: predicated region body
PF: predicated region fallthrough
CT: control target
= control target key end

     0   :  { %s8688_s24 = smov 0   ;;  %s12557_s0 = inlined_call_operand.vmem [shape: f32[2,64,256], index: 0, kind: input, shape index: {}]   ;;  %s12558_s1 = inlined_call_operand.vmem [shape: f32[64,1], index: 1, kind: input, shape index: {}]   ;;  %s12559_s2 = inlined_call_operand.vmem [shape: f32[64,1], index: 2, kind: input, shape index: {}]   ;;  %s12560_s3 = inlined_call_operand.vmem [shape: f32[192,64], index: 3, kind: input, shape index: {}]   ;;  %s12561_s4 = inlined_call_operand.vmem [shape: f32[192,1], index: 4, kind: input, shape index: {}]   ;;  %s12562_s5 = inlined_call_operand.vmem [shape: f32[64,64], index: 5, kind: input, shape index: {}]   ;;  %s12563_s6 = inlined_call_operand.vmem [shape: f32[64,1], index: 6, kind: input, shape index: {}]   ;;  %s12564_s7 = inlined_call_operand.vmem [shape: f32[2,64,256], index: 7, kind: output, shape index: {}]  }
   0x1 LB: > { %s7259_s25 = sadd.s32 4294967295, %s8639_s24   ;;  %p7263_p0 = scmp.ge.s32.totalorder %s8639_s24, 1  ;;  %s8639_s24 = sphi %s8688_s24, %s17_s24  }
   0x2   : > { %p237_p1 = scmp.lt.s32.totalorder %s8639_s24, 3 }
   0x4   : > { %p238_p2 = pnand %p7263_p0, %p237_p1 }
   0x6   : > { %241 = sbr.rel (%p238_p2) target bundleno = 2855 (0xb27), region = 48 }
   0xd   : > { %p269_p3 = scmp.lt.s32.totalorder %s7259_s25, 1  ;;  %v8641_v48 = vmov 0   ;;  %v370_v49 = vlaneseq  ;;  %v8642_v50 = vmov 269488144   ;;  %v8643_v52 = vmov 842150450  }
   0xe   : > { %7760 = vset.pattern.permute.xlu1 %v8641_v48  ;;  %7759 = vset.pattern.permute.xlu0 %v8641_v48  ;;  %v368_v51 = vunpack.c.l.s4 %v8642_v50  ;;  %v375_v53 = vunpack.c.l.s4 %v8643_v52  ;;  %v8644_v54 = vmov 1414812756   ;;  %v8645_v56 = vmov 1987475062  }
   0xf   : > { %s13762_s25 = smov (!%p269_p3, %s7259_s25), 1  ;;  %v382_v55 = vunpack.c.l.s4 %v8644_v54  ;;  %v389_v57 = vunpack.c.l.s4 %v8645_v56  ;;  %v8646_v58 = vmov 1983009808   ;;  %v371_v60 = vshrl.u32 %v370_v49, 7 }
  0x10   : > { %s7430_s26 = sshll.u32 %s13762_s25, 7  ;;  %v1546_v59 = vunpack.c.l.s4 %v8646_v58  ;;  %v369_v61 = vunpack.c.0.s8 %v368_v51  ;;  %v376_v62 = vunpack.c.0.s8 %v375_v53  ;;  %vm623_vm0 = vcmask 1041408  }
  0x11   : > { %s8704_s29 = scalar_lea.vmem %s12557_s0, %s7430_s26  ;;  %v383_v63 = vunpack.c.0.s8 %v382_v55  ;;  %vm2784_vm1 = vcmask 523264   ;;  %vm3134_vm2 = vcmask 130048   ;;  %s12520_s17 = scalar_lea.vmem %s12564_s7, %s7430_s26 }
  0x12   : > { %v285_v0 = vld [vmem:[%s8704_s29 + $0x30] sm:$0xff]  ;;  %v286_v1 = vld [vmem:[%s8704_s29 + $0x38] sm:$0xff]  ;;  %v279_v2 = vld [vmem:[%s8704_s29] sm:$0xff] }
  0x13   : > { %v304_v3 = vadd.f32 %v286_v1, %v285_v0  ;;  %v280_v4 = vld [vmem:[%s8704_s29 + $0x8] sm:$0xff]  ;;  %v319_v5 = vmul.f32 %v279_v2, %v279_v2  ;;  %v281_v6 = vld [vmem:[%s8704_s29 + $0x10] sm:$0xff]  ;;  %v282_v7 = vld [vmem:[%s8704_s29 + $0x18] sm:$0xff]  ;;  %v325_v17 = vmul.f32 %v285_v0, %v285_v0  ;;  %v326_v18 = vmul.f32 %v286_v1, %v286_v1 }
  0x14   : > { %v295_v8 = vadd.f32 %v280_v4, %v279_v2  ;;  %v320_v9 = vmul.f32 %v280_v4, %v280_v4  ;;  %v321_v10 = vmul.f32 %v281_v6, %v281_v6  ;;  %v322_v11 = vmul.f32 %v282_v7, %v282_v7  ;;  %v283_v14 = vld [vmem:[%s8704_s29 + $0x20] sm:$0xff]  ;;  %v284_v15 = vld [vmem:[%s8704_s29 + $0x28] sm:$0xff]  ;;  %v289_v24 = vld [vmem:[%s8704_s29 + $0x50] sm:$0xff] }
  0x15   : > { %305 = vadd.xlane.f32.xlu1 %v304_v3  ;;  %v298_v13 = vadd.f32 %v282_v7, %v281_v6  ;;  %v301_v19 = vadd.f32 %v284_v15, %v283_v14  ;;  %v323_v20 = vmul.f32 %v283_v14, %v283_v14  ;;  %v324_v21 = vmul.f32 %v284_v15, %v284_v15  ;;  %v290_v25 = vld [vmem:[%s8704_s29 + $0x58] sm:$0xff]  ;;  %v287_v26 = vld [vmem:[%s8704_s29 + $0x40] sm:$0xff]  ;;  %v288_v27 = vld [vmem:[%s8704_s29 + $0x48] sm:$0xff] }
  0x16   : > { %296 = vadd.xlane.f32.xlu0 %v295_v8  ;;  %v335_v12 = vadd.f32 %v320_v9, %v319_v5  ;;  %v338_v16 = vadd.f32 %v322_v11, %v321_v10  ;;  %v344_v22 = vadd.f32 %v326_v18, %v325_v17  ;;  %v310_v28 = vadd.f32 %v290_v25, %v289_v24  ;;  %v293_v36 = vld [vmem:[%s8704_s29 + $0x70] sm:$0xff]  ;;  %v294_v37 = vld [vmem:[%s8704_s29 + $0x78] sm:$0xff]  ;;  %v291_v38 = vld [vmem:[%s8704_s29 + $0x60] sm:$0xff] }
  0x17   : > { %v341_v23 = vadd.f32 %v324_v21, %v323_v20  ;;  %v329_v29 = vmul.f32 %v289_v24, %v289_v24  ;;  %v330_v30 = vmul.f32 %v290_v25, %v290_v25  ;;  %v307_v31 = vadd.f32 %v288_v27, %v287_v26  ;;  %v292_v39 = vld [vmem:[%s8704_s29 + $0x68] sm:$0xff]  ;;  %v1528_v7 = vld [vmem:[%s12558_s1] sm:$0xff] }
  0x18   : > { %v327_v32 = vmul.f32 %v287_v26, %v287_v26  ;;  %v328_v33 = vmul.f32 %v288_v27, %v288_v27  ;;  %v316_v40 = vadd.f32 %v294_v37, %v293_v36  ;;  %v333_v41 = vmul.f32 %v293_v36, %v293_v36 }
  0x19   : > { %336 = vadd.xlane.f32.xlu1 %v335_v12  ;;  %v350_v34 = vadd.f32 %v330_v30, %v329_v29  ;;  %v334_v42 = vmul.f32 %v294_v37, %v294_v37  ;;  %v313_v43 = vadd.f32 %v292_v39, %v291_v38  ;;  %v331_v44 = vmul.f32 %v291_v38, %v291_v38 }
  0x1a   : > { %299 = vadd.xlane.f32.xlu0 %v298_v13  ;;  %v347_v35 = vadd.f32 %v328_v33, %v327_v32  ;;  %v332_v45 = vmul.f32 %v292_v39, %v292_v39  ;;  %v390_v0 = vunpack.c.0.s8 %v389_v57  ;;  %v1547_v1 = vunpack.c.0.s8 %v1546_v59 }
  0x1b   : > { %v356_v46 = vadd.f32 %v334_v42, %v333_v41  ;;  %v8722_v2 = vsub.s32 %v369_v61, %v371_v60  ;;  %v8724_v3 = vsub.s32 %v376_v62, %v371_v60  ;;  %v8726_v4 = vsub.s32 %v383_v63, %v371_v60 }
  0x1c   : > { %v353_v47 = vadd.f32 %v332_v45, %v331_v44  ;;  %v8728_v5 = vsub.s32 %v390_v0, %v371_v60  ;;  %v8730_v6 = vsub.s32 %v1547_v1, %v371_v60  ;;  %v1544_v17 = vcombine.high %v1528_v7, %v1528_v7 }
  0x1d   : > { %339 = vadd.xlane.f32.xlu1 %v338_v16  ;;  %12934 = vst [vmem:[#allocation2_spill] sm:$0xff] %v8722_v2 }
  0x1e   : > { %302 = vadd.xlane.f32.xlu0 %v301_v19  ;;  %v8742_v16 = vrot.slane %v1528_v7, %v8730_v6  ;;  %v8757_v36 = vrot.slane %v1544_v17, %v8730_v6 }
  0x21   : > { %345 = vadd.xlane.f32.xlu1 %v344_v22 }
  0x22   : > { %342 = vadd.xlane.f32.xlu0 %v341_v23 }
  0x25   : > { %311 = vadd.xlane.f32.xlu1 %v310_v28 }
  0x26   : > { %308 = vadd.xlane.f32.xlu0 %v307_v31 }
  0x29   : > { %351 = vadd.xlane.f32.xlu1 %v350_v34 }
  0x2a   : > { %348 = vadd.xlane.f32.xlu0 %v347_v35 }
  0x2d   : > { %317 = vadd.xlane.f32.xlu1 %v316_v40 }
  0x2e   : > { %314 = vadd.xlane.f32.xlu0 %v313_v43 }
  0x31   : > { %357 = vadd.xlane.f32.xlu1 %v356_v46 }
  0x32   : > { %354 = vadd.xlane.f32.xlu0 %v353_v47 }
  0xa2   : > { %v306_v8 = vpop.xlane.xlu1 %305 }
  0xa3   : > { %v457_v9 = vrot.slane %v306_v8, %v8722_v2  ;;  %v464_v10 = vrot.slane %v306_v8, %v8724_v3  ;;  %v471_v11 = vrot.slane %v306_v8, %v8726_v4  ;;  %v478_v12 = vrot.slane %v306_v8, %v8728_v5  ;;  %v297_v13 = vpop.xlane.xlu0 %296 }
  0xa4   : > { %v373_v14 = vrot.slane %v297_v13, %v8722_v2  ;;  %v380_v15 = vrot.slane %v297_v13, %v8724_v3  ;;  %v387_v24 = vrot.slane %v297_v13, %v8726_v4  ;;  %v394_v25 = vrot.slane %v297_v13, %v8728_v5 }
  0xa5   : > { %v708_v18 = vsel %vm623_vm0, %v457_v9, 0.0  ;;  %v715_v19 = vsel %vm623_vm0, %v464_v10, 0.0  ;;  %v722_v20 = vsel %vm623_vm0, %v471_v11, 0.0  ;;  %v729_v21 = vsel %vm623_vm0, %v478_v12, 0.0 }
  0xa6   : > { %v709_v22 = vrot.slane %v708_v18, 4  ;;  %v716_v23 = vrot.slane %v715_v19, 4  ;;  %v723_v26 = vrot.slane %v722_v20, 4  ;;  %v730_v27 = vrot.slane %v729_v21, 4  ;;  %v337_v32 = vpop.xlane.xlu1 %336 }
  0xa7   : > { %v624_v28 = vsel %vm623_vm0, %v373_v14, 0.0  ;;  %v631_v29 = vsel %vm623_vm0, %v380_v15, 0.0  ;;  %v638_v33 = vsel %vm623_vm0, %v387_v24, 0.0  ;;  %v645_v34 = vsel %vm623_vm0, %v394_v25, 0.0  ;;  %v300_v57 = vpop.xlane.xlu0 %299 }
  0xa8   : > { %v625_v30 = vrot.slane %v624_v28, 4  ;;  %v632_v31 = vrot.slane %v631_v29, 4  ;;  %v8759_v37 = vadd.f32 %v709_v22, %v708_v18  ;;  %v8761_v38 = vadd.f32 %v716_v23, %v715_v19 }
  0xa9   : > { %v8763_v39 = vadd.f32 %v723_v26, %v722_v20  ;;  %v8765_v40 = vadd.f32 %v730_v27, %v729_v21  ;;  %v862_v41 = vrot.slane %v337_v32, %v8722_v2  ;;  %v869_v42 = vrot.slane %v337_v32, %v8724_v3 }
  0xaa   : > { %12935 = vst [vmem:[#allocation3_spill] sm:$0xff] %v8759_v37  ;;  %v876_v43 = vrot.slane %v337_v32, %v8726_v4  ;;  %v883_v44 = vrot.slane %v337_v32, %v8728_v5  ;;  %v8771_v45 = vadd.f32 %v625_v30, %v624_v28  ;;  %v8773_v46 = vadd.f32 %v632_v31, %v631_v29  ;;  %v340_v28 = vpop.xlane.xlu1 %339 }
  0xab   : > { %12936 = vst [vmem:[#allocation4_spill] sm:$0xff] %v8763_v39  ;;  %v639_v47 = vrot.slane %v638_v33, 4  ;;  %v646_v48 = vrot.slane %v645_v34, 4  ;;  %v1112_v49 = vsel %vm623_vm0, %v862_v41, 0.0  ;;  %v1119_v50 = vsel %vm623_vm0, %v869_v42, 0.0 }
  0xac   : > { %v1126_v51 = vsel %vm623_vm0, %v876_v43, 0.0  ;;  %v1133_v52 = vsel %vm623_vm0, %v883_v44, 0.0  ;;  %v1113_v53 = vrot.slane %v1112_v49, 4  ;;  %v1120_v54 = vrot.slane %v1119_v50, 4 }
  0xad   : > { %v1127_v55 = vrot.slane %v1126_v51, 4  ;;  %v1134_v56 = vrot.slane %v1133_v52, 4  ;;  %v401_v58 = vrot.slane %v300_v57, %v8722_v2  ;;  %v408_v59 = vrot.slane %v300_v57, %v8724_v3 }
  0xae   : > { %v415_v60 = vrot.slane %v300_v57, %v8726_v4  ;;  %v422_v61 = vrot.slane %v300_v57, %v8728_v5  ;;  %v1114_v62 = vadd.f32 %v1113_v53, %v1112_v49  ;;  %v1121_v63 = vadd.f32 %v1120_v54, %v1119_v50  ;;  %v303_v49 = vpop.xlane.xlu0 %302 }
  0xaf   : > { %v1128_v0 = vadd.f32 %v1127_v55, %v1126_v51  ;;  %v1135_v1 = vadd.f32 %v1134_v56, %v1133_v52  ;;  %v8783_v7 = vadd.f32 %v639_v47, %v638_v33  ;;  %v8785_v8 = vadd.f32 %v646_v48, %v645_v34 }
  0xb0   : > { %v652_v9 = vsel %vm623_vm0, %v401_v58, 0.0  ;;  %v659_v10 = vsel %vm623_vm0, %v408_v59, 0.0  ;;  %v1115_v11 = vrot.slane %v1114_v62, 2  ;;  %v1122_v12 = vrot.slane %v1121_v63, 2 }
  0xb1   : > { %v666_v13 = vsel %vm623_vm0, %v415_v60, 0.0  ;;  %v673_v14 = vsel %vm623_vm0, %v422_v61, 0.0  ;;  %v1129_v15 = vrot.slane %v1128_v0, 2  ;;  %v1136_v17 = vrot.slane %v1135_v1, 2 }
  0xb2   : > { %v653_v18 = vrot.slane %v652_v9, 4  ;;  %v660_v19 = vrot.slane %v659_v10, 4  ;;  %v8799_v29 = vadd.f32 %v1115_v11, %v1114_v62  ;;  %v8801_v30 = vadd.f32 %v1122_v12, %v1121_v63  ;;  %v343_v23 = vpop.xlane.xlu0 %342 }
  0xb3   : > { %v667_v31 = vrot.slane %v666_v13, 4  ;;  %v674_v32 = vrot.slane %v673_v14, 4  ;;  %v8803_v33 = vadd.f32 %v1129_v15, %v1128_v0  ;;  %v8805_v34 = vadd.f32 %v1136_v17, %v1135_v1 }
  0xb4   : > { %v8807_v41 = vadd.f32 %v653_v18, %v652_v9  ;;  %v8809_v42 = vadd.f32 %v660_v19, %v659_v10  ;;  %v890_v43 = vrot.slane %v340_v28, %v8722_v2  ;;  %v897_v44 = vrot.slane %v340_v28, %v8724_v3 }
  0xb5   : > { %v904_v47 = vrot.slane %v340_v28, %v8726_v4  ;;  %v911_v48 = vrot.slane %v340_v28, %v8728_v5  ;;  %v429_v50 = vrot.slane %v303_v49, %v8722_v2  ;;  %v436_v51 = vrot.slane %v303_v49, %v8724_v3 }
  0xb6   : > { %v443_v52 = vrot.slane %v303_v49, %v8726_v4  ;;  %v450_v53 = vrot.slane %v303_v49, %v8728_v5  ;;  %v1140_v54 = vsel %vm623_vm0, %v890_v43, 0.0  ;;  %v1147_v55 = vsel %vm623_vm0, %v897_v44, 0.0 }
  0xb7   : > { %v1154_v56 = vsel %vm623_vm0, %v904_v47, 0.0  ;;  %v1161_v57 = vsel %vm623_vm0, %v911_v48, 0.0  ;;  %v1141_v58 = vrot.slane %v1140_v54, 4  ;;  %v1148_v59 = vrot.slane %v1147_v55, 4 }
  0xb8   : > { %v1155_v60 = vrot.slane %v1154_v56, 4  ;;  %v1162_v61 = vrot.slane %v1161_v57, 4  ;;  %v8823_v62 = vadd.f32 %v667_v31, %v666_v13  ;;  %v8825_v63 = vadd.f32 %v674_v32, %v673_v14 }
  0xb9   : > { %v680_v0 = vsel %vm623_vm0, %v429_v50, 0.0  ;;  %v687_v1 = vsel %vm623_vm0, %v436_v51, 0.0  ;;  %v1142_v9 = vadd.f32 %v1141_v58, %v1140_v54  ;;  %v1149_v10 = vadd.f32 %v1148_v59, %v1147_v55  ;;  %v346_v54 = vpop.xlane.xlu1 %345 }
  0xba   : > { %12937 = vst [vmem:[#allocation5_spill] sm:$0xff] %v8825_v63  ;;  %v1156_v11 = vadd.f32 %v1155_v60, %v1154_v56  ;;  %v1163_v12 = vadd.f32 %v1162_v61, %v1161_v57  ;;  %v694_v18 = vsel %vm623_vm0, %v443_v52, 0.0  ;;  %v701_v19 = vsel %vm623_vm0, %v450_v53, 0.0 }
  0xbb   : > { %v1143_v13 = vrot.slane %v1142_v9, 2  ;;  %v1150_v28 = vrot.slane %v1149_v10, 2  ;;  %v681_v44 = vrot.slane %v680_v0, 4  ;;  %v688_v47 = vrot.slane %v687_v1, 4 }
  0xbc   : > { %v1157_v14 = vrot.slane %v1156_v11, 2  ;;  %v1164_v31 = vrot.slane %v1163_v12, 2  ;;  %v695_v50 = vrot.slane %v694_v18, 4  ;;  %v702_v51 = vrot.slane %v701_v19, 4 }
  0xbd   : > { %v1144_v48 = vadd.f32 %v1143_v13, %v1142_v9  ;;  %v1151_v49 = vadd.f32 %v1150_v28, %v1149_v10  ;;  %v946_v61 = vrot.slane %v346_v54, %v8722_v2  ;;  %v953_v9 = vrot.slane %v346_v54, %v8724_v3 }
  0xbe   : > { %v8839_v59 = vadd.f32 %v1157_v14, %v1156_v11  ;;  %v8841_v60 = vadd.f32 %v1164_v31, %v1163_v12  ;;  %v960_v10 = vrot.slane %v346_v54, %v8726_v4  ;;  %v967_v13 = vrot.slane %v346_v54, %v8728_v5 }
  0xbf   : > { %v1145_v57 = vrot.slane %v1144_v48, 1  ;;  %v1152_v58 = vrot.slane %v1151_v49, 1  ;;  %v8847_v28 = vadd.f32 %v681_v44, %v680_v0  ;;  %v8849_v22 = vadd.f32 %v688_v47, %v687_v1 }
  0xc0   : > { %v8851_v20 = vadd.f32 %v695_v50, %v694_v18  ;;  %v8853_v56 = vadd.f32 %v702_v51, %v701_v19  ;;  %v1196_v11 = vsel %vm623_vm0, %v946_v61, 0.0  ;;  %v1203_v12 = vsel %vm623_vm0, %v953_v9, 0.0 }
  0xc1   : > { %12938 = vst [vmem:[#allocation6_spill] sm:$0xff] %v8847_v28  ;;  %v1210_v14 = vsel %vm623_vm0, %v960_v10, 0.0  ;;  %v1217_v31 = vsel %vm623_vm0, %v967_v13, 0.0  ;;  %v1146_v53 = vadd.f32 %v1145_v57, %v1144_v48  ;;  %v1153_v21 = vadd.f32 %v1152_v58, %v1151_v49 }
  0xc2   : > { %12939 = vst [vmem:[#allocation7_spill] sm:$0xff] %v8851_v20  ;;  %v1159_v0 = vrot.slane %v8839_v59, 1  ;;  %v1166_v1 = vrot.slane %v8841_v60, 1  ;;  %v1197_v44 = vrot.slane %v1196_v11, 4  ;;  %v1204_v18 = vrot.slane %v1203_v12, 4 }
  0xc3   : > { %v1211_v47 = vrot.slane %v1210_v14, 4  ;;  %v1218_v19 = vrot.slane %v1217_v31, 4  ;;  %v918_v50 = vrot.slane %v343_v23, %v8722_v2  ;;  %v925_v51 = vrot.slane %v343_v23, %v8724_v3 }
  0xc4   : > { %v932_v54 = vrot.slane %v343_v23, %v8726_v4  ;;  %v939_v61 = vrot.slane %v343_v23, %v8728_v5  ;;  %v1198_v9 = vadd.f32 %v1197_v44, %v1196_v11  ;;  %v1205_v10 = vadd.f32 %v1204_v18, %v1203_v12 }
  0xc5   : > { %v1212_v48 = vadd.f32 %v1211_v47, %v1210_v14  ;;  %v1219_v49 = vadd.f32 %v1218_v19, %v1217_v31  ;;  %v1168_v57 = vsel %vm623_vm0, %v918_v50, 0.0  ;;  %v1175_v58 = vsel %vm623_vm0, %v925_v51, 0.0 }
  0xc6   : > { %v1182_v13 = vsel %vm623_vm0, %v932_v54, 0.0  ;;  %v1189_v52 = vsel %vm623_vm0, %v939_v61, 0.0  ;;  %v1199_v55 = vrot.slane %v1198_v9, 2  ;;  %v1206_v35 = vrot.slane %v1205_v10, 2 }
  0xc7   : > { %v1213_v43 = vrot.slane %v1212_v48, 2  ;;  %v1220_v27 = vrot.slane %v1219_v49, 2  ;;  %v1169_v32 = vrot.slane %v1168_v57, 4  ;;  %v1176_v26 = vrot.slane %v1175_v58, 4 }
  0xc8   : > { %v1183_v15 = vrot.slane %v1182_v13, 4  ;;  %v1190_v23 = vrot.slane %v1189_v52, 4  ;;  %v1200_v11 = vadd.f32 %v1199_v55, %v1198_v9  ;;  %v1207_v12 = vadd.f32 %v1206_v35, %v1205_v10 }
  0xc9   : > { %v1214_v14 = vadd.f32 %v1213_v43, %v1212_v48  ;;  %v1221_v31 = vadd.f32 %v1220_v27, %v1219_v49  ;;  %v1170_v44 = vadd.f32 %v1169_v32, %v1168_v57  ;;  %v1177_v18 = vadd.f32 %v1176_v26, %v1175_v58  ;;  %v309_v32 = vpop.xlane.xlu0 %308 }
  0xca   : > { %v1184_v47 = vadd.f32 %v1183_v15, %v1182_v13  ;;  %v1191_v19 = vadd.f32 %v1190_v23, %v1189_v52  ;;  %v1201_v50 = vrot.slane %v1200_v11, 1  ;;  %v1208_v51 = vrot.slane %v1207_v12, 1 }
  0xcb   : > { %v1215_v54 = vrot.slane %v1214_v14, 1  ;;  %v1222_v61 = vrot.slane %v1221_v31, 1  ;;  %v1171_v24 = vrot.slane %v1170_v44, 2  ;;  %v1178_v17 = vrot.slane %v1177_v18, 2 }
  0xcc   : > { %v1185_v25 = vrot.slane %v1184_v47, 2  ;;  %v1192_v39 = vrot.slane %v1191_v19, 2  ;;  %v1160_v26 = vadd.f32 %v1159_v0, %v8839_v59  ;;  %v1167_v15 = vadd.f32 %v1166_v1, %v8841_v60 }
  0xcd   : > { %v1172_v43 = vadd.f32 %v1171_v24, %v1170_v44  ;;  %v1179_v55 = vadd.f32 %v1178_v17, %v1177_v18  ;;  %v8875_v52 = vmul.f32 0.001953125, %v1146_v53  ;;  %v8877_v9 = vmul.f32 0.001953125, %v1153_v21 }
  0xce   : > { %v1186_v10 = vadd.f32 %v1185_v25, %v1184_v47  ;;  %v1193_v48 = vadd.f32 %v1192_v39, %v1191_v19  ;;  %v1202_v49 = vadd.f32 %v1201_v50, %v1200_v11  ;;  %v1209_v57 = vadd.f32 %v1208_v51, %v1207_v12  ;;  %v349_v11 = vpop.xlane.xlu0 %348 }
  0xcf   : > { %v1216_v58 = vadd.f32 %v1215_v54, %v1214_v14  ;;  %v1223_v13 = vadd.f32 %v1222_v61, %v1221_v31  ;;  %v485_v23 = vrot.slane %v309_v32, %v8722_v2  ;;  %v492_v35 = vrot.slane %v309_v32, %v8724_v3 }
  0xd0   : > { %v499_v59 = vrot.slane %v309_v32, %v8726_v4  ;;  %v506_v60 = vrot.slane %v309_v32, %v8728_v5  ;;  %v8883_v24 = vmul.f32 0.001953125, %v1160_v26  ;;  %v8885_v17 = vmul.f32 0.001953125, %v1167_v15 }
  0xd1   : > { %v1173_v21 = vrot.slane %v1172_v43, 1  ;;  %v1180_v53 = vrot.slane %v1179_v55, 1  ;;  %v1187_v25 = vrot.slane %v1186_v10, 1  ;;  %v1194_v39 = vrot.slane %v1193_v48, 1 }
  0xd2   : > { %12940 = vst [vmem:[#allocation8_spill] sm:$0xff] %v8883_v24  ;;  %12941 = vst [vmem:[#allocation9_spill] sm:$0xff] %v8885_v17  ;;  %v736_v0 = vsel %vm623_vm0, %v485_v23, 0.0  ;;  %v743_v1 = vsel %vm623_vm0, %v492_v35, 0.0  ;;  %v8889_v12 = vmul.f32 0.001953125, %v1202_v49  ;;  %v8891_v14 = vmul.f32 0.001953125, %v1209_v57 }
  0xd3   : > { %v8893_v31 = vmul.f32 0.001953125, %v1216_v58  ;;  %v8895_v44 = vmul.f32 0.001953125, %v1223_v13  ;;  %v737_v18 = vrot.slane %v736_v0, 4  ;;  %v744_v47 = vrot.slane %v743_v1, 4 }
  0xd4   : > { %12942 = vst [vmem:[#allocation10_spill] sm:$0xff] %v8889_v12  ;;  %12943 = vst [vmem:[#allocation11_spill] sm:$0xff] %v8891_v14  ;;  %v750_v19 = vsel %vm623_vm0, %v499_v59, 0.0  ;;  %v757_v50 = vsel %vm623_vm0, %v506_v60, 0.0  ;;  %v974_v51 = vrot.slane %v349_v11, %v8722_v2  ;;  %v981_v54 = vrot.slane %v349_v11, %v8724_v3 }
  0xd5   : > { %12944 = vst [vmem:[#allocation12_spill] sm:$0xff] %v8893_v31  ;;  %12945 = vst [vmem:[#allocation13_spill] sm:$0xff] %v8895_v44  ;;  %v988_v61 = vrot.slane %v349_v11, %v8726_v4  ;;  %v995_v35 = vrot.slane %v349_v11, %v8728_v5  ;;  %v1174_v32 = vadd.f32 %v1173_v21, %v1172_v43  ;;  %v751_v37 = vrot.slane %v750_v19, 4 }
  0xd6   : > { %v1181_v26 = vadd.f32 %v1180_v53, %v1179_v55  ;;  %v1188_v15 = vadd.f32 %v1187_v25, %v1186_v10  ;;  %v1195_v49 = vadd.f32 %v1194_v39, %v1193_v48  ;;  %v1224_v57 = vsel %vm623_vm0, %v974_v51, 0.0  ;;  %v312_v10 = vpop.xlane.xlu1 %311 }
  0xd7   : > { %v1231_v58 = vsel %vm623_vm0, %v981_v54, 0.0  ;;  %v1238_v13 = vsel %vm623_vm0, %v988_v61, 0.0  ;;  %v1245_v23 = vsel %vm623_vm0, %v995_v35, 0.0  ;;  %v8907_v59 = vadd.f32 %v737_v18, %v736_v0 }
  0xd8   : > { %v8909_v60 = vadd.f32 %v744_v47, %v743_v1  ;;  %v758_v27 = vrot.slane %v757_v50, 4  ;;  %v1225_v63 = vrot.slane %v1224_v57, 4  ;;  %v1232_v11 = vrot.slane %v1231_v58, 4 }
  0xd9   : > { %12946 = vst [vmem:[#allocation14_spill] sm:$0xff] %v8907_v59  ;;  %v1239_v43 = vrot.slane %v1238_v13, 4  ;;  %v1246_v55 = vrot.slane %v1245_v23, 4  ;;  %v513_v48 = vrot.slane %v312_v10, %v8722_v2  ;;  %v520_v21 = vrot.slane %v312_v10, %v8724_v3 }
  0xda   : > { %12947 = vst [vmem:[#allocation15_spill] sm:$0xff] %v8909_v60  ;;  %v527_v53 = vrot.slane %v312_v10, %v8726_v4  ;;  %v534_v25 = vrot.slane %v312_v10, %v8728_v5  ;;  %v1226_v39 = vadd.f32 %v1225_v63, %v1224_v57  ;;  %v1233_v0 = vadd.f32 %v1232_v11, %v1231_v58 }
  0xdb   : > { %v1240_v18 = vadd.f32 %v1239_v43, %v1238_v13  ;;  %v1247_v1 = vadd.f32 %v1246_v55, %v1245_v23  ;;  %v764_v47 = vsel %vm623_vm0, %v513_v48, 0.0  ;;  %v771_v51 = vsel %vm623_vm0, %v520_v21, 0.0 }
  0xdc   : > { %v778_v54 = vsel %vm623_vm0, %v527_v53, 0.0  ;;  %v785_v61 = vsel %vm623_vm0, %v534_v25, 0.0  ;;  %v1227_v35 = vrot.slane %v1226_v39, 2  ;;  %v1234_v31 = vrot.slane %v1233_v0, 2 }
  0xdd   : > { %v1241_v12 = vrot.slane %v1240_v18, 2  ;;  %v1248_v17 = vrot.slane %v1247_v1, 2  ;;  %v8919_v20 = vadd.f32 %v751_v37, %v750_v19  ;;  %v8921_v44 = vadd.f32 %v758_v27, %v757_v50  ;;  %v352_v27 = vpop.xlane.xlu1 %351 }
  0xde   : > { %v765_v63 = vrot.slane %v764_v47, 4  ;;  %v772_v57 = vrot.slane %v771_v51, 4  ;;  %v1228_v58 = vadd.f32 %v1227_v35, %v1226_v39  ;;  %v1235_v13 = vadd.f32 %v1234_v31, %v1233_v0 }
  0xdf   : > { %12948 = vst [vmem:[#allocation16_spill] sm:$0xff] %v8919_v20  ;;  %12949 = vst [vmem:[#allocation17_spill] sm:$0xff] %v8921_v44  ;;  %v779_v23 = vrot.slane %v778_v54, 4  ;;  %v786_v11 = vrot.slane %v785_v61, 4  ;;  %v8923_v43 = vmul.f32 0.001953125, %v1174_v32  ;;  %v8925_v55 = vmul.f32 0.001953125, %v1181_v26  ;;  %v315_v32 = vpop.xlane.xlu0 %314 }
  0xe0   : > { %v8927_v10 = vmul.f32 0.001953125, %v1188_v15  ;;  %v8929_v48 = vmul.f32 0.001953125, %v1195_v49  ;;  %v1229_v21 = vrot.slane %v1228_v58, 1  ;;  %v1236_v53 = vrot.slane %v1235_v13, 1 }
  0xe1   : > { %12950 = vst [vmem:[#allocation18_spill] sm:$0xff] %v8923_v43  ;;  %v1242_v37 = vadd.f32 %v1241_v12, %v1240_v18  ;;  %v1249_v19 = vadd.f32 %v1248_v17, %v1247_v1  ;;  %v8935_v39 = vadd.f32 %v765_v63, %v764_v47  ;;  %v8937_v26 = vadd.f32 %v772_v57, %v771_v51 }
  0xe2   : > { %12951 = vst [vmem:[#allocation19_spill] sm:$0xff] %v8927_v10  ;;  %v8939_v15 = vadd.f32 %v779_v23, %v778_v54  ;;  %v8941_v49 = vadd.f32 %v786_v11, %v785_v61  ;;  %v1002_v12 = vrot.slane %v352_v27, %v8722_v2  ;;  %v1009_v17 = vrot.slane %v352_v27, %v8724_v3 }
  0xe3   : > { %12952 = vst [vmem:[#allocation20_spill] sm:$0xff] %v8935_v39  ;;  %v1016_v0 = vrot.slane %v352_v27, %v8726_v4  ;;  %v1023_v18 = vrot.slane %v352_v27, %v8728_v5  ;;  %v1230_v1 = vadd.f32 %v1229_v21, %v1228_v58  ;;  %v1237_v35 = vadd.f32 %v1236_v53, %v1235_v13 }
  0xe4   : > { %12953 = vst [vmem:[#allocation21_spill] sm:$0xff] %v8939_v15  ;;  %12954 = vst [vmem:[#allocation22_spill] sm:$0xff] %v8941_v49  ;;  %v1243_v31 = vrot.slane %v1242_v37, 1  ;;  %v1250_v50 = vrot.slane %v1249_v19, 1  ;;  %v1252_v47 = vsel %vm623_vm0, %v1002_v12, 0.0  ;;  %v1259_v51 = vsel %vm623_vm0, %v1009_v17, 0.0 }
  0xe5   : > { %v1266_v54 = vsel %vm623_vm0, %v1016_v0, 0.0  ;;  %v1273_v61 = vsel %vm623_vm0, %v1023_v18, 0.0  ;;  %v1253_v63 = vrot.slane %v1252_v47, 4  ;;  %v1260_v57 = vrot.slane %v1259_v51, 4 }
  0xe6   : > { %v1267_v23 = vrot.slane %v1266_v54, 4  ;;  %v1274_v11 = vrot.slane %v1273_v61, 4  ;;  %v541_v25 = vrot.slane %v315_v32, %v8722_v2  ;;  %v548_v58 = vrot.slane %v315_v32, %v8724_v3 }
  0xe7   : > { %v555_v13 = vrot.slane %v315_v32, %v8726_v4  ;;  %v562_v21 = vrot.slane %v315_v32, %v8728_v5  ;;  %v1254_v53 = vadd.f32 %v1253_v63, %v1252_v47  ;;  %v1261_v27 = vadd.f32 %v1260_v57, %v1259_v51 }
  0xe8   : > { %v1268_v12 = vadd.f32 %v1267_v23, %v1266_v54  ;;  %v1275_v17 = vadd.f32 %v1274_v11, %v1273_v61  ;;  %v792_v0 = vsel %vm623_vm0, %v541_v25, 0.0  ;;  %v799_v18 = vsel %vm623_vm0, %v548_v58, 0.0 }
  0xe9   : > { %v806_v20 = vsel %vm623_vm0, %v555_v13, 0.0  ;;  %v813_v59 = vsel %vm623_vm0, %v562_v21, 0.0  ;;  %v1255_v10 = vrot.slane %v1254_v53, 2  ;;  %v1262_v43 = vrot.slane %v1261_v27, 2 }
  0xea   : > { %v1269_v44 = vrot.slane %v1268_v12, 2  ;;  %v1276_v28 = vrot.slane %v1275_v17, 2  ;;  %v1244_v60 = vadd.f32 %v1243_v31, %v1242_v37  ;;  %v1251_v24 = vadd.f32 %v1250_v50, %v1249_v19  ;;  %v355_v19 = vpop.xlane.xlu0 %354 }
  0xeb   : > { %v793_v14 = vrot.slane %v792_v0, 4  ;;  %v800_v32 = vrot.slane %v799_v18, 4  ;;  %v1256_v47 = vadd.f32 %v1255_v10, %v1254_v53  ;;  %v8959_v51 = vadd.f32 %v1262_v43, %v1261_v27 }
  0xec   : > { %v807_v54 = vrot.slane %v806_v20, 4  ;;  %v814_v61 = vrot.slane %v813_v59, 4  ;;  %v1270_v11 = vadd.f32 %v1269_v44, %v1268_v12  ;;  %v1277_v58 = vadd.f32 %v1276_v28, %v1275_v17 }
  0xed   : > { %v8965_v13 = vadd.f32 %v793_v14, %v792_v0  ;;  %v8967_v37 = vadd.f32 %v800_v32, %v799_v18  ;;  %v8969_v10 = vmul.f32 0.001953125, %v1230_v1  ;;  %v8971_v43 = vmul.f32 0.001953125, %v1237_v35 }
  0xee   : > { %v8973_v50 = vmul.f32 0.001953125, %v1244_v60  ;;  %v8975_v31 = vmul.f32 0.001953125, %v1251_v24  ;;  %v1257_v21 = vrot.slane %v1256_v47, 1  ;;  %v1264_v53 = vrot.slane %v8959_v51, 1 }
  0xef   : > { %12955 = vst [vmem:[#allocation23_spill] sm:$0xff] %v8965_v13  ;;  %12956 = vst [vmem:[#allocation24_spill] sm:$0xff] %v8967_v37  ;;  %v8978_v27 = vadd.f32 %v807_v54, %v806_v20  ;;  %v8980_v44 = vadd.f32 %v814_v61, %v813_v59  ;;  %v1030_v28 = vrot.slane %v355_v19, %v8722_v2  ;;  %v1271_v12 = vrot.slane %v1270_v11, 1 }
  0xf0   : > { %12957 = vst [vmem:[#allocation25_spill] sm:$0xff] %v8969_v10  ;;  %12958 = vst [vmem:[#allocation26_spill] sm:$0xff] %v8973_v50  ;;  %v1037_v14 = vrot.slane %v355_v19, %v8724_v3  ;;  %v1044_v1 = vrot.slane %v355_v19, %v8726_v4  ;;  %v1051_v35 = vrot.slane %v355_v19, %v8728_v5  ;;  %v1278_v60 = vrot.slane %v1277_v58, 1 }
  0xf1   : > { %12959 = vst [vmem:[#allocation27_spill] sm:$0xff] %v8978_v27  ;;  %v1280_v0 = vsel %vm623_vm0, %v1030_v28, 0.0  ;;  %v12960_v25 = vrot.slane %v8773_v46, 2  ;;  %v12961_v17 = vrot.slane %v8801_v30, 1  ;;  %v12963_v27 = vrot.slane %v8799_v29, 1 }
  0xf2   : > { %v1287_v20 = vsel %vm623_vm0, %v1037_v14, 0.0  ;;  %v1294_v59 = vsel %vm623_vm0, %v1044_v1, 0.0  ;;  %v1301_v18 = vsel %vm623_vm0, %v1051_v35, 0.0  ;;  %v1281_v32 = vrot.slane %v1280_v0, 4 }
  0xf3   : > { %v1288_v54 = vrot.slane %v1287_v20, 4  ;;  %v1295_v61 = vrot.slane %v1294_v59, 4  ;;  %v1302_v57 = vrot.slane %v1301_v18, 4  ;;  %v635_v24 = vadd.f32 %v12960_v25, %v8773_v46 }
  0xf4   : > { %v1125_v28 = vadd.f32 %v12961_v17, %v8801_v30  ;;  %v12962_v14 = vrot.slane %v8771_v45, 2  ;;  %v1282_v23 = vadd.f32 %v1281_v32, %v1280_v0  ;;  %v1118_v46 = vadd.f32 %v12963_v27, %v8799_v29  ;;  %v318_v17 = vpop.xlane.xlu1 %317 }
  0xf5   : > { %v1289_v35 = vadd.f32 %v1288_v54, %v1287_v20  ;;  %v1296_v63 = vadd.f32 %v1295_v61, %v1294_v59  ;;  %v1303_v13 = vadd.f32 %v1302_v57, %v1301_v18  ;;  %v636_v50 = vrot.slane %v635_v24, 1 }
  0xf6   : > { %v628_v1 = vadd.f32 %v12962_v14, %v8771_v45  ;;  %v1258_v25 = vadd.f32 %v1257_v21, %v1256_v47  ;;  %v1283_v39 = vrot.slane %v1282_v23, 2  ;;  %v569_v0 = vrot.slane %v318_v17, %v8722_v2 }
  0xf7   : > { %v1290_v10 = vrot.slane %v1289_v35, 2  ;;  %v1297_v30 = vrot.slane %v1296_v63, 2  ;;  %v1304_v37 = vrot.slane %v1303_v13, 2  ;;  %v637_v49 = vadd.f32 %v636_v50, %v635_v24 }
  0xf8   : > { %v629_v19 = vrot.slane %v628_v1, 1  ;;  %v1284_v20 = vadd.f32 %v1283_v39, %v1282_v23  ;;  %v1369_v18 = vmul.f32 0.001953125, %v1125_v28  ;;  %v1368_v61 = vmul.f32 0.001953125, %v1118_v46 }
  0xf9   : > { %v1291_v57 = vadd.f32 %v1290_v10, %v1289_v35  ;;  %v1298_v59 = vadd.f32 %v1297_v30, %v1296_v63  ;;  %v9007_v32 = vmul.f32 0.001953125, %v637_v49  ;;  %v576_v29 = vrot.slane %v318_v17, %v8724_v3 }
  0xfa   : > { %v630_v45 = vadd.f32 %v629_v19, %v628_v1  ;;  %v1265_v47 = vadd.f32 %v1264_v53, %v8959_v51  ;;  %v1272_v21 = vadd.f32 %v1271_v12, %v1270_v11  ;;  %v1279_v27 = vadd.f32 %v1278_v60, %v1277_v58 }
  0xfb   : > { %v9013_v14 = vmul.f32 0.001953125, %v1258_v25  ;;  %v1305_v50 = vadd.f32 %v1304_v37, %v1303_v13  ;;  %v1401_v39 = vmul.f32 %v9007_v32, %v9007_v32  ;;  %v820_v49 = vsel %vm623_vm0, %v569_v0, 0.0 }
  0xfc   : > { %v9009_v54 = vmul.f32 0.001953125, %v630_v45  ;;  %v1285_v23 = vrot.slane %v1284_v20, 1  ;;  %v1292_v10 = vrot.slane %v1291_v57, 1  ;;  %v1299_v24 = vrot.slane %v1298_v59, 1 }
  0xfd   : > { %v583_v19 = vrot.slane %v318_v17, %v8726_v4  ;;  %v1433_v28 = vsub.f32 %v1369_v18, %v1401_v39  ;;  %v821_v11 = vrot.slane %v820_v49, 4  ;;  %v827_v58 = vsel %vm623_vm0, %v576_v29, 0.0 }
  0xfe   : > { %v1400_v63 = vmul.f32 %v9009_v54, %v9009_v54  ;;  %v9022_v53 = vmul.f32 0.001953125, %v1265_v47  ;;  %v9024_v13 = vmul.f32 0.001953125, %v1272_v21  ;;  %v9026_v37 = vmul.f32 0.001953125, %v1279_v27 }
  0xff   : > { %v590_v12 = vrot.slane %v318_v17, %v8728_v5  ;;  %v1306_v60 = vrot.slane %v1305_v50, 1  ;;  %v1465_v1 = vadd.f32 1e-05, %v1433_v28  ;;  %v822_v46 = vadd.f32 %v821_v11, %v820_v49 }
 0x100   : > { %v1432_v51 = vsub.f32 %v1368_v61, %v1400_v63  ;;  %12964 = vst [vmem:[#allocation28_spill] sm:$0xff] %v9024_v13  ;;  %v9029_v25 = vadd.f32 %v1285_v23, %v1284_v20  ;;  %v828_v30 = vrot.slane %v827_v58, 4  ;;  %v834_v45 = vsel %vm623_vm0, %v583_v19, 0.0  ;;  %v358_v61 = vpop.xlane.xlu1 %357 }
 0x101   : > { %v12965_v0 = vrot.slane %v8783_v7, 2  ;;  %v1293_v29 = vadd.f32 %v1292_v10, %v1291_v57  ;;  %v9035_v47 = vadd.f32 %v1299_v24, %v1298_v59  ;;  %7769 = vrsqrt.f32 %v1465_v1 }
 0x102   : > { %v1464_v35 = vadd.f32 1e-05, %v1432_v51  ;;  %v12967_v17 = vrot.slane %v8803_v33, 1  ;;  %v823_v27 = vrot.slane %v822_v46, 2  ;;  %v841_v20 = vsel %vm623_vm0, %v590_v12, 0.0 }
 0x103   : > { %v642_v18 = vadd.f32 %v12965_v0, %v8783_v7  ;;  %12966 = vst [vmem:[#allocation29_spill] sm:$0xff] %v9035_v47  ;;  %v1307_v63 = vadd.f32 %v1306_v60, %v1305_v50  ;;  %v835_v49 = vrot.slane %v834_v45, 4  ;;  %v1058_v23 = vrot.slane %v358_v61, %v8722_v2 }
 0x104   : > { %v1132_v21 = vadd.f32 %v12967_v17, %v8803_v33  ;;  %7771 = vrsqrt.f32 %v1464_v35  ;;  %v1065_v7 = vrot.slane %v358_v61, %v8724_v3  ;;  %v9043_v19 = vadd.f32 %v828_v30, %v827_v58 }
 0x105   : > { %v643_v39 = vrot.slane %v642_v18, 1  ;;  %v1072_v59 = vrot.slane %v358_v61, %v8726_v4  ;;  %v1079_v10 = vrot.slane %v358_v61, %v8728_v5  ;;  %v842_v24 = vrot.slane %v841_v20, 4 }
 0x106   : > { %v1370_v33 = vmul.f32 0.001953125, %v1132_v21  ;;  %v1308_v28 = vsel %vm623_vm0, %v1058_v23, 0.0  ;;  %v1315_v51 = vsel %vm623_vm0, %v1065_v7, 0.0  ;;  %v9049_v11 = vadd.f32 %v823_v27, %v822_v46 }
 0x107   : > { %v644_v57 = vadd.f32 %v643_v39, %v642_v18  ;;  %v1309_v12 = vrot.slane %v1308_v28, 4  ;;  %v1316_v60 = vrot.slane %v1315_v51, 4  ;;  %v836_v3 = vadd.f32 %v835_v49, %v834_v45 }
 0x108   : > { %v1322_v58 = vsel %vm623_vm0, %v1072_v59, 0.0  ;;  %v1329_v1 = vsel %vm623_vm0, %v1079_v10, 0.0  ;;  %v12968_v4 = vrot.slane %v8785_v8, 2  ;;  %v9060_v18 = vadd.f32 %v842_v24, %v841_v20 }
 0x109   : > { %v9051_v50 = vmul.f32 0.001953125, %v644_v57  ;;  %v1310_v30 = vadd.f32 %v1309_v12, %v1308_v28  ;;  %v1317_v0 = vadd.f32 %v1316_v60, %v1315_v51  ;;  %v1323_v46 = vrot.slane %v1322_v58, 4 }
 0x10a   : > { %v649_v5 = vadd.f32 %v12968_v4, %v8785_v8  ;;  %v1330_v61 = vrot.slane %v1329_v1, 4  ;;  %v12969_v45 = vrot.slane %v8805_v34, 1  ;;  %v837_v8 = vrot.slane %v836_v3, 2 }
 0x10b   : > { %v1402_v35 = vmul.f32 %v9051_v50, %v9051_v50  ;;  %v1311_v39 = vrot.slane %v1310_v30, 2  ;;  %v1318_v49 = vrot.slane %v1317_v0, 2  ;;  %v1324_v23 = vadd.f32 %v1323_v46, %v1322_v58  ;;  %v7770_v7 = vpop.eup %7769 }
 0x10c   : > { %v650_v17 = vrot.slane %v649_v5, 1  ;;  %v1139_v21 = vadd.f32 %v12969_v45, %v8805_v34  ;;  %v1331_v57 = vadd.f32 %v1330_v61, %v1329_v1  ;;  %v12970_v20 = vcombine.high %v8742_v16, %v8742_v16 }
 0x10d   : > { %v1434_v27 = vsub.f32 %v1370_v33, %v1402_v35  ;;  %v1312_v12 = vadd.f32 %v1311_v39, %v1310_v30  ;;  %v1319_v60 = vadd.f32 %v1318_v49, %v1317_v0  ;;  %v1325_v34 = vrot.slane %v1324_v23, 2 }
 0x10e   : > { %v651_v59 = vadd.f32 %v650_v17, %v649_v5  ;;  %v1371_v10 = vmul.f32 0.001953125, %v1139_v21  ;;  %v7772_v28 = vpop.eup %7771  ;;  %v1713_v24 = vmul.f32 %v7770_v7, %v12970_v20  ;;  %v1332_v33 = vrot.slane %v1331_v57, 2 }
 0x10f   : > { %v1466_v51 = vadd.f32 1e-05, %v1434_v27  ;;  %v1712_v4 = vmul.f32 %v7772_v28, %v8742_v16  ;;  %v1313_v1 = vrot.slane %v1312_v12, 1  ;;  %v1320_v5 = vrot.slane %v1319_v60, 1 }
 0x110   : > { %v9069_v35 = vmul.f32 0.001953125, %v651_v59  ;;  %1982 = vperm.xlu1 %7760, %v1713_v24   ;;  %v9072_v58 = vmul.f32 %v1713_v24, %v9007_v32  ;;  %v9074_v46 = vmul.f32 0.001953125, %v1293_v29  ;;  %v1326_v30 = vadd.f32 %v1325_v34, %v1324_v23  ;;  %v12986_v29 = vld [vmem:[#allocation17_spill] sm:$0xff] }
 0x111   : > { %7773 = vrsqrt.f32 %v1466_v51  ;;  %1970 = vperm.xlu0 %7759, %v1712_v4   ;;  %v9077_v61 = vmul.f32 %v1712_v4, %v9009_v54  ;;  %v9081_v0 = vmul.f32 0.001953125, %v1307_v63  ;;  %v9083_v17 = vadd.f32 %v837_v8, %v836_v3  ;;  %v1530_v3 = vld [vmem:[%s12558_s1 + $0x10] sm:$0xff] }
 0x112   : > { %v1403_v16 = vmul.f32 %v9069_v35, %v9069_v35  ;;  %v1333_v45 = vadd.f32 %v1332_v33, %v1331_v57  ;;  %v12971_v32 = vrot.slane %v8849_v22, 2  ;;  %v1314_v54 = vadd.f32 %v1313_v1, %v1312_v12 }
 0x113   : > { %v1321_v63 = vadd.f32 %v1320_v5, %v1319_v60  ;;  %v1327_v8 = vrot.slane %v1326_v30, 1  ;;  %v12972_v59 = vrot.slane %v8807_v41, 2  ;;  %v12973_v51 = vrot.slane %v8853_v56, 2 }
 0x114   : > { %v691_v21 = vadd.f32 %v12971_v32, %v8849_v22  ;;  %v1435_v39 = vsub.f32 %v1371_v10, %v1403_v16  ;;  %v9097_v22 = vrot.slane %v1530_v3, %v8730_v6  ;;  %v1334_v20 = vrot.slane %v1333_v45, 1 }
 0x115   : > { %v656_v28 = vadd.f32 %v12972_v59, %v8807_v41  ;;  %v705_v12 = vadd.f32 %v12973_v51, %v8853_v56  ;;  %v9106_v60 = vmul.f32 0.001953125, %v1314_v54  ;;  %v1560_v4 = vcombine.high %v8757_v36, %v8757_v36 }
 0x116   : > { %v692_v7 = vrot.slane %v691_v21, 1  ;;  %v1467_v57 = vadd.f32 1e-05, %v1435_v39  ;;  %v9110_v33 = vmul.f32 0.001953125, %v1321_v63  ;;  %v12974_v5 = vrot.slane %v8809_v42, 2 }
 0x117   : > { %v657_v34 = vrot.slane %v656_v28, 1  ;;  %v706_v41 = vrot.slane %v705_v12, 1  ;;  %v9117_v32 = vadd.f32 %v1327_v8, %v1326_v30  ;;  %v1593_v56 = vcombine.high %v9097_v22, %v9097_v22 }
 0x118   : > { %v693_v24 = vadd.f32 %v692_v7, %v691_v21  ;;  %7775 = vrsqrt.f32 %v1467_v57  ;;  %v663_v16 = vadd.f32 %v12974_v5, %v8809_v42  ;;  %v12975_v54 = vrot.slane %v8761_v38, 2 }
 0x119   : > { %v658_v21 = vadd.f32 %v657_v34, %v656_v28  ;;  %v9124_v63 = vadd.f32 %v1334_v20, %v1333_v45  ;;  %v707_v59 = vadd.f32 %v706_v41, %v705_v12  ;;  %v1578_v8 = vcombine.high %v1530_v3, %v1530_v3 }
 0x11a   : > { %v9112_v1 = vmul.f32 0.001953125, %v693_v24  ;;  %v719_v39 = vadd.f32 %v12975_v54, %v8761_v38  ;;  %v664_v24 = vrot.slane %v663_v16, 1  ;;  %v9135_v38 = vld [vmem:[%s12558_s1 + $0x8] sm:$0xff]  ;;  %v12976_v12 = vrot.slane %v8823_v62, 2 }
 0x11b   : > { %v7774_v7 = vpop.eup %7773  ;;  %v9129_v30 = vmul.f32 0.001953125, %v658_v21  ;;  %v9137_v45 = vmul.f32 0.001953125, %v707_v59 }
 0x11c   : > { %v1409_v57 = vmul.f32 %v9112_v1, %v9112_v1  ;;  %v1714_v42 = vmul.f32 %v7774_v7, %v8757_v36  ;;  %v720_v51 = vrot.slane %v719_v39, 1  ;;  %v665_v20 = vadd.f32 %v664_v24, %v663_v16 }
 0x11d   : > { %v670_v34 = vadd.f32 %v12976_v12, %v8823_v62  ;;  %v1404_v3 = vmul.f32 %v9129_v30, %v9129_v30  ;;  %v1411_v16 = vmul.f32 %v9137_v45, %v9137_v45 }
 0x11e   : > { %v1441_v28 = vsub.f32 %v8925_v55, %v1409_v57  ;;  %v9143_v36 = vmul.f32 %v1714_v42, %v9051_v50  ;;  %1994 = vperm.xlu1 %7760, %v1714_v42   ;;  %v9149_v55 = vrot.slane %v9135_v38, %v8730_v6  ;;  %v721_v41 = vadd.f32 %v720_v51, %v719_v39 }
 0x11f   : > { %v9153_v21 = vmul.f32 0.001953125, %v665_v20  ;;  %v671_v54 = vrot.slane %v670_v34, 1  ;;  %v1436_v62 = vsub.f32 %v8875_v52, %v1404_v3  ;;  %v9157_v50 = vrot.slane %v1578_v8, %v8730_v6 }
 0x120   : > { %v1473_v5 = vadd.f32 1e-05, %v1441_v28  ;;  %v9159_v7 = vmul.f32 0.001953125, %v721_v41  ;;  %v12977_v57 = vrot.slane %v8765_v40, 2  ;;  %v1443_v39 = vsub.f32 %v8929_v48, %v1411_v16  ;;  %v1531_v48 = vld [vmem:[%s12558_s1 + $0x18] sm:$0xff] }
 0x121   : > { %v1405_v24 = vmul.f32 %v9153_v21, %v9153_v21  ;;  %v672_v42 = vadd.f32 %v671_v54, %v670_v34  ;;  %v1468_v28 = vadd.f32 1e-05, %v1436_v62  ;;  %v1576_v52 = vcombine.high %v9149_v55, %v9149_v55  ;;  %v12978_v34 = vld [vmem:[#allocation11_spill] sm:$0xff] }
 0x122   : > { %v733_v59 = vadd.f32 %v12977_v57, %v8765_v40  ;;  %7777 = vrsqrt.f32 %v1473_v5  ;;  %v7776_v51 = vpop.eup %7775  ;;  %v1413_v8 = vmul.f32 %v9159_v7, %v9159_v7  ;;  %v1475_v3 = vadd.f32 1e-05, %v1443_v39 }
 0x123   : > { %v1715_v12 = vmul.f32 %v7776_v51, %v1560_v4  ;;  %v1437_v40 = vsub.f32 %v8877_v9, %v1405_v24  ;;  %v9175_v41 = vmul.f32 0.001953125, %v672_v42  ;;  %7779 = vrsqrt.f32 %v1468_v28  ;;  %v12979_v42 = vld [vmem:[#allocation5_spill] sm:$0xff] }
 0x124   : > { %v734_v20 = vrot.slane %v733_v59, 1  ;;  %v1445_v5 = vsub.f32 %v12978_v34, %v1413_v8  ;;  %v9179_v16 = vrot.slane %v1531_v48, %v8730_v6  ;;  %7781 = vrsqrt.f32 %v1475_v3 }
 0x125   : > { %v9182_v62 = vmul.f32 %v1715_v12, %v9069_v35  ;;  %2006 = vperm.xlu1 %7760, %v1715_v12   ;;  %v1469_v4 = vadd.f32 1e-05, %v1437_v40  ;;  %v1406_v9 = vmul.f32 %v9175_v41, %v9175_v41  ;;  %v1594_v57 = vcombine.high %v9157_v50, %v9157_v50  ;;  %v12982_v40 = vld [vmem:[#allocation15_spill] sm:$0xff] }
 0x126   : > { %v735_v54 = vadd.f32 %v734_v20, %v733_v59  ;;  %v1477_v39 = vadd.f32 1e-05, %v1445_v5  ;;  %v12980_v51 = vrot.slane %v12979_v42, 2  ;;  %v12981_v59 = vld [vmem:[#allocation8_spill] sm:$0xff]  ;;  %v1595_v20 = vcombine.high %v1531_v48, %v1531_v48 }
 0x127   : > { %7783 = vrsqrt.f32 %v1469_v4  ;;  %v1438_v8 = vsub.f32 %v12981_v59, %v1406_v9  ;;  %v12983_v34 = vrot.slane %v12982_v40, 2  ;;  %v12987_v48 = vrot.slane %v12986_v29, 2  ;;  %v12988_v59 = vld [vmem:[#allocation13_spill] sm:$0xff] }
 0x128   : > { %v9188_v24 = vmul.f32 0.001953125, %v735_v54  ;;  %v677_v28 = vadd.f32 %v12980_v51, %v12979_v42  ;;  %7785 = vrsqrt.f32 %v1477_v39  ;;  %v1561_v42 = vcombine.high %v9135_v38, %v9135_v38  ;;  %v12984_v51 = vld [vmem:[#allocation6_spill] sm:$0xff] }
 0x129   : > { %v747_v5 = vadd.f32 %v12983_v34, %v12982_v40  ;;  %v1470_v54 = vadd.f32 1e-05, %v1438_v8  ;;  %v12985_v35 = vrot.slane %v12984_v51, 2  ;;  %v761_v9 = vadd.f32 %v12987_v48, %v12986_v29 }
 0x12a   : > { %v1415_v12 = vmul.f32 %v9188_v24, %v9188_v24  ;;  %v678_v3 = vrot.slane %v677_v28, 1  ;;  %v1610_v39 = vcombine.high %v9179_v16, %v9179_v16  ;;  %v9213_v8 = vrot.slane %v1595_v20, %v8730_v6 }
 0x12b   : > { %v684_v4 = vadd.f32 %v12985_v35, %v12984_v51  ;;  %v748_v27 = vrot.slane %v747_v5, 1  ;;  %7787 = vrsqrt.f32 %v1470_v54  ;;  %v762_v34 = vrot.slane %v761_v9, 1 }
 0x12c   : > { %v1447_v23 = vsub.f32 %v12988_v59, %v1415_v12  ;;  %v679_v10 = vadd.f32 %v678_v3, %v677_v28  ;;  %v7778_v40 = vpop.eup %7777  ;;  %v9221_v49 = vrot.slane %v1561_v42, %v8730_v6  ;;  %v12989_v3 = vld [vmem:[#allocation7_spill] sm:$0xff] }
 0x12d   : > { %v685_v38 = vrot.slane %v684_v4, 1  ;;  %v1721_v35 = vmul.f32 %v7778_v40, %v1593_v56  ;;  %v749_v48 = vadd.f32 %v748_v27, %v747_v5  ;;  %v763_v12 = vadd.f32 %v762_v34, %v761_v9  ;;  %v7780_v59 = vpop.eup %7779  ;;  %v12991_v40 = vld [vmem:[#allocation9_spill] sm:$0xff] }
 0x12e   : > { %v1479_v51 = vadd.f32 1e-05, %v1447_v23  ;;  %v9218_v29 = vmul.f32 0.001953125, %v679_v10  ;;  %v12990_v54 = vrot.slane %v12989_v3, 2  ;;  %v7782_v27 = vpop.eup %7781  ;;  %v1716_v56 = vmul.f32 %v7780_v59, %v9149_v55 }
 0x12f   : > { %v686_v28 = vadd.f32 %v685_v38, %v684_v4  ;;  %2078 = vperm.xlu0 %7759, %v1721_v35   ;;  %v9227_v15 = vmul.f32 %v1721_v35, %v9112_v1  ;;  %v9231_v10 = vmul.f32 0.001953125, %v749_v48  ;;  %v1611_v5 = vcombine.high %v9213_v8, %v9213_v8 }
 0x130   : > { %v698_v20 = vadd.f32 %v12990_v54, %v12989_v3  ;;  %7789 = vrsqrt.f32 %v1479_v51  ;;  %v1407_v23 = vmul.f32 %v9218_v29, %v9218_v29  ;;  %v9238_v4 = vmul.f32 0.001953125, %v763_v12  ;;  %2018 = vperm.xlu1 %7760, %v1716_v56  }
 0x131   : > { %v9236_v42 = vmul.f32 0.001953125, %v686_v28  ;;  %v1723_v9 = vmul.f32 %v7782_v27, %v1594_v57  ;;  %v1417_v38 = vmul.f32 %v9231_v10, %v9231_v10  ;;  %v7784_v35 = vpop.eup %7783  ;;  %v9244_v51 = vmul.f32 %v1716_v56, %v9129_v30  ;;  %v1532_v27 = vld [vmem:[%s12558_s1 + $0x20] sm:$0xff] }
 0x132   : > { %v1439_v1 = vsub.f32 %v12991_v40, %v1407_v23  ;;  %v699_v34 = vrot.slane %v698_v20, 1  ;;  %v1419_v28 = vmul.f32 %v9238_v4, %v9238_v4  ;;  %v12992_v57 = vrot.slane %v8937_v26, 2  ;;  %v7786_v3 = vpop.eup %7785  ;;  %v12993_v40 = vld [vmem:[#allocation18_spill] sm:$0xff] }
 0x133   : > { %v1408_v48 = vmul.f32 %v9236_v42, %v9236_v42  ;;  %v9254_v54 = vmul.f32 %v1723_v9, %v9137_v45  ;;  %2102 = vperm.xlu0 %7759, %v1723_v9   ;;  %v1717_v30 = vmul.f32 %v7784_v35, %v1576_v52  ;;  %v1449_v23 = vsub.f32 %v8971_v43, %v1417_v38 }
 0x134   : > { %v775_v12 = vadd.f32 %v12992_v57, %v8937_v26  ;;  %v1471_v59 = vadd.f32 1e-05, %v1439_v1  ;;  %v1725_v56 = vmul.f32 %v7786_v3, %v1610_v39  ;;  %v1451_v26 = vsub.f32 %v8975_v31, %v1419_v28 }
 0x135   : > { %v1440_v2 = vsub.f32 %v12993_v40, %v1408_v48  ;;  %v700_v57 = vadd.f32 %v699_v34, %v698_v20  ;;  %v9266_v45 = vmul.f32 %v1717_v30, %v9153_v21  ;;  %v1481_v9 = vadd.f32 1e-05, %v1449_v23  ;;  %v7788_v52 = vpop.eup %7787  ;;  %2030 = vperm.xlu1 %7760, %v1717_v30  }
 0x136   : > { %7791 = vrsqrt.f32 %v1471_v59  ;;  %v776_v55 = vrot.slane %v775_v12, 1  ;;  %v1483_v43 = vadd.f32 1e-05, %v1451_v26  ;;  %v1612_v38 = vcombine.high %v1532_v27, %v1532_v27  ;;  %v12997_v59 = vld [vmem:[#allocation22_spill] sm:$0xff] }
 0x137   : > { %v1472_v1 = vadd.f32 1e-05, %v1440_v2  ;;  %v9268_v35 = vmul.f32 0.001953125, %v700_v57  ;;  %v9271_v39 = vmul.f32 0.001953125, %v9117_v32  ;;  %2126 = vperm.xlu0 %7759, %v1725_v56   ;;  %7793 = vrsqrt.f32 %v1481_v9  ;;  %v12994_v2 = vld [vmem:[#allocation3_spill] sm:$0xff] }
 0x138   : > { %v777_v21 = vadd.f32 %v776_v55, %v775_v12  ;;  %v1718_v20 = vmul.f32 %v7788_v52, %v9221_v49  ;;  %v12995_v48 = vrot.slane %v12994_v2, 2  ;;  %v9282_v32 = vrot.slane %v1532_v27, %v8730_v6  ;;  %v12999_v57 = vld [vmem:[#allocation19_spill] sm:$0xff] }
 0x139   : > { %7795 = vrsqrt.f32 %v1472_v1  ;;  %v1410_v34 = vmul.f32 %v9268_v35, %v9268_v35  ;;  %v12998_v12 = vrot.slane %v12997_v59, 2  ;;  %v9292_v26 = vrot.slane %v1612_v38, %v8730_v6 }
 0x13a   : > { %v712_v28 = vadd.f32 %v12995_v48, %v12994_v2  ;;  %v7790_v3 = vpop.eup %7789  ;;  %7797 = vrsqrt.f32 %v1483_v43  ;;  %v9284_v30 = vmul.f32 0.001953125, %v777_v21  ;;  %2042 = vperm.xlu1 %7760, %v1718_v20   ;;  %v9296_v52 = vmul.f32 0.001953125, %v9124_v63  ;;  %v13000_v43 = vld [vmem:[#allocation4_spill] sm:$0xff] }
 0x13b   : > { %v789_v23 = vadd.f32 %v12998_v12, %v12997_v59  ;;  %v9289_v40 = vmul.f32 %v7790_v3, %v1611_v5  ;;  %v1442_v9 = vsub.f32 %v12999_v57, %v1410_v34  ;;  %v13001_v21 = vrot.slane %v13000_v43, 2  ;;  %v13002_v34 = vld [vmem:[#allocation24_spill] sm:$0xff] }
 0x13c   : > { %12996 = vst [vmem:[#allocation11_spill] sm:$0xff] %v9284_v30  ;;  %v713_v55 = vrot.slane %v712_v28, 1  ;;  %v1421_v27 = vmul.f32 %v9284_v30, %v9284_v30  ;;  %v1577_v5 = vcombine.high %v9221_v49, %v9221_v49  ;;  %v13003_v3 = vrot.slane %v13002_v34, 2 }
 0x13d   : > { %v790_v1 = vrot.slane %v789_v23, 1  ;;  %v726_v2 = vadd.f32 %v13001_v21, %v13000_v43  ;;  %2150 = vperm.xlu0 %7759, %v9289_v40   ;;  %v1474_v38 = vadd.f32 1e-05, %v1442_v9  ;;  %v1627_v59 = vcombine.high %v9282_v32, %v9282_v32 }
 0x13e   : > { %v714_v48 = vadd.f32 %v713_v55, %v712_v28  ;;  %v803_v63 = vadd.f32 %v13003_v3, %v13002_v34  ;;  %v1453_v12 = vsub.f32 %v9022_v53, %v1421_v27  ;;  %v1628_v43 = vcombine.high %v9292_v26, %v9292_v26  ;;  %v1533_v34 = vld [vmem:[%s12558_s1 + $0x28] sm:$0xff] }
 0x13f   : > { %v791_v57 = vadd.f32 %v790_v1, %v789_v23  ;;  %v727_v31 = vrot.slane %v726_v2, 1  ;;  %7799 = vrsqrt.f32 %v1474_v38  ;;  %v9317_v28 = vmul.f32 %v1725_v56, %v9159_v7 }
 0x140   : > { %v9314_v21 = vmul.f32 0.001953125, %v714_v48  ;;  %v804_v49 = vrot.slane %v803_v63, 1  ;;  %v7792_v9 = vpop.eup %7791  ;;  %v1485_v55 = vadd.f32 1e-05, %v1453_v12  ;;  %v9325_v27 = vrot.slane %v1533_v34, %v8730_v6  ;;  %v13005_v12 = vld [vmem:[#allocation14_spill] sm:$0xff] }
 0x141   : > { %v9322_v3 = vmul.f32 0.001953125, %v791_v57  ;;  %v728_v53 = vadd.f32 %v727_v31, %v726_v2  ;;  %v1719_v23 = vmul.f32 %v7792_v9, %v1577_v5  ;;  %v7794_v48 = vpop.eup %7793  ;;  %v13006_v57 = vrot.slane %v13005_v12, 2  ;;  %v13007_v9 = vld [vmem:[#allocation10_spill] sm:$0xff] }
 0x142   : > { %v1412_v1 = vmul.f32 %v9314_v21, %v9314_v21  ;;  %v805_v38 = vadd.f32 %v804_v49, %v803_v63  ;;  %7801 = vrsqrt.f32 %v1485_v55  ;;  %v9337_v2 = vmul.f32 %v1718_v20, %v9175_v41 }
 0x143   : > { %13004 = vst [vmem:[#allocation5_spill] sm:$0xff] %v9322_v3  ;;  %v1423_v7 = vmul.f32 %v9322_v3, %v9322_v3  ;;  %v9331_v56 = vmul.f32 0.001953125, %v728_v53  ;;  %v740_v30 = vadd.f32 %v13006_v57, %v13005_v12  ;;  %v7796_v31 = vpop.eup %7795  ;;  %2054 = vperm.xlu1 %7760, %v1719_v23   ;;  %v1729_v5 = vmul.f32 %v7794_v48, %v1627_v59  ;;  %v13008_v48 = vld [vmem:[#allocation12_spill] sm:$0xff] }
 0x144   : > { %v1444_v47 = vsub.f32 %v13007_v9, %v1412_v1  ;;  %v9340_v63 = vmul.f32 0.001953125, %v805_v38  ;;  %v7798_v49 = vpop.eup %7797  ;;  %v1720_v55 = vmul.f32 %v7796_v31, %v9097_v22  ;;  %v1629_v59 = vcombine.high %v1533_v34, %v1533_v34 }
 0x145   : > { %v1455_v53 = vsub.f32 %v9026_v37, %v1423_v7  ;;  %v1414_v3 = vmul.f32 %v9331_v56, %v9331_v56  ;;  %v741_v13 = vrot.slane %v740_v30, 1  ;;  %2174 = vperm.xlu0 %7759, %v1729_v5   ;;  %v9347_v12 = vmul.f32 %v1729_v5, %v9231_v10 }
 0x146   : > { %v1731_v41 = vmul.f32 %v7798_v49, %v1628_v43  ;;  %v1476_v20 = vadd.f32 1e-05, %v1444_v47  ;;  %v9350_v1 = vmul.f32 %v1720_v55, %v9236_v42  ;;  %v1425_v37 = vmul.f32 %v9340_v63, %v9340_v63 }
 0x147   : > { %v1487_v38 = vadd.f32 1e-05, %v1455_v53  ;;  %v1446_v57 = vsub.f32 %v13008_v48, %v1414_v3  ;;  %2066 = vperm.xlu1 %7760, %v1720_v55   ;;  %v742_v7 = vadd.f32 %v741_v13, %v740_v30  ;;  %v13009_v10 = vrot.slane %v8980_v44, 2  ;;  %v13010_v13 = vld [vmem:[#allocation16_spill] sm:$0xff] }
 0x148   : > { %v9356_v22 = vmul.f32 %v1731_v41, %v9238_v4  ;;  %7803 = vrsqrt.f32 %v1476_v20  ;;  %v1850_v42 = vcombine.low %v9350_v1, %v9227_v15  ;;  %v1457_v34 = vsub.f32 %v9074_v46, %v1425_v37  ;;  %v1534_v46 = vld [vmem:[%s12558_s1 + $0x30] sm:$0xff] }
 0x149   : > { %v817_v47 = vadd.f32 %v13009_v10, %v8980_v44  ;;  %7805 = vrsqrt.f32 %v1487_v38  ;;  %v1478_v43 = vadd.f32 1e-05, %v1446_v57  ;;  %v7800_v3 = vpop.eup %7799  ;;  %2198 = vperm.xlu0 %7759, %v1731_v41   ;;  %v1644_v31 = vcombine.high %v9325_v27, %v9325_v27 }
 0x14a   : > { %v9366_v4 = vmul.f32 0.001953125, %v742_v7  ;;  %v13011_v30 = vrot.slane %v13010_v13, 2  ;;  %v1722_v44 = vmul.f32 %v7800_v3, %v9157_v50  ;;  %v9373_v49 = vrot.slane %v1629_v59, %v8730_v6 }
 0x14b   : > { %v818_v5 = vrot.slane %v817_v47, 1  ;;  %7807 = vrsqrt.f32 %v1478_v43  ;;  %v1489_v55 = vadd.f32 1e-05, %v1457_v34  ;;  %v9379_v53 = vrot.slane %v1534_v46, %v8730_v6 }
 0x14c   : > { %v754_v9 = vadd.f32 %v13011_v30, %v13010_v13  ;;  %v1416_v41 = vmul.f32 %v9366_v4, %v9366_v4  ;;  %v7802_v48 = vpop.eup %7801  ;;  %v9384_v50 = vmul.f32 %v1722_v44, %v9268_v35  ;;  %2090 = vperm.xlu1 %7760, %v1722_v44   ;;  %v13012_v59 = vrot.slane %v9049_v11, 1  ;;  %v13015_v44 = vld [vmem:[#allocation20_spill] sm:$0xff] }
 0x14d   : > { %v819_v20 = vadd.f32 %v818_v5, %v817_v47  ;;  %7809 = vrsqrt.f32 %v1489_v55  ;;  %v13013_v37 = vrot.slane %v9043_v19, 2  ;;  %v9393_v10 = vmul.f32 %v1719_v23, %v9218_v29  ;;  %v13014_v47 = vld [vmem:[#allocation25_spill] sm:$0xff] }
 0x14e   : > { %v755_v38 = vrot.slane %v754_v9, 1  ;;  %v826_v57 = vadd.f32 %v13012_v59, %v9049_v11  ;;  %v9395_v43 = vmul.f32 %v7802_v48, %v1644_v31  ;;  %v1448_v34 = vsub.f32 %v13014_v47, %v1416_v41 }
 0x14f   : > { %v831_v7 = vadd.f32 %v13013_v37, %v9043_v19  ;;  %v9398_v3 = vmul.f32 0.001953125, %v819_v20  ;;  %v9402_v35 = vmul.f32 %v9289_v40, %v9188_v24  ;;  %v1851_v11 = vcombine.low %v9384_v50, %v9254_v54 }
 0x150   : > { %v756_v5 = vadd.f32 %v755_v38, %v754_v9  ;;  %2222 = vperm.xlu0 %7759, %v9395_v43   ;;  %v1645_v19 = vcombine.high %v9373_v49, %v9373_v49  ;;  %v1661_v29 = vcombine.high %v9379_v53, %v9379_v53  ;;  %v1480_v23 = vadd.f32 1e-05, %v1448_v34 }
 0x151   : > { %v832_v13 = vrot.slane %v831_v7, 1  ;;  %v1427_v31 = vmul.f32 %v9398_v3, %v9398_v3  ;;  %v9415_v40 = vmul.f32 0.001953125, %v826_v57  ;;  %v13016_v9 = vrot.slane %v13015_v44, 2 }
 0x152   : > { %v9413_v30 = vmul.f32 0.001953125, %v756_v5  ;;  %v7804_v41 = vpop.eup %7803  ;;  %v1834_v20 = vcombine.low %v9337_v2, %v9393_v10  ;;  %7811 = vrsqrt.f32 %v1480_v23  ;;  %v1646_v48 = vcombine.high %v1534_v46, %v1534_v46  ;;  %v13019_v23 = vld [vmem:[#allocation26_spill] sm:$0xff] }
 0x153   : > { %v833_v24 = vadd.f32 %v832_v13, %v831_v7  ;;  %v768_v55 = vadd.f32 %v13016_v9, %v13015_v44  ;;  %v1459_v38 = vsub.f32 %v9081_v0, %v1427_v31  ;;  %v7806_v59 = vpop.eup %7805  ;;  %v1724_v37 = vmul.f32 %v7804_v41, %v9179_v16 }
 0x154   : > { %v1418_v7 = vmul.f32 %v9413_v30, %v9413_v30  ;;  %v13017_v47 = vrot.slane %v9083_v17, 1  ;;  %v9431_v5 = vmul.f32 %v7806_v59, %v1645_v19  ;;  %v13018_v0 = vrot.slane %v9060_v18, 2 }
 0x155   : > { %v9426_v57 = vmul.f32 0.001953125, %v833_v24  ;;  %v1491_v13 = vadd.f32 1e-05, %v1459_v38  ;;  %v769_v2 = vrot.slane %v768_v55, 1  ;;  %v7808_v10 = vpop.eup %7807  ;;  %v1764_v16 = vmul.f32 %v1724_v37, %v9314_v21  ;;  %2114 = vperm.xlu1 %7760, %v1724_v37  }
 0x156   : > { %v840_v34 = vadd.f32 %v13017_v47, %v9083_v17  ;;  %v845_v46 = vadd.f32 %v13018_v0, %v9060_v18  ;;  %v1450_v31 = vsub.f32 %v13019_v23, %v1418_v7  ;;  %v1428_v24 = vmul.f32 %v9415_v40, %v9415_v40  ;;  %2246 = vperm.xlu0 %7759, %v9431_v5  }
 0x157   : > { %v1429_v17 = vmul.f32 %v9426_v57, %v9426_v57  ;;  %v1726_v19 = vmul.f32 %v7808_v10, %v9213_v8  ;;  %7813 = vrsqrt.f32 %v1491_v13  ;;  %v9445_v44 = vrot.slane %v1646_v48, %v8730_v6  ;;  %v7810_v9 = vpop.eup %7809  ;;  %v13020_v13 = vld [vmem:[#allocation21_spill] sm:$0xff] }
 0x158   : > { %v770_v18 = vadd.f32 %v769_v2, %v768_v55  ;;  %v1867_v21 = vcombine.low %v1764_v16, %v9317_v28  ;;  %v1482_v41 = vadd.f32 1e-05, %v1450_v31  ;;  %v846_v59 = vrot.slane %v845_v46, 1 }
 0x159   : > { %v1461_v38 = vsub.f32 %v9110_v33, %v1429_v17  ;;  %v1766_v37 = vmul.f32 %v1726_v19, %v9331_v56  ;;  %v9450_v7 = vmul.f32 %v7810_v9, %v1661_v29  ;;  %v9454_v0 = vmul.f32 0.001953125, %v840_v34  ;;  %2138 = vperm.xlu1 %7760, %v1726_v19   ;;  %v1535_v56 = vld [vmem:[%s12558_s1 + $0x38] sm:$0xff] }
 0x15a   : > { %v9452_v47 = vmul.f32 0.001953125, %v770_v18  ;;  %7815 = vrsqrt.f32 %v1482_v41  ;;  %v1460_v8 = vsub.f32 %v9106_v60, %v1428_v24  ;;  %v847_v48 = vadd.f32 %v846_v59, %v845_v46 }
 0x15b   : > { %v1493_v55 = vadd.f32 1e-05, %v1461_v38  ;;  %v1868_v28 = vcombine.low %v1766_v37, %v9402_v35  ;;  %2270 = vperm.xlu0 %7759, %v9450_v7   ;;  %v1662_v33 = vcombine.high %v9445_v44, %v9445_v44  ;;  %v1430_v34 = vmul.f32 %v9454_v0, %v9454_v0 }
 0x15c   : > { %v1420_v29 = vmul.f32 %v9452_v47, %v9452_v47  ;;  %v9469_v60 = vrot.slane %v1535_v56, %v8730_v6  ;;  %v9471_v35 = vmul.f32 0.001953125, %v847_v48  ;;  %v13021_v2 = vrot.slane %v13020_v13, 2  ;;  %v7812_v10 = vpop.eup %7811  ;;  %v13023_v48 = vld [vmem:[#allocation23_spill] sm:$0xff] }
 0x15d   : > { %7817 = vrsqrt.f32 %v1493_v55  ;;  %v1462_v23 = vsub.f32 %v9271_v39, %v1430_v34  ;;  %v13022_v31 = vcombine.low %v9244_v51, %v9266_v45  ;;  %v9485_v17 = vrot.slane %v1834_v20, %v8730_v6 }
 0x15e   : > { %v782_v46 = vadd.f32 %v13021_v2, %v13020_v13  ;;  %v1452_v16 = vsub.f32 %v9013_v14, %v1420_v29  ;;  %v1728_v19 = vmul.f32 %v7812_v10, %v9282_v32  ;;  %v1492_v18 = vadd.f32 1e-05, %v1460_v8 }
 0x15f   : > { %v9482_v24 = vrot.slane %v13022_v31, %v8730_v6  ;;  %v1431_v9 = vmul.f32 %v9471_v35, %v9471_v35  ;;  %v1494_v14 = vadd.f32 1e-05, %v1462_v23  ;;  %v9493_v59 = vrot.slane %v1867_v21, %v8730_v6 }
 0x160   : > { %v783_v41 = vrot.slane %v782_v46, 1  ;;  %v1484_v38 = vadd.f32 1e-05, %v1452_v16  ;;  %2162 = vperm.xlu1 %7760, %v1728_v19   ;;  %v1663_v45 = vcombine.high %v1535_v56, %v1535_v56  ;;  %v9497_v32 = vrot.slane %v1868_v28, %v8730_v6 }
 0x161   : > { %v1849_v39 = vcombine.low %v9482_v24, %v9485_v17  ;;  %v1463_v51 = vsub.f32 %v9296_v52, %v1431_v9  ;;  %v7814_v37 = vpop.eup %7813  ;;  %v1392_v8 = vmul.f32 0.001953125, %v9029_v25  ;;  %v1768_v55 = vmul.f32 %v1728_v19, %v9366_v4 }
 0x162   : > { %v784_v20 = vadd.f32 %v783_v41, %v782_v46  ;;  %7819 = vrsqrt.f32 %v1484_v38  ;;  %v13024_v29 = vrot.slane %v13023_v48, 2  ;;  %v9504_v21 = vmul.f32 %v7814_v37, %v1662_v33  ;;  %v13025_v33 = vld [vmem:[#allocation27_spill] sm:$0xff] }
 0x163   : > { %7821 = vrsqrt.f32 %v1492_v18  ;;  %v1678_v52 = vcombine.high %v9469_v60, %v9469_v60  ;;  %v1495_v56 = vadd.f32 1e-05, %v1463_v51  ;;  %v1883_v25 = vcombine.low %v9493_v59, %v9497_v32  ;;  %v1749_v32 = vld [vmem:[%s12559_s2 + $0x28] sm:$0xff] }
 0x164   : > { %v796_v34 = vadd.f32 %v13024_v29, %v13023_v48  ;;  %7823 = vrsqrt.f32 %v1494_v14  ;;  %v9508_v28 = vmul.f32 0.001953125, %v784_v20  ;;  %v7816_v4 = vpop.eup %7815  ;;  %2294 = vperm.xlu0 %7759, %v9504_v21   ;;  %v1677_v2 = vrot.slane %v1663_v45, %v8730_v6  ;;  %v13029_v45 = vld [vmem:[#allocation28_spill] sm:$0xff] }
 0x165   : > { %7825 = vrsqrt.f32 %v1495_v56  ;;  %v13026_v46 = vrot.slane %v13025_v33, 2  ;;  %v13027_v16 = vcombine.low %v9077_v61, %v9072_v58  ;;  %v1884_v31 = vcombine.low %v1768_v55, %v9347_v12 }
 0x166   : > { %v797_v13 = vrot.slane %v796_v34, 1  ;;  %v1730_v19 = vmul.f32 %v7816_v4, %v9292_v26  ;;  %v1422_v18 = vmul.f32 %v9508_v28, %v9508_v28  ;;  %v13028_v14 = vcombine.low %v9143_v36, %v9182_v62 }
 0x167   : > { %v810_v10 = vadd.f32 %v13026_v46, %v13025_v33  ;;  %v9521_v23 = vrot.slane %v13027_v16, %v8730_v6  ;;  %v7818_v41 = vpop.eup %7817  ;;  %v9537_v58 = vrot.slane %v1850_v42, %v8730_v6  ;;  %v9543_v61 = vrot.slane %v1851_v11, %v8730_v6 }
 0x168   : > { %v798_v9 = vadd.f32 %v797_v13, %v796_v34  ;;  %v9531_v51 = vrot.slane %v13028_v14, %v8730_v6  ;;  %v1770_v26 = vmul.f32 %v1730_v19, %v9413_v30  ;;  %2186 = vperm.xlu1 %7760, %v1730_v19   ;;  %v1741_v12 = vmul.f32 %v7818_v41, %v1678_v52  ;;  %v13030_v30 = vld [vmem:[#allocation29_spill] sm:$0xff] }
 0x169   : > { %v811_v38 = vrot.slane %v810_v10, 1  ;;  %v1454_v36 = vsub.f32 %v13029_v45, %v1422_v18  ;;  %v1866_v1 = vcombine.low %v9537_v58, %v9543_v61  ;;  %v9557_v11 = vrot.slane %v1884_v31, %v8730_v6  ;;  %v2649_v61 = vld [vmem:[%s12561_s4 + $0x48] sm:$0xff] }
 0x16a   : > { %v9547_v62 = vmul.f32 0.001953125, %v798_v9  ;;  %v1832_v15 = vcombine.low %v9521_v23, %v9531_v51  ;;  %v1885_v42 = vcombine.low %v1770_v26, %v9356_v22  ;;  %2318 = vperm.xlu0 %7759, %v1741_v12   ;;  %v1394_v37 = vmul.f32 0.001953125, %v13030_v30  ;;  %v13031_v9 = vld [vmem:[#allocation11_spill] sm:$0xff]  ;;  %v2643_v23 = vld [vmem:[%s12561_s4 + $0x18] sm:$0xff]  ;;  %v1748_v51 = vld [vmem:[%s12559_s2 + $0x20] sm:$0xff] }
 0x16b   : > { %v812_v20 = vadd.f32 %v811_v38, %v810_v10  ;;  %v1486_v54 = vadd.f32 1e-05, %v1454_v36  ;;  %v1679_v29 = vcombine.high %v1677_v2, %v1677_v2  ;;  %v1773_v41 = vmul.f32 %v9395_v43, %v13031_v9  ;;  %v1747_v36 = vld [vmem:[%s12559_s2 + $0x18] sm:$0xff] }
 0x16c   : > { %v1424_v50 = vmul.f32 %v9547_v62, %v9547_v62  ;;  %v7820_v48 = vpop.eup %7819  ;;  %v9563_v52 = vrot.slane %v1885_v42, %v8730_v6 }
 0x16d   : > { %v9560_v55 = vmul.f32 0.001953125, %v812_v20  ;;  %7827 = vrsqrt.f32 %v1486_v54  ;;  %v7822_v22 = vpop.eup %7821  ;;  %v1732_v56 = vmul.f32 %v7820_v48, %v9325_v27  ;;  %v1745_v27 = vld [vmem:[%s12559_s2 + $0x8] sm:$0xff] }
 0x16e   : > { %v1456_v34 = vsub.f32 %v1392_v8, %v1424_v50  ;;  %v7824_v4 = vpop.eup %7823  ;;  %v1900_v46 = vcombine.low %v9557_v11, %v9563_v52  ;;  %v1740_v8 = vmul.f32 %v7822_v22, %v9469_v60  ;;  %v1961_v14 = vsub.f32 %v1745_v27, %v1849_v39  ;;  %v2646_v11 = vld [vmem:[%s12561_s4 + $0x30] sm:$0xff] }
 0x16f   : > { %v1426_v13 = vmul.f32 %v9560_v55, %v9560_v55  ;;  %v7826_v10 = vpop.eup %7825  ;;  %2210 = vperm.xlu1 %7760, %v1732_v56   ;;  %v1742_v19 = vmul.f32 %v7824_v4, %v1677_v2  ;;  %v1772_v38 = vmul.f32 %v1732_v56, %v9452_v47  ;;  %v1781_v60 = vmul.f32 %v1741_v12, %v9426_v57  ;;  %v13032_v47 = vld [vmem:[#allocation5_spill] sm:$0xff]  ;;  %v2641_v56 = vld [vmem:[%s12561_s4 + $0x8] sm:$0xff] }
 0x170   : > { %v1488_v33 = vadd.f32 1e-05, %v1456_v34  ;;  %v1743_v31 = vmul.f32 %v7826_v10, %v1679_v29  ;;  %v1780_v26 = vmul.f32 %v1740_v8, %v9415_v40  ;;  %v1775_v20 = vmul.f32 %v9431_v5, %v13032_v47 }
 0x171   : > { %v1458_v16 = vsub.f32 %v1394_v37, %v1426_v13  ;;  %v1782_v2 = vmul.f32 %v1742_v19, %v9454_v0  ;;  %v1901_v42 = vcombine.low %v1772_v38, %v1773_v41  ;;  %v1963_v40 = vsub.f32 %v1747_v36, %v1883_v25  ;;  %v1751_v37 = vld [vmem:[%s12559_s2 + $0x38] sm:$0xff]  ;;  %v1744_v13 = vld [vmem:[%s12559_s2] sm:$0xff] }
 0x172   : > { %7829 = vrsqrt.f32 %v1488_v33  ;;  %2342 = vperm.xlu0 %7759, %v1743_v31   ;;  %v1783_v45 = vmul.f32 %v1743_v31, %v9471_v35  ;;  %v1935_v57 = vcombine.low %v1780_v26, %v1781_v60  ;;  %v1777_v29 = vmul.f32 %v9450_v7, %v9340_v63  ;;  %v1746_v7 = vld [vmem:[%s12559_s2 + $0x10] sm:$0xff] }
 0x173   : > { %v1490_v18 = vadd.f32 1e-05, %v1458_v16  ;;  %v1909_v54 = vrot.slane %v1901_v42, %v8730_v6  ;;  %v1779_v34 = vmul.f32 %v9504_v21, %v9398_v3  ;;  %v1960_v63 = vsub.f32 %v1744_v13, %v1832_v15  ;;  %v2647_v3 = vld [vmem:[%s12561_s4 + $0x38] sm:$0xff]  ;;  %v2640_v16 = vld [vmem:[%s12561_s4] sm:$0xff] }
 0x174   : > { %v1936_v0 = vcombine.low %v1782_v2, %v1783_v45  ;;  %v1943_v50 = vrot.slane %v1935_v57, %v8730_v6  ;;  %v1962_v21 = vsub.f32 %v1746_v7, %v1866_v1  ;;  %v1964_v15 = vsub.f32 %v1748_v51, %v1900_v46  ;;  %v1750_v1 = vld [vmem:[%s12559_s2 + $0x30] sm:$0xff] }
 0x175   : > { %7831 = vrsqrt.f32 %v1490_v18  ;;  %v12599_v52 = vmov 0.0   ;;  %v2642_v46 = vld [vmem:[%s12561_s4 + $0x10] sm:$0xff] }
 0x176   : > { %2567 = vperm.xlu0 %7759, %v1961_v14   ;;  %v1950_v59 = vrot.slane %v1936_v0, %v8730_v6  ;;  %2921 = vmatprep.mubr.f32.mxu0 %v12599_v52 }
 0x177   : > { %v7828_v43 = vpop.eup %7827  ;;  %3023 = vmatprep.mubr.f32.mxu1 %v12599_v52 }
 0x178   : > { %v1734_v24 = vmul.f32 %v7828_v43, %v9373_v49 }
 0x17a   : > { %v1774_v35 = vmul.f32 %v1734_v24, %v9508_v28  ;;  %2234 = vperm.xlu1 %7760, %v1734_v24   ;;  %2577 = vperm.xlu0 %7759, %v1963_v40  }
 0x17c   : > { %v7830_v17 = vpop.eup %7829  ;;  %v1902_v39 = vcombine.low %v1774_v35, %v1775_v20 }
 0x17d   : > { %v1736_v12 = vmul.f32 %v7830_v17, %v9379_v53  ;;  %v1951_v53 = vcombine.low %v1943_v50, %v1950_v59 }
 0x17e   : > { %v1916_v49 = vrot.slane %v1902_v39, %v8730_v6 }
 0x17f   : > { %v7832_v5 = vpop.eup %7831  ;;  %2258 = vperm.xlu1 %7760, %v1736_v12   ;;  %v1967_v48 = vsub.f32 %v1751_v37, %v1951_v53  ;;  %v1776_v22 = vmul.f32 %v1736_v12, %v9547_v62  ;;  %v13033_v12 = vld [vmem:[#allocation2_spill] sm:$0xff] }
 0x180   : > { %v1917_v28 = vcombine.low %v1909_v54, %v1916_v49  ;;  %v1738_v25 = vmul.f32 %v7832_v5, %v9445_v44 }
 0x181   : > { %v1918_v4 = vcombine.low %v1776_v22, %v1777_v29 }
 0x182   : > { %v1965_v30 = vsub.f32 %v1749_v32, %v1917_v28  ;;  %v1778_v44 = vmul.f32 %v1738_v25, %v9560_v55 }
 0x183   : > { %2282 = vperm.xlu1 %7760, %v1738_v25   ;;  %v1926_v62 = vrot.slane %v1918_v4, %v8730_v6 }
 0x184   : > { %2587 = vperm.xlu0 %7759, %v1965_v30   ;;  %v1919_v33 = vcombine.low %v1778_v44, %v1779_v34 }
 0x186   : > { %v1933_v55 = vrot.slane %v1919_v33, %v8730_v6 }
 0x187   : > { %2306 = vperm.xlu1 %7760, %v1740_v8   ;;  %v2648_v8 = vld [vmem:[%s12561_s4 + $0x40] sm:$0xff] }
 0x188   : > { %2597 = vperm.xlu0 %7759, %v1967_v48   ;;  %v1934_v58 = vcombine.low %v1926_v62, %v1933_v55 }
 0x18a   : > { %v1966_v10 = vsub.f32 %v1750_v1, %v1934_v58 }
 0x18b   : > { %2330 = vperm.xlu1 %7760, %v1742_v19  }
 0x18c   : > { %2671 = vperm.xlu0 %7759, %v2641_v56  }
 0x18f   : > { %2562 = vperm.xlu1 %7760, %v1960_v63   ;;  %v1983_v31 = vpop.permute.xlu1 %1982 }
 0x190   : > { %2701 = vperm.xlu0 %7759, %v2647_v3   ;;  %v1971_v9 = vpop.permute.xlu0 %1970  ;;  %v1991_v49 = vrot.slane %v1983_v31, %v13033_v12 }
 0x191   : > { %v1979_v50 = vrot.slane %v1971_v9, %v13033_v12 }
 0x193   : > { %2572 = vperm.xlu1 %7760, %v1962_v21   ;;  %v2384_v37 = vcombine.low %v1979_v50, %v1991_v49  ;;  %v8603_v50 = vld [vmem:[%s8704_s29] sm:$0xff] }
 0x194   : > { %2681 = vperm.xlu0 %7759, %v2643_v23  }
 0x195   : > { %v2392_v55 = vrot.slane %v2384_v37, %v8730_v6 }
 0x197   : > { %2582 = vperm.xlu1 %7760, %v1964_v15  }
 0x198   : > { %2711 = vperm.xlu0 %7759, %v2649_v61  }
 0x19b   : > { %2592 = vperm.xlu1 %7760, %v1966_v10  }
 0x19d   : > { %v1995_v19 = vpop.permute.xlu1 %1994 }
 0x19e   : > { %v2003_v59 = vrot.slane %v1995_v19, %v13033_v12 }
 0x19f   : > { %2666 = vperm.xlu1 %7760, %v2640_v16  }
 0x1a3   : > { %2696 = vperm.xlu1 %7760, %v2646_v11  }
 0x1a4   : > { %v2007_v27 = vpop.permute.xlu1 %2006 }
 0x1a5   : > { %v2015_v54 = vrot.slane %v2007_v27, %v13033_v12 }
 0x1a7   : > { %2676 = vperm.xlu1 %7760, %v2642_v46   ;;  %v2385_v28 = vcombine.low %v2003_v59, %v2015_v54  ;;  %v8602_v54 = vld [vmem:[%s8704_s29 + $0x18] sm:$0xff] }
 0x1a9   : > { %v2399_v4 = vrot.slane %v2385_v28, %v8730_v6 }
 0x1ab   : > { %2706 = vperm.xlu1 %7760, %v2648_v8   ;;  %v2401_v61 = vcombine.high %v2392_v55, %v2399_v4  ;;  %v2400_v8 = vcombine.low %v2392_v55, %v2399_v4  ;;  %v8606_v4 = vld [vmem:[%s8704_s29 + $0x28] sm:$0xff] }
 0x1ad   : > { %v2544_v59 = vmul.f32 %v8603_v50, %v2400_v8  ;;  %v8611_v50 = vld [vmem:[%s8704_s29 + $0x40] sm:$0xff] }
 0x1ae   : > { %v2079_v38 = vpop.permute.xlu0 %2078 }
 0x1af   : > { %v2019_v18 = vpop.permute.xlu1 %2018  ;;  %v2087_v33 = vrot.slane %v2079_v38, %v13033_v12 }
 0x1b0   : > { %v2027_v29 = vrot.slane %v2019_v18, %v13033_v12 }
 0x1b2   : > { %v2103_v26 = vpop.permute.xlu0 %2102 }
 0x1b3   : > { %v2111_v34 = vrot.slane %v2103_v26, %v13033_v12 }
 0x1b4   : > { %v2031_v41 = vpop.permute.xlu1 %2030 }
 0x1b5   : > { %v2039_v25 = vrot.slane %v2031_v41, %v13033_v12 }
 0x1b6   : > { %v2127_v2 = vpop.permute.xlu0 %2126 }
 0x1b7   : > { %v2402_v63 = vcombine.low %v2027_v29, %v2039_v25  ;;  %v2135_v15 = vrot.slane %v2127_v2, %v13033_v12  ;;  %v8605_v29 = vld [vmem:[%s8704_s29 + $0x20] sm:$0xff] }
 0x1b9   : > { %v2043_v14 = vpop.permute.xlu1 %2042  ;;  %v2410_v1 = vrot.slane %v2402_v63, %v8730_v6 }
 0x1ba   : > { %v2051_v30 = vrot.slane %v2043_v14, %v13033_v12 }
 0x1bc   : > { %v2151_v36 = vpop.permute.xlu0 %2150 }
 0x1bd   : > { %v2159_v7 = vrot.slane %v2151_v36, %v13033_v12 }
 0x1c2   : > { %v2055_v60 = vpop.permute.xlu1 %2054 }
 0x1c3   : > { %v2063_v32 = vrot.slane %v2055_v60, %v13033_v12 }
 0x1c4   : > { %v9661_v47 = vpop.permute.xlu0 %2174 }
 0x1c5   : > { %v2403_v22 = vcombine.low %v2051_v30, %v2063_v32 }
 0x1c6   : > { %v2067_v45 = vpop.permute.xlu1 %2066 }
 0x1c7   : > { %v2075_v44 = vrot.slane %v2067_v45, %v13033_v12  ;;  %v2417_v23 = vrot.slane %v2403_v22, %v8730_v6  ;;  %v8601_v45 = vld [vmem:[%s8704_s29 + $0x8] sm:$0xff] }
 0x1c8   : > { %v9663_v42 = vpop.permute.xlu0 %2198  ;;  %v2545_v36 = vmul.f32 %v8601_v45, %v2401_v61 }
 0x1c9   : > { %v2420_v51 = vcombine.low %v2075_v44, %v2087_v33  ;;  %v2418_v19 = vcombine.low %v2410_v1, %v2417_v23  ;;  %v2419_v27 = vcombine.high %v2410_v1, %v2417_v23  ;;  %v2207_v26 = vrot.slane %v9663_v42, %v13033_v12  ;;  %v8607_v23 = vld [vmem:[%s8704_s29 + $0x30] sm:$0xff] }
 0x1cb   : > { %v2091_v43 = vpop.permute.xlu1 %2090  ;;  %v2428_v18 = vrot.slane %v2420_v51, %v8730_v6  ;;  %v2547_v49 = vmul.f32 %v8602_v54, %v2419_v27 }
 0x1cc   : > { %v2099_v53 = vrot.slane %v2091_v43, %v13033_v12 }
 0x1ce   : > { %v2421_v3 = vcombine.low %v2099_v53, %v2111_v34 }
 0x1cf   : > { %v9665_v40 = vpop.permute.xlu0 %2222 }
 0x1d0   : > { %v2435_v10 = vrot.slane %v2421_v3, %v8730_v6 }
 0x1d2   : > { %v2436_v60 = vcombine.low %v2428_v18, %v2435_v10  ;;  %v2437_v43 = vcombine.high %v2428_v18, %v2435_v10 }
 0x1d4   : > { %v2115_v20 = vpop.permute.xlu1 %2114  ;;  %v2549_v33 = vmul.f32 %v8606_v4, %v2437_v43  ;;  %v8609_v43 = vld [vmem:[%s8704_s29 + $0x50] sm:$0xff]  ;;  %v8615_v4 = vld [vmem:[%s8704_s29 + $0x60] sm:$0xff] }
 0x1d5   : > { %v2247_v0 = vpop.permute.xlu0 %2246  ;;  %v2123_v21 = vrot.slane %v2115_v20, %v13033_v12  ;;  %v2231_v20 = vrot.slane %v9665_v40, %v13033_v12 }
 0x1d6   : > { %v2255_v9 = vrot.slane %v2247_v0, %v13033_v12 }
 0x1d7   : > { %v2438_v11 = vcombine.low %v2123_v21, %v2135_v15 }
 0x1d8   : > { %v2139_v24 = vpop.permute.xlu1 %2138 }
 0x1d9   : > { %v2147_v13 = vrot.slane %v2139_v24, %v13033_v12  ;;  %v2446_v24 = vrot.slane %v2438_v11, %v8730_v6 }
 0x1da   : > { %v9671_v17 = vpop.permute.xlu0 %2270 }
 0x1db   : > { %v2439_v58 = vcombine.low %v2147_v13, %v2159_v7  ;;  %v2279_v63 = vrot.slane %v9671_v17, %v13033_v12 }
 0x1dd   : > { %v2453_v41 = vrot.slane %v2439_v58, %v8730_v6  ;;  %v8608_v58 = vld [vmem:[%s8704_s29 + $0x38] sm:$0xff] }
 0x1df   : > { %v9667_v57 = vpop.permute.xlu1 %2162  ;;  %v2454_v30 = vcombine.low %v2446_v24, %v2453_v41  ;;  %v2455_v37 = vcombine.high %v2446_v24, %v2453_v41  ;;  %v8610_v24 = vld [vmem:[%s8704_s29 + $0x58] sm:$0xff] }
 0x1e0   : > { %v2171_v2 = vrot.slane %v9667_v57, %v13033_v12  ;;  %v8604_v57 = vld [vmem:[%s8704_s29 + $0x10] sm:$0xff] }
 0x1e1   : > { %v2546_v32 = vmul.f32 %v8604_v57, %v2418_v19  ;;  %v2550_v51 = vmul.f32 %v8607_v23, %v2454_v30  ;;  %v2551_v61 = vmul.f32 %v8608_v58, %v2455_v37 }
 0x1e3   : > { %v9676_v5 = vpop.permute.xlu0 %2294 }
 0x1e4   : > { %v2303_v3 = vrot.slane %v9676_v5, %v13033_v12 }
 0x1e7   : > { %v9669_v35 = vpop.permute.xlu1 %2186 }
 0x1e8   : > { %v2195_v38 = vrot.slane %v9669_v35, %v13033_v12 }
 0x1e9   : > { %v9688_v56 = vpop.permute.xlu0 %2318 }
 0x1ea   : > { %v2457_v28 = vcombine.low %v2195_v38, %v2207_v26  ;;  %v2327_v34 = vrot.slane %v9688_v56, %v13033_v12 }
 0x1ec   : > { %v2471_v56 = vrot.slane %v2457_v28, %v8730_v6 }
 0x1ee   : > { %v9673_v39 = vpop.permute.xlu1 %2210 }
 0x1ef   : > { %v2219_v14 = vrot.slane %v9673_v39, %v13033_v12  ;;  %v2183_v39 = vrot.slane %v9661_v47, %v13033_v12  ;;  %v2548_v47 = vmul.f32 %v8605_v29, %v2436_v60 }
 0x1f1   : > { %v2343_v16 = vpop.permute.xlu0 %2342  ;;  %v2474_v25 = vcombine.low %v2219_v14, %v2231_v20  ;;  %v2456_v53 = vcombine.low %v2171_v2, %v2183_v39 }
 0x1f2   : > { %v2351_v7 = vrot.slane %v2343_v16, %v13033_v12 }
 0x1f3   : > { %v2482_v55 = vrot.slane %v2474_v25, %v8730_v6  ;;  %v2464_v15 = vrot.slane %v2456_v53, %v8730_v6 }
 0x1f5   : > { %v2568_v42 = vpop.permute.xlu0 %2567  ;;  %v2472_v41 = vcombine.low %v2464_v15, %v2471_v56  ;;  %v2473_v38 = vcombine.high %v2464_v15, %v2471_v56 }
 0x1f6   : > { %v2602_v27 = vadd.f32 %v2568_v42, %v2546_v32 }
 0x1f9   : > { %v2235_v48 = vpop.permute.xlu1 %2234  ;;  %v2578_v1 = vpop.permute.xlu0 %2577 }
 0x1fa   : > { %v2243_v46 = vrot.slane %v2235_v48, %v13033_v12  ;;  %v2606_v18 = vadd.f32 %v2578_v1, %v2550_v51  ;;  %v2607_v14 = vadd.f32 %v2578_v1, %v2551_v61  ;;  %v2616_v61 = vld [vmem:[%s12560_s3] sm:$0xff]  ;;  %v2617_v1 = vld [vmem:[%s12560_s3 + $0x8] sm:$0xff] }
 0x1fc   : > { %v2475_v0 = vcombine.low %v2243_v46, %v2255_v9 }
 0x1fe   : > { %v9695_v62 = vpop.permute.xlu1 %2258  ;;  %v2489_v22 = vrot.slane %v2475_v0, %v8730_v6 }
 0x1ff   : > { %v2267_v44 = vrot.slane %v9695_v62, %v13033_v12 }
 0x200   : > { %v2490_v5 = vcombine.low %v2482_v55, %v2489_v22  ;;  %v2491_v46 = vcombine.high %v2482_v55, %v2489_v22  ;;  %v8614_v22 = vld [vmem:[%s8704_s29 + $0x70] sm:$0xff] }
 0x201   : > { %v2492_v11 = vcombine.low %v2267_v44, %v2279_v63  ;;  %v8616_v63 = vld [vmem:[%s8704_s29 + $0x68] sm:$0xff] }
 0x202   : > { %v2283_v31 = vpop.permute.xlu1 %2282  ;;  %v2554_v20 = vmul.f32 %v8609_v43, %v2490_v5  ;;  %v2621_v5 = vld [vmem:[%s12560_s3 + $0x28] sm:$0xff]  ;;  %v2639_v43 = vld [vmem:[%s12560_s3 + $0xb8] sm:$0xff] }
 0x203   : > { %v2291_v48 = vrot.slane %v2283_v31, %v13033_v12  ;;  %v2500_v45 = vrot.slane %v2492_v11, %v8730_v6  ;;  %v2588_v39 = vpop.permute.xlu0 %2587  ;;  %v2620_v11 = vld [vmem:[%s12560_s3 + $0x20] sm:$0xff] }
 0x205   : > { %v2493_v17 = vcombine.low %v2291_v48, %v2303_v3  ;;  %v8613_v48 = vld [vmem:[%s8704_s29 + $0x78] sm:$0xff] }
 0x206   : > { %v2307_v35 = vpop.permute.xlu1 %2306 }
 0x207   : > { %v2315_v40 = vrot.slane %v2307_v35, %v13033_v12  ;;  %v2507_v26 = vrot.slane %v2493_v17, %v8730_v6  ;;  %v2618_v17 = vld [vmem:[%s12560_s3 + $0x10] sm:$0xff] }
 0x209   : > { %v2510_v62 = vcombine.low %v2315_v40, %v2327_v34  ;;  %v2508_v25 = vcombine.low %v2500_v45, %v2507_v26  ;;  %v2509_v30 = vcombine.high %v2500_v45, %v2507_v26  ;;  %v2610_v40 = vadd.f32 %v2588_v39, %v2554_v20  ;;  %v2631_v26 = vld [vmem:[%s12560_s3 + $0x78] sm:$0xff]  ;;  %v2638_v45 = vld [vmem:[%s12560_s3 + $0xb0] sm:$0xff] }
 0x20a   : > { %v2331_v13 = vpop.permute.xlu1 %2330 }
 0x20b   : > { %v2339_v21 = vrot.slane %v2331_v13, %v13033_v12  ;;  %v2603_v12 = vadd.f32 %v2568_v42, %v2547_v49  ;;  %v2518_v9 = vrot.slane %v2510_v62, %v8730_v6  ;;  %v2598_v13 = vpop.permute.xlu0 %2597  ;;  %v2557_v3 = vmul.f32 %v8616_v63, %v2509_v30 }
 0x20d   : > { %v2511_v10 = vcombine.low %v2339_v21, %v2351_v7 }
 0x20e   : > { %v2563_v16 = vpop.permute.xlu1 %2562 }
 0x20f   : > { %v2525_v31 = vrot.slane %v2511_v10, %v8730_v6  ;;  %v2601_v8 = vadd.f32 %v2563_v16, %v2545_v36  ;;  %v2600_v19 = vadd.f32 %v2563_v16, %v2544_v59  ;;  %v2555_v36 = vmul.f32 %v8610_v24, %v2491_v46  ;;  %v8612_v6 = vld [vmem:[%s8704_s29 + $0x48] sm:$0xff]  ;;  %v2619_v10 = vld [vmem:[%s12560_s3 + $0x18] sm:$0xff]  ;;  %v2622_v46 = vld [vmem:[%s12560_s3 + $0x30] sm:$0xff]  ;;  %v9870_v20 = vpop.permute.xlu0 %2671 }
 0x210   : > { %v2552_v59 = vmul.f32 %v8611_v50, %v2472_v41  ;;  %v2553_v57 = vmul.f32 %v8612_v6, %v2473_v38  ;;  %v2623_v16 = vld [vmem:[%s12560_s3 + $0x38] sm:$0xff]  ;;  %v2634_v41 = vld [vmem:[%s12560_s3 + $0x90] sm:$0xff] }
 0x211   : > { %v7432_v60 = vpack.c.bf16 %v2603_v12, %v2601_v8  ;;  %v7434_v2 = vpack.c.bf16 %v2602_v27, %v2600_v19  ;;  %v2527_v0 = vcombine.high %v2518_v9, %v2525_v31  ;;  %v2526_v42 = vcombine.low %v2518_v9, %v2525_v31  ;;  %v2624_v12 = vld [vmem:[%s12560_s3 + $0x40] sm:$0xff]  ;;  %v2625_v31 = vld [vmem:[%s12560_s3 + $0x48] sm:$0xff]  ;;  %v2626_v19 = vld [vmem:[%s12560_s3 + $0x50] sm:$0xff] }
 0x212   : > { %v2573_v35 = vpop.permute.xlu1 %2572  ;;  %v2611_v53 = vadd.f32 %v2588_v39, %v2555_v36  ;;  %v2633_v8 = vld [vmem:[%s12560_s3 + $0x88] sm:$0xff]  ;;  %v2627_v27 = vld [vmem:[%s12560_s3 + $0x58] sm:$0xff] }
 0x213   : > { %v2604_v54 = vadd.f32 %v2573_v35, %v2548_v47  ;;  %v2605_v49 = vadd.f32 %v2573_v35, %v2549_v33  ;;  %7433 = vmatprep.subr.bf16.mxu0 %v7432_v60  ;;  %7736 = vmatprep.subr.bf16.mxu1 %v7432_v60  ;;  %v2559_v29 = vmul.f32 %v8613_v48, %v2527_v0  ;;  %v2629_v9 = vld [vmem:[%s12560_s3 + $0x68] sm:$0xff]  ;;  %v2635_v38 = vld [vmem:[%s12560_s3 + $0x98] sm:$0xff]  ;;  %v2636_v60 = vld [vmem:[%s12560_s3 + $0xa0] sm:$0xff] }
 0x214   : > { %7435 = vmatpush1.bf16.msra.mxu0 %v7434_v2  ;;  %7740 = vmatpush1.bf16.msra.mxu1 %v7434_v2  ;;  %v2558_v44 = vmul.f32 %v8614_v22, %v2526_v42  ;;  %v2556_v33 = vmul.f32 %v8615_v4, %v2508_v25  ;;  %v2637_v2 = vld [vmem:[%s12560_s3 + $0xa8] sm:$0xff] }
 0x215   : > { %v7436_v32 = vpack.c.bf16 %v2607_v14, %v2605_v49  ;;  %v7438_v28 = vpack.c.bf16 %v2606_v18, %v2604_v54  ;;  %v2615_v55 = vadd.f32 %v2598_v13, %v2559_v29  ;;  %v2628_v18 = vld [vmem:[%s12560_s3 + $0x60] sm:$0xff]  ;;  %v2630_v14 = vld [vmem:[%s12560_s3 + $0x70] sm:$0xff]  ;;  %v2702_v54 = vpop.permute.xlu0 %2701 }
 0x216   : > { %v2583_v37 = vpop.permute.xlu1 %2582  ;;  %v2614_v62 = vadd.f32 %v2598_v13, %v2558_v44 }
 0x217   : > { %v2608_v47 = vadd.f32 %v2583_v37, %v2552_v59  ;;  %v2609_v34 = vadd.f32 %v2583_v37, %v2553_v57  ;;  %7437 = vmatprep.subr.bf16.mxu0 %v7436_v32  ;;  %7737 = vmatprep.subr.bf16.mxu1 %v7436_v32 }
 0x218   : > { %7439 = vmatpush1.bf16.msra.mxu0 %v7438_v28  ;;  %7741 = vmatpush1.bf16.msra.mxu1 %v7438_v28 }
 0x219   : > { %v7440_v7 = vpack.c.bf16 %v2611_v53, %v2609_v34  ;;  %v7442_v21 = vpack.c.bf16 %v2610_v40, %v2608_v47  ;;  %v2682_v28 = vpop.permute.xlu0 %2681 }
 0x21a   : > { %v2593_v56 = vpop.permute.xlu1 %2592 }
 0x21b   : > { %v2612_v23 = vadd.f32 %v2593_v56, %v2556_v33  ;;  %v2613_v51 = vadd.f32 %v2593_v56, %v2557_v3  ;;  %7441 = vmatprep.subr.bf16.mxu0 %v7440_v7  ;;  %7738 = vmatprep.subr.bf16.mxu1 %v7440_v7  ;;  %v2632_v7 = vld [vmem:[%s12560_s3 + $0x80] sm:$0xff] }
 0x21c   : > { %7443 = vmatpush1.bf16.msra.mxu0 %v7442_v21  ;;  %7742 = vmatpush1.bf16.msra.mxu1 %v7442_v21 }
 0x21d   : > { %v7444_v15 = vpack.c.bf16 %v2615_v55, %v2613_v51  ;;  %v7446_v58 = vpack.c.bf16 %v2614_v62, %v2612_v23 }
 0x21e   : > { %v9872_v24 = vpop.permute.xlu1 %2666 }
 0x21f   : > { %7445 = vmatprep.subr.bf16.mxu0 %v7444_v15  ;;  %7739 = vmatprep.subr.bf16.mxu1 %v7444_v15 }
 0x220   : > { %7447 = vmatpush1.bf16.msra.mxu0 %v7446_v58  ;;  %7743 = vmatpush1.bf16.msra.mxu1 %v7446_v58  ;;  %v2712_v58 = vpop.permute.xlu0 %2711 }
 0x222   : > { %v2697_v59 = vpop.permute.xlu1 %2696 }
 0x223   : > { %7268 = vmatmul.mubr.msk.f32.vlgmr.msra.gmra.mrb[0].mxu0 %vm2784_vm1, %v2616_v61  ;;  %7285 = vmatmul.mubr.msk.f32.vlgmr.msra.gmra.mrb[0].mxu1 %vm2784_vm1, %v2633_v8 }
 0x224   : > { %2927 = vmatprep.mubr.f32.mxu0 %v12599_v52  ;;  %3029 = vmatprep.mubr.f32.mxu1 %v12599_v52 }
 0x226   : > { %v2677_v25 = vpop.permute.xlu1 %2676 }
 0x227   : > { %7269 = vmatmul.mubr.msk.f32.gmra.mrb[2].mxu0 %vm2784_vm1, %v2617_v1  ;;  %7286 = vmatmul.mubr.msk.f32.gmra.mrb[2].mxu1 %vm2784_vm1, %v2634_v41 }
 0x228   : > { %2933 = vmatprep.mubr.f32.mxu0 %v12599_v52  ;;  %3035 = vmatprep.mubr.f32.mxu1 %v12599_v52 }
 0x22a   : > { %v2707_v61 = vpop.permute.xlu1 %2706 }
 0x22b   : > { %7270 = vmatmul.mubr.msk.f32.gmra.mrb[4].mxu0 %vm2784_vm1, %v2618_v17  ;;  %7287 = vmatmul.mubr.msk.f32.gmra.mrb[4].mxu1 %vm2784_vm1, %v2635_v38 }
 0x22c   : > { %2939 = vmatprep.mubr.f32.mxu0 %v12599_v52  ;;  %3041 = vmatprep.mubr.f32.mxu1 %v12599_v52 }
 0x22f   : > { %7271 = vmatmul.mubr.msk.f32.gmra.mrb[6].mxu0 %vm2784_vm1, %v2619_v10  ;;  %7288 = vmatmul.mubr.msk.f32.gmra.mrb[6].mxu1 %vm2784_vm1, %v2636_v60 }
 0x230   : > { %2945 = vmatprep.mubr.f32.mxu0 %v12599_v52  ;;  %3047 = vmatprep.mubr.f32.mxu1 %v12599_v52 }
 0x233   : > { %7272 = vmatmul.mubr.msk.f32.gmra.mrb[8].mxu0 %vm2784_vm1, %v2620_v11  ;;  %7289 = vmatmul.mubr.msk.f32.gmra.mrb[8].mxu1 %vm2784_vm1, %v2637_v2 }
 0x234   : > { %2951 = vmatprep.mubr.f32.mxu0 %v12599_v52  ;;  %3053 = vmatprep.mubr.f32.mxu1 %v12599_v52 }
 0x237   : > { %7273 = vmatmul.mubr.msk.f32.gmra.mrb[10].mxu0 %vm2784_vm1, %v2621_v5  ;;  %7290 = vmatmul.mubr.msk.f32.gmra.mrb[10].mxu1 %vm2784_vm1, %v2638_v45 }
 0x238   : > { %2957 = vmatprep.mubr.f32.mxu0 %v12599_v52  ;;  %3059 = vmatprep.mubr.f32.mxu1 %v12599_v52 }
 0x23b   : > { %7274 = vmatmul.mubr.msk.f32.gmra.mrb[12].mxu0 %vm2784_vm1, %v2622_v46  ;;  %7291 = vmatmul.mubr.msk.f32.gmra.mrb[12].mxu1 %vm2784_vm1, %v2639_v43 }
 0x23c   : > { %2963 = vmatprep.mubr.f32.mxu0 %v12599_v52  ;;  %3295 = vmatprep.mubr.f32.mxu1 %v12599_v52 }
 0x23f   : > { %7275 = vmatmul.mubr.msk.f32.gmra.mrb[14].mxu0 %vm2784_vm1, %v2623_v16 }
 0x240   : > { %2969 = vmatprep.mubr.f32.mxu0 %v12599_v52 }
 0x243   : > { %7276 = vmatmul.mubr.msk.f32.gmra.mrb[16].mxu0 %vm2784_vm1, %v2624_v12 }
 0x244   : > { %2975 = vmatprep.mubr.f32.mxu0 %v12599_v52 }
 0x247   : > { %7277 = vmatmul.mubr.msk.f32.gmra.mrb[18].mxu0 %vm2784_vm1, %v2625_v31 }
 0x248   : > { %2981 = vmatprep.mubr.f32.mxu0 %v12599_v52 }
 0x24b   : > { %7278 = vmatmul.mubr.msk.f32.gmra.mrb[20].mxu0 %vm2784_vm1, %v2626_v19 }
 0x24c   : > { %2987 = vmatprep.mubr.f32.mxu0 %v12599_v52 }
 0x24f   : > { %7279 = vmatmul.mubr.msk.f32.gmra.mrb[22].mxu0 %vm2784_vm1, %v2627_v27 }
 0x250   : > { %2993 = vmatprep.mubr.f32.mxu0 %v12599_v52 }
 0x253   : > { %7280 = vmatmul.mubr.msk.f32.gmra.mrb[24].mxu0 %vm2784_vm1, %v2628_v18 }
 0x254   : > { %2999 = vmatprep.mubr.f32.mxu0 %v12599_v52 }
 0x257   : > { %7281 = vmatmul.mubr.msk.f32.gmra.mrb[26].mxu0 %vm2784_vm1, %v2629_v9 }
 0x258   : > { %3005 = vmatprep.mubr.f32.mxu0 %v12599_v52 }
 0x25b   : > { %7282 = vmatmul.mubr.msk.f32.gmra.mrb[28].mxu0 %vm2784_vm1, %v2630_v14 }
 0x25c   : > { %3011 = vmatprep.mubr.f32.mxu0 %v12599_v52 }
 0x25f   : > { %7283 = vmatmul.mubr.msk.f32.gmra.mrb[30].mxu0 %vm2784_vm1, %v2631_v26 }
 0x260   : > { %3017 = vmatprep.mubr.f32.mxu0 %v12599_v52 }
 0x263   : > { %7284 = vmatmul.mubr.msk.f32.gmra.mrb[32].mxu0 %vm2784_vm1, %v2632_v7 }
 0x264   : > { %4273 = vmatprep.mubr.f32.mxu0 %v12599_v52 }
 0x2f6   : > { %v2923_v36 = vpop.f32.mrb[0].mxu0 }
 0x2f7   : > { %v2924_v0 = vadd.f32 %v2923_v36, %v9872_v24  ;;  %v2925_v35 = vpop.f32.mrb[1].mxu0 }
 0x2f8   : > { %v2926_v18 = vadd.f32 %v2925_v35, %v9872_v24 }
 0x2f9   : > { %v3066_v39 = vmul.f32 0.25, %v2924_v0 }
 0x2fa   : > { %v2929_v42 = vpop.f32.mrb[2].mxu0  ;;  %v3067_v9 = vmul.f32 0.25, %v2926_v18 }
 0x2fb   : > { %v2930_v49 = vadd.f32 %v2929_v42, %v9870_v20  ;;  %v2931_v50 = vpop.f32.mrb[3].mxu0  ;;  %3070 = vxpose.xlu1.b32.start [1/2] (short) %v3066_v39, 128  ;;  %v2653_v42 = vld [vmem:[%s12561_s4 + $0x68] sm:$0xff] }
 0x2fc   : > { %v2932_v41 = vadd.f32 %v2931_v50, %v9870_v20 }
 0x2fd   : > { %v3068_v6 = vmul.f32 0.25, %v2930_v49 }
 0x2fe   : > { %v2935_v57 = vpop.f32.mrb[4].mxu0  ;;  %v3069_v38 = vmul.f32 0.25, %v2932_v41 }
 0x2ff   : > { %v2937_v32 = vpop.f32.mrb[5].mxu0  ;;  %3071 = vxpose.xlu1.b32.end [2/2] (short) %v3068_v6, 128  ;;  %v2936_v40 = vadd.f32 %v2935_v57, %v2677_v25  ;;  %v2659_v57 = vld [vmem:[%s12561_s4 + $0x98] sm:$0xff] }
 0x300   : > { %v2938_v48 = vadd.f32 %v2937_v32, %v2677_v25 }
 0x302   : > { %v2941_v30 = vpop.f32.mrb[6].mxu0 }
 0x303   : > { %v2942_v53 = vadd.f32 %v2941_v30, %v2682_v28  ;;  %v2943_v37 = vpop.f32.mrb[7].mxu0 }
 0x304   : > { %v2944_v29 = vadd.f32 %v2943_v37, %v2682_v28 }
 0x305   : > { %v7450_v47 = vpack.c.bf16 %v2942_v53, %v2936_v40  ;;  %v2654_v53 = vld [vmem:[%s12561_s4 + $0x70] sm:$0xff] }
 0x306   : > { %v7448_v34 = vpack.c.bf16 %v2944_v29, %v2938_v48  ;;  %v9876_v22 = vpop.f32.mrb[8].mxu0 }
 0x307   : > { %13034 = vst [vmem:[#allocation8_spill] sm:$0xff] %v9876_v22  ;;  %v9878_v44 = vpop.f32.mrb[9].mxu0 }
 0x308   : > { %7449 = vmatprep.subr.bf16.mxu1 %v7448_v34 }
 0x309   : > { %7451 = vmatpush1.bf16.msra.mxu1 %v7450_v47 }
 0x30a   : > { %v9880_v13 = vpop.f32.mrb[10].mxu0 }
 0x30b   : > { %13035 = vst [vmem:[#allocation15_spill] sm:$0xff] %v9880_v13  ;;  %v9882_v4 = vpop.f32.mrb[11].mxu0 }
 0x30c   : > { %13036 = vst [vmem:[#allocation6_spill] sm:$0xff] %v9882_v4 }
 0x30e   : > { %v2959_v33 = vpop.f32.mrb[12].mxu0 }
 0x30f   : > { %v2960_v63 = vadd.f32 %v2959_v33, %v2697_v59  ;;  %v2961_v3 = vpop.f32.mrb[13].mxu0 }
 0x310   : > { %v2962_v31 = vadd.f32 %v2961_v3, %v2697_v59 }
 0x311   : > { %v4045_v21 = vmul.f32 0.25, %v2960_v63  ;;  %v2655_v63 = vld [vmem:[%s12561_s4 + $0x78] sm:$0xff] }
 0x312   : > { %v2965_v56 = vpop.f32.mrb[14].mxu0  ;;  %v4046_v8 = vmul.f32 0.25, %v2962_v31  ;;  %v2644_v31 = vld [vmem:[%s12561_s4 + $0x20] sm:$0xff] }
 0x313   : > { %v2966_v55 = vadd.f32 %v2965_v56, %v2702_v54  ;;  %v2967_v23 = vpop.f32.mrb[15].mxu0  ;;  %4049 = vxpose.xlu0.b32.start [1/2] (short) %v4045_v21, 128  ;;  %v2650_v56 = vld [vmem:[%s12561_s4 + $0x50] sm:$0xff] }
 0x314   : > { %v2968_v19 = vadd.f32 %v2967_v23, %v2702_v54  ;;  %v9916_v54 = vpop.f32.mrb[0].mxu1 }
 0x315   : > { %v4047_v51 = vmul.f32 0.25, %v2966_v55  ;;  %13042 = vst [vmem:[#allocation3_spill] sm:$0xff] %v9916_v54  ;;  %v9921_v50 = vpop.f32.mrb[1].mxu1 }
 0x316   : > { %v2971_v62 = vpop.f32.mrb[16].mxu0  ;;  %v4048_v27 = vmul.f32 0.25, %v2968_v19  ;;  %13044 = vst [vmem:[#allocation19_spill] sm:$0xff] %v9921_v50  ;;  %v9931_v28 = vpop.f32.mrb[2].mxu1 }
 0x317   : > { %v2973_v15 = vpop.f32.mrb[17].mxu0  ;;  %4050 = vxpose.xlu0.b32.end [2/2] (short) %v4047_v51, 128  ;;  %v2972_v17 = vadd.f32 %v2971_v62, %v2707_v61  ;;  %13046 = vst [vmem:[#allocation24_spill] sm:$0xff] %v9931_v28  ;;  %v9935_v25 = vpop.f32.mrb[3].mxu1 }
 0x318   : > { %v2974_v5 = vadd.f32 %v2973_v15, %v2707_v61  ;;  %13047 = vst [vmem:[#allocation14_spill] sm:$0xff] %v9935_v25  ;;  %v9937_v30 = vpop.f32.mrb[4].mxu1 }
 0x319   : > { %13048 = vst [vmem:[#allocation10_spill] sm:$0xff] %v9937_v30  ;;  %v9944_v48 = vpop.f32.mrb[5].mxu1 }
 0x31a   : > { %v2977_v1 = vpop.f32.mrb[18].mxu0  ;;  %13049 = vst [vmem:[#allocation12_spill] sm:$0xff] %v9944_v48  ;;  %v10010_v41 = vpop.f32.mrb[6].mxu1 }
 0x31b   : > { %v2978_v10 = vadd.f32 %v2977_v1, %v2712_v58  ;;  %v2979_v11 = vpop.f32.mrb[19].mxu0  ;;  %13050 = vst [vmem:[#allocation16_spill] sm:$0xff] %v10010_v41 }
 0x31c   : > { %v2980_v46 = vadd.f32 %v2979_v11, %v2712_v58 }
 0x31d   : > { %v7518_v16 = vpack.c.bf16 %v2978_v10, %v2972_v17  ;;  %v2652_v10 = vld [vmem:[%s12561_s4 + $0x60] sm:$0xff] }
 0x31e   : > { %v7516_v12 = vpack.c.bf16 %v2980_v46, %v2974_v5  ;;  %v9898_v45 = vpop.f32.mrb[20].mxu0  ;;  %v2658_v46 = vld [vmem:[%s12561_s4 + $0x90] sm:$0xff] }
 0x31f   : > { %13037 = vst [vmem:[#allocation17_spill] sm:$0xff] %v9898_v45  ;;  %v9901_v43 = vpop.f32.mrb[21].mxu0 }
 0x320   : > { %7517 = vmatprep.subr.bf16.mxu0 %v7516_v12 }
 0x321   : > { %7519 = vmatpush1.bf16.msra.mxu0 %v7518_v16 }
 0x322   : > { %v9903_v24 = vpop.f32.mrb[22].mxu0 }
 0x323   : > { %13038 = vst [vmem:[#allocation13_spill] sm:$0xff] %v9903_v24  ;;  %v9906_v36 = vpop.f32.mrb[23].mxu0 }
 0x324   : > { %13039 = vst [vmem:[#allocation7_spill] sm:$0xff] %v9906_v36 }
 0x326   : > { %v9909_v0 = vpop.f32.mrb[24].mxu0 }
 0x327   : > { %13040 = vst [vmem:[#allocation9_spill] sm:$0xff] %v9909_v0  ;;  %v9911_v35 = vpop.f32.mrb[25].mxu0 }
 0x328   : > { %13041 = vst [vmem:[#allocation18_spill] sm:$0xff] %v9911_v35 }
 0x32a   : > { %v9919_v49 = vpop.f32.mrb[26].mxu0 }
 0x32b   : > { %13043 = vst [vmem:[#allocation22_spill] sm:$0xff] %v9919_v49  ;;  %v9924_v59 = vpop.f32.mrb[27].mxu0 }
 0x32c   : > { %13045 = vst [vmem:[#allocation4_spill] sm:$0xff] %v9924_v59 }
 0x32e   : > { %v9946_v29 = vpop.f32.mrb[28].mxu0 }
 0x32f   : > { %v9950_v47 = vpop.f32.mrb[29].mxu0 }
 0x332   : > { %v9952_v34 = vpop.f32.mrb[30].mxu0 }
 0x333   : > { %v9959_v7 = vpop.f32.mrb[31].mxu0 }
 0x338   : > { %4081 = vxpose.xlu1.b32.start [1/2] (short) %v4046_v8, 128 }
 0x33c   : > { %4082 = vxpose.xlu1.b32.end [2/2] (short) %v4048_v27, 128  ;;  %v2645_v27 = vld [vmem:[%s12561_s4 + $0x28] sm:$0xff] }
 0x350   : > { %3102 = vxpose.xlu0.b32.start [1/2] (short) %v3067_v9, 128 }
 0x354   : > { %3103 = vxpose.xlu0.b32.end [2/2] (short) %v3069_v38, 128  ;;  %v10012_v38 = vpop.f32.mrb[7].mxu1 }
 0x355   : > { %13051 = vst [vmem:[#allocation25_spill] sm:$0xff] %v10012_v38 }
 0x37b   : > { %v3086_v14 = vpop.trf.xlu1 }
 0x37c   : > { %7292 = vmatmul.mubr.msk.f32.vlgmr.msra.gmra.mrb[14].mxu1 %vm3134_vm2, %v3086_v14 }
 0x37d   : > { %3301 = vmatprep.mubr.f32.mxu1 %v12599_v52 }
 0x37f   : > { %v3087_v26 = vpop.trf.xlu1 }
 0x380   : > { %7293 = vmatmul.mubr.msk.f32.gmra.mrb[16].mxu1 %vm3134_vm2, %v3087_v26 }
 0x381   : > { %3307 = vmatprep.mubr.f32.mxu1 %v12599_v52 }
 0x383   : > { %v3088_v60 = vpop.trf.xlu1 }
 0x384   : > { %7294 = vmatmul.mubr.msk.f32.gmra.mrb[18].mxu1 %vm3134_vm2, %v3088_v60  ;;  %v10015_v60 = vpop.f32.mrb[8].mxu1 }
 0x385   : > { %3313 = vmatprep.mubr.f32.mxu1 %v12599_v52  ;;  %13052 = vst [vmem:[#allocation20_spill] sm:$0xff] %v10015_v60 }
 0x387   : > { %v3089_v2 = vpop.trf.xlu1 }
 0x388   : > { %7295 = vmatmul.mubr.msk.f32.gmra.mrb[20].mxu1 %vm3134_vm2, %v3089_v2  ;;  %v10018_v2 = vpop.f32.mrb[9].mxu1 }
 0x389   : > { %3319 = vmatprep.mubr.f32.mxu1 %v12599_v52  ;;  %13053 = vst [vmem:[#allocation26_spill] sm:$0xff] %v10018_v2 }
 0x38b   : > { %v3090_v20 = vpop.trf.xlu1 }
 0x38c   : > { %7296 = vmatmul.mubr.msk.f32.gmra.mrb[22].mxu1 %vm3134_vm2, %v3090_v20  ;;  %v10020_v20 = vpop.f32.mrb[10].mxu1 }
 0x38d   : > { %3325 = vmatprep.mubr.f32.mxu1 %v12599_v52  ;;  %13054 = vst [vmem:[#allocation21_spill] sm:$0xff] %v10020_v20 }
 0x38f   : > { %v3091_v39 = vpop.trf.xlu1 }
 0x390   : > { %7297 = vmatmul.mubr.msk.f32.gmra.mrb[24].mxu1 %vm3134_vm2, %v3091_v39 }
 0x391   : > { %3331 = vmatprep.mubr.f32.mxu1 %v12599_v52 }
 0x392   : > { %2731 = vperm.xlu1 %7760, %v2653_v42  }
 0x393   : > { %v4065_v6 = vpop.trf.xlu0  ;;  %v3092_v32 = vpop.trf.xlu1 }
 0x394   : > { %7324 = vmatmul.mubr.msk.f32.vlgmr.msra.gmra.mrb[34].mxu0 %vm3134_vm2, %v4065_v6  ;;  %7298 = vmatmul.mubr.msk.f32.gmra.mrb[26].mxu1 %vm3134_vm2, %v3092_v32  ;;  %v10023_v6 = vpop.f32.mrb[11].mxu1 }
 0x395   : > { %4279 = vmatprep.mubr.f32.mxu0 %v12599_v52  ;;  %3337 = vmatprep.mubr.f32.mxu1 %v12599_v52  ;;  %13055 = vst [vmem:[#allocation23_spill] sm:$0xff] %v10023_v6 }
 0x396   : > { %2761 = vperm.xlu1 %7760, %v2659_v57   ;;  %v10026_v57 = vpop.f32.mrb[12].mxu1 }
 0x397   : > { %v4066_v40 = vpop.trf.xlu0  ;;  %v3093_v37 = vpop.trf.xlu1  ;;  %13056 = vst [vmem:[#allocation27_spill] sm:$0xff] %v10026_v57 }
 0x398   : > { %7325 = vmatmul.mubr.msk.f32.gmra.mrb[36].mxu0 %vm3134_vm2, %v4066_v40  ;;  %7299 = vmatmul.mubr.msk.f32.gmra.mrb[28].mxu1 %vm3134_vm2, %v3093_v37  ;;  %v10028_v32 = vpop.f32.mrb[13].mxu1 }
 0x399   : > { %4285 = vmatprep.mubr.f32.mxu0 %v12599_v52  ;;  %3343 = vmatprep.mubr.f32.mxu1 %v12599_v52  ;;  %13057 = vst [vmem:[#allocation28_spill] sm:$0xff] %v10028_v32 }
 0x39a   : > { %2736 = vperm.xlu1 %7760, %v2654_v53  }
 0x39b   : > { %v4067_v33 = vpop.trf.xlu0  ;;  %v3094_v3 = vpop.trf.xlu1 }
 0x39c   : > { %7326 = vmatmul.mubr.msk.f32.gmra.mrb[38].mxu0 %vm3134_vm2, %v4067_v33  ;;  %7300 = vmatmul.mubr.msk.f32.gmra.mrb[30].mxu1 %vm3134_vm2, %v3094_v3 }
 0x39d   : > { %4291 = vmatprep.mubr.f32.mxu0 %v12599_v52  ;;  %3349 = vmatprep.mubr.f32.mxu1 %v12599_v52 }
 0x39e   : > { %2741 = vperm.xlu1 %7760, %v2655_v63  }
 0x39f   : > { %v4068_v21 = vpop.trf.xlu0  ;;  %v3095_v55 = vpop.trf.xlu1 }
 0x3a0   : > { %7327 = vmatmul.mubr.msk.f32.gmra.mrb[40].mxu0 %vm3134_vm2, %v4068_v21  ;;  %7301 = vmatmul.mubr.msk.f32.gmra.mrb[32].mxu1 %vm3134_vm2, %v3095_v55 }
 0x3a1   : > { %4297 = vmatprep.mubr.f32.mxu0 %v12599_v52  ;;  %3355 = vmatprep.mubr.f32.mxu1 %v12599_v52 }
 0x3a2   : > { %2716 = vperm.xlu1 %7760, %v2650_v56  }
 0x3a3   : > { %v4069_v23 = vpop.trf.xlu0  ;;  %v3096_v51 = vpop.trf.xlu1 }
 0x3a4   : > { %7328 = vmatmul.mubr.msk.f32.gmra.mrb[42].mxu0 %vm3134_vm2, %v4069_v23  ;;  %7302 = vmatmul.mubr.msk.f32.gmra.mrb[34].mxu1 %vm3134_vm2, %v3096_v51 }
 0x3a5   : > { %4303 = vmatprep.mubr.f32.mxu0 %v12599_v52  ;;  %3361 = vmatprep.mubr.f32.mxu1 %v12599_v52 }
 0x3a7   : > { %v4070_v62 = vpop.trf.xlu0  ;;  %v3097_v15 = vpop.trf.xlu1 }
 0x3a8   : > { %7329 = vmatmul.mubr.msk.f32.gmra.mrb[44].mxu0 %vm3134_vm2, %v4070_v62  ;;  %7303 = vmatmul.mubr.msk.f32.gmra.mrb[36].mxu1 %vm3134_vm2, %v3097_v15  ;;  %v10054_v15 = vpop.f32.mrb[32].mxu0 }
 0x3a9   : > { %4309 = vmatprep.mubr.f32.mxu0 %v12599_v52  ;;  %3367 = vmatprep.mubr.f32.mxu1 %v12599_v52  ;;  %13058 = vst [vmem:[#allocation29_spill] sm:$0xff] %v10054_v15 }
 0x3ab   : > { %v4071_v58 = vpop.trf.xlu0  ;;  %v3098_v61 = vpop.trf.xlu1 }
 0x3ac   : > { %7330 = vmatmul.mubr.msk.f32.gmra.mrb[46].mxu0 %vm3134_vm2, %v4071_v58  ;;  %7304 = vmatmul.mubr.msk.f32.gmra.mrb[38].mxu1 %vm3134_vm2, %v3098_v61  ;;  %v10056_v58 = vpop.f32.mrb[33].mxu0 }
 0x3ad   : > { %4315 = vmatprep.mubr.f32.mxu0 %v12599_v52  ;;  %3373 = vmatprep.mubr.f32.mxu1 %v12599_v52  ;;  %13059 = vst [vmem:[#allocation11_spill] sm:$0xff] %v10056_v58 }
 0x3af   : > { %v4072_v1 = vpop.trf.xlu0  ;;  %v3099_v17 = vpop.trf.xlu1 }
 0x3b0   : > { %7331 = vmatmul.mubr.msk.f32.gmra.mrb[48].mxu0 %vm3134_vm2, %v4072_v1  ;;  %7305 = vmatmul.mubr.msk.f32.gmra.mrb[40].mxu1 %vm3134_vm2, %v3099_v17 }
 0x3b1   : > { %4321 = vmatprep.mubr.f32.mxu0 %v12599_v52  ;;  %3379 = vmatprep.mubr.f32.mxu1 %v12599_v52 }
 0x3b3   : > { %v4073_v11 = vpop.trf.xlu0  ;;  %v3100_v5 = vpop.trf.xlu1 }
 0x3b4   : > { %7332 = vmatmul.mubr.msk.f32.gmra.mrb[50].mxu0 %vm3134_vm2, %v4073_v11  ;;  %7306 = vmatmul.mubr.msk.f32.gmra.mrb[42].mxu1 %vm3134_vm2, %v3100_v5 }
 0x3b5   : > { %2726 = vperm.xlu0 %7759, %v2652_v10   ;;  %4327 = vmatprep.mubr.f32.mxu0 %v12599_v52 }
 0x3b6   : > { %3385 = vmatprep.mubr.f32.mxu1 %v12599_v52 }
 0x3b7   : > { %v4074_v16 = vpop.trf.xlu0  ;;  %v3101_v12 = vpop.trf.xlu1 }
 0x3b8   : > { %7333 = vmatmul.mubr.msk.f32.gmra.mrb[52].mxu0 %vm3134_vm2, %v4074_v16  ;;  %7307 = vmatmul.mubr.msk.f32.gmra.mrb[44].mxu1 %vm3134_vm2, %v3101_v12 }
 0x3b9   : > { %2756 = vperm.xlu0 %7759, %v2658_v46   ;;  %4333 = vmatprep.mubr.f32.mxu0 %v12599_v52 }
 0x3ba   : > { %3391 = vmatprep.mubr.f32.mxu1 %v12599_v52 }
 0x3bb   : > { %v4075_v8 = vpop.trf.xlu0  ;;  %v4097_v19 = vpop.trf.xlu1 }
 0x3bc   : > { %7334 = vmatmul.mubr.msk.f32.gmra.mrb[54].mxu0 %vm3134_vm2, %v4075_v8 }
 0x3bd   : > { %2686 = vperm.xlu0 %7759, %v2644_v31   ;;  %4339 = vmatprep.mubr.f32.mxu0 %v12599_v52 }
 0x3bf   : > { %v4076_v18 = vpop.trf.xlu0  ;;  %v4098_v9 = vpop.trf.xlu1 }
 0x3c0   : > { %7335 = vmatmul.mubr.msk.f32.gmra.mrb[56].mxu0 %vm3134_vm2, %v4076_v18 }
 0x3c1   : > { %2691 = vperm.xlu0 %7759, %v2645_v27   ;;  %4345 = vmatprep.mubr.f32.mxu0 %v12599_v52 }
 0x3c3   : > { %v4077_v14 = vpop.trf.xlu0  ;;  %v4099_v26 = vpop.trf.xlu1 }
 0x3c4   : > { %7336 = vmatmul.mubr.msk.f32.gmra.mrb[58].mxu0 %vm3134_vm2, %v4077_v14 }
 0x3c5   : > { %4351 = vmatprep.mubr.f32.mxu0 %v12599_v52 }
 0x3c7   : > { %v4078_v39 = vpop.trf.xlu0  ;;  %v4100_v42 = vpop.trf.xlu1 }
 0x3c8   : > { %7337 = vmatmul.mubr.msk.f32.gmra.mrb[60].mxu0 %vm3134_vm2, %v4078_v39 }
 0x3c9   : > { %4357 = vmatprep.mubr.f32.mxu0 %v12599_v52 }
 0x3cb   : > { %v4079_v40 = vpop.trf.xlu0  ;;  %v4101_v53 = vpop.trf.xlu1 }
 0x3cc   : > { %7338 = vmatmul.mubr.msk.f32.gmra.mrb[62].mxu0 %vm3134_vm2, %v4079_v40 }
 0x3cd   : > { %4363 = vmatprep.mubr.f32.mxu0 %v12599_v52 }
 0x3cf   : > { %v4080_v37 = vpop.trf.xlu0  ;;  %v4102_v33 = vpop.trf.xlu1 }
 0x3d0   : > { %7339 = vmatmul.mubr.msk.f32.gmra.mrb[64].mxu0 %vm3134_vm2, %v4080_v37 }
 0x3d1   : > { %4369 = vmatprep.mubr.f32.mxu0 %v12599_v52 }
 0x3d3   : > { %v3118_v63 = vpop.trf.xlu0  ;;  %v4103_v3 = vpop.trf.xlu1 }
 0x3d4   : > { %7308 = vmatmul.mubr.msk.f32.gmra.mrb[46].mxu1 %vm3134_vm2, %v3118_v63  ;;  %7340 = vmatmul.mubr.msk.f32.gmra.mrb[66].mxu0 %vm3134_vm2, %v4097_v19 }
 0x3d5   : > { %3397 = vmatprep.mubr.f32.mxu1 %v12599_v52  ;;  %4375 = vmatprep.mubr.f32.mxu0 %v12599_v52 }
 0x3d7   : > { %v3119_v21 = vpop.trf.xlu0  ;;  %v4104_v55 = vpop.trf.xlu1 }
 0x3d8   : > { %7309 = vmatmul.mubr.msk.f32.gmra.mrb[48].mxu1 %vm3134_vm2, %v3119_v21  ;;  %7341 = vmatmul.mubr.msk.f32.gmra.mrb[68].mxu0 %vm3134_vm2, %v4098_v9 }
 0x3d9   : > { %3403 = vmatprep.mubr.f32.mxu1 %v12599_v52  ;;  %4381 = vmatprep.mubr.f32.mxu0 %v12599_v52 }
 0x3db   : > { %v3120_v56 = vpop.trf.xlu0  ;;  %v4105_v51 = vpop.trf.xlu1 }
 0x3dc   : > { %7310 = vmatmul.mubr.msk.f32.gmra.mrb[50].mxu1 %vm3134_vm2, %v3120_v56  ;;  %7342 = vmatmul.mubr.msk.f32.gmra.mrb[70].mxu0 %vm3134_vm2, %v4099_v26 }
 0x3dd   : > { %3409 = vmatprep.mubr.f32.mxu1 %v12599_v52  ;;  %4387 = vmatprep.mubr.f32.mxu0 %v12599_v52 }
 0x3df   : > { %v3121_v23 = vpop.trf.xlu0  ;;  %v4106_v1 = vpop.trf.xlu1 }
 0x3e0   : > { %7311 = vmatmul.mubr.msk.f32.gmra.mrb[52].mxu1 %vm3134_vm2, %v3121_v23  ;;  %7343 = vmatmul.mubr.msk.f32.gmra.mrb[72].mxu0 %vm3134_vm2, %v4100_v42 }
 0x3e1   : > { %3415 = vmatprep.mubr.f32.mxu1 %v12599_v52  ;;  %4393 = vmatprep.mubr.f32.mxu0 %v12599_v52 }
 0x3e3   : > { %v3122_v62 = vpop.trf.xlu0  ;;  %v4107_v10 = vpop.trf.xlu1 }
 0x3e4   : > { %7312 = vmatmul.mubr.msk.f32.gmra.mrb[54].mxu1 %vm3134_vm2, %v3122_v62  ;;  %7344 = vmatmul.mubr.msk.f32.gmra.mrb[74].mxu0 %vm3134_vm2, %v4101_v53 }
 0x3e5   : > { %3421 = vmatprep.mubr.f32.mxu1 %v12599_v52  ;;  %4399 = vmatprep.mubr.f32.mxu0 %v12599_v52 }
 0x3e7   : > { %v3123_v61 = vpop.trf.xlu0  ;;  %v4108_v46 = vpop.trf.xlu1 }
 0x3e8   : > { %7313 = vmatmul.mubr.msk.f32.gmra.mrb[56].mxu1 %vm3134_vm2, %v3123_v61  ;;  %7345 = vmatmul.mubr.msk.f32.gmra.mrb[76].mxu0 %vm3134_vm2, %v4102_v33 }
 0x3e9   : > { %3427 = vmatprep.mubr.f32.mxu1 %v12599_v52  ;;  %4405 = vmatprep.mubr.f32.mxu0 %v12599_v52 }
 0x3eb   : > { %v3124_v17 = vpop.trf.xlu0  ;;  %v4109_v12 = vpop.trf.xlu1 }
 0x3ec   : > { %7314 = vmatmul.mubr.msk.f32.gmra.mrb[58].mxu1 %vm3134_vm2, %v3124_v17  ;;  %7346 = vmatmul.mubr.msk.f32.gmra.mrb[78].mxu0 %vm3134_vm2, %v4103_v3 }
 0x3ed   : > { %3433 = vmatprep.mubr.f32.mxu1 %v12599_v52  ;;  %4411 = vmatprep.mubr.f32.mxu0 %v12599_v52 }
 0x3ef   : > { %v3125_v11 = vpop.trf.xlu0  ;;  %v4110_v19 = vpop.trf.xlu1 }
 0x3f0   : > { %7315 = vmatmul.mubr.msk.f32.gmra.mrb[60].mxu1 %vm3134_vm2, %v3125_v11  ;;  %7347 = vmatmul.mubr.msk.f32.gmra.mrb[80].mxu0 %vm3134_vm2, %v4104_v55 }
 0x3f1   : > { %3439 = vmatprep.mubr.f32.mxu1 %v12599_v52  ;;  %4417 = vmatprep.mubr.f32.mxu0 %v12599_v52 }
 0x3f3   : > { %v3126_v5 = vpop.trf.xlu0  ;;  %v4111_v18 = vpop.trf.xlu1 }
 0x3f4   : > { %7316 = vmatmul.mubr.msk.f32.gmra.mrb[62].mxu1 %vm3134_vm2, %v3126_v5  ;;  %7348 = vmatmul.mubr.msk.f32.gmra.mrb[82].mxu0 %vm3134_vm2, %v4105_v51 }
 0x3f5   : > { %3445 = vmatprep.mubr.f32.mxu1 %v12599_v52  ;;  %4423 = vmatprep.mubr.f32.mxu0 %v12599_v52 }
 0x3f7   : > { %v3127_v16 = vpop.trf.xlu0  ;;  %v4112_v26 = vpop.trf.xlu1 }
 0x3f8   : > { %7317 = vmatmul.mubr.msk.f32.gmra.mrb[64].mxu1 %vm3134_vm2, %v3127_v16  ;;  %7349 = vmatmul.mubr.msk.f32.gmra.mrb[84].mxu0 %vm3134_vm2, %v4106_v1 }
 0x3f9   : > { %3451 = vmatprep.mubr.f32.mxu1 %v12599_v52  ;;  %4429 = vmatprep.mubr.f32.mxu0 %v12599_v52 }
 0x3fb   : > { %v3128_v31 = vpop.trf.xlu0 }
 0x3fc   : > { %7318 = vmatmul.mubr.msk.f32.gmra.mrb[66].mxu1 %vm3134_vm2, %v3128_v31  ;;  %7350 = vmatmul.mubr.msk.f32.gmra.mrb[86].mxu0 %vm3134_vm2, %v4107_v10 }
 0x3fd   : > { %3457 = vmatprep.mubr.f32.mxu1 %v12599_v52  ;;  %4435 = vmatprep.mubr.f32.mxu0 %v12599_v52 }
 0x3ff   : > { %v3129_v8 = vpop.trf.xlu0 }
 0x400   : > { %7319 = vmatmul.mubr.msk.f32.gmra.mrb[68].mxu1 %vm3134_vm2, %v3129_v8  ;;  %7351 = vmatmul.mubr.msk.f32.gmra.mrb[88].mxu0 %vm3134_vm2, %v4108_v46 }
 0x401   : > { %3463 = vmatprep.mubr.f32.mxu1 %v12599_v52  ;;  %4441 = vmatprep.mubr.f32.mxu0 %v12599_v52 }
 0x403   : > { %v3130_v27 = vpop.trf.xlu0 }
 0x404   : > { %7320 = vmatmul.mubr.msk.f32.gmra.mrb[70].mxu1 %vm3134_vm2, %v3130_v27  ;;  %7352 = vmatmul.mubr.msk.f32.gmra.mrb[90].mxu0 %vm3134_vm2, %v4109_v12 }
 0x405   : > { %3469 = vmatprep.mubr.f32.mxu1 %v12599_v52  ;;  %4447 = vmatprep.mubr.f32.mxu0 %v12599_v52 }
 0x407   : > { %v3131_v9 = vpop.trf.xlu0 }
 0x408   : > { %7321 = vmatmul.mubr.msk.f32.gmra.mrb[72].mxu1 %vm3134_vm2, %v3131_v9  ;;  %7353 = vmatmul.mubr.msk.f32.gmra.mrb[92].mxu0 %vm3134_vm2, %v4110_v19 }
 0x409   : > { %3475 = vmatprep.mubr.f32.mxu1 %v12599_v52  ;;  %4453 = vmatprep.mubr.f32.mxu0 %v12599_v52 }
 0x40b   : > { %v3132_v14 = vpop.trf.xlu0 }
 0x40c   : > { %7322 = vmatmul.mubr.msk.f32.gmra.mrb[74].mxu1 %vm3134_vm2, %v3132_v14  ;;  %7354 = vmatmul.mubr.msk.f32.gmra.mrb[94].mxu0 %vm3134_vm2, %v4111_v18 }
 0x40d   : > { %3481 = vmatprep.mubr.f32.mxu1 %v12599_v52  ;;  %4459 = vmatprep.mubr.f32.mxu0 %v12599_v52 }
 0x40f   : > { %v3133_v39 = vpop.trf.xlu0 }
 0x410   : > { %7323 = vmatmul.mubr.msk.f32.gmra.mrb[76].mxu1 %vm3134_vm2, %v3133_v39  ;;  %7355 = vmatmul.mubr.msk.f32.gmra.mrb[96].mxu0 %vm3134_vm2, %v4112_v26 }
 0x411   : > { %v10100_v42 = vpop.permute.xlu1 %2731 }
 0x412   : > { %13060 = vst [vmem:[#allocation5_spill] sm:$0xff] %v10100_v42 }
 0x415   : > { %v10102_v40 = vpop.permute.xlu1 %2761 }
 0x416   : > { %13061 = vst [vmem:[#allocation2_spill] sm:$0xff] %v10102_v40 }
 0x419   : > { %v2737_v53 = vpop.permute.xlu1 %2736 }
 0x41a   : > { %v10105_v33 = vadd.f32 %v9946_v29, %v2737_v53  ;;  %v10108_v63 = vadd.f32 %v9950_v47, %v2737_v53 }
 0x41c   : > { %13062 = vst [vmem:[#allocation30_spill] sm:$0xff] %v10105_v33  ;;  %13063 = vst [vmem:[#allocation31_spill] sm:$0xff] %v10108_v63 }
 0x41d   : > { %v2742_v37 = vpop.permute.xlu1 %2741 }
 0x41e   : > { %v10111_v3 = vadd.f32 %v9952_v34, %v2742_v37  ;;  %v10114_v21 = vadd.f32 %v9959_v7, %v2742_v37 }
 0x420   : > { %13064 = vst [vmem:[#allocation32_spill] sm:$0xff] %v10111_v3  ;;  %13065 = vst [vmem:[#allocation33_spill] sm:$0xff] %v10114_v21 }
 0x421   : > { %v10120_v23 = vpop.permute.xlu1 %2716 }
 0x422   : > { %13066 = vst [vmem:[#allocation34_spill] sm:$0xff] %v10120_v23  ;;  %v2986_v29 = vadd.f32 %v9901_v43, %v10120_v23 }
 0x424   : > { %5010 = vmatprep.mubr.f32.mxu0 %v2986_v29 }
 0x434   : > { %v10124_v47 = vpop.permute.xlu0 %2726 }
 0x435   : > { %13067 = vst [vmem:[#allocation35_spill] sm:$0xff] %v10124_v47 }
 0x438   : > { %v10126_v51 = vpop.permute.xlu0 %2756 }
 0x439   : > { %13068 = vst [vmem:[#allocation36_spill] sm:$0xff] %v10126_v51 }
 0x43c   : > { %v10128_v34 = vpop.permute.xlu0 %2686 }
 0x43d   : > { %13069 = vst [vmem:[#allocation37_spill] sm:$0xff] %v10128_v34  ;;  %v2950_v7 = vadd.f32 %v9878_v44, %v10128_v34 }
 0x43f   : > { %4032 = vmatprep.mubr.f32.mxu1 %v2950_v7 }
 0x44f   : > { %v10132_v62 = vpop.f32.mrb[14].mxu1 }
 0x450   : > { %v10134_v61 = vpop.f32.mrb[15].mxu1 }
 0x451   : > { %v3488_v1 = vmax.f32 %v10132_v62, %v10134_v61 }
 0x453   : > { %3489 = vmax.xlane.f32.xlu0 %v3488_v1  ;;  %v10138_v43 = vpop.f32.mrb[16].mxu1 }
 0x454   : > { %v10140_v17 = vpop.f32.mrb[17].mxu1 }
 0x455   : > { %v3491_v10 = vmax.f32 %v10138_v43, %v10140_v17 }
 0x457   : > { %3492 = vmax.xlane.f32.xlu1 %v3491_v10  ;;  %v10144_v11 = vpop.f32.mrb[18].mxu1 }
 0x458   : > { %v10146_v44 = vpop.f32.mrb[19].mxu1 }
 0x459   : > { %v3494_v5 = vmax.f32 %v10144_v11, %v10146_v44 }
 0x45b   : > { %3495 = vmax.xlane.f32.xlu0 %v3494_v5  ;;  %v10150_v46 = vpop.f32.mrb[20].mxu1 }
 0x45c   : > { %v10152_v16 = vpop.f32.mrb[21].mxu1 }
 0x45d   : > { %v3497_v12 = vmax.f32 %v10150_v46, %v10152_v16 }
 0x45f   : > { %3498 = vmax.xlane.f32.xlu1 %v3497_v12  ;;  %v10156_v31 = vpop.f32.mrb[22].mxu1 }
 0x460   : > { %v10158_v8 = vpop.f32.mrb[23].mxu1 }
 0x461   : > { %v3500_v19 = vmax.f32 %v10156_v31, %v10158_v8 }
 0x463   : > { %3501 = vmax.xlane.f32.xlu0 %v3500_v19  ;;  %v10162_v27 = vpop.f32.mrb[24].mxu1 }
 0x464   : > { %v10164_v18 = vpop.f32.mrb[25].mxu1 }
 0x465   : > { %v3503_v9 = vmax.f32 %v10162_v27, %v10164_v18 }
 0x467   : > { %3504 = vmax.xlane.f32.xlu1 %v3503_v9  ;;  %v10168_v14 = vpop.f32.mrb[34].mxu0  ;;  %v10170_v26 = vpop.f32.mrb[26].mxu1 }
 0x468   : > { %v10172_v39 = vpop.f32.mrb[35].mxu0  ;;  %v10174_v53 = vpop.f32.mrb[27].mxu1 }
 0x469   : > { %v4466_v37 = vmax.f32 %v10168_v14, %v10172_v39  ;;  %v3506_v29 = vmax.f32 %v10170_v26, %v10174_v53 }
 0x46b   : > { %4467 = vmax.xlane.f32.xlu0 %v4466_v37  ;;  %v10180_v7 = vpop.f32.mrb[36].mxu0  ;;  %v10182_v1 = vpop.f32.mrb[28].mxu1 }
 0x46c   : > { %v10184_v10 = vpop.f32.mrb[37].mxu0  ;;  %v10186_v5 = vpop.f32.mrb[29].mxu1 }
 0x46d   : > { %v4469_v12 = vmax.f32 %v10180_v7, %v10184_v10  ;;  %v3509_v19 = vmax.f32 %v10182_v1, %v10186_v5 }
 0x46f   : > { %3507 = vmax.xlane.f32.xlu0 %v3506_v29  ;;  %4470 = vmax.xlane.f32.xlu1 %v4469_v12  ;;  %v10192_v9 = vpop.f32.mrb[38].mxu0  ;;  %v10194_v52 = vpop.f32.mrb[30].mxu1 }
 0x470   : > { %v10196_v37 = vpop.f32.mrb[39].mxu0  ;;  %v10198_v56 = vpop.f32.mrb[31].mxu1 }
 0x471   : > { %v4472_v55 = vmax.f32 %v10192_v9, %v10196_v37  ;;  %v3512_v57 = vmax.f32 %v10194_v52, %v10198_v56 }
 0x473   : > { %3510 = vmax.xlane.f32.xlu1 %v3509_v19  ;;  %4473 = vmax.xlane.f32.xlu0 %v4472_v55  ;;  %v10204_v32 = vpop.f32.mrb[40].mxu0  ;;  %v10206_v29 = vpop.f32.mrb[32].mxu1 }
 0x474   : > { %v10208_v12 = vpop.f32.mrb[41].mxu0  ;;  %v10210_v20 = vpop.f32.mrb[33].mxu1 }
 0x475   : > { %v4475_v6 = vmax.f32 %v10204_v32, %v10208_v12  ;;  %v3515_v54 = vmax.f32 %v10206_v29, %v10210_v20 }
 0x477   : > { %3513 = vmax.xlane.f32.xlu0 %v3512_v57  ;;  %4476 = vmax.xlane.f32.xlu1 %v4475_v6  ;;  %v10216_v50 = vpop.f32.mrb[42].mxu0  ;;  %v10218_v19 = vpop.f32.mrb[34].mxu1 }
 0x478   : > { %v10220_v55 = vpop.f32.mrb[43].mxu0  ;;  %v10222_v15 = vpop.f32.mrb[35].mxu1 }
 0x479   : > { %v4478_v58 = vmax.f32 %v10216_v50, %v10220_v55  ;;  %v3518_v24 = vmax.f32 %v10218_v19, %v10222_v15 }
 0x47b   : > { %3516 = vmax.xlane.f32.xlu1 %v3515_v54  ;;  %4479 = vmax.xlane.f32.xlu0 %v4478_v58  ;;  %v10228_v36 = vpop.f32.mrb[44].mxu0  ;;  %v10230_v57 = vpop.f32.mrb[36].mxu1 }
 0x47c   : > { %v10232_v6 = vpop.f32.mrb[45].mxu0  ;;  %v10234_v45 = vpop.f32.mrb[37].mxu1 }
 0x47d   : > { %v4481_v23 = vmax.f32 %v10228_v36, %v10232_v6  ;;  %v3521_v59 = vmax.f32 %v10230_v57, %v10234_v45 }
 0x47f   : > { %3519 = vmax.xlane.f32.xlu0 %v3518_v24  ;;  %4482 = vmax.xlane.f32.xlu1 %v4481_v23  ;;  %v10240_v13 = vpop.f32.mrb[46].mxu0  ;;  %v10242_v54 = vpop.f32.mrb[38].mxu1 }
 0x480   : > { %v10244_v58 = vpop.f32.mrb[47].mxu0  ;;  %v10246_v35 = vpop.f32.mrb[39].mxu1 }
 0x481   : > { %v4484_v33 = vmax.f32 %v10240_v13, %v10244_v58  ;;  %v3524_v3 = vmax.f32 %v10242_v54, %v10246_v35 }
 0x483   : > { %3522 = vmax.xlane.f32.xlu1 %v3521_v59  ;;  %4485 = vmax.xlane.f32.xlu0 %v4484_v33  ;;  %v10252_v4 = vpop.f32.mrb[48].mxu0  ;;  %v10254_v24 = vpop.f32.mrb[40].mxu1 }
 0x484   : > { %v10256_v23 = vpop.f32.mrb[49].mxu0  ;;  %v10258_v22 = vpop.f32.mrb[41].mxu1 }
 0x485   : > { %v4487_v34 = vmax.f32 %v10252_v4, %v10256_v23  ;;  %v3527_v63 = vmax.f32 %v10254_v24, %v10258_v22 }
 0x487   : > { %3525 = vmax.xlane.f32.xlu0 %v3524_v3  ;;  %4488 = vmax.xlane.f32.xlu1 %v4487_v34  ;;  %v10264_v21 = vpop.f32.mrb[50].mxu0  ;;  %v10266_v59 = vpop.f32.mrb[42].mxu1 }
 0x488   : > { %13070 = vst [vmem:[#allocation38_spill] sm:$0xff] %v10264_v21  ;;  %13071 = vst [vmem:[#allocation39_spill] sm:$0xff] %v10266_v59  ;;  %v10268_v33 = vpop.f32.mrb[51].mxu0  ;;  %v10270_v2 = vpop.f32.mrb[43].mxu1 }
 0x489   : > { %13072 = vst [vmem:[#allocation40_spill] sm:$0xff] %v10268_v33  ;;  %13073 = vst [vmem:[#allocation41_spill] sm:$0xff] %v10270_v2  ;;  %v4490_v60 = vmax.f32 %v10264_v21, %v10268_v33  ;;  %v3530_v38 = vmax.f32 %v10266_v59, %v10270_v2 }
 0x48b   : > { %3528 = vmax.xlane.f32.xlu1 %v3527_v63  ;;  %4491 = vmax.xlane.f32.xlu0 %v4490_v60  ;;  %v10276_v41 = vpop.f32.mrb[52].mxu0  ;;  %v10278_v3 = vpop.f32.mrb[44].mxu1 }
 0x48c   : > { %13074 = vst [vmem:[#allocation42_spill] sm:$0xff] %v10276_v41  ;;  %13075 = vst [vmem:[#allocation43_spill] sm:$0xff] %v10278_v3  ;;  %v10280_v34 = vpop.f32.mrb[53].mxu0  ;;  %v10282_v48 = vpop.f32.mrb[45].mxu1 }
 0x48d   : > { %13076 = vst [vmem:[#allocation44_spill] sm:$0xff] %v10280_v34  ;;  %13077 = vst [vmem:[#allocation45_spill] sm:$0xff] %v10282_v48  ;;  %v4493_v25 = vmax.f32 %v10276_v41, %v10280_v34  ;;  %v3533_v30 = vmax.f32 %v10278_v3, %v10282_v48 }
 0x48f   : > { %3531 = vmax.xlane.f32.xlu0 %v3530_v38  ;;  %4494 = vmax.xlane.f32.xlu1 %v4493_v25  ;;  %v10288_v40 = vpop.f32.mrb[54].mxu0 }
 0x490   : > { %13078 = vst [vmem:[#allocation46_spill] sm:$0xff] %v10288_v40  ;;  %v10290_v63 = vpop.f32.mrb[55].mxu0 }
 0x491   : > { %13079 = vst [vmem:[#allocation47_spill] sm:$0xff] %v10290_v63  ;;  %v4496_v60 = vmax.f32 %v10288_v40, %v10290_v63 }
 0x493   : > { %3534 = vmax.xlane.f32.xlu1 %v3533_v30  ;;  %4497 = vmax.xlane.f32.xlu0 %v4496_v60  ;;  %v10294_v28 = vpop.f32.mrb[56].mxu0 }
 0x494   : > { %13080 = vst [vmem:[#allocation48_spill] sm:$0xff] %v10294_v28  ;;  %v10296_v51 = vpop.f32.mrb[57].mxu0 }
 0x495   : > { %13081 = vst [vmem:[#allocation49_spill] sm:$0xff] %v10296_v51  ;;  %v4499_v49 = vmax.f32 %v10294_v28, %v10296_v51 }
 0x497   : > { %4500 = vmax.xlane.f32.xlu1 %v4499_v49  ;;  %v10300_v42 = vpop.f32.mrb[58].mxu0 }
 0x498   : > { %13082 = vst [vmem:[#allocation50_spill] sm:$0xff] %v10300_v42  ;;  %v10302_v25 = vpop.f32.mrb[59].mxu0 }
 0x499   : > { %13083 = vst [vmem:[#allocation51_spill] sm:$0xff] %v10302_v25  ;;  %v4502_v38 = vmax.f32 %v10300_v42, %v10302_v25 }
 0x49b   : > { %v10306_v0 = vpop.f32.mrb[60].mxu0 }
 0x49c   : > { %13084 = vst [vmem:[#allocation52_spill] sm:$0xff] %v10306_v0  ;;  %v10308_v47 = vpop.f32.mrb[61].mxu0 }
 0x49d   : > { %13085 = vst [vmem:[#allocation53_spill] sm:$0xff] %v10308_v47  ;;  %v4505_v30 = vmax.f32 %v10306_v0, %v10308_v47 }
 0x49f   : > { %v10312_v60 = vpop.f32.mrb[62].mxu0 }
 0x4a0   : > { %13086 = vst [vmem:[#allocation54_spill] sm:$0xff] %v10312_v60  ;;  %v10314_v63 = vpop.f32.mrb[63].mxu0 }
 0x4a1   : > { %13087 = vst [vmem:[#allocation55_spill] sm:$0xff] %v10314_v63  ;;  %v4508_v49 = vmax.f32 %v10312_v60, %v10314_v63 }
 0x4a3   : > { %v10318_v51 = vpop.f32.mrb[64].mxu0 }
 0x4a4   : > { %13088 = vst [vmem:[#allocation56_spill] sm:$0xff] %v10318_v51  ;;  %v10320_v28 = vpop.f32.mrb[65].mxu0 }
 0x4a5   : > { %13089 = vst [vmem:[#allocation57_spill] sm:$0xff] %v10320_v28  ;;  %v4511_v25 = vmax.f32 %v10318_v51, %v10320_v28 }
 0x4a7   : > { %v10324_v42 = vpop.f32.mrb[46].mxu1  ;;  %v10326_v40 = vpop.f32.mrb[66].mxu0 }
 0x4a8   : > { %13090 = vst [vmem:[#allocation58_spill] sm:$0xff] %v10324_v42  ;;  %13091 = vst [vmem:[#allocation59_spill] sm:$0xff] %v10326_v40  ;;  %v10328_v48 = vpop.f32.mrb[47].mxu1  ;;  %v10330_v47 = vpop.f32.mrb[67].mxu0 }
 0x4a9   : > { %13092 = vst [vmem:[#allocation60_spill] sm:$0xff] %v10328_v48  ;;  %13093 = vst [vmem:[#allocation61_spill] sm:$0xff] %v10330_v47  ;;  %v3536_v0 = vmax.f32 %v10324_v42, %v10328_v48  ;;  %v4514_v63 = vmax.f32 %v10326_v40, %v10330_v47 }
 0x4ab   : > { %3537 = vmax.xlane.f32.xlu0 %v3536_v0  ;;  %v10336_v60 = vpop.f32.mrb[48].mxu1  ;;  %v10338_v3 = vpop.f32.mrb[68].mxu0 }
 0x4ac   : > { %13094 = vst [vmem:[#allocation62_spill] sm:$0xff] %v10336_v60  ;;  %13095 = vst [vmem:[#allocation63_spill] sm:$0xff] %v10338_v3  ;;  %v10340_v28 = vpop.f32.mrb[49].mxu1  ;;  %v10342_v51 = vpop.f32.mrb[69].mxu0 }
 0x4ad   : > { %13096 = vst [vmem:[#allocation64_spill] sm:$0xff] %v10340_v28  ;;  %13097 = vst [vmem:[#allocation65_spill] sm:$0xff] %v10342_v51  ;;  %v3539_v2 = vmax.f32 %v10336_v60, %v10340_v28  ;;  %v4517_v59 = vmax.f32 %v10338_v3, %v10342_v51 }
 0x4af   : > { %4503 = vmax.xlane.f32.xlu0 %v4502_v38  ;;  %3540 = vmax.xlane.f32.xlu1 %v3539_v2  ;;  %v10348_v48 = vpop.f32.mrb[50].mxu1  ;;  %v10350_v47 = vpop.f32.mrb[70].mxu0 }
 0x4b0   : > { %13098 = vst [vmem:[#allocation66_spill] sm:$0xff] %v10348_v48  ;;  %13099 = vst [vmem:[#allocation67_spill] sm:$0xff] %v10350_v47  ;;  %v10352_v0 = vpop.f32.mrb[51].mxu1  ;;  %v10354_v40 = vpop.f32.mrb[71].mxu0 }
 0x4b1   : > { %13100 = vst [vmem:[#allocation68_spill] sm:$0xff] %v10352_v0  ;;  %13101 = vst [vmem:[#allocation69_spill] sm:$0xff] %v10354_v40  ;;  %v3542_v42 = vmax.f32 %v10348_v48, %v10352_v0  ;;  %v4520_v34 = vmax.f32 %v10350_v47, %v10354_v40 }
 0x4b3   : > { %4506 = vmax.xlane.f32.xlu1 %v4505_v30  ;;  %3543 = vmax.xlane.f32.xlu0 %v3542_v42  ;;  %v10360_v28 = vpop.f32.mrb[52].mxu1  ;;  %v10362_v38 = vpop.f32.mrb[72].mxu0 }
 0x4b4   : > { %13102 = vst [vmem:[#allocation70_spill] sm:$0xff] %v10360_v28  ;;  %13103 = vst [vmem:[#allocation71_spill] sm:$0xff] %v10362_v38  ;;  %v10364_v2 = vpop.f32.mrb[53].mxu1  ;;  %v10366_v51 = vpop.f32.mrb[73].mxu0 }
 0x4b5   : > { %13104 = vst [vmem:[#allocation72_spill] sm:$0xff] %v10364_v2  ;;  %13105 = vst [vmem:[#allocation73_spill] sm:$0xff] %v10366_v51  ;;  %v3545_v3 = vmax.f32 %v10360_v28, %v10364_v2  ;;  %v4523_v60 = vmax.f32 %v10362_v38, %v10366_v51 }
 0x4b7   : > { %4509 = vmax.xlane.f32.xlu0 %v4508_v49  ;;  %3546 = vmax.xlane.f32.xlu1 %v3545_v3  ;;  %v10372_v0 = vpop.f32.mrb[54].mxu1  ;;  %v10374_v30 = vpop.f32.mrb[74].mxu0 }
 0x4b8   : > { %13106 = vst [vmem:[#allocation74_spill] sm:$0xff] %v10372_v0  ;;  %13107 = vst [vmem:[#allocation75_spill] sm:$0xff] %v10374_v30  ;;  %v10376_v42 = vpop.f32.mrb[55].mxu1  ;;  %v10378_v40 = vpop.f32.mrb[75].mxu0 }
 0x4b9   : > { %13108 = vst [vmem:[#allocation76_spill] sm:$0xff] %v10376_v42  ;;  %13109 = vst [vmem:[#allocation77_spill] sm:$0xff] %v10378_v40  ;;  %v3548_v47 = vmax.f32 %v10372_v0, %v10376_v42  ;;  %v4526_v48 = vmax.f32 %v10374_v30, %v10378_v40 }
 0x4bb   : > { %4512 = vmax.xlane.f32.xlu1 %v4511_v25  ;;  %3549 = vmax.xlane.f32.xlu0 %v3548_v47  ;;  %v10384_v2 = vpop.f32.mrb[56].mxu1  ;;  %v10386_v49 = vpop.f32.mrb[76].mxu0 }
 0x4bc   : > { %13110 = vst [vmem:[#allocation78_spill] sm:$0xff] %v10384_v2  ;;  %13111 = vst [vmem:[#allocation79_spill] sm:$0xff] %v10386_v49  ;;  %v10388_v3 = vpop.f32.mrb[57].mxu1  ;;  %v10390_v51 = vpop.f32.mrb[77].mxu0 }
 0x4bd   : > { %13112 = vst [vmem:[#allocation80_spill] sm:$0xff] %v10388_v3  ;;  %13113 = vst [vmem:[#allocation81_spill] sm:$0xff] %v10390_v51  ;;  %v3551_v38 = vmax.f32 %v10384_v2, %v10388_v3  ;;  %v4529_v28 = vmax.f32 %v10386_v49, %v10390_v51 }
 0x4bf   : > { %4515 = vmax.xlane.f32.xlu0 %v4514_v63  ;;  %3552 = vmax.xlane.f32.xlu1 %v3551_v38  ;;  %v10396_v42 = vpop.f32.mrb[58].mxu1  ;;  %v10398_v25 = vpop.f32.mrb[78].mxu0 }
 0x4c0   : > { %13114 = vst [vmem:[#allocation82_spill] sm:$0xff] %v10396_v42  ;;  %13115 = vst [vmem:[#allocation83_spill] sm:$0xff] %v10398_v25  ;;  %v10400_v47 = vpop.f32.mrb[59].mxu1  ;;  %v10402_v40 = vpop.f32.mrb[79].mxu0 }
 0x4c1   : > { %13116 = vst [vmem:[#allocation84_spill] sm:$0xff] %v10400_v47  ;;  %13117 = vst [vmem:[#allocation85_spill] sm:$0xff] %v10402_v40  ;;  %v3554_v30 = vmax.f32 %v10396_v42, %v10400_v47  ;;  %v4532_v0 = vmax.f32 %v10398_v25, %v10402_v40 }
 0x4c3   : > { %4518 = vmax.xlane.f32.xlu1 %v4517_v59  ;;  %3555 = vmax.xlane.f32.xlu0 %v3554_v30  ;;  %v10408_v3 = vpop.f32.mrb[60].mxu1  ;;  %v10410_v63 = vpop.f32.mrb[80].mxu0 }
 0x4c4   : > { %13118 = vst [vmem:[#allocation86_spill] sm:$0xff] %v10408_v3  ;;  %13119 = vst [vmem:[#allocation87_spill] sm:$0xff] %v10410_v63  ;;  %v10412_v38 = vpop.f32.mrb[61].mxu1  ;;  %v10414_v51 = vpop.f32.mrb[81].mxu0 }
 0x4c5   : > { %13120 = vst [vmem:[#allocation88_spill] sm:$0xff] %v10412_v38  ;;  %13121 = vst [vmem:[#allocation89_spill] sm:$0xff] %v10414_v51  ;;  %v3557_v49 = vmax.f32 %v10408_v3, %v10412_v38  ;;  %v4535_v2 = vmax.f32 %v10410_v63, %v10414_v51 }
 0x4c7   : > { %4521 = vmax.xlane.f32.xlu0 %v4520_v34  ;;  %3558 = vmax.xlane.f32.xlu1 %v3557_v49  ;;  %v10420_v47 = vpop.f32.mrb[62].mxu1  ;;  %v10422_v59 = vpop.f32.mrb[82].mxu0 }
 0x4c8   : > { %13122 = vst [vmem:[#allocation90_spill] sm:$0xff] %v10420_v47  ;;  %13123 = vst [vmem:[#allocation91_spill] sm:$0xff] %v10422_v59  ;;  %v10424_v30 = vpop.f32.mrb[63].mxu1  ;;  %v10426_v40 = vpop.f32.mrb[83].mxu0 }
 0x4c9   : > { %13124 = vst [vmem:[#allocation92_spill] sm:$0xff] %v10424_v30  ;;  %13125 = vst [vmem:[#allocation93_spill] sm:$0xff] %v10426_v40  ;;  %v3560_v25 = vmax.f32 %v10420_v47, %v10424_v30  ;;  %v4538_v42 = vmax.f32 %v10422_v59, %v10426_v40 }
 0x4cb   : > { %4524 = vmax.xlane.f32.xlu1 %v4523_v60  ;;  %3561 = vmax.xlane.f32.xlu0 %v3560_v25  ;;  %v10432_v38 = vpop.f32.mrb[64].mxu1  ;;  %v10434_v34 = vpop.f32.mrb[84].mxu0 }
 0x4cc   : > { %13126 = vst [vmem:[#allocation94_spill] sm:$0xff] %v10432_v38  ;;  %13127 = vst [vmem:[#allocation95_spill] sm:$0xff] %v10434_v34  ;;  %v10436_v49 = vpop.f32.mrb[65].mxu1  ;;  %v10438_v51 = vpop.f32.mrb[85].mxu0 }
 0x4cd   : > { %13128 = vst [vmem:[#allocation96_spill] sm:$0xff] %v10436_v49  ;;  %13129 = vst [vmem:[#allocation97_spill] sm:$0xff] %v10438_v51  ;;  %v3563_v63 = vmax.f32 %v10432_v38, %v10436_v49  ;;  %v4541_v3 = vmax.f32 %v10434_v34, %v10438_v51 }
 0x4cf   : > { %4527 = vmax.xlane.f32.xlu0 %v4526_v48  ;;  %3564 = vmax.xlane.f32.xlu1 %v3563_v63  ;;  %v10444_v30 = vpop.f32.mrb[66].mxu1  ;;  %v10446_v60 = vpop.f32.mrb[86].mxu0 }
 0x4d0   : > { %13130 = vst [vmem:[#allocation98_spill] sm:$0xff] %v10444_v30  ;;  %13131 = vst [vmem:[#allocation99_spill] sm:$0xff] %v10446_v60  ;;  %v10448_v25 = vpop.f32.mrb[67].mxu1  ;;  %v10450_v40 = vpop.f32.mrb[87].mxu0 }
 0x4d1   : > { %13132 = vst [vmem:[#allocation100_spill] sm:$0xff] %v10448_v25  ;;  %13133 = vst [vmem:[#allocation101_spill] sm:$0xff] %v10450_v40  ;;  %v3566_v59 = vmax.f32 %v10444_v30, %v10448_v25  ;;  %v4544_v47 = vmax.f32 %v10446_v60, %v10450_v40 }
 0x4d3   : > { %4530 = vmax.xlane.f32.xlu1 %v4529_v28  ;;  %3567 = vmax.xlane.f32.xlu0 %v3566_v59  ;;  %v10456_v49 = vpop.f32.mrb[68].mxu1  ;;  %v10458_v48 = vpop.f32.mrb[88].mxu0 }
 0x4d4   : > { %13134 = vst [vmem:[#allocation102_spill] sm:$0xff] %v10456_v49  ;;  %13135 = vst [vmem:[#allocation103_spill] sm:$0xff] %v10458_v48  ;;  %v10460_v63 = vpop.f32.mrb[69].mxu1  ;;  %v10462_v51 = vpop.f32.mrb[89].mxu0 }
 0x4d5   : > { %13136 = vst [vmem:[#allocation104_spill] sm:$0xff] %v10460_v63  ;;  %13137 = vst [vmem:[#allocation105_spill] sm:$0xff] %v10462_v51  ;;  %v3569_v34 = vmax.f32 %v10456_v49, %v10460_v63  ;;  %v4547_v38 = vmax.f32 %v10458_v48, %v10462_v51  ;;  %v10480_v63 = vpop.permute.xlu0 %2691 }
 0x4d6   : > { %13142 = vst [vmem:[#allocation110_spill] sm:$0xff] %v10480_v63 }
 0x4d7   : > { %4533 = vmax.xlane.f32.xlu0 %v4532_v0  ;;  %3570 = vmax.xlane.f32.xlu1 %v3569_v34  ;;  %v10468_v25 = vpop.f32.mrb[70].mxu1  ;;  %v10470_v28 = vpop.f32.mrb[90].mxu0 }
 0x4d8   : > { %13138 = vst [vmem:[#allocation106_spill] sm:$0xff] %v10468_v25  ;;  %13139 = vst [vmem:[#allocation107_spill] sm:$0xff] %v10470_v28  ;;  %v10472_v59 = vpop.f32.mrb[71].mxu1  ;;  %v10474_v40 = vpop.f32.mrb[91].mxu0 }
 0x4d9   : > { %13140 = vst [vmem:[#allocation108_spill] sm:$0xff] %v10472_v59  ;;  %13141 = vst [vmem:[#allocation109_spill] sm:$0xff] %v10474_v40  ;;  %v3572_v60 = vmax.f32 %v10468_v25, %v10472_v59  ;;  %v4550_v30 = vmax.f32 %v10470_v28, %v10474_v40 }
 0x4db   : > { %4536 = vmax.xlane.f32.xlu1 %v4535_v2  ;;  %3573 = vmax.xlane.f32.xlu0 %v3572_v60  ;;  %v10482_v0 = vpop.f32.mrb[72].mxu1  ;;  %v10484_v34 = vpop.f32.mrb[92].mxu0 }
 0x4dc   : > { %13143 = vst [vmem:[#allocation111_spill] sm:$0xff] %v10482_v0  ;;  %13144 = vst [vmem:[#allocation112_spill] sm:$0xff] %v10484_v34  ;;  %v10486_v51 = vpop.f32.mrb[73].mxu1  ;;  %v10488_v48 = vpop.f32.mrb[93].mxu0 }
 0x4dd   : > { %13145 = vst [vmem:[#allocation113_spill] sm:$0xff] %v10486_v51  ;;  %13146 = vst [vmem:[#allocation114_spill] sm:$0xff] %v10488_v48  ;;  %v3575_v49 = vmax.f32 %v10482_v0, %v10486_v51  ;;  %v4553_v59 = vmax.f32 %v10484_v34, %v10488_v48 }
 0x4df   : > { %4539 = vmax.xlane.f32.xlu0 %v4538_v42  ;;  %3576 = vmax.xlane.f32.xlu1 %v3575_v49  ;;  %v10494_v40 = vpop.f32.mrb[74].mxu1  ;;  %v10496_v2 = vpop.f32.mrb[94].mxu0 }
 0x4e0   : > { %13147 = vst [vmem:[#allocation115_spill] sm:$0xff] %v10496_v2  ;;  %v10498_v60 = vpop.f32.mrb[75].mxu1  ;;  %v3490_v63 = vpop.xlane.xlu0 %3489 }
 0x4e1   : > { %v3578_v28 = vmax.f32 %v10494_v40, %v10498_v60  ;;  %v3584_v25 = vsub.f32 %v10132_v62, %v3490_v63  ;;  %v3585_v41 = vsub.f32 %v10134_v61, %v3490_v63  ;;  %v10504_v51 = vpop.f32.mrb[95].mxu0 }
 0x4e2   : > { %13148 = vst [vmem:[#allocation116_spill] sm:$0xff] %v10504_v51  ;;  %v4556_v42 = vmax.f32 %v10496_v2, %v10504_v51 }
 0x4e3   : > { %v3648_v49 = vmul.f32 1.442695, %v3584_v25  ;;  %v3650_v48 = vmul.f32 1.442695, %v3585_v41  ;;  %4542 = vmax.xlane.f32.xlu1 %v4541_v3  ;;  %3579 = vmax.xlane.f32.xlu0 %v3578_v28  ;;  %v10508_v34 = vpop.f32.mrb[76].mxu1  ;;  %v10510_v0 = vpop.f32.mrb[96].mxu0 }
 0x4e4   : > { %v3493_v33 = vpop.xlane.xlu1 %3492  ;;  %v10512_v21 = vpop.f32.mrb[77].mxu1 }
 0x4e5   : > { %7833 = vpow2.f32 %v3648_v49  ;;  %v3586_v62 = vsub.f32 %v10138_v43, %v3493_v33  ;;  %v3587_v61 = vsub.f32 %v10140_v17, %v3493_v33  ;;  %v3581_v63 = vmax.f32 %v10508_v34, %v10512_v21  ;;  %v10518_v51 = vpop.f32.mrb[97].mxu0 }
 0x4e6   : > { %7835 = vpow2.f32 %v3650_v48  ;;  %v4559_v41 = vmax.f32 %v10510_v0, %v10518_v51 }
 0x4e7   : > { %v3652_v3 = vmul.f32 1.442695, %v3586_v62  ;;  %v3654_v25 = vmul.f32 1.442695, %v3587_v61  ;;  %4545 = vmax.xlane.f32.xlu0 %v4544_v47  ;;  %3582 = vmax.xlane.f32.xlu1 %v3581_v63 }
 0x4e8   : > { %v3496_v28 = vpop.xlane.xlu0 %3495 }
 0x4e9   : > { %7837 = vpow2.f32 %v3652_v3  ;;  %v3588_v49 = vsub.f32 %v10144_v11, %v3496_v28  ;;  %v3589_v43 = vsub.f32 %v10146_v44, %v3496_v28 }
 0x4ea   : > { %7839 = vpow2.f32 %v3654_v25 }
 0x4eb   : > { %v3656_v17 = vmul.f32 1.442695, %v3588_v49  ;;  %v3658_v33 = vmul.f32 1.442695, %v3589_v43  ;;  %4551 = vmax.xlane.f32.xlu0 %v4550_v30  ;;  %4548 = vmax.xlane.f32.xlu1 %v4547_v38 }
 0x4ec   : > { %v3499_v2 = vpop.xlane.xlu1 %3498 }
 0x4ed   : > { %7841 = vpow2.f32 %v3656_v17  ;;  %v3590_v48 = vsub.f32 %v10150_v46, %v3499_v2  ;;  %v3591_v62 = vsub.f32 %v10152_v16, %v3499_v2 }
 0x4ee   : > { %7843 = vpow2.f32 %v3658_v33 }
 0x4ef   : > { %v10526_v47 = vpop.eup %7833  ;;  %v3660_v61 = vmul.f32 1.442695, %v3590_v48  ;;  %v3662_v63 = vmul.f32 1.442695, %v3591_v62  ;;  %4557 = vmax.xlane.f32.xlu0 %v4556_v42  ;;  %4554 = vmax.xlane.f32.xlu1 %v4553_v59 }
 0x4f0   : > { %v10528_v11 = vpop.eup %7835  ;;  %v3502_v44 = vpop.xlane.xlu0 %3501 }
 0x4f1   : > { %7845 = vpow2.f32 %v3660_v61  ;;  %v3592_v30 = vsub.f32 %v10156_v31, %v3502_v44  ;;  %v3593_v38 = vsub.f32 %v10158_v8, %v3502_v44  ;;  %v3776_v46 = vadd.f32 %v10528_v11, %v10526_v47 }
 0x4f2   : > { %7847 = vpow2.f32 %v3662_v63 }
 0x4f3   : > { %v10534_v16 = vpop.eup %7837  ;;  %v3664_v2 = vmul.f32 1.442695, %v3592_v30  ;;  %v3666_v3 = vmul.f32 1.442695, %v3593_v38  ;;  %4560 = vmax.xlane.f32.xlu1 %v4559_v41  ;;  %3777 = vadd.xlane.f32.xlu0 %v3776_v46 }
 0x4f4   : > { %v10536_v42 = vpop.eup %7839  ;;  %v3505_v59 = vpop.xlane.xlu1 %3504 }
 0x4f5   : > { %7849 = vpow2.f32 %v3664_v2  ;;  %v3594_v25 = vsub.f32 %v10162_v27, %v3505_v59  ;;  %v3595_v31 = vsub.f32 %v10164_v18, %v3505_v59  ;;  %v3779_v8 = vadd.f32 %v10536_v42, %v10534_v16 }
 0x4f6   : > { %7851 = vpow2.f32 %v3666_v3 }
 0x4f7   : > { %v10542_v28 = vpop.eup %7841  ;;  %v3668_v49 = vmul.f32 1.442695, %v3594_v25  ;;  %v3670_v43 = vmul.f32 1.442695, %v3595_v31  ;;  %3780 = vadd.xlane.f32.xlu1 %v3779_v8 }
 0x4f8   : > { %v10544_v17 = vpop.eup %7843  ;;  %v4468_v41 = vpop.xlane.xlu0 %4467 }
 0x4f9   : > { %7853 = vpow2.f32 %v3668_v49  ;;  %v4562_v33 = vsub.f32 %v10168_v14, %v4468_v41  ;;  %v4563_v48 = vsub.f32 %v10172_v39, %v4468_v41  ;;  %v3782_v27 = vadd.f32 %v10544_v17, %v10542_v28 }
 0x4fa   : > { %7855 = vpow2.f32 %v3670_v43 }
 0x4fb   : > { %v10550_v18 = vpop.eup %7845  ;;  %v4626_v62 = vmul.f32 1.442695, %v4562_v33  ;;  %v4628_v61 = vmul.f32 1.442695, %v4563_v48  ;;  %3783 = vadd.xlane.f32.xlu0 %v3782_v27 }
 0x4fc   : > { %v10552_v63 = vpop.eup %7847  ;;  %v4471_v44 = vpop.xlane.xlu1 %4470 }
 0x4fd   : > { %v3508_v30 = vpop.xlane.xlu0 %3507  ;;  %7857 = vpow2.f32 %v4626_v62  ;;  %v4564_v38 = vsub.f32 %v10180_v7, %v4471_v44  ;;  %v4565_v14 = vsub.f32 %v10184_v10, %v4471_v44  ;;  %v3785_v2 = vadd.f32 %v10552_v63, %v10550_v18 }
 0x4fe   : > { %v3596_v39 = vsub.f32 %v10170_v26, %v3508_v30  ;;  %7859 = vpow2.f32 %v4628_v61  ;;  %v3597_v46 = vsub.f32 %v10174_v53, %v3508_v30 }
 0x4ff   : > { %v10560_v3 = vpop.eup %7849  ;;  %v4630_v59 = vmul.f32 1.442695, %v4564_v38  ;;  %v4632_v25 = vmul.f32 1.442695, %v4565_v14  ;;  %3786 = vadd.xlane.f32.xlu1 %v3785_v2 }
 0x500   : > { %v3672_v31 = vmul.f32 1.442695, %v3596_v39  ;;  %v10562_v8 = vpop.eup %7851  ;;  %v3674_v49 = vmul.f32 1.442695, %v3597_v46  ;;  %v3511_v7 = vpop.xlane.xlu1 %3510 }
 0x501   : > { %v4474_v43 = vpop.xlane.xlu0 %4473  ;;  %7861 = vpow2.f32 %v4630_v59  ;;  %v3598_v26 = vsub.f32 %v10182_v1, %v3511_v7  ;;  %v3599_v10 = vsub.f32 %v10186_v5, %v3511_v7  ;;  %v3788_v33 = vadd.f32 %v10562_v8, %v10560_v3 }
 0x502   : > { %v4566_v53 = vsub.f32 %v10192_v9, %v4474_v43  ;;  %7863 = vpow2.f32 %v4632_v25  ;;  %v4567_v41 = vsub.f32 %v10196_v37, %v4474_v43 }
 0x503   : > { %v10570_v48 = vpop.eup %7853  ;;  %7865 = vpow2.f32 %v3672_v31  ;;  %v3676_v27 = vmul.f32 1.442695, %v3598_v26  ;;  %v3678_v62 = vmul.f32 1.442695, %v3599_v10  ;;  %3789 = vadd.xlane.f32.xlu0 %v3788_v33 }
 0x504   : > { %v4634_v61 = vmul.f32 1.442695, %v4566_v53  ;;  %v10572_v44 = vpop.eup %7855  ;;  %7867 = vpow2.f32 %v3674_v49  ;;  %v4636_v1 = vmul.f32 1.442695, %v4567_v41  ;;  %v4477_v5 = vpop.xlane.xlu1 %4476 }
 0x505   : > { %v3514_v30 = vpop.xlane.xlu0 %3513  ;;  %7869 = vpow2.f32 %v3676_v27  ;;  %v4568_v9 = vsub.f32 %v10204_v32, %v4477_v5  ;;  %v4569_v37 = vsub.f32 %v10208_v12, %v4477_v5  ;;  %v3791_v39 = vadd.f32 %v10572_v44, %v10570_v48 }
 0x506   : > { %v3600_v38 = vsub.f32 %v10194_v52, %v3514_v30  ;;  %7871 = vpow2.f32 %v3678_v62  ;;  %v3601_v14 = vsub.f32 %v10198_v56, %v3514_v30 }
 0x507   : > { %v10580_v46 = vpop.eup %7857  ;;  %7873 = vpow2.f32 %v4634_v61  ;;  %v4638_v2 = vmul.f32 1.442695, %v4568_v9  ;;  %v4640_v59 = vmul.f32 1.442695, %v4569_v37  ;;  %3792 = vadd.xlane.f32.xlu1 %v3791_v39 }
 0x508   : > { %v3680_v25 = vmul.f32 1.442695, %v3600_v38  ;;  %v10582_v31 = vpop.eup %7859  ;;  %7875 = vpow2.f32 %v4636_v1  ;;  %v3682_v32 = vmul.f32 1.442695, %v3601_v14  ;;  %v3517_v12 = vpop.xlane.xlu1 %3516 }
 0x509   : > { %v4480_v49 = vpop.xlane.xlu0 %4479  ;;  %7877 = vpow2.f32 %v4638_v2  ;;  %v3602_v52 = vsub.f32 %v10206_v29, %v3517_v12  ;;  %v3603_v56 = vsub.f32 %v10210_v20, %v3517_v12  ;;  %v4754_v26 = vadd.f32 %v10582_v31, %v10580_v46 }
 0x50a   : > { %v4570_v7 = vsub.f32 %v10216_v50, %v4480_v49  ;;  %7879 = vpow2.f32 %v4640_v59  ;;  %v4571_v43 = vsub.f32 %v10220_v55, %v4480_v49 }
 0x50b   : > { %v10590_v10 = vpop.eup %7861  ;;  %7881 = vpow2.f32 %v3680_v25  ;;  %v3684_v53 = vmul.f32 1.442695, %v3602_v52  ;;  %v3686_v41 = vmul.f32 1.442695, %v3603_v56  ;;  %4755 = vadd.xlane.f32.xlu0 %v4754_v26 }
 0x50c   : > { %v4642_v33 = vmul.f32 1.442695, %v4570_v7  ;;  %v10592_v27 = vpop.eup %7863  ;;  %7883 = vpow2.f32 %v3682_v32  ;;  %v4644_v29 = vmul.f32 1.442695, %v4571_v43  ;;  %v4483_v20 = vpop.xlane.xlu1 %4482 }
 0x50d   : > { %v3520_v62 = vpop.xlane.xlu0 %3519  ;;  %v10594_v50 = vpop.eup %7865  ;;  %7885 = vpow2.f32 %v3684_v53  ;;  %v4572_v55 = vsub.f32 %v10228_v36, %v4483_v20  ;;  %v4573_v61 = vsub.f32 %v10232_v6, %v4483_v20  ;;  %v4757_v9 = vadd.f32 %v10592_v27, %v10590_v10 }
 0x50e   : > { %v3604_v1 = vsub.f32 %v10218_v19, %v3520_v62  ;;  %v10599_v5 = vpop.eup %7867  ;;  %7887 = vpow2.f32 %v3686_v41  ;;  %v3605_v30 = vsub.f32 %v10222_v15, %v3520_v62 }
 0x50f   : > { %v10604_v37 = vpop.eup %7869  ;;  %7889 = vpow2.f32 %v4642_v33  ;;  %v4646_v38 = vmul.f32 1.442695, %v4572_v55  ;;  %v4648_v14 = vmul.f32 1.442695, %v4573_v61  ;;  %4758 = vadd.xlane.f32.xlu1 %v4757_v9  ;;  %v3794_v19 = vadd.f32 %v10599_v5, %v10594_v50 }
 0x510   : > { %v3688_v39 = vmul.f32 1.442695, %v3604_v1  ;;  %v10606_v2 = vpop.eup %7871  ;;  %7891 = vpow2.f32 %v4644_v29  ;;  %v3690_v36 = vmul.f32 1.442695, %v3605_v30  ;;  %v3523_v6 = vpop.xlane.xlu1 %3522 }
 0x511   : > { %v4486_v59 = vpop.xlane.xlu0 %4485  ;;  %v10610_v15 = vpop.eup %7873  ;;  %7893 = vpow2.f32 %v4646_v38  ;;  %v3606_v25 = vsub.f32 %v10230_v57, %v3523_v6  ;;  %v3607_v32 = vsub.f32 %v10234_v45, %v3523_v6  ;;  %3795 = vadd.xlane.f32.xlu0 %v3794_v19  ;;  %v3797_v56 = vadd.f32 %v10606_v2, %v10604_v37 }
 0x512   : > { %v4574_v12 = vsub.f32 %v10240_v13, %v4486_v59  ;;  %v10615_v49 = vpop.eup %7875  ;;  %7895 = vpow2.f32 %v4648_v14  ;;  %v4575_v52 = vsub.f32 %v10244_v58, %v4486_v59  ;;  %v13149_v59 = vld [vmem:[#allocation38_spill] sm:$0xff] }
 0x513   : > { %v10620_v7 = vpop.eup %7877  ;;  %7897 = vpow2.f32 %v3688_v39  ;;  %v3692_v43 = vmul.f32 1.442695, %v3606_v25  ;;  %v3694_v26 = vmul.f32 1.442695, %v3607_v32  ;;  %3798 = vadd.xlane.f32.xlu1 %v3797_v56  ;;  %v4760_v13 = vadd.f32 %v10615_v49, %v10610_v15 }
 0x514   : > { %v4650_v53 = vmul.f32 1.442695, %v4574_v12  ;;  %v10622_v57 = vpop.eup %7879  ;;  %7899 = vpow2.f32 %v3690_v36  ;;  %v4652_v45 = vmul.f32 1.442695, %v4575_v52  ;;  %v4489_v41 = vpop.xlane.xlu1 %4488  ;;  %v13150_v12 = vld [vmem:[#allocation40_spill] sm:$0xff] }
 0x515   : > { %v3526_v33 = vpop.xlane.xlu0 %3525  ;;  %v10626_v58 = vpop.eup %7881  ;;  %7901 = vpow2.f32 %v3692_v43  ;;  %v4576_v29 = vsub.f32 %v10252_v4, %v4489_v41  ;;  %v4577_v20 = vsub.f32 %v10256_v23, %v4489_v41  ;;  %4761 = vadd.xlane.f32.xlu0 %v4760_v13  ;;  %v4763_v1 = vadd.f32 %v10622_v57, %v10620_v7 }
 0x516   : > { %v3608_v62 = vsub.f32 %v10242_v54, %v3526_v33  ;;  %v10631_v55 = vpop.eup %7883  ;;  %7903 = vpow2.f32 %v3694_v26  ;;  %v3609_v61 = vsub.f32 %v10246_v35, %v3526_v33 }
 0x517   : > { %v10636_v30 = vpop.eup %7885  ;;  %7905 = vpow2.f32 %v4650_v53  ;;  %v4654_v9 = vmul.f32 1.442695, %v4576_v29  ;;  %v4656_v38 = vmul.f32 1.442695, %v4577_v20  ;;  %4764 = vadd.xlane.f32.xlu1 %v4763_v1  ;;  %v3800_v54 = vadd.f32 %v10631_v55, %v10626_v58  ;;  %v13151_v20 = vld [vmem:[#allocation42_spill] sm:$0xff] }
 0x518   : > { %v3696_v14 = vmul.f32 1.442695, %v3608_v62  ;;  %v10638_v4 = vpop.eup %7887  ;;  %7907 = vpow2.f32 %v4652_v45  ;;  %v3698_v23 = vmul.f32 1.442695, %v3609_v61  ;;  %v3529_v39 = vpop.xlane.xlu1 %3528  ;;  %v13152_v61 = vld [vmem:[#allocation44_spill] sm:$0xff] }
 0x519   : > { %v4492_v36 = vpop.xlane.xlu0 %4491  ;;  %v10642_v35 = vpop.eup %7889  ;;  %7909 = vpow2.f32 %v4654_v9  ;;  %v3610_v19 = vsub.f32 %v10254_v24, %v3529_v39  ;;  %v3611_v6 = vsub.f32 %v10258_v22, %v3529_v39  ;;  %3801 = vadd.xlane.f32.xlu0 %v3800_v54  ;;  %v3803_v56 = vadd.f32 %v10638_v4, %v10636_v30  ;;  %v13153_v9 = vld [vmem:[#allocation39_spill] sm:$0xff] }
 0x51a   : > { %v4578_v25 = vsub.f32 %v13149_v59, %v4492_v36  ;;  %v10647_v32 = vpop.eup %7891  ;;  %7911 = vpow2.f32 %v4656_v38  ;;  %v4579_v52 = vsub.f32 %v13150_v12, %v4492_v36 }
 0x51b   : > { %v10652_v43 = vpop.eup %7893  ;;  %7913 = vpow2.f32 %v3696_v14  ;;  %v3700_v26 = vmul.f32 1.442695, %v3610_v19  ;;  %v3702_v53 = vmul.f32 1.442695, %v3611_v6  ;;  %3804 = vadd.xlane.f32.xlu1 %v3803_v56  ;;  %v4766_v13 = vadd.f32 %v10647_v32, %v10642_v35 }
 0x51c   : > { %v4658_v45 = vmul.f32 1.442695, %v4578_v25  ;;  %v10654_v24 = vpop.eup %7895  ;;  %7915 = vpow2.f32 %v3698_v23  ;;  %v4660_v22 = vmul.f32 1.442695, %v4579_v52  ;;  %v4495_v41 = vpop.xlane.xlu1 %4494  ;;  %v13154_v23 = vld [vmem:[#allocation41_spill] sm:$0xff] }
 0x51d   : > { %v3532_v33 = vpop.xlane.xlu0 %3531  ;;  %v10658_v29 = vpop.eup %7897  ;;  %7917 = vpow2.f32 %v3700_v26  ;;  %v4580_v62 = vsub.f32 %v13151_v20, %v4495_v41  ;;  %v4581_v1 = vsub.f32 %v13152_v61, %v4495_v41  ;;  %4767 = vadd.xlane.f32.xlu0 %v4766_v13  ;;  %v4769_v39 = vadd.f32 %v10654_v24, %v10652_v43  ;;  %v13157_v13 = vld [vmem:[#allocation43_spill] sm:$0xff]  ;;  %v13159_v20 = vld [vmem:[#allocation46_spill] sm:$0xff] }
 0x51e   : > { %v3612_v38 = vsub.f32 %v13153_v9, %v3532_v33  ;;  %v10663_v14 = vpop.eup %7899  ;;  %7919 = vpow2.f32 %v3702_v53  ;;  %v3613_v54 = vsub.f32 %v13154_v23, %v3532_v33  ;;  %v13158_v33 = vld [vmem:[#allocation45_spill] sm:$0xff] }
 0x51f   : > { %v10668_v36 = vpop.eup %7901  ;;  %7921 = vpow2.f32 %v4658_v45  ;;  %v4662_v19 = vmul.f32 1.442695, %v4580_v62  ;;  %v4664_v6 = vmul.f32 1.442695, %v4581_v1  ;;  %4770 = vadd.xlane.f32.xlu1 %v4769_v39  ;;  %v3806_v52 = vadd.f32 %v10663_v14, %v10658_v29 }
 0x520   : > { %13155 = vst [vmem:[#allocation38_spill] sm:$0xff] %v10668_v36  ;;  %v3704_v59 = vmul.f32 1.442695, %v3612_v38  ;;  %v10670_v25 = vpop.eup %7903  ;;  %7923 = vpow2.f32 %v4660_v22  ;;  %v3706_v12 = vmul.f32 1.442695, %v3613_v54  ;;  %v3535_v56 = vpop.xlane.xlu1 %3534  ;;  %v13161_v22 = vld [vmem:[#allocation47_spill] sm:$0xff] }
 0x521   : > { %v4498_v26 = vpop.xlane.xlu0 %4497  ;;  %v10674_v53 = vpop.eup %7905  ;;  %7925 = vpow2.f32 %v4662_v19  ;;  %v3614_v41 = vsub.f32 %v13157_v13, %v3535_v56  ;;  %v3615_v45 = vsub.f32 %v13158_v33, %v3535_v56  ;;  %3807 = vadd.xlane.f32.xlu0 %v3806_v52  ;;  %v3809_v9 = vadd.f32 %v10670_v25, %v10668_v36  ;;  %v13194_v36 = vld [vmem:[#allocation54_spill] sm:$0xff] }
 0x522   : > { %13156 = vst [vmem:[#allocation40_spill] sm:$0xff] %v10674_v53  ;;  %v4582_v62 = vsub.f32 %v13159_v20, %v4498_v26  ;;  %v10679_v61 = vpop.eup %7907  ;;  %7927 = vpow2.f32 %v4664_v6  ;;  %v4583_v1 = vsub.f32 %v13161_v22, %v4498_v26  ;;  %v13165_v26 = vld [vmem:[#allocation48_spill] sm:$0xff]  ;;  %v13166_v20 = vld [vmem:[#allocation49_spill] sm:$0xff] }
 0x523   : > { %13160 = vst [vmem:[#allocation42_spill] sm:$0xff] %v10679_v61  ;;  %v10684_v38 = vpop.eup %7909  ;;  %7929 = vpow2.f32 %v3704_v59  ;;  %v3708_v23 = vmul.f32 1.442695, %v3614_v41  ;;  %v3710_v54 = vmul.f32 1.442695, %v3615_v45  ;;  %3810 = vadd.xlane.f32.xlu1 %v3809_v9  ;;  %v4772_v6 = vadd.f32 %v10679_v61, %v10674_v53  ;;  %v13190_v61 = vld [vmem:[#allocation66_spill] sm:$0xff] }
 0x524   : > { %13162 = vst [vmem:[#allocation44_spill] sm:$0xff] %v10684_v38  ;;  %v4666_v39 = vmul.f32 1.442695, %v4582_v62  ;;  %v10686_v19 = vpop.eup %7911  ;;  %7931 = vpow2.f32 %v3706_v12  ;;  %v4668_v56 = vmul.f32 1.442695, %v4583_v1  ;;  %v4501_v52 = vpop.xlane.xlu1 %4500 }
 0x525   : > { %13163 = vst [vmem:[#allocation39_spill] sm:$0xff] %v10686_v19  ;;  %v10690_v13 = vpop.eup %7913  ;;  %7933 = vpow2.f32 %v3708_v23  ;;  %v4584_v33 = vsub.f32 %v13165_v26, %v4501_v52  ;;  %v4585_v22 = vsub.f32 %v13166_v20, %v4501_v52  ;;  %v4775_v59 = vadd.f32 %v10686_v19, %v10684_v38  ;;  %4773 = vadd.xlane.f32.xlu0 %v4772_v6 }
 0x526   : > { %13164 = vst [vmem:[#allocation41_spill] sm:$0xff] %v10690_v13  ;;  %v10696_v41 = vpop.eup %7915  ;;  %7935 = vpow2.f32 %v3710_v54 }
 0x527   : > { %13167 = vst [vmem:[#allocation43_spill] sm:$0xff] %v10696_v41  ;;  %v10698_v12 = vpop.eup %7917  ;;  %7937 = vpow2.f32 %v4666_v39  ;;  %v4670_v45 = vmul.f32 1.442695, %v4584_v33  ;;  %v4672_v62 = vmul.f32 1.442695, %v4585_v22  ;;  %v3812_v1 = vadd.f32 %v10696_v41, %v10690_v13  ;;  %4776 = vadd.xlane.f32.xlu1 %v4775_v59 }
 0x528   : > { %13168 = vst [vmem:[#allocation45_spill] sm:$0xff] %v10698_v12  ;;  %v10702_v9 = vpop.eup %7919  ;;  %7939 = vpow2.f32 %v4668_v56 }
 0x529   : > { %13169 = vst [vmem:[#allocation46_spill] sm:$0xff] %v10702_v9  ;;  %v10704_v23 = vpop.eup %7921  ;;  %7941 = vpow2.f32 %v4670_v45  ;;  %v3815_v52 = vadd.f32 %v10702_v9, %v10698_v12  ;;  %3813 = vadd.xlane.f32.xlu0 %v3812_v1  ;;  %v13184_v9 = vld [vmem:[#allocation62_spill] sm:$0xff] }
 0x52a   : > { %13170 = vst [vmem:[#allocation47_spill] sm:$0xff] %v10704_v23  ;;  %v10708_v54 = vpop.eup %7923  ;;  %7943 = vpow2.f32 %v4672_v62 }
 0x52b   : > { %13171 = vst [vmem:[#allocation48_spill] sm:$0xff] %v10708_v54  ;;  %v10710_v39 = vpop.eup %7925  ;;  %v4778_v6 = vadd.f32 %v10708_v54, %v10704_v23  ;;  %3816 = vadd.xlane.f32.xlu1 %v3815_v52 }
 0x52c   : > { %13172 = vst [vmem:[#allocation49_spill] sm:$0xff] %v10710_v39  ;;  %v10714_v26 = vpop.eup %7927 }
 0x52d   : > { %13173 = vst [vmem:[#allocation117_spill] sm:$0xff] %v10714_v26  ;;  %v10716_v56 = vpop.eup %7929  ;;  %v4781_v33 = vadd.f32 %v10714_v26, %v10710_v39  ;;  %4779 = vadd.xlane.f32.xlu0 %v4778_v6 }
 0x52e   : > { %13174 = vst [vmem:[#allocation118_spill] sm:$0xff] %v10716_v56  ;;  %v10720_v20 = vpop.eup %7931 }
 0x52f   : > { %13175 = vst [vmem:[#allocation119_spill] sm:$0xff] %v10720_v20  ;;  %v10722_v22 = vpop.eup %7933  ;;  %v3818_v59 = vadd.f32 %v10720_v20, %v10716_v56  ;;  %4782 = vadd.xlane.f32.xlu1 %v4781_v33  ;;  %v13182_v20 = vld [vmem:[#allocation58_spill] sm:$0xff] }
 0x530   : > { %13176 = vst [vmem:[#allocation120_spill] sm:$0xff] %v10722_v22  ;;  %v10726_v45 = vpop.eup %7935 }
 0x531   : > { %13177 = vst [vmem:[#allocation121_spill] sm:$0xff] %v10726_v45  ;;  %v10728_v62 = vpop.eup %7937  ;;  %v3821_v1 = vadd.f32 %v10726_v45, %v10722_v22  ;;  %3819 = vadd.xlane.f32.xlu0 %v3818_v59  ;;  %v13183_v22 = vld [vmem:[#allocation60_spill] sm:$0xff] }
 0x532   : > { %13178 = vst [vmem:[#allocation122_spill] sm:$0xff] %v10728_v62  ;;  %v10732_v52 = vpop.eup %7939 }
 0x533   : > { %13179 = vst [vmem:[#allocation123_spill] sm:$0xff] %v10732_v52  ;;  %v10734_v39 = vpop.eup %7941  ;;  %v4784_v6 = vadd.f32 %v10732_v52, %v10728_v62  ;;  %3822 = vadd.xlane.f32.xlu1 %v3821_v1  ;;  %v13185_v52 = vld [vmem:[#allocation64_spill] sm:$0xff]  ;;  %v13186_v1 = vld [vmem:[#allocation50_spill] sm:$0xff] }
 0x534   : > { %13180 = vst [vmem:[#allocation124_spill] sm:$0xff] %v10734_v39  ;;  %v10738_v23 = vpop.eup %7943 }
 0x535   : > { %13181 = vst [vmem:[#allocation125_spill] sm:$0xff] %v10738_v23  ;;  %v4787_v56 = vadd.f32 %v10738_v23, %v10734_v39  ;;  %4785 = vadd.xlane.f32.xlu0 %v4784_v6  ;;  %v13187_v39 = vld [vmem:[#allocation51_spill] sm:$0xff] }
 0x537   : > { %4788 = vadd.xlane.f32.xlu1 %v4787_v56 }
 0x538   : > { %v3538_v33 = vpop.xlane.xlu0 %3537 }
 0x539   : > { %v3616_v26 = vsub.f32 %v13182_v20, %v3538_v33  ;;  %v3617_v45 = vsub.f32 %v13183_v22, %v3538_v33  ;;  %v13189_v33 = vld [vmem:[#allocation53_spill] sm:$0xff] }
 0x53b   : > { %v3712_v54 = vmul.f32 1.442695, %v3616_v26  ;;  %v3714_v59 = vmul.f32 1.442695, %v3617_v45  ;;  %v13188_v26 = vld [vmem:[#allocation52_spill] sm:$0xff] }
 0x53c   : > { %v3541_v12 = vpop.xlane.xlu1 %3540  ;;  %v4504_v13 = vpop.xlane.xlu0 %4503 }
 0x53d   : > { %7945 = vpow2.f32 %v3712_v54  ;;  %v3618_v62 = vsub.f32 %v13184_v9, %v3541_v12  ;;  %v3619_v41 = vsub.f32 %v13185_v52, %v3541_v12  ;;  %v4586_v38 = vsub.f32 %v13186_v1, %v4504_v13  ;;  %v13191_v12 = vld [vmem:[#allocation68_spill] sm:$0xff] }
 0x53e   : > { %7947 = vpow2.f32 %v3714_v59  ;;  %v4587_v6 = vsub.f32 %v13187_v39, %v4504_v13 }
 0x53f   : > { %v3716_v56 = vmul.f32 1.442695, %v3618_v62  ;;  %v3718_v23 = vmul.f32 1.442695, %v3619_v41  ;;  %v4674_v53 = vmul.f32 1.442695, %v4586_v38 }
 0x540   : > { %v4676_v20 = vmul.f32 1.442695, %v4587_v6  ;;  %v4507_v19 = vpop.xlane.xlu1 %4506  ;;  %v3544_v22 = vpop.xlane.xlu0 %3543  ;;  %v13192_v62 = vld [vmem:[#allocation70_spill] sm:$0xff] }
 0x541   : > { %7949 = vpow2.f32 %v3716_v56  ;;  %v4588_v45 = vsub.f32 %v13188_v26, %v4507_v19  ;;  %v4589_v54 = vsub.f32 %v13189_v33, %v4507_v19  ;;  %v3620_v9 = vsub.f32 %v13190_v61, %v3544_v22  ;;  %v13193_v56 = vld [vmem:[#allocation72_spill] sm:$0xff]  ;;  %v13195_v61 = vld [vmem:[#allocation55_spill] sm:$0xff] }
 0x542   : > { %7951 = vpow2.f32 %v3718_v23  ;;  %v3621_v52 = vsub.f32 %v13191_v12, %v3544_v22 }
 0x543   : > { %7953 = vpow2.f32 %v4674_v53  ;;  %v4678_v59 = vmul.f32 1.442695, %v4588_v45  ;;  %v4680_v1 = vmul.f32 1.442695, %v4589_v54  ;;  %v3720_v13 = vmul.f32 1.442695, %v3620_v9 }
 0x544   : > { %7955 = vpow2.f32 %v4676_v20  ;;  %v3722_v41 = vmul.f32 1.442695, %v3621_v52  ;;  %v3547_v38 = vpop.xlane.xlu1 %3546  ;;  %v4510_v39 = vpop.xlane.xlu0 %4509  ;;  %v13198_v52 = vld [vmem:[#allocation56_spill] sm:$0xff] }
 0x545   : > { %7957 = vpow2.f32 %v4678_v59  ;;  %v3622_v6 = vsub.f32 %v13192_v62, %v3547_v38  ;;  %v3623_v26 = vsub.f32 %v13193_v56, %v3547_v38  ;;  %v4590_v19 = vsub.f32 %v13194_v36, %v4510_v39  ;;  %v13199_v38 = vld [vmem:[#allocation57_spill] sm:$0xff] }
 0x546   : > { %7959 = vpow2.f32 %v4680_v1  ;;  %v4591_v23 = vsub.f32 %v13195_v61, %v4510_v39  ;;  %v13200_v1 = vld [vmem:[#allocation74_spill] sm:$0xff]  ;;  %v13201_v39 = vld [vmem:[#allocation76_spill] sm:$0xff] }
 0x547   : > { %v10756_v33 = vpop.eup %7945  ;;  %7961 = vpow2.f32 %v3720_v13  ;;  %v3724_v53 = vmul.f32 1.442695, %v3622_v6  ;;  %v3726_v22 = vmul.f32 1.442695, %v3623_v26  ;;  %v4682_v45 = vmul.f32 1.442695, %v4590_v19 }
 0x548   : > { %13196 = vst [vmem:[#allocation58_spill] sm:$0xff] %v10756_v33  ;;  %v10758_v20 = vpop.eup %7947  ;;  %7963 = vpow2.f32 %v3722_v41  ;;  %v4684_v54 = vmul.f32 1.442695, %v4591_v23  ;;  %v4513_v9 = vpop.xlane.xlu1 %4512 }
 0x549   : > { %13197 = vst [vmem:[#allocation60_spill] sm:$0xff] %v10758_v20  ;;  %v3550_v12 = vpop.xlane.xlu0 %3549  ;;  %7965 = vpow2.f32 %v3724_v53  ;;  %v4592_v59 = vsub.f32 %v13198_v52, %v4513_v9  ;;  %v4593_v36 = vsub.f32 %v13199_v38, %v4513_v9  ;;  %v3824_v13 = vadd.f32 %v10758_v20, %v10756_v33  ;;  %v13206_v38 = vld [vmem:[#allocation80_spill] sm:$0xff] }
 0x54a   : > { %v3624_v62 = vsub.f32 %v13200_v1, %v3550_v12  ;;  %7967 = vpow2.f32 %v3726_v22  ;;  %v3625_v56 = vsub.f32 %v13201_v39, %v3550_v12  ;;  %v13205_v22 = vld [vmem:[#allocation78_spill] sm:$0xff]  ;;  %v13207_v39 = vld [vmem:[#allocation59_spill] sm:$0xff] }
 0x54b   : > { %v10766_v6 = vpop.eup %7949  ;;  %7969 = vpow2.f32 %v4682_v45  ;;  %v4686_v41 = vmul.f32 1.442695, %v4592_v59  ;;  %v4688_v26 = vmul.f32 1.442695, %v4593_v36  ;;  %3825 = vadd.xlane.f32.xlu0 %v3824_v13  ;;  %v13209_v59 = vld [vmem:[#allocation61_spill] sm:$0xff] }
 0x54c   : > { %13202 = vst [vmem:[#allocation62_spill] sm:$0xff] %v10766_v6  ;;  %v3728_v19 = vmul.f32 1.442695, %v3624_v62  ;;  %v10768_v61 = vpop.eup %7951  ;;  %7971 = vpow2.f32 %v4684_v54  ;;  %v3730_v23 = vmul.f32 1.442695, %v3625_v56  ;;  %v3553_v53 = vpop.xlane.xlu1 %3552 }
 0x54d   : > { %13203 = vst [vmem:[#allocation64_spill] sm:$0xff] %v10768_v61  ;;  %v4516_v9 = vpop.xlane.xlu0 %4515  ;;  %v10770_v52 = vpop.eup %7953  ;;  %7973 = vpow2.f32 %v4686_v41  ;;  %v3626_v12 = vsub.f32 %v13205_v22, %v3553_v53  ;;  %v3627_v1 = vsub.f32 %v13206_v38, %v3553_v53  ;;  %v3827_v54 = vadd.f32 %v10768_v61, %v10766_v6  ;;  %v13214_v6 = vld [vmem:[#allocation65_spill] sm:$0xff] }
 0x54e   : > { %13204 = vst [vmem:[#allocation50_spill] sm:$0xff] %v10770_v52  ;;  %v4594_v33 = vsub.f32 %v13207_v39, %v4516_v9  ;;  %v10775_v45 = vpop.eup %7955  ;;  %7975 = vpow2.f32 %v4688_v26  ;;  %v4595_v36 = vsub.f32 %v13209_v59, %v4516_v9  ;;  %v13213_v39 = vld [vmem:[#allocation63_spill] sm:$0xff] }
 0x54f   : > { %13208 = vst [vmem:[#allocation51_spill] sm:$0xff] %v10775_v45  ;;  %v10780_v62 = vpop.eup %7957  ;;  %7977 = vpow2.f32 %v3728_v19  ;;  %v3732_v56 = vmul.f32 1.442695, %v3626_v12  ;;  %v3734_v13 = vmul.f32 1.442695, %v3627_v1  ;;  %3828 = vadd.xlane.f32.xlu1 %v3827_v54  ;;  %v4790_v22 = vadd.f32 %v10775_v45, %v10770_v52  ;;  %v13215_v12 = vld [vmem:[#allocation82_spill] sm:$0xff] }
 0x550   : > { %13210 = vst [vmem:[#allocation52_spill] sm:$0xff] %v10780_v62  ;;  %v4690_v41 = vmul.f32 1.442695, %v4594_v33  ;;  %v10782_v20 = vpop.eup %7959  ;;  %7979 = vpow2.f32 %v3730_v23  ;;  %v4692_v53 = vmul.f32 1.442695, %v4595_v36  ;;  %v4519_v26 = vpop.xlane.xlu1 %4518  ;;  %v13217_v23 = vld [vmem:[#allocation84_spill] sm:$0xff] }
 0x551   : > { %13211 = vst [vmem:[#allocation53_spill] sm:$0xff] %v10782_v20  ;;  %v3556_v38 = vpop.xlane.xlu0 %3555  ;;  %v10786_v9 = vpop.eup %7961  ;;  %7981 = vpow2.f32 %v3732_v56  ;;  %v4596_v59 = vsub.f32 %v13213_v39, %v4519_v26  ;;  %v4597_v19 = vsub.f32 %v13214_v6, %v4519_v26  ;;  %4791 = vadd.xlane.f32.xlu0 %v4790_v22  ;;  %v4793_v54 = vadd.f32 %v10782_v20, %v10780_v62  ;;  %v13222_v62 = vld [vmem:[#allocation88_spill] sm:$0xff] }
 0x552   : > { %13212 = vst [vmem:[#allocation66_spill] sm:$0xff] %v10786_v9  ;;  %v3628_v1 = vsub.f32 %v13215_v12, %v3556_v38  ;;  %v10791_v33 = vpop.eup %7963  ;;  %7983 = vpow2.f32 %v3734_v13  ;;  %v3629_v36 = vsub.f32 %v13217_v23, %v3556_v38  ;;  %v13221_v12 = vld [vmem:[#allocation86_spill] sm:$0xff] }
 0x553   : > { %13216 = vst [vmem:[#allocation68_spill] sm:$0xff] %v10791_v33  ;;  %v10796_v52 = vpop.eup %7965  ;;  %7985 = vpow2.f32 %v4690_v41  ;;  %v4694_v45 = vmul.f32 1.442695, %v4596_v59  ;;  %v4696_v56 = vmul.f32 1.442695, %v4597_v19  ;;  %4794 = vadd.xlane.f32.xlu1 %v4793_v54  ;;  %v3830_v13 = vadd.f32 %v10791_v33, %v10786_v9  ;;  %v13223_v59 = vld [vmem:[#allocation67_spill] sm:$0xff] }
 0x554   : > { %13218 = vst [vmem:[#allocation70_spill] sm:$0xff] %v10796_v52  ;;  %v3736_v61 = vmul.f32 1.442695, %v3628_v1  ;;  %v10798_v39 = vpop.eup %7967  ;;  %7987 = vpow2.f32 %v4692_v53  ;;  %v3738_v6 = vmul.f32 1.442695, %v3629_v36  ;;  %v3559_v22 = vpop.xlane.xlu1 %3558  ;;  %v13225_v53 = vld [vmem:[#allocation69_spill] sm:$0xff] }
 0x555   : > { %13219 = vst [vmem:[#allocation72_spill] sm:$0xff] %v10798_v39  ;;  %v4522_v26 = vpop.xlane.xlu0 %4521  ;;  %v10802_v38 = vpop.eup %7969  ;;  %7989 = vpow2.f32 %v4694_v45  ;;  %v3630_v23 = vsub.f32 %v13221_v12, %v3559_v22  ;;  %v3631_v41 = vsub.f32 %v13222_v62, %v3559_v22  ;;  %3831 = vadd.xlane.f32.xlu0 %v3830_v13  ;;  %v3833_v54 = vadd.f32 %v10798_v39, %v10796_v52  ;;  %v13230_v52 = vld [vmem:[#allocation73_spill] sm:$0xff] }
 0x556   : > { %13220 = vst [vmem:[#allocation54_spill] sm:$0xff] %v10802_v38  ;;  %v4598_v19 = vsub.f32 %v13223_v59, %v4522_v26  ;;  %v10807_v1 = vpop.eup %7971  ;;  %7991 = vpow2.f32 %v4696_v56  ;;  %v4599_v36 = vsub.f32 %v13225_v53, %v4522_v26  ;;  %v13229_v59 = vld [vmem:[#allocation71_spill] sm:$0xff] }
 0x557   : > { %13224 = vst [vmem:[#allocation55_spill] sm:$0xff] %v10807_v1  ;;  %v10812_v9 = vpop.eup %7973  ;;  %7993 = vpow2.f32 %v3736_v61  ;;  %v3740_v33 = vmul.f32 1.442695, %v3630_v23  ;;  %v3742_v45 = vmul.f32 1.442695, %v3631_v41  ;;  %3834 = vadd.xlane.f32.xlu1 %v3833_v54  ;;  %v4796_v56 = vadd.f32 %v10807_v1, %v10802_v38  ;;  %v13231_v23 = vld [vmem:[#allocation90_spill] sm:$0xff] }
 0x558   : > { %13226 = vst [vmem:[#allocation56_spill] sm:$0xff] %v10812_v9  ;;  %v4698_v20 = vmul.f32 1.442695, %v4598_v19  ;;  %v10814_v12 = vpop.eup %7975  ;;  %7995 = vpow2.f32 %v3738_v6  ;;  %v4700_v62 = vmul.f32 1.442695, %v4599_v36  ;;  %v4525_v13 = vpop.xlane.xlu1 %4524  ;;  %v13233_v6 = vld [vmem:[#allocation92_spill] sm:$0xff] }
 0x559   : > { %13227 = vst [vmem:[#allocation57_spill] sm:$0xff] %v10814_v12  ;;  %v3562_v22 = vpop.xlane.xlu0 %3561  ;;  %v10818_v26 = vpop.eup %7977  ;;  %7997 = vpow2.f32 %v3740_v33  ;;  %v4600_v53 = vsub.f32 %v13229_v59, %v4525_v13  ;;  %v4601_v61 = vsub.f32 %v13230_v52, %v4525_v13  ;;  %4797 = vadd.xlane.f32.xlu0 %v4796_v56  ;;  %v4799_v54 = vadd.f32 %v10814_v12, %v10812_v9  ;;  %v13238_v9 = vld [vmem:[#allocation96_spill] sm:$0xff] }
 0x55a   : > { %13228 = vst [vmem:[#allocation74_spill] sm:$0xff] %v10818_v26  ;;  %v3632_v41 = vsub.f32 %v13231_v23, %v3562_v22  ;;  %v10823_v19 = vpop.eup %7979  ;;  %7999 = vpow2.f32 %v3742_v45  ;;  %v3633_v36 = vsub.f32 %v13233_v6, %v3562_v22  ;;  %v13237_v23 = vld [vmem:[#allocation94_spill] sm:$0xff] }
 0x55b   : > { %13232 = vst [vmem:[#allocation76_spill] sm:$0xff] %v10823_v19  ;;  %v10828_v38 = vpop.eup %7981  ;;  %8001 = vpow2.f32 %v4698_v20  ;;  %v4702_v1 = vmul.f32 1.442695, %v4600_v53  ;;  %v4704_v33 = vmul.f32 1.442695, %v4601_v61  ;;  %4800 = vadd.xlane.f32.xlu1 %v4799_v54  ;;  %v3836_v45 = vadd.f32 %v10823_v19, %v10818_v26  ;;  %v13239_v53 = vld [vmem:[#allocation75_spill] sm:$0xff] }
 0x55c   : > { %13234 = vst [vmem:[#allocation78_spill] sm:$0xff] %v10828_v38  ;;  %v3744_v39 = vmul.f32 1.442695, %v3632_v41  ;;  %v10830_v59 = vpop.eup %7983  ;;  %8003 = vpow2.f32 %v4700_v62  ;;  %v3746_v52 = vmul.f32 1.442695, %v3633_v36  ;;  %v3565_v56 = vpop.xlane.xlu1 %3564  ;;  %v13241_v62 = vld [vmem:[#allocation77_spill] sm:$0xff] }
 0x55d   : > { %13235 = vst [vmem:[#allocation80_spill] sm:$0xff] %v10830_v59  ;;  %v4528_v13 = vpop.xlane.xlu0 %4527  ;;  %v10834_v22 = vpop.eup %7985  ;;  %8005 = vpow2.f32 %v4702_v1  ;;  %v3634_v6 = vsub.f32 %v13237_v23, %v3565_v56  ;;  %v3635_v20 = vsub.f32 %v13238_v9, %v3565_v56  ;;  %3837 = vadd.xlane.f32.xlu0 %v3836_v45  ;;  %v3839_v54 = vadd.f32 %v10830_v59, %v10828_v38  ;;  %v13246_v38 = vld [vmem:[#allocation81_spill] sm:$0xff] }
 0x55e   : > { %13236 = vst [vmem:[#allocation59_spill] sm:$0xff] %v10834_v22  ;;  %v4602_v61 = vsub.f32 %v13239_v53, %v4528_v13  ;;  %v10839_v41 = vpop.eup %7987  ;;  %8007 = vpow2.f32 %v4704_v33  ;;  %v4603_v36 = vsub.f32 %v13241_v62, %v4528_v13  ;;  %v13245_v53 = vld [vmem:[#allocation79_spill] sm:$0xff] }
 0x55f   : > { %13240 = vst [vmem:[#allocation61_spill] sm:$0xff] %v10839_v41  ;;  %v10844_v26 = vpop.eup %7989  ;;  %8009 = vpow2.f32 %v3744_v39  ;;  %v3748_v19 = vmul.f32 1.442695, %v3634_v6  ;;  %v3750_v1 = vmul.f32 1.442695, %v3635_v20  ;;  %3840 = vadd.xlane.f32.xlu1 %v3839_v54  ;;  %v4802_v33 = vadd.f32 %v10839_v41, %v10834_v22  ;;  %v13247_v6 = vld [vmem:[#allocation98_spill] sm:$0xff] }
 0x560   : > { %13242 = vst [vmem:[#allocation63_spill] sm:$0xff] %v10844_v26  ;;  %v4706_v12 = vmul.f32 1.442695, %v4602_v61  ;;  %v10846_v23 = vpop.eup %7991  ;;  %8011 = vpow2.f32 %v3746_v52  ;;  %v4708_v9 = vmul.f32 1.442695, %v4603_v36  ;;  %v4531_v45 = vpop.xlane.xlu1 %4530  ;;  %v13249_v52 = vld [vmem:[#allocation100_spill] sm:$0xff] }
 0x561   : > { %13243 = vst [vmem:[#allocation65_spill] sm:$0xff] %v10846_v23  ;;  %v3568_v56 = vpop.xlane.xlu0 %3567  ;;  %v10850_v13 = vpop.eup %7993  ;;  %8013 = vpow2.f32 %v3748_v19  ;;  %v4604_v62 = vsub.f32 %v13245_v53, %v4531_v45  ;;  %v4605_v39 = vsub.f32 %v13246_v38, %v4531_v45  ;;  %4803 = vadd.xlane.f32.xlu0 %v4802_v33  ;;  %v4805_v54 = vadd.f32 %v10846_v23, %v10844_v26  ;;  %v13254_v26 = vld [vmem:[#allocation104_spill] sm:$0xff] }
 0x562   : > { %13244 = vst [vmem:[#allocation82_spill] sm:$0xff] %v10850_v13  ;;  %v3636_v20 = vsub.f32 %v13247_v6, %v3568_v56  ;;  %v10855_v61 = vpop.eup %7995  ;;  %8015 = vpow2.f32 %v3750_v1  ;;  %v3637_v36 = vsub.f32 %v13249_v52, %v3568_v56  ;;  %v13253_v6 = vld [vmem:[#allocation102_spill] sm:$0xff] }
 0x563   : > { %13248 = vst [vmem:[#allocation84_spill] sm:$0xff] %v10855_v61  ;;  %v10860_v22 = vpop.eup %7997  ;;  %8017 = vpow2.f32 %v4706_v12  ;;  %v4710_v41 = vmul.f32 1.442695, %v4604_v62  ;;  %v4712_v19 = vmul.f32 1.442695, %v4605_v39  ;;  %4806 = vadd.xlane.f32.xlu1 %v4805_v54  ;;  %v3842_v1 = vadd.f32 %v10855_v61, %v10850_v13  ;;  %v13255_v62 = vld [vmem:[#allocation83_spill] sm:$0xff] }
 0x564   : > { %13250 = vst [vmem:[#allocation86_spill] sm:$0xff] %v10860_v22  ;;  %v3752_v59 = vmul.f32 1.442695, %v3636_v20  ;;  %v10862_v53 = vpop.eup %7999  ;;  %8019 = vpow2.f32 %v4708_v9  ;;  %v3754_v38 = vmul.f32 1.442695, %v3637_v36  ;;  %v3571_v33 = vpop.xlane.xlu1 %3570  ;;  %v13257_v9 = vld [vmem:[#allocation85_spill] sm:$0xff] }
 0x565   : > { %13251 = vst [vmem:[#allocation88_spill] sm:$0xff] %v10862_v53  ;;  %v4534_v45 = vpop.xlane.xlu0 %4533  ;;  %v10866_v56 = vpop.eup %8001  ;;  %8021 = vpow2.f32 %v4710_v41  ;;  %v3638_v52 = vsub.f32 %v13253_v6, %v3571_v33  ;;  %v3639_v12 = vsub.f32 %v13254_v26, %v3571_v33  ;;  %3843 = vadd.xlane.f32.xlu0 %v3842_v1  ;;  %v3845_v54 = vadd.f32 %v10862_v53, %v10860_v22  ;;  %v13262_v22 = vld [vmem:[#allocation89_spill] sm:$0xff] }
 0x566   : > { %13252 = vst [vmem:[#allocation67_spill] sm:$0xff] %v10866_v56  ;;  %v4606_v39 = vsub.f32 %v13255_v62, %v4534_v45  ;;  %v10871_v20 = vpop.eup %8003  ;;  %8023 = vpow2.f32 %v4712_v19  ;;  %v4607_v36 = vsub.f32 %v13257_v9, %v4534_v45  ;;  %v13261_v62 = vld [vmem:[#allocation87_spill] sm:$0xff] }
 0x567   : > { %13256 = vst [vmem:[#allocation69_spill] sm:$0xff] %v10871_v20  ;;  %v10876_v13 = vpop.eup %8005  ;;  %8025 = vpow2.f32 %v3752_v59  ;;  %v3756_v61 = vmul.f32 1.442695, %v3638_v52  ;;  %v3758_v41 = vmul.f32 1.442695, %v3639_v12  ;;  %3846 = vadd.xlane.f32.xlu1 %v3845_v54  ;;  %v4808_v19 = vadd.f32 %v10871_v20, %v10866_v56  ;;  %v13263_v52 = vld [vmem:[#allocation106_spill] sm:$0xff] }
 0x568   : > { %13258 = vst [vmem:[#allocation71_spill] sm:$0xff] %v10876_v13  ;;  %v4714_v23 = vmul.f32 1.442695, %v4606_v39  ;;  %v10878_v6 = vpop.eup %8007  ;;  %8027 = vpow2.f32 %v3754_v38  ;;  %v4716_v26 = vmul.f32 1.442695, %v4607_v36  ;;  %v4537_v1 = vpop.xlane.xlu1 %4536  ;;  %v13265_v38 = vld [vmem:[#allocation108_spill] sm:$0xff] }
 0x569   : > { %13259 = vst [vmem:[#allocation73_spill] sm:$0xff] %v10878_v6  ;;  %v3574_v33 = vpop.xlane.xlu0 %3573  ;;  %v10882_v45 = vpop.eup %8009  ;;  %8029 = vpow2.f32 %v3756_v61  ;;  %v4608_v9 = vsub.f32 %v13261_v62, %v4537_v1  ;;  %v4609_v59 = vsub.f32 %v13262_v22, %v4537_v1  ;;  %4809 = vadd.xlane.f32.xlu0 %v4808_v19  ;;  %v4811_v54 = vadd.f32 %v10878_v6, %v10876_v13  ;;  %v13269_v13 = vld [vmem:[#allocation113_spill] sm:$0xff] }
 0x56a   : > { %13260 = vst [vmem:[#allocation90_spill] sm:$0xff] %v10882_v45  ;;  %v3640_v12 = vsub.f32 %v13263_v52, %v3574_v33  ;;  %v10887_v39 = vpop.eup %8011  ;;  %8031 = vpow2.f32 %v3758_v41  ;;  %v3641_v36 = vsub.f32 %v13265_v38, %v3574_v33  ;;  %v13268_v52 = vld [vmem:[#allocation111_spill] sm:$0xff] }
 0x56b   : > { %13264 = vst [vmem:[#allocation92_spill] sm:$0xff] %v10887_v39  ;;  %v10892_v56 = vpop.eup %8013  ;;  %8033 = vpow2.f32 %v4714_v23  ;;  %v4718_v20 = vmul.f32 1.442695, %v4608_v9  ;;  %v4720_v61 = vmul.f32 1.442695, %v4609_v59  ;;  %4812 = vadd.xlane.f32.xlu1 %v4811_v54  ;;  %v3848_v41 = vadd.f32 %v10887_v39, %v10882_v45  ;;  %v13270_v9 = vld [vmem:[#allocation91_spill] sm:$0xff] }
 0x56c   : > { %13266 = vst [vmem:[#allocation94_spill] sm:$0xff] %v10892_v56  ;;  %v3760_v53 = vmul.f32 1.442695, %v3640_v12  ;;  %v10894_v62 = vpop.eup %8015  ;;  %8035 = vpow2.f32 %v4716_v26  ;;  %v3762_v22 = vmul.f32 1.442695, %v3641_v36  ;;  %v3577_v19 = vpop.xlane.xlu1 %3576  ;;  %v13271_v26 = vld [vmem:[#allocation93_spill] sm:$0xff] }
 0x56d   : > { %v4540_v1 = vpop.xlane.xlu0 %4539  ;;  %v10898_v33 = vpop.eup %8017  ;;  %8037 = vpow2.f32 %v4718_v20  ;;  %v3642_v38 = vsub.f32 %v13268_v52, %v3577_v19  ;;  %v3643_v23 = vsub.f32 %v13269_v13, %v3577_v19  ;;  %3849 = vadd.xlane.f32.xlu0 %v3848_v41  ;;  %v3851_v54 = vadd.f32 %v10894_v62, %v10892_v56  ;;  %v13274_v56 = vld [vmem:[#allocation97_spill] sm:$0xff] }
 0x56e   : > { %13267 = vst [vmem:[#allocation96_spill] sm:$0xff] %v10898_v33  ;;  %v4610_v59 = vsub.f32 %v13270_v9, %v4540_v1  ;;  %v10903_v12 = vpop.eup %8019  ;;  %8039 = vpow2.f32 %v4720_v61  ;;  %v4611_v36 = vsub.f32 %v13271_v26, %v4540_v1  ;;  %v13273_v9 = vld [vmem:[#allocation95_spill] sm:$0xff] }
 0x56f   : > { %v10908_v45 = vpop.eup %8021  ;;  %8041 = vpow2.f32 %v3760_v53  ;;  %v3764_v39 = vmul.f32 1.442695, %v3642_v38  ;;  %v3766_v20 = vmul.f32 1.442695, %v3643_v23  ;;  %3852 = vadd.xlane.f32.xlu1 %v3851_v54  ;;  %v4814_v61 = vadd.f32 %v10903_v12, %v10898_v33 }
 0x570   : > { %v4722_v6 = vmul.f32 1.442695, %v4610_v59  ;;  %v10910_v52 = vpop.eup %8023  ;;  %8043 = vpow2.f32 %v3762_v22  ;;  %v4724_v13 = vmul.f32 1.442695, %v4611_v36  ;;  %v4543_v41 = vpop.xlane.xlu1 %4542 }
 0x571   : > { %v3580_v19 = vpop.xlane.xlu0 %3579  ;;  %v10914_v1 = vpop.eup %8025  ;;  %8045 = vpow2.f32 %v3764_v39  ;;  %v4612_v26 = vsub.f32 %v13273_v9, %v4543_v41  ;;  %v4613_v53 = vsub.f32 %v13274_v56, %v4543_v41  ;;  %4815 = vadd.xlane.f32.xlu0 %v4814_v61  ;;  %v4817_v59 = vadd.f32 %v10910_v52, %v10908_v45 }
 0x572   : > { %13272 = vst [vmem:[#allocation75_spill] sm:$0xff] %v10914_v1  ;;  %v3644_v38 = vsub.f32 %v10494_v40, %v3580_v19  ;;  %v10919_v23 = vpop.eup %8027  ;;  %8047 = vpow2.f32 %v3766_v20  ;;  %v3645_v22 = vsub.f32 %v10498_v60, %v3580_v19  ;;  %v13279_v19 = vld [vmem:[#allocation99_spill] sm:$0xff] }
 0x573   : > { %13275 = vst [vmem:[#allocation77_spill] sm:$0xff] %v10919_v23  ;;  %v10924_v36 = vpop.eup %8029  ;;  %8049 = vpow2.f32 %v4722_v6  ;;  %v4726_v54 = vmul.f32 1.442695, %v4612_v26  ;;  %v4728_v39 = vmul.f32 1.442695, %v4613_v53  ;;  %4818 = vadd.xlane.f32.xlu1 %v4817_v59  ;;  %v3854_v40 = vadd.f32 %v10919_v23, %v10914_v1 }
 0x574   : > { %13276 = vst [vmem:[#allocation79_spill] sm:$0xff] %v10924_v36  ;;  %v3768_v33 = vmul.f32 1.442695, %v3644_v38  ;;  %v10926_v9 = vpop.eup %8031  ;;  %8051 = vpow2.f32 %v4724_v13  ;;  %v3770_v56 = vmul.f32 1.442695, %v3645_v22  ;;  %v3583_v20 = vpop.xlane.xlu1 %3582  ;;  %v13281_v13 = vld [vmem:[#allocation101_spill] sm:$0xff] }
 0x575   : > { %13277 = vst [vmem:[#allocation81_spill] sm:$0xff] %v10926_v9  ;;  %v4546_v61 = vpop.xlane.xlu0 %4545  ;;  %v10930_v60 = vpop.eup %8033  ;;  %8053 = vpow2.f32 %v4726_v54  ;;  %v3646_v41 = vsub.f32 %v10508_v34, %v3583_v20  ;;  %v3647_v6 = vsub.f32 %v10512_v21, %v3583_v20  ;;  %3855 = vadd.xlane.f32.xlu0 %v3854_v40  ;;  %v3857_v22 = vadd.f32 %v10926_v9, %v10924_v36  ;;  %v13286_v36 = vld [vmem:[#allocation105_spill] sm:$0xff] }
 0x576   : > { %13278 = vst [vmem:[#allocation98_spill] sm:$0xff] %v10930_v60  ;;  %v4614_v26 = vsub.f32 %v13279_v19, %v4546_v61  ;;  %v10935_v53 = vpop.eup %8035  ;;  %8055 = vpow2.f32 %v4728_v39  ;;  %v4615_v38 = vsub.f32 %v13281_v13, %v4546_v61  ;;  %v13285_v19 = vld [vmem:[#allocation103_spill] sm:$0xff] }
 0x577   : > { %13280 = vst [vmem:[#allocation100_spill] sm:$0xff] %v10935_v53  ;;  %v10940_v59 = vpop.eup %8037  ;;  %8057 = vpow2.f32 %v3768_v33  ;;  %v3772_v1 = vmul.f32 1.442695, %v3646_v41  ;;  %v3774_v54 = vmul.f32 1.442695, %v3647_v6  ;;  %3858 = vadd.xlane.f32.xlu1 %v3857_v22  ;;  %v4820_v39 = vadd.f32 %v10935_v53, %v10930_v60  ;;  %v13287_v41 = vld [vmem:[#allocation107_spill] sm:$0xff] }
 0x578   : > { %13282 = vst [vmem:[#allocation102_spill] sm:$0xff] %v10940_v59  ;;  %v4730_v23 = vmul.f32 1.442695, %v4614_v26  ;;  %v10942_v34 = vpop.eup %8039  ;;  %8059 = vpow2.f32 %v3770_v56  ;;  %v4732_v21 = vmul.f32 1.442695, %v4615_v38  ;;  %v4549_v40 = vpop.xlane.xlu1 %4548  ;;  %v13289_v56 = vld [vmem:[#allocation109_spill] sm:$0xff] }
 0x579   : > { %13283 = vst [vmem:[#allocation104_spill] sm:$0xff] %v10942_v34  ;;  %v4552_v20 = vpop.xlane.xlu0 %4551  ;;  %v10946_v61 = vpop.eup %8041  ;;  %8061 = vpow2.f32 %v3772_v1  ;;  %v4616_v13 = vsub.f32 %v13285_v19, %v4549_v40  ;;  %v4617_v33 = vsub.f32 %v13286_v36, %v4549_v40  ;;  %4821 = vadd.xlane.f32.xlu0 %v4820_v39  ;;  %v4823_v22 = vadd.f32 %v10942_v34, %v10940_v59  ;;  %v13292_v59 = vld [vmem:[#allocation114_spill] sm:$0xff] }
 0x57a   : > { %13284 = vst [vmem:[#allocation83_spill] sm:$0xff] %v10946_v61  ;;  %v4618_v6 = vsub.f32 %v13287_v41, %v4552_v20  ;;  %v10951_v26 = vpop.eup %8043  ;;  %8063 = vpow2.f32 %v3774_v54  ;;  %v4619_v38 = vsub.f32 %v13289_v56, %v4552_v20  ;;  %v13291_v41 = vld [vmem:[#allocation112_spill] sm:$0xff] }
 0x57b   : > { %13288 = vst [vmem:[#allocation85_spill] sm:$0xff] %v10951_v26  ;;  %v10956_v60 = vpop.eup %8045  ;;  %8065 = vpow2.f32 %v4730_v23  ;;  %v4734_v53 = vmul.f32 1.442695, %v4616_v13  ;;  %v4736_v1 = vmul.f32 1.442695, %v4617_v33  ;;  %4824 = vadd.xlane.f32.xlu1 %v4823_v22  ;;  %v3860_v54 = vadd.f32 %v10951_v26, %v10946_v61  ;;  %v13293_v13 = vld [vmem:[#allocation115_spill] sm:$0xff] }
 0x57c   : > { %v4738_v9 = vmul.f32 1.442695, %v4618_v6  ;;  %v10958_v19 = vpop.eup %8047  ;;  %8067 = vpow2.f32 %v4732_v21  ;;  %v4740_v36 = vmul.f32 1.442695, %v4619_v38  ;;  %v4555_v39 = vpop.xlane.xlu1 %4554  ;;  %v13295_v21 = vld [vmem:[#allocation116_spill] sm:$0xff] }
 0x57d   : > { %v4558_v40 = vpop.xlane.xlu0 %4557  ;;  %v10962_v20 = vpop.eup %8049  ;;  %8069 = vpow2.f32 %v4734_v53  ;;  %v4620_v56 = vsub.f32 %v13291_v41, %v4555_v39  ;;  %v4621_v23 = vsub.f32 %v13292_v59, %v4555_v39  ;;  %3861 = vadd.xlane.f32.xlu0 %v3860_v54  ;;  %v3863_v22 = vadd.f32 %v10958_v19, %v10956_v60 }
 0x57e   : > { %13290 = vst [vmem:[#allocation87_spill] sm:$0xff] %v10962_v20  ;;  %v4622_v33 = vsub.f32 %v13293_v13, %v4558_v40  ;;  %v10967_v6 = vpop.eup %8051  ;;  %8071 = vpow2.f32 %v4736_v1  ;;  %v4623_v38 = vsub.f32 %v13295_v21, %v4558_v40 }
 0x57f   : > { %13294 = vst [vmem:[#allocation89_spill] sm:$0xff] %v10967_v6  ;;  %v10972_v61 = vpop.eup %8053  ;;  %8073 = vpow2.f32 %v4738_v9  ;;  %v4742_v26 = vmul.f32 1.442695, %v4620_v56  ;;  %v4744_v53 = vmul.f32 1.442695, %v4621_v23  ;;  %3864 = vadd.xlane.f32.xlu1 %v3863_v22  ;;  %v4826_v39 = vadd.f32 %v10967_v6, %v10962_v20 }
 0x580   : > { %13296 = vst [vmem:[#allocation106_spill] sm:$0xff] %v10972_v61  ;;  %v10974_v34 = vpop.eup %8055  ;;  %8075 = vpow2.f32 %v4740_v36  ;;  %v4746_v59 = vmul.f32 1.442695, %v4622_v33  ;;  %v10978_v1 = vpop.xlane.xlu1 %4560  ;;  %v4748_v40 = vmul.f32 1.442695, %v4623_v38 }
 0x581   : > { %13297 = vst [vmem:[#allocation108_spill] sm:$0xff] %v10974_v34  ;;  %v10980_v54 = vpop.eup %8057  ;;  %8077 = vpow2.f32 %v4742_v26  ;;  %4827 = vadd.xlane.f32.xlu0 %v4826_v39  ;;  %v3778_v23 = vpop.xlane.xlu0 %3777  ;;  %v4829_v22 = vadd.f32 %v10974_v34, %v10972_v61 }
 0x582   : > { %v10982_v41 = vpop.eup %8059  ;;  %8079 = vpow2.f32 %v4744_v53 }
 0x583   : > { %v10984_v9 = vpop.eup %8061  ;;  %v3866_v36 = vadd.f32 %v10982_v41, %v10980_v54  ;;  %8081 = vpow2.f32 %v4746_v59 }
 0x584   : > { %v10988_v56 = vpop.eup %8063  ;;  %8083 = vpow2.f32 %v4748_v40  ;;  %v3781_v33 = vpop.xlane.xlu1 %3780 }
 0x585   : > { %v10990_v13 = vpop.eup %8065  ;;  %3867 = vadd.xlane.f32.xlu1 %v3866_v36  ;;  %v3869_v26 = vadd.f32 %v10988_v56, %v10984_v9  ;;  %8085 = vrcp.f32 %v3778_v23 }
 0x586   : > { %13298 = vst [vmem:[#allocation111_spill] sm:$0xff] %v10990_v13  ;;  %v10994_v21 = vpop.eup %8067  ;;  %8087 = vrcp.f32 %v3781_v33 }
 0x587   : > { %13299 = vst [vmem:[#allocation113_spill] sm:$0xff] %v10994_v21  ;;  %v10996_v38 = vpop.eup %8069  ;;  %3870 = vadd.xlane.f32.xlu0 %v3869_v26  ;;  %v4832_v36 = vadd.f32 %v10994_v21, %v10990_v13 }
 0x588   : > { %13300 = vst [vmem:[#allocation91_spill] sm:$0xff] %v10996_v38  ;;  %v11000_v53 = vpop.eup %8071  ;;  %v3784_v39 = vpop.xlane.xlu0 %3783 }
 0x589   : > { %13301 = vst [vmem:[#allocation93_spill] sm:$0xff] %v11000_v53  ;;  %v11002_v59 = vpop.eup %8073  ;;  %4830 = vadd.xlane.f32.xlu1 %v4829_v22  ;;  %v4835_v40 = vadd.f32 %v11000_v53, %v10996_v38  ;;  %8089 = vrcp.f32 %v3784_v39 }
 0x58a   : > { %13302 = vst [vmem:[#allocation95_spill] sm:$0xff] %v11002_v59  ;;  %v11008_v20 = vpop.eup %8075 }
 0x58b   : > { %13303 = vst [vmem:[#allocation97_spill] sm:$0xff] %v11008_v20  ;;  %v11010_v23 = vpop.eup %8077  ;;  %4833 = vadd.xlane.f32.xlu0 %v4832_v36  ;;  %v4838_v61 = vadd.f32 %v11008_v20, %v11002_v59 }
 0x58c   : > { %13304 = vst [vmem:[#allocation99_spill] sm:$0xff] %v11010_v23  ;;  %v11012_v26 = vpop.eup %8079  ;;  %v3787_v33 = vpop.xlane.xlu1 %3786 }
 0x58d   : > { %13305 = vst [vmem:[#allocation101_spill] sm:$0xff] %v11012_v26  ;;  %4836 = vadd.xlane.f32.xlu1 %v4835_v40  ;;  %v4841_v22 = vadd.f32 %v11012_v26, %v11010_v23  ;;  %v11018_v38 = vpop.eup %8081  ;;  %8091 = vrcp.f32 %v3787_v33 }
 0x58e   : > { %13306 = vst [vmem:[#allocation103_spill] sm:$0xff] %v11018_v38  ;;  %v11020_v13 = vpop.eup %8083 }
 0x58f   : > { %4839 = vadd.xlane.f32.xlu0 %v4838_v61  ;;  %v8086_v53 = vpop.eup %8085  ;;  %v4844_v39 = vadd.f32 %v11020_v13, %v11018_v38 }
 0x590   : > { %v3790_v36 = vpop.xlane.xlu0 %3789  ;;  %v8088_v21 = vpop.eup %8087  ;;  %v3905_v40 = vmul.f32 %v8086_v53, %v10528_v11  ;;  %v3904_v26 = vmul.f32 %v8086_v53, %v10526_v47 }
 0x591   : > { %4842 = vadd.xlane.f32.xlu1 %v4841_v22  ;;  %v3907_v23 = vmul.f32 %v8088_v21, %v10536_v42  ;;  %v3906_v59 = vmul.f32 %v8088_v21, %v10534_v16  ;;  %8093 = vrcp.f32 %v3790_v36 }
 0x593   : > { %v7452_v20 = vpack.c.bf16 %v3907_v23, %v3905_v40  ;;  %v7454_v61 = vpack.c.bf16 %v3906_v59, %v3904_v26  ;;  %v8090_v34 = vpop.eup %8089  ;;  %v4624_v40 = vsub.f32 %v10510_v0, %v10978_v1 }
 0x594   : > { %v3793_v33 = vpop.xlane.xlu1 %3792  ;;  %v3909_v38 = vmul.f32 %v8090_v34, %v10544_v17  ;;  %v3908_v16 = vmul.f32 %v8090_v34, %v10542_v28 }
 0x595   : > { %4845 = vadd.xlane.f32.xlu1 %v4844_v39  ;;  %8095 = vrcp.f32 %v3793_v33  ;;  %7453 = vmatprep.subr.bf16.mxu1 %v7452_v20 }
 0x596   : > { %7455 = vmatpush1.bf16.xpose.msra.mxu1 %v7454_v61 }
 0x597   : > { %v8092_v22 = vpop.eup %8091 }
 0x598   : > { %v4756_v6 = vpop.xlane.xlu0 %4755  ;;  %v3911_v11 = vmul.f32 %v8092_v22, %v10552_v63  ;;  %v3910_v42 = vmul.f32 %v8092_v22, %v10550_v18  ;;  %v2660_v18 = vld [vmem:[%s12561_s4 + $0xa0] sm:$0xff] }
 0x599   : > { %8097 = vrcp.f32 %v4756_v6  ;;  %v2661_v6 = vld [vmem:[%s12561_s4 + $0xa8] sm:$0xff] }
 0x59a   : > { %v7456_v47 = vpack.c.bf16 %v3911_v11, %v3909_v38  ;;  %v7458_v59 = vpack.c.bf16 %v3910_v42, %v3908_v16  ;;  %v4625_v16 = vsub.f32 %v10518_v51, %v10978_v1 }
 0x59b   : > { %v8094_v53 = vpop.eup %8093 }
 0x59c   : > { %v4759_v21 = vpop.xlane.xlu1 %4758  ;;  %7457 = vmatprep.subr.bf16.mxu1 %v7456_v47  ;;  %v3913_v17 = vmul.f32 %v8094_v53, %v10562_v8  ;;  %v3912_v36 = vmul.f32 %v8094_v53, %v10560_v3  ;;  %v4752_v51 = vmul.f32 1.442695, %v4625_v16 }
 0x59d   : > { %8099 = vrcp.f32 %v4759_v21  ;;  %v4750_v21 = vmul.f32 1.442695, %v4624_v40 }
 0x59e   : > { %v3796_v23 = vpop.xlane.xlu0 %3795  ;;  %7459 = vmatpush1.bf16.xpose.msra.mxu1 %v7458_v59 }
 0x59f   : > { %v8096_v20 = vpop.eup %8095  ;;  %8101 = vrcp.f32 %v3796_v23 }
 0x5a0   : > { %v3799_v26 = vpop.xlane.xlu1 %3798  ;;  %v3915_v63 = vmul.f32 %v8096_v20, %v10572_v44  ;;  %v3914_v28 = vmul.f32 %v8096_v20, %v10570_v48 }
 0x5a1   : > { %8103 = vrcp.f32 %v3799_v26 }
 0x5a2   : > { %v4762_v34 = vpop.xlane.xlu0 %4761  ;;  %v7460_v38 = vpack.c.bf16 %v3915_v63, %v3913_v17  ;;  %v7462_v44 = vpack.c.bf16 %v3914_v28, %v3912_v36 }
 0x5a3   : > { %8105 = vrcp.f32 %v4762_v34  ;;  %v8098_v8 = vpop.eup %8097 }
 0x5a4   : > { %v4765_v39 = vpop.xlane.xlu1 %4764  ;;  %7461 = vmatprep.subr.bf16.mxu1 %v7460_v38  ;;  %v4883_v22 = vmul.f32 %v8098_v8, %v10582_v31  ;;  %v4882_v3 = vmul.f32 %v8098_v8, %v10580_v46 }
 0x5a5   : > { %2766 = vperm.xlu0 %7759, %v2660_v18   ;;  %8107 = vrcp.f32 %v4765_v39 }
 0x5a6   : > { %2771 = vperm.xlu1 %7760, %v2661_v6   ;;  %v3802_v48 = vpop.xlane.xlu0 %3801  ;;  %7463 = vmatpush1.bf16.xpose.msra.mxu1 %v7462_v44 }
 0x5a7   : > { %v8100_v33 = vpop.eup %8099  ;;  %8109 = vrcp.f32 %v3802_v48 }
 0x5a8   : > { %v3805_v61 = vpop.xlane.xlu1 %3804  ;;  %v4885_v11 = vmul.f32 %v8100_v33, %v10592_v27  ;;  %v4884_v42 = vmul.f32 %v8100_v33, %v10590_v10 }
 0x5a9   : > { %v8102_v47 = vpop.eup %8101  ;;  %8111 = vrcp.f32 %v3805_v61 }
 0x5aa   : > { %v4768_v0 = vpop.xlane.xlu0 %4767  ;;  %v7520_v53 = vpack.c.bf16 %v4885_v11, %v4883_v22  ;;  %v7522_v59 = vpack.c.bf16 %v4884_v42, %v4882_v3  ;;  %v3917_v31 = vmul.f32 %v8102_v47, %v10599_v5  ;;  %v3916_v46 = vmul.f32 %v8102_v47, %v10594_v50 }
 0x5ab   : > { %v8104_v23 = vpop.eup %8103  ;;  %8113 = vrcp.f32 %v4768_v0 }
 0x5ac   : > { %v4771_v20 = vpop.xlane.xlu1 %4770  ;;  %7521 = vmatprep.subr.bf16.mxu0 %v7520_v53  ;;  %v3919_v27 = vmul.f32 %v8104_v23, %v10606_v2  ;;  %v3918_v10 = vmul.f32 %v8104_v23, %v10604_v37 }
 0x5ad   : > { %v8106_v26 = vpop.eup %8105  ;;  %8115 = vrcp.f32 %v4771_v20  ;;  %7523 = vmatpush1.bf16.xpose.msra.mxu0 %v7522_v59  ;;  %v13307_v59 = vld [vmem:[#allocation38_spill] sm:$0xff] }
 0x5ae   : > { %8117 = vpow2.f32 %v4750_v21  ;;  %v3808_v1 = vpop.xlane.xlu0 %3807  ;;  %v7464_v17 = vpack.c.bf16 %v3919_v27, %v3917_v31  ;;  %v7466_v63 = vpack.c.bf16 %v3918_v10, %v3916_v46  ;;  %v4887_v5 = vmul.f32 %v8106_v26, %v10615_v49 }
 0x5af   : > { %v8108_v18 = vpop.eup %8107  ;;  %8119 = vrcp.f32 %v3808_v1  ;;  %v4886_v50 = vmul.f32 %v8106_v26, %v10610_v15  ;;  %v13308_v26 = vld [vmem:[#allocation42_spill] sm:$0xff]  ;;  %v13309_v1 = vld [vmem:[#allocation39_spill] sm:$0xff] }
 0x5b0   : > { %v3811_v28 = vpop.xlane.xlu1 %3810  ;;  %7465 = vmatprep.subr.bf16.mxu1 %v7464_v17  ;;  %v4889_v2 = vmul.f32 %v8108_v18, %v10622_v57  ;;  %v4888_v37 = vmul.f32 %v8108_v18, %v10620_v7  ;;  %v13310_v17 = vld [vmem:[#allocation40_spill] sm:$0xff] }
 0x5b1   : > { %v8110_v34 = vpop.eup %8109  ;;  %8121 = vrcp.f32 %v3811_v28  ;;  %7467 = vmatpush1.bf16.xpose.msra.mxu1 %v7466_v63  ;;  %v13311_v63 = vld [vmem:[#allocation44_spill] sm:$0xff] }
 0x5b2   : > { %8123 = vpow2.f32 %v4752_v51  ;;  %v4774_v6 = vpop.xlane.xlu0 %4773  ;;  %v7524_v38 = vpack.c.bf16 %v4889_v2, %v4887_v5  ;;  %v7526_v36 = vpack.c.bf16 %v4888_v37, %v4886_v50  ;;  %v3921_v44 = vmul.f32 %v8110_v34, %v10631_v55 }
 0x5b3   : > { %v8112_v39 = vpop.eup %8111  ;;  %8125 = vrcp.f32 %v4774_v6  ;;  %v3920_v57 = vmul.f32 %v8110_v34, %v10626_v58  ;;  %v13312_v6 = vld [vmem:[#allocation43_spill] sm:$0xff] }
 0x5b4   : > { %v4777_v8 = vpop.xlane.xlu1 %4776  ;;  %7525 = vmatprep.subr.bf16.mxu0 %v7524_v38  ;;  %v3923_v49 = vmul.f32 %v8112_v39, %v10638_v4  ;;  %v3922_v15 = vmul.f32 %v8112_v39, %v10636_v30 }
 0x5b5   : > { %v8114_v7 = vpop.eup %8113  ;;  %8127 = vrcp.f32 %v4777_v8  ;;  %7527 = vmatpush1.bf16.xpose.msra.mxu0 %v7526_v36  ;;  %v13313_v36 = vld [vmem:[#allocation46_spill] sm:$0xff]  ;;  %v13314_v8 = vld [vmem:[#allocation41_spill] sm:$0xff] }
 0x5b6   : > { %v3814_v40 = vpop.xlane.xlu0 %3813  ;;  %v7468_v48 = vpack.c.bf16 %v3923_v49, %v3921_v44  ;;  %v7470_v33 = vpack.c.bf16 %v3922_v15, %v3920_v57  ;;  %v4891_v55 = vmul.f32 %v8114_v7, %v10647_v32  ;;  %v4890_v58 = vmul.f32 %v8114_v7, %v10642_v35  ;;  %v13315_v49 = vld [vmem:[#allocation45_spill] sm:$0xff] }
 0x5b7   : > { %v8116_v61 = vpop.eup %8115  ;;  %8129 = vrcp.f32 %v3814_v40 }
 0x5b8   : > { %v11062_v22 = vpop.eup %8117  ;;  %v3817_v11 = vpop.xlane.xlu1 %3816  ;;  %7469 = vmatprep.subr.bf16.mxu1 %v7468_v48  ;;  %v4893_v4 = vmul.f32 %v8116_v61, %v10654_v24  ;;  %v4892_v30 = vmul.f32 %v8116_v61, %v10652_v43  ;;  %v13317_v61 = vld [vmem:[#allocation9_spill] sm:$0xff] }
 0x5b9   : > { %v8120_v3 = vpop.eup %8119  ;;  %8131 = vrcp.f32 %v3817_v11  ;;  %7471 = vmatpush1.bf16.xpose.msra.mxu1 %v7470_v33  ;;  %v13316_v33 = vld [vmem:[#allocation35_spill] sm:$0xff] }
 0x5ba   : > { %v4780_v42 = vpop.xlane.xlu0 %4779  ;;  %v7528_v47 = vpack.c.bf16 %v4893_v4, %v4891_v55  ;;  %v7530_v16 = vpack.c.bf16 %v4892_v30, %v4890_v58  ;;  %v3925_v32 = vmul.f32 %v8120_v3, %v10663_v14  ;;  %v3924_v35 = vmul.f32 %v8120_v3, %v10658_v29  ;;  %v13318_v55 = vld [vmem:[#allocation48_spill] sm:$0xff]  ;;  %v13319_v58 = vld [vmem:[#allocation117_spill] sm:$0xff]  ;;  %v13320_v3 = vld [vmem:[#allocation47_spill] sm:$0xff] }
 0x5bb   : > { %v8122_v21 = vpop.eup %8121  ;;  %8133 = vrcp.f32 %v4780_v42  ;;  %v2996_v11 = vadd.f32 %v13317_v61, %v13316_v33 }
 0x5bc   : > { %v11068_v0 = vpop.eup %8123  ;;  %v4783_v53 = vpop.xlane.xlu1 %4782  ;;  %7529 = vmatprep.subr.bf16.mxu0 %v7528_v47  ;;  %v3927_v24 = vmul.f32 %v8122_v21, %v10670_v25  ;;  %v3926_v43 = vmul.f32 %v8122_v21, %v13307_v59  ;;  %v13321_v47 = vld [vmem:[#allocation49_spill] sm:$0xff]  ;;  %v13323_v59 = vld [vmem:[#allocation22_spill] sm:$0xff] }
 0x5bd   : > { %v8126_v23 = vpop.eup %8125  ;;  %8135 = vrcp.f32 %v4783_v53  ;;  %7531 = vmatpush1.bf16.xpose.msra.mxu0 %v7530_v16  ;;  %v4847_v28 = vadd.f32 %v11068_v0, %v11062_v22 }
 0x5be   : > { %v3820_v20 = vpop.xlane.xlu0 %3819  ;;  %v7472_v31 = vpack.c.bf16 %v3927_v24, %v3925_v32  ;;  %v7474_v27 = vpack.c.bf16 %v3926_v43, %v3924_v35  ;;  %v4895_v51 = vmul.f32 %v8126_v23, %v13308_v26  ;;  %v4894_v25 = vmul.f32 %v8126_v23, %v13310_v17  ;;  %v13322_v35 = vld [vmem:[#allocation5_spill] sm:$0xff] }
 0x5bf   : > { %v8128_v46 = vpop.eup %8127  ;;  %8137 = vrcp.f32 %v3820_v20  ;;  %v3002_v43 = vadd.f32 %v13323_v59, %v13322_v35  ;;  %v5023_v23 = vmul.f32 0.25, %v2996_v11  ;;  %v13324_v20 = vld [vmem:[#allocation119_spill] sm:$0xff] }
 0x5c0   : > { %v3823_v10 = vpop.xlane.xlu1 %3822  ;;  %7473 = vmatprep.subr.bf16.mxu1 %v7472_v31  ;;  %v4897_v14 = vmul.f32 %v8128_v46, %v13309_v1  ;;  %v4896_v29 = vmul.f32 %v8128_v46, %v13311_v63 }
 0x5c1   : > { %v8130_v18 = vpop.eup %8129  ;;  %8139 = vrcp.f32 %v3823_v10  ;;  %7475 = vmatpush1.bf16.xpose.msra.mxu1 %v7474_v27  ;;  %v13325_v27 = vld [vmem:[#allocation121_spill] sm:$0xff]  ;;  %v13326_v10 = vld [vmem:[#allocation118_spill] sm:$0xff] }
 0x5c2   : > { %v4786_v5 = vpop.xlane.xlu0 %4785  ;;  %v7532_v2 = vpack.c.bf16 %v4897_v14, %v4895_v51  ;;  %v7534_v50 = vpack.c.bf16 %v4896_v29, %v4894_v25  ;;  %v3929_v38 = vmul.f32 %v8130_v18, %v13312_v6  ;;  %v3928_v44 = vmul.f32 %v8130_v18, %v13314_v8  ;;  %v13327_v51 = vld [vmem:[#allocation120_spill] sm:$0xff]  ;;  %v13328_v18 = vld [vmem:[#allocation123_spill] sm:$0xff] }
 0x5c3   : > { %v8132_v37 = vpop.eup %8131  ;;  %8141 = vrcp.f32 %v4786_v5  ;;  %v5025_v29 = vmul.f32 0.25, %v3002_v43  ;;  %v13329_v5 = vld [vmem:[#allocation125_spill] sm:$0xff] }
 0x5c4   : > { %4848 = vadd.xlane.f32.xlu0 %v4847_v28  ;;  %v4789_v34 = vpop.xlane.xlu1 %4788  ;;  %7533 = vmatprep.subr.bf16.mxu0 %v7532_v2  ;;  %v3931_v39 = vmul.f32 %v8132_v37, %v13313_v36  ;;  %v3930_v57 = vmul.f32 %v8132_v37, %v13315_v49 }
 0x5c5   : > { %v8134_v15 = vpop.eup %8133  ;;  %8143 = vrcp.f32 %v4789_v34  ;;  %7535 = vmatpush1.bf16.xpose.msra.mxu0 %v7534_v50  ;;  %v13330_v50 = vld [vmem:[#allocation122_spill] sm:$0xff]  ;;  %v13331_v34 = vld [vmem:[#allocation124_spill] sm:$0xff] }
 0x5c6   : > { %v7476_v7 = vpack.c.bf16 %v3931_v39, %v3929_v38  ;;  %v7478_v40 = vpack.c.bf16 %v3930_v57, %v3928_v44  ;;  %v4899_v4 = vmul.f32 %v8134_v15, %v13318_v55  ;;  %v4898_v42 = vmul.f32 %v8134_v15, %v13320_v3  ;;  %v2651_v39 = vld [vmem:[%s12561_s4 + $0x58] sm:$0xff]  ;;  %v13332_v55 = vld [vmem:[#allocation60_spill] sm:$0xff]  ;;  %v13334_v3 = vld [vmem:[#allocation58_spill] sm:$0xff] }
 0x5c7   : > { %v8136_v48 = vpop.eup %8135 }
 0x5c8   : > { %7477 = vmatprep.subr.bf16.mxu1 %v7476_v7  ;;  %v4901_v30 = vmul.f32 %v8136_v48, %v13319_v58  ;;  %v4900_v16 = vmul.f32 %v8136_v48, %v13321_v47  ;;  %v13333_v58 = vld [vmem:[#allocation64_spill] sm:$0xff]  ;;  %v13335_v47 = vld [vmem:[#allocation62_spill] sm:$0xff] }
 0x5c9   : > { %v8138_v21 = vpop.eup %8137  ;;  %7479 = vmatpush1.bf16.xpose.msra.mxu1 %v7478_v40 }
 0x5ca   : > { %v7536_v53 = vpack.c.bf16 %v4901_v30, %v4899_v4  ;;  %v7538_v32 = vpack.c.bf16 %v4900_v16, %v4898_v42  ;;  %v3933_v31 = vmul.f32 %v8138_v21, %v13324_v20  ;;  %v3932_v26 = vmul.f32 %v8138_v21, %v13326_v10 }
 0x5cb   : > { %v8140_v24 = vpop.eup %8139 }
 0x5cc   : > { %7537 = vmatprep.subr.bf16.mxu0 %v7536_v53  ;;  %v3935_v46 = vmul.f32 %v8140_v24, %v13325_v27  ;;  %v3934_v1 = vmul.f32 %v8140_v24, %v13327_v51 }
 0x5cd   : > { %v8142_v14 = vpop.eup %8141  ;;  %7539 = vmatpush1.bf16.xpose.msra.mxu0 %v7538_v32 }
 0x5ce   : > { %v7480_v17 = vpack.c.bf16 %v3935_v46, %v3933_v31  ;;  %v7482_v25 = vpack.c.bf16 %v3934_v1, %v3932_v26  ;;  %v4903_v28 = vmul.f32 %v8142_v14, %v13328_v18  ;;  %v4902_v37 = vmul.f32 %v8142_v14, %v13330_v50  ;;  %v13337_v31 = vld [vmem:[#allocation53_spill] sm:$0xff]  ;;  %v13338_v46 = vld [vmem:[#allocation50_spill] sm:$0xff]  ;;  %v13339_v26 = vld [vmem:[#allocation52_spill] sm:$0xff] }
 0x5cf   : > { %5027 = vxpose.xlu1.b32.start [1/2] (short) %v5023_v23, 128  ;;  %v8144_v63 = vpop.eup %8143  ;;  %v13336_v23 = vld [vmem:[#allocation51_spill] sm:$0xff]  ;;  %v13340_v18 = vld [vmem:[#allocation68_spill] sm:$0xff]  ;;  %v13342_v50 = vld [vmem:[#allocation66_spill] sm:$0xff] }
 0x5d0   : > { %7481 = vmatprep.subr.bf16.mxu1 %v7480_v17  ;;  %v4905_v2 = vmul.f32 %v8144_v63, %v13329_v5  ;;  %v4904_v6 = vmul.f32 %v8144_v63, %v13331_v34  ;;  %v13341_v5 = vld [vmem:[#allocation72_spill] sm:$0xff]  ;;  %v13343_v34 = vld [vmem:[#allocation70_spill] sm:$0xff] }
 0x5d1   : > { %7483 = vmatpush1.bf16.xpose.msra.mxu1 %v7482_v25 }
 0x5d2   : > { %v7540_v38 = vpack.c.bf16 %v4905_v2, %v4903_v28  ;;  %v7542_v36 = vpack.c.bf16 %v4904_v6, %v4902_v37 }
 0x5d3   : > { %5028 = vxpose.xlu1.b32.end [2/2] (short) %v5025_v29, 128 }
 0x5d4   : > { %7541 = vmatprep.subr.bf16.mxu0 %v7540_v38 }
 0x5d5   : > { %7543 = vmatpush1.bf16.xpose.msra.mxu0 %v7542_v36  ;;  %v13344_v36 = vld [vmem:[#allocation36_spill] sm:$0xff] }
 0x5d8   : > { %v3826_v8 = vpop.xlane.xlu0 %3825 }
 0x5d9   : > { %8145 = vrcp.f32 %v3826_v8 }
 0x5da   : > { %2721 = vperm.xlu0 %7759, %v2651_v39   ;;  %v13345_v39 = vld [vmem:[#allocation24_spill] sm:$0xff] }
 0x5db   : > { %v3032_v8 = vadd.f32 %v13345_v39, %v13344_v36 }
 0x5dc   : > { %v3829_v44 = vpop.xlane.xlu1 %3828 }
 0x5dd   : > { %8147 = vrcp.f32 %v3829_v44 }
 0x5de   : > { %v4792_v49 = vpop.xlane.xlu0 %4791 }
 0x5df   : > { %8149 = vrcp.f32 %v4792_v49 }
 0x5e0   : > { %v4795_v57 = vpop.xlane.xlu1 %4794 }
 0x5e1   : > { %8151 = vrcp.f32 %v4795_v57 }
 0x5e2   : > { %v3832_v15 = vpop.xlane.xlu0 %3831 }
 0x5e3   : > { %8153 = vrcp.f32 %v3832_v15  ;;  %v8146_v40 = vpop.eup %8145 }
 0x5e4   : > { %v3835_v7 = vpop.xlane.xlu1 %3834  ;;  %v3937_v4 = vmul.f32 %v8146_v40, %v13332_v55  ;;  %v3936_v42 = vmul.f32 %v8146_v40, %v13334_v3  ;;  %v13346_v40 = vld [vmem:[#allocation55_spill] sm:$0xff]  ;;  %v13348_v55 = vld [vmem:[#allocation54_spill] sm:$0xff] }
 0x5e5   : > { %8155 = vrcp.f32 %v3835_v7 }
 0x5e6   : > { %v4798_v48 = vpop.xlane.xlu0 %4797 }
 0x5e7   : > { %v8148_v61 = vpop.eup %8147  ;;  %8157 = vrcp.f32 %v4798_v48 }
 0x5e8   : > { %v4801_v11 = vpop.xlane.xlu1 %4800  ;;  %v3939_v30 = vmul.f32 %v8148_v61, %v13333_v58  ;;  %v3938_v16 = vmul.f32 %v8148_v61, %v13335_v47  ;;  %v13347_v61 = vld [vmem:[#allocation57_spill] sm:$0xff]  ;;  %v13349_v58 = vld [vmem:[#allocation56_spill] sm:$0xff]  ;;  %v13351_v47 = vld [vmem:[#allocation10_spill] sm:$0xff] }
 0x5e9   : > { %v8150_v21 = vpop.eup %8149  ;;  %8159 = vrcp.f32 %v4801_v11 }
 0x5ea   : > { %v3838_v53 = vpop.xlane.xlu0 %3837  ;;  %v7484_v32 = vpack.c.bf16 %v3939_v30, %v3937_v4  ;;  %v7486_v24 = vpack.c.bf16 %v3938_v16, %v3936_v42  ;;  %v4907_v20 = vmul.f32 %v8150_v21, %v13336_v23  ;;  %v4906_v10 = vmul.f32 %v8150_v21, %v13338_v46  ;;  %v13350_v42 = vld [vmem:[#allocation2_spill] sm:$0xff]  ;;  %v13352_v23 = vld [vmem:[#allocation76_spill] sm:$0xff] }
 0x5eb   : > { %v8152_v59 = vpop.eup %8151  ;;  %8161 = vrcp.f32 %v3838_v53  ;;  %v3038_v16 = vadd.f32 %v13351_v47, %v13350_v42  ;;  %v6001_v21 = vmul.f32 0.25, %v3032_v8  ;;  %v13354_v46 = vld [vmem:[#allocation74_spill] sm:$0xff] }
 0x5ec   : > { %v3841_v43 = vpop.xlane.xlu1 %3840  ;;  %7485 = vmatprep.subr.bf16.mxu1 %v7484_v32  ;;  %v4909_v27 = vmul.f32 %v8152_v59, %v13337_v31  ;;  %v4908_v51 = vmul.f32 %v8152_v59, %v13339_v26  ;;  %v13353_v31 = vld [vmem:[#allocation80_spill] sm:$0xff]  ;;  %v13355_v26 = vld [vmem:[#allocation78_spill] sm:$0xff] }
 0x5ed   : > { %v8154_v1 = vpop.eup %8153  ;;  %8163 = vrcp.f32 %v3841_v43  ;;  %7487 = vmatpush1.bf16.xpose.msra.mxu1 %v7486_v24 }
 0x5ee   : > { %v4804_v14 = vpop.xlane.xlu0 %4803  ;;  %v7544_v17 = vpack.c.bf16 %v4909_v27, %v4907_v20  ;;  %v7546_v25 = vpack.c.bf16 %v4908_v51, %v4906_v10  ;;  %v3941_v28 = vmul.f32 %v8154_v1, %v13340_v18  ;;  %v3940_v37 = vmul.f32 %v8154_v1, %v13342_v50 }
 0x5ef   : > { %v8156_v63 = vpop.eup %8155  ;;  %8165 = vrcp.f32 %v4804_v14  ;;  %v6003_v14 = vmul.f32 0.25, %v3038_v16 }
 0x5f0   : > { %v4807_v29 = vpop.xlane.xlu1 %4806  ;;  %7545 = vmatprep.subr.bf16.mxu0 %v7544_v17  ;;  %v3943_v2 = vmul.f32 %v8156_v63, %v13341_v5  ;;  %v3942_v6 = vmul.f32 %v8156_v63, %v13343_v34 }
 0x5f1   : > { %v8158_v38 = vpop.eup %8157  ;;  %8167 = vrcp.f32 %v4807_v29  ;;  %7547 = vmatpush1.bf16.xpose.msra.mxu0 %v7546_v25 }
 0x5f2   : > { %v3844_v44 = vpop.xlane.xlu0 %3843  ;;  %v7488_v49 = vpack.c.bf16 %v3943_v2, %v3941_v28  ;;  %v7490_v57 = vpack.c.bf16 %v3942_v6, %v3940_v37  ;;  %v4911_v48 = vmul.f32 %v8158_v38, %v13346_v40  ;;  %v4910_v4 = vmul.f32 %v8158_v38, %v13348_v55  ;;  %v13356_v28 = vld [vmem:[#allocation61_spill] sm:$0xff]  ;;  %v13358_v37 = vld [vmem:[#allocation59_spill] sm:$0xff] }
 0x5f3   : > { %v8160_v15 = vpop.eup %8159  ;;  %8169 = vrcp.f32 %v3844_v44  ;;  %v13357_v2 = vld [vmem:[#allocation65_spill] sm:$0xff]  ;;  %v13359_v6 = vld [vmem:[#allocation63_spill] sm:$0xff] }
 0x5f4   : > { %v3847_v7 = vpop.xlane.xlu1 %3846  ;;  %7489 = vmatprep.subr.bf16.mxu1 %v7488_v49  ;;  %v4913_v11 = vmul.f32 %v8160_v15, %v13347_v61  ;;  %v4912_v30 = vmul.f32 %v8160_v15, %v13349_v58 }
 0x5f5   : > { %v8162_v3 = vpop.eup %8161  ;;  %8171 = vrcp.f32 %v3847_v7  ;;  %7491 = vmatpush1.bf16.xpose.msra.mxu1 %v7490_v57  ;;  %v13360_v7 = vld [vmem:[#allocation84_spill] sm:$0xff] }
 0x5f6   : > { %v4810_v53 = vpop.xlane.xlu0 %4809  ;;  %v7548_v32 = vpack.c.bf16 %v4913_v11, %v4911_v48  ;;  %v7550_v24 = vpack.c.bf16 %v4912_v30, %v4910_v4  ;;  %v3945_v20 = vmul.f32 %v8162_v3, %v13352_v23  ;;  %v3944_v10 = vmul.f32 %v8162_v3, %v13354_v46  ;;  %v13361_v48 = vld [vmem:[#allocation88_spill] sm:$0xff]  ;;  %v13362_v11 = vld [vmem:[#allocation82_spill] sm:$0xff]  ;;  %v13366_v23 = vld [vmem:[#allocation67_spill] sm:$0xff] }
 0x5f7   : > { %v8164_v59 = vpop.eup %8163  ;;  %8173 = vrcp.f32 %v4810_v53  ;;  %v13363_v4 = vld [vmem:[#allocation86_spill] sm:$0xff] }
 0x5f8   : > { %6005 = vxpose.xlu0.b32.start [1/2] (short) %v6001_v21, 128  ;;  %v4813_v43 = vpop.xlane.xlu1 %4812  ;;  %7549 = vmatprep.subr.bf16.mxu0 %v7548_v32  ;;  %v3947_v27 = vmul.f32 %v8164_v59, %v13353_v31  ;;  %v3946_v51 = vmul.f32 %v8164_v59, %v13355_v26  ;;  %v13364_v32 = vld [vmem:[#allocation69_spill] sm:$0xff]  ;;  %v13367_v31 = vld [vmem:[#allocation71_spill] sm:$0xff] }
 0x5f9   : > { %v8166_v1 = vpop.eup %8165  ;;  %8175 = vrcp.f32 %v4813_v43  ;;  %7551 = vmatpush1.bf16.xpose.msra.mxu0 %v7550_v24  ;;  %v13365_v59 = vld [vmem:[#allocation73_spill] sm:$0xff] }
 0x5fa   : > { %v3850_v17 = vpop.xlane.xlu0 %3849  ;;  %v7492_v25 = vpack.c.bf16 %v3947_v27, %v3945_v20  ;;  %v7494_v63 = vpack.c.bf16 %v3946_v51, %v3944_v10  ;;  %v4915_v5 = vmul.f32 %v8166_v1, %v13356_v28  ;;  %v4914_v34 = vmul.f32 %v8166_v1, %v13358_v37  ;;  %v13368_v10 = vld [vmem:[#allocation14_spill] sm:$0xff] }
 0x5fb   : > { %v8168_v29 = vpop.eup %8167  ;;  %8177 = vrcp.f32 %v3850_v17  ;;  %v3034_v26 = vadd.f32 %v13368_v10, %v13344_v36  ;;  %v13370_v28 = vld [vmem:[#allocation90_spill] sm:$0xff]  ;;  %v13372_v36 = vld [vmem:[#allocation12_spill] sm:$0xff] }
 0x5fc   : > { %6006 = vxpose.xlu0.b32.end [2/2] (short) %v6003_v14, 128  ;;  %v3853_v18 = vpop.xlane.xlu1 %3852  ;;  %7493 = vmatprep.subr.bf16.mxu1 %v7492_v25  ;;  %v4917_v50 = vmul.f32 %v8168_v29, %v13357_v2  ;;  %v4916_v38 = vmul.f32 %v8168_v29, %v13359_v6  ;;  %v13371_v2 = vld [vmem:[#allocation94_spill] sm:$0xff] }
 0x5fd   : > { %v8170_v39 = vpop.eup %8169  ;;  %8179 = vrcp.f32 %v3853_v18  ;;  %7495 = vmatpush1.bf16.xpose.msra.mxu1 %v7494_v63  ;;  %v13369_v63 = vld [vmem:[#allocation92_spill] sm:$0xff]  ;;  %v6002_v6 = vmul.f32 0.25, %v3034_v26  ;;  %v13381_v26 = vld [vmem:[#allocation102_spill] sm:$0xff] }
 0x5fe   : > { %v4816_v8 = vpop.xlane.xlu0 %4815  ;;  %v7552_v44 = vpack.c.bf16 %v4917_v50, %v4915_v5  ;;  %v7554_v49 = vpack.c.bf16 %v4916_v38, %v4914_v34  ;;  %v3949_v40 = vmul.f32 %v8170_v39, %v13360_v7  ;;  %v3948_v55 = vmul.f32 %v8170_v39, %v13362_v11 }
 0x5ff   : > { %v8172_v57 = vpop.eup %8171  ;;  %8181 = vrcp.f32 %v4816_v8  ;;  %v3040_v34 = vadd.f32 %v13372_v36, %v13350_v42 }
 0x600   : > { %v4819_v15 = vpop.xlane.xlu1 %4818  ;;  %7553 = vmatprep.subr.bf16.mxu0 %v7552_v44  ;;  %v3951_v61 = vmul.f32 %v8172_v57, %v13361_v48  ;;  %v3950_v58 = vmul.f32 %v8172_v57, %v13363_v4 }
 0x601   : > { %v8174_v30 = vpop.eup %8173  ;;  %8183 = vrcp.f32 %v4819_v15  ;;  %7555 = vmatpush1.bf16.xpose.msra.mxu0 %v7554_v49  ;;  %v13373_v15 = vld [vmem:[#allocation96_spill] sm:$0xff]  ;;  %v6004_v48 = vmul.f32 0.25, %v3040_v34 }
 0x602   : > { %v3856_v3 = vpop.xlane.xlu0 %3855  ;;  %v7496_v47 = vpack.c.bf16 %v3951_v61, %v3949_v40  ;;  %v7498_v16 = vpack.c.bf16 %v3950_v58, %v3948_v55  ;;  %v4919_v24 = vmul.f32 %v8174_v30, %v13364_v32  ;;  %v4918_v20 = vmul.f32 %v8174_v30, %v13366_v23  ;;  %v13374_v58 = vld [vmem:[#allocation77_spill] sm:$0xff]  ;;  %v13378_v23 = vld [vmem:[#allocation100_spill] sm:$0xff] }
 0x603   : > { %v8176_v21 = vpop.eup %8175  ;;  %8185 = vrcp.f32 %v3856_v3  ;;  %v13375_v3 = vld [vmem:[#allocation81_spill] sm:$0xff] }
 0x604   : > { %v3859_v53 = vpop.xlane.xlu1 %3858  ;;  %7497 = vmatprep.subr.bf16.mxu1 %v7496_v47  ;;  %v4921_v43 = vmul.f32 %v8176_v21, %v13365_v59  ;;  %v4920_v27 = vmul.f32 %v8176_v21, %v13367_v31  ;;  %v13376_v47 = vld [vmem:[#allocation75_spill] sm:$0xff]  ;;  %v13379_v31 = vld [vmem:[#allocation104_spill] sm:$0xff] }
 0x605   : > { %v8178_v46 = vpop.eup %8177  ;;  %8187 = vrcp.f32 %v3859_v53  ;;  %7499 = vmatpush1.bf16.xpose.msra.mxu1 %v7498_v16  ;;  %v13377_v16 = vld [vmem:[#allocation79_spill] sm:$0xff] }
 0x606   : > { %v4822_v51 = vpop.xlane.xlu0 %4821  ;;  %v7556_v1 = vpack.c.bf16 %v4921_v43, %v4919_v24  ;;  %v7558_v14 = vpack.c.bf16 %v4920_v27, %v4918_v20  ;;  %v3953_v29 = vmul.f32 %v8178_v46, %v13369_v63  ;;  %v3952_v5 = vmul.f32 %v8178_v46, %v13370_v28  ;;  %v13380_v46 = vld [vmem:[#allocation98_spill] sm:$0xff] }
 0x607   : > { %v8180_v17 = vpop.eup %8179  ;;  %8189 = vrcp.f32 %v4822_v51 }
 0x608   : > { %v4825_v25 = vpop.xlane.xlu1 %4824  ;;  %7557 = vmatprep.subr.bf16.mxu0 %v7556_v1  ;;  %v3955_v18 = vmul.f32 %v8180_v17, %v10894_v62  ;;  %v3954_v50 = vmul.f32 %v8180_v17, %v13371_v2  ;;  %v13383_v2 = vld [vmem:[#allocation83_spill] sm:$0xff] }
 0x609   : > { %v8182_v37 = vpop.eup %8181  ;;  %8191 = vrcp.f32 %v4825_v25  ;;  %7559 = vmatpush1.bf16.xpose.msra.mxu0 %v7558_v14 }
 0x60a   : > { %v3862_v38 = vpop.xlane.xlu0 %3861  ;;  %v7500_v39 = vpack.c.bf16 %v3955_v18, %v3953_v29  ;;  %v7502_v8 = vpack.c.bf16 %v3954_v50, %v3952_v5  ;;  %v4923_v62 = vmul.f32 %v8182_v37, %v10903_v12  ;;  %v4922_v7 = vmul.f32 %v8182_v37, %v13373_v15  ;;  %v13382_v18 = vld [vmem:[#allocation85_spill] sm:$0xff] }
 0x60b   : > { %v8184_v44 = vpop.eup %8183  ;;  %8193 = vrcp.f32 %v3862_v38 }
 0x60c   : > { %6037 = vxpose.xlu1.b32.start [1/2] (short) %v6002_v6, 128  ;;  %v3865_v49 = vpop.xlane.xlu1 %3864  ;;  %7501 = vmatprep.subr.bf16.mxu1 %v7500_v39  ;;  %v4925_v57 = vmul.f32 %v8184_v44, %v10910_v52  ;;  %v4924_v40 = vmul.f32 %v8184_v44, %v10908_v45 }
 0x60d   : > { %v8186_v42 = vpop.eup %8185  ;;  %8195 = vrcp.f32 %v3865_v49  ;;  %7503 = vmatpush1.bf16.xpose.msra.mxu1 %v7502_v8 }
 0x60e   : > { %v7560_v61 = vpack.c.bf16 %v4925_v57, %v4923_v62  ;;  %v7562_v11 = vpack.c.bf16 %v4924_v40, %v4922_v7  ;;  %v4828_v4 = vpop.xlane.xlu0 %4827  ;;  %v3957_v30 = vmul.f32 %v8186_v42, %v13374_v58  ;;  %v3956_v52 = vmul.f32 %v8186_v42, %v13376_v47  ;;  %v13384_v7 = vld [vmem:[#allocation89_spill] sm:$0xff]  ;;  %v13385_v42 = vld [vmem:[#allocation87_spill] sm:$0xff] }
 0x60f   : > { %v8188_v55 = vpop.eup %8187 }
 0x610   : > { %6038 = vxpose.xlu1.b32.end [2/2] (short) %v6004_v48, 128  ;;  %7561 = vmatprep.subr.bf16.mxu0 %v7560_v61  ;;  %v3959_v12 = vmul.f32 %v8188_v55, %v13375_v3  ;;  %v3958_v21 = vmul.f32 %v8188_v55, %v13377_v16  ;;  %v13386_v55 = vld [vmem:[#allocation108_spill] sm:$0xff] }
 0x611   : > { %v8190_v53 = vpop.eup %8189  ;;  %7563 = vmatpush1.bf16.xpose.msra.mxu0 %v7562_v11  ;;  %v13389_v16 = vld [vmem:[#allocation16_spill] sm:$0xff] }
 0x612   : > { %v3868_v45 = vpop.xlane.xlu1 %3867  ;;  %v7504_v32 = vpack.c.bf16 %v3959_v12, %v3957_v30  ;;  %v7506_v24 = vpack.c.bf16 %v3958_v21, %v3956_v52  ;;  %v4927_v20 = vmul.f32 %v8190_v53, %v13378_v23  ;;  %v4926_v10 = vmul.f32 %v8190_v53, %v13380_v46  ;;  %v13387_v30 = vld [vmem:[#allocation106_spill] sm:$0xff]  ;;  %v13390_v53 = vld [vmem:[#allocation25_spill] sm:$0xff]  ;;  %v13392_v23 = vld [vmem:[#allocation20_spill] sm:$0xff] }
 0x613   : > { %8197 = vrcp.f32 %v3868_v45  ;;  %v8192_v59 = vpop.eup %8191  ;;  %v13394_v46 = vld [vmem:[#allocation33_spill] sm:$0xff] }
 0x614   : > { %8199 = vrcp.f32 %v4828_v4  ;;  %v3871_v43 = vpop.xlane.xlu0 %3870  ;;  %7505 = vmatprep.subr.bf16.mxu1 %v7504_v32  ;;  %v4929_v27 = vmul.f32 %v8192_v59, %v13379_v31  ;;  %v4928_v51 = vmul.f32 %v8192_v59, %v13381_v26  ;;  %v13393_v31 = vld [vmem:[#allocation26_spill] sm:$0xff] }
 0x615   : > { %8201 = vrcp.f32 %v3871_v43  ;;  %v8194_v1 = vpop.eup %8193  ;;  %7507 = vmatpush1.bf16.xpose.msra.mxu1 %v7506_v24  ;;  %v13391_v24 = vld [vmem:[#allocation93_spill] sm:$0xff] }
 0x616   : > { %v4831_v14 = vpop.xlane.xlu1 %4830  ;;  %v7564_v17 = vpack.c.bf16 %v4929_v27, %v4927_v20  ;;  %v7566_v25 = vpack.c.bf16 %v4928_v51, %v4926_v10  ;;  %v3961_v28 = vmul.f32 %v8194_v1, %v13382_v18  ;;  %v3960_v50 = vmul.f32 %v8194_v1, %v13383_v2  ;;  %v13395_v10 = vld [vmem:[#allocation31_spill] sm:$0xff]  ;;  %v13400_v2 = vld [vmem:[#allocation101_spill] sm:$0xff] }
 0x617   : > { %8203 = vrcp.f32 %v4831_v14  ;;  %v8196_v63 = vpop.eup %8195  ;;  %v13396_v26 = vpack.c.bf16 %v13394_v46, %v13395_v10  ;;  %v13418_v10 = vld [vmem:[#allocation13_spill] sm:$0xff] }
 0x618   : > { %v4834_v29 = vpop.xlane.xlu0 %4833  ;;  %7565 = vmatprep.subr.bf16.mxu0 %v7564_v17  ;;  %v3963_v5 = vmul.f32 %v8196_v63, %v10958_v19  ;;  %v3962_v37 = vmul.f32 %v8196_v63, %v10956_v60  ;;  %v13397_v17 = vld [vmem:[#allocation111_spill] sm:$0xff] }
 0x619   : > { %8205 = vrcp.f32 %v4834_v29  ;;  %7567 = vmatpush1.bf16.xpose.msra.mxu0 %v7566_v25  ;;  %v13398_v63 = vld [vmem:[#allocation91_spill] sm:$0xff] }
 0x61a   : > { %v4837_v36 = vpop.xlane.xlu1 %4836  ;;  %v7508_v34 = vpack.c.bf16 %v3963_v5, %v3961_v28  ;;  %v7510_v6 = vpack.c.bf16 %v3962_v37, %v3960_v50  ;;  %v13399_v28 = vld [vmem:[#allocation97_spill] sm:$0xff] }
 0x61b   : > { %8207 = vrcp.f32 %v4837_v36  ;;  %v13401_v37 = vld [vmem:[#allocation37_spill] sm:$0xff]  ;;  %v13402_v36 = vld [vmem:[#allocation8_spill] sm:$0xff] }
 0x61c   : > { %v4840_v38 = vpop.xlane.xlu0 %4839  ;;  %7509 = vmatprep.subr.bf16.mxu1 %v7508_v34  ;;  %v2948_v34 = vadd.f32 %v13402_v36, %v13401_v37 }
 0x61d   : > { %v8198_v39 = vpop.eup %8197  ;;  %8209 = vrcp.f32 %v4840_v38  ;;  %7511 = vmatpush1.bf16.xpose.msra.mxu1 %v7510_v6  ;;  %v13403_v6 = vld [vmem:[#allocation110_spill] sm:$0xff] }
 0x61e   : > { %v8200_v8 = vpop.eup %8199  ;;  %v4843_v44 = vpop.xlane.xlu1 %4842  ;;  %v3965_v19 = vmul.f32 %v8198_v39, %v10982_v41  ;;  %v3964_v60 = vmul.f32 %v8198_v39, %v10980_v54  ;;  %v13388_v54 = vld [vmem:[#allocation113_spill] sm:$0xff]  ;;  %v13404_v38 = vld [vmem:[#allocation6_spill] sm:$0xff] }
 0x61f   : > { %v8202_v49 = vpop.eup %8201  ;;  %8211 = vrcp.f32 %v4843_v44  ;;  %v4931_v40 = vmul.f32 %v8200_v8, %v13384_v7  ;;  %v4930_v48 = vmul.f32 %v8200_v8, %v13385_v42  ;;  %v2956_v39 = vadd.f32 %v13404_v38, %v13403_v6  ;;  %v13405_v44 = vld [vmem:[#allocation32_spill] sm:$0xff] }
 0x620   : > { %v3967_v62 = vmul.f32 %v8202_v49, %v10988_v56  ;;  %v3966_v57 = vmul.f32 %v8202_v49, %v10984_v9  ;;  %v13406_v49 = vld [vmem:[#allocation30_spill] sm:$0xff] }
 0x621   : > { %v8204_v15 = vpop.eup %8203 }
 0x622   : > { %v4846_v61 = vpop.xlane.xlu1 %4845  ;;  %v7512_v11 = vpack.c.bf16 %v3967_v62, %v3965_v19  ;;  %v4933_v4 = vmul.f32 %v8204_v15, %v13386_v55  ;;  %v7514_v58 = vpack.c.bf16 %v3966_v57, %v3964_v60  ;;  %v4932_v3 = vmul.f32 %v8204_v15, %v13387_v30  ;;  %v13408_v60 = vld [vmem:[#allocation18_spill] sm:$0xff]  ;;  %v13409_v15 = vld [vmem:[#allocation15_spill] sm:$0xff] }
 0x623   : > { %v8206_v12 = vpop.eup %8205  ;;  %v13407_v19 = vpack.c.bf16 %v13405_v44, %v13406_v49  ;;  %v2998_v57 = vadd.f32 %v13408_v60, %v13316_v33  ;;  %v2954_v7 = vadd.f32 %v13409_v15, %v13403_v6  ;;  %v13412_v55 = vmov 0.0  }
 0x624   : > { %7513 = vmatprep.subr.bf16.mxu1 %v7512_v11  ;;  %v7568_v41 = vpack.c.bf16 %v4933_v4, %v4931_v40  ;;  %v2767_v56 = vpop.permute.xlu0 %2766  ;;  %v7570_v47 = vpack.c.bf16 %v4932_v3, %v4930_v48  ;;  %v4935_v52 = vmul.f32 %v8206_v12, %v13388_v54  ;;  %v4934_v25 = vmul.f32 %v8206_v12, %v13397_v17  ;;  %v13410_v40 = vld [vmem:[#allocation95_spill] sm:$0xff]  ;;  %v13413_v4 = vld [vmem:[#allocation4_spill] sm:$0xff] }
 0x625   : > { %v8208_v9 = vpop.eup %8207  ;;  %v11173_v21 = vadd.f32 %v13389_v16, %v2767_v56  ;;  %v11176_v45 = vadd.f32 %v13390_v53, %v2767_v56  ;;  %7515 = vmatpush1.bf16.xpose.msra.mxu1 %v7514_v58  ;;  %v13411_v48 = vld [vmem:[#allocation99_spill] sm:$0xff]  ;;  %v3004_v58 = vadd.f32 %v13413_v4, %v13322_v35  ;;  %v5024_v30 = vmul.f32 0.25, %v2998_v57 }
 0x626   : > { %v2772_v32 = vpop.permute.xlu1 %2771  ;;  %7569 = vmatprep.subr.bf16.mxu0 %v7568_v41  ;;  %v4937_v59 = vmul.f32 %v8208_v9, %v13391_v24  ;;  %7585 = vmatprep.subr.bf16.mxu1 %v13396_v26  ;;  %v4936_v29 = vmul.f32 %v8208_v9, %v13398_v63  ;;  %8213 = vrcp.f32 %v4846_v61  ;;  %v13414_v16 = vld [vmem:[#allocation103_spill] sm:$0xff] }
 0x627   : > { %v8210_v43 = vpop.eup %8209  ;;  %v11180_v20 = vadd.f32 %v13392_v23, %v2772_v32  ;;  %v11183_v27 = vadd.f32 %v13393_v31, %v2772_v32  ;;  %7571 = vmatpush1.bf16.xpose.msra.mxu0 %v7570_v47  ;;  %v5026_v12 = vmul.f32 0.25, %v3004_v58  ;;  %v13416_v23 = vld [vmem:[#allocation17_spill] sm:$0xff] }
 0x628   : > { %v7572_v51 = vpack.c.bf16 %v4937_v59, %v4935_v52  ;;  %v4939_v5 = vmul.f32 %v8210_v43, %v13399_v28  ;;  %v7574_v8 = vpack.c.bf16 %v4936_v29, %v4934_v25  ;;  %v4938_v42 = vmul.f32 %v8210_v43, %v13410_v40 }
 0x629   : > { %v8212_v1 = vpop.eup %8211  ;;  %v7654_v14 = vpack.c.bf16 %v11180_v20, %v11173_v21  ;;  %v7652_v18 = vpack.c.bf16 %v11183_v27, %v11176_v45  ;;  %v13417_v27 = vld [vmem:[#allocation7_spill] sm:$0xff] }
 0x62a   : > { %7573 = vmatprep.subr.bf16.mxu0 %v7572_v51  ;;  %v4941_v50 = vmul.f32 %v8212_v1, %v13400_v2  ;;  %v4940_v11 = vmul.f32 %v8212_v1, %v13411_v48 }
 0x62c   : > { %4033 = vmatmul.mubr.f32.vlgmr.msra.gmra.mrb[78].mxu1 %v2948_v34  ;;  %v7576_v62 = vpack.c.bf16 %v4941_v50, %v4939_v5  ;;  %v7578_v3 = vpack.c.bf16 %v4940_v11, %v4938_v42 }
 0x62d   : > { %4038 = vmatprep.mubr.f32.mxu1 %v2956_v39  ;;  %7587 = vmatpush1.bf16.msra.mxu1 %v13407_v19 }
 0x62f   : > { %7575 = vmatpush1.bf16.xpose.msra.mxu0 %v7574_v8 }
 0x630   : > { %7577 = vmatprep.subr.bf16.mxu0 %v7576_v62  ;;  %4039 = vmatmul.mubr.f32.gmra.mrb[80].mxu1 %v2954_v7  ;;  %v8214_v47 = vpop.eup %8213 }
 0x631   : > { %5251 = vmatprep.mubr.f32.mxu1 %v13412_v55  ;;  %v4943_v61 = vmul.f32 %v8214_v47, %v11020_v13  ;;  %v4942_v53 = vmul.f32 %v8214_v47, %v13414_v16 }
 0x635   : > { %5059 = vxpose.xlu0.b32.start [1/2] (short) %v5024_v30, 128 }
 0x637   : > { %7579 = vmatpush1.bf16.xpose.msra.mxu0 %v7578_v3 }
 0x639   : > { %5060 = vxpose.xlu0.b32.end [2/2] (short) %v5026_v12, 128 }
 0x64f   : > { %v5043_v33 = vpop.trf.xlu1 }
 0x650   : > { %7356 = vmatmul.mubr.msk.f32.vlgmr.msra.gmra.mrb[82].mxu1 %vm3134_vm2, %v5043_v33 }
 0x651   : > { %5257 = vmatprep.mubr.f32.mxu1 %v13412_v55  ;;  %v4849_v41 = vpop.xlane.xlu0 %4848 }
 0x652   : > { %8215 = vrcp.f32 %v4849_v41 }
 0x653   : > { %v5044_v56 = vpop.trf.xlu1 }
 0x654   : > { %7357 = vmatmul.mubr.msk.f32.gmra.mrb[84].mxu1 %vm3134_vm2, %v5044_v56 }
 0x655   : > { %5263 = vmatprep.mubr.f32.mxu1 %v13412_v55 }
 0x657   : > { %v5045_v35 = vpop.trf.xlu1 }
 0x658   : > { %7358 = vmatmul.mubr.msk.f32.gmra.mrb[86].mxu1 %vm3134_vm2, %v5045_v35 }
 0x659   : > { %5269 = vmatprep.mubr.f32.mxu1 %v13412_v55  ;;  %v2722_v13 = vpop.permute.xlu0 %2721 }
 0x65a   : > { %v2992_v46 = vadd.f32 %v13417_v27, %v2722_v13  ;;  %v2990_v26 = vadd.f32 %v13418_v10, %v2722_v13 }
 0x65b   : > { %v5046_v54 = vpop.trf.xlu1 }
 0x65c   : > { %v8216_v52 = vpop.eup %8215  ;;  %7359 = vmatmul.mubr.msk.f32.gmra.mrb[88].mxu1 %vm3134_vm2, %v5046_v54 }
 0x65d   : > { %5275 = vmatprep.mubr.f32.mxu1 %v13412_v55  ;;  %v4945_v9 = vmul.f32 %v8216_v52, %v11068_v0  ;;  %v4944_v45 = vmul.f32 %v8216_v52, %v11062_v22  ;;  %v13415_v0 = vld [vmem:[#allocation34_spill] sm:$0xff] }
 0x65e   : > { %v2984_v31 = vadd.f32 %v13416_v23, %v13415_v0 }
 0x65f   : > { %v5047_v32 = vpop.trf.xlu1  ;;  %v7580_v24 = vpack.c.bf16 %v4945_v9, %v4943_v61  ;;  %v7582_v59 = vpack.c.bf16 %v4944_v45, %v4942_v53 }
 0x660   : > { %7360 = vmatmul.mubr.msk.f32.gmra.mrb[90].mxu1 %vm3134_vm2, %v5047_v32 }
 0x661   : > { %7581 = vmatprep.subr.bf16.mxu0 %v7580_v24  ;;  %5281 = vmatprep.mubr.f32.mxu1 %v13412_v55 }
 0x662   : > { %7583 = vmatpush1.bf16.xpose.msra.mxu0 %v7582_v59 }
 0x663   : > { %v5048_v43 = vpop.trf.xlu1  ;;  %7653 = vmatprep.subr.bf16.mxu0 %v7652_v18 }
 0x664   : > { %7361 = vmatmul.mubr.msk.f32.gmra.mrb[92].mxu1 %vm3134_vm2, %v5048_v43 }
 0x665   : > { %5287 = vmatprep.mubr.f32.mxu1 %v13412_v55 }
 0x667   : > { %v5049_v22 = vpop.trf.xlu1 }
 0x668   : > { %7362 = vmatmul.mubr.msk.f32.gmra.mrb[94].mxu1 %vm3134_vm2, %v5049_v22 }
 0x669   : > { %5011 = vmatmul.mubr.f32.vlgmr.msra.gmra.mrb[98].mxu0 %v2984_v31  ;;  %5293 = vmatprep.mubr.f32.mxu1 %v13412_v55 }
 0x66a   : > { %5016 = vmatprep.mubr.f32.mxu0 %v2992_v46  ;;  %7655 = vmatpush1.bf16.msra.mxu0 %v7654_v14 }
 0x66b   : > { %v5050_v51 = vpop.trf.xlu1 }
 0x66c   : > { %7363 = vmatmul.mubr.msk.f32.gmra.mrb[96].mxu1 %vm3134_vm2, %v5050_v51 }
 0x66d   : > { %5017 = vmatmul.mubr.f32.gmra.mrb[100].mxu0 %v2990_v26  ;;  %5299 = vmatprep.mubr.f32.mxu1 %v13412_v55 }
 0x66e   : > { %6229 = vmatprep.mubr.f32.mxu0 %v13412_v55 }
 0x66f   : > { %v5051_v1 = vpop.trf.xlu1 }
 0x670   : > { %7364 = vmatmul.mubr.msk.f32.gmra.mrb[98].mxu1 %vm3134_vm2, %v5051_v1 }
 0x671   : > { %5305 = vmatprep.mubr.f32.mxu1 %v13412_v55 }
 0x673   : > { %v5052_v17 = vpop.trf.xlu1 }
 0x674   : > { %7365 = vmatmul.mubr.msk.f32.gmra.mrb[100].mxu1 %vm3134_vm2, %v5052_v17 }
 0x675   : > { %5311 = vmatprep.mubr.f32.mxu1 %v13412_v55 }
 0x677   : > { %v5053_v21 = vpop.trf.xlu1 }
 0x678   : > { %v6021_v20 = vpop.trf.xlu0  ;;  %7366 = vmatmul.mubr.msk.f32.gmra.mrb[102].mxu1 %vm3134_vm2, %v5053_v21 }
 0x679   : > { %7388 = vmatmul.mubr.msk.f32.vlgmr.msra.gmra.mrb[102].mxu0 %vm3134_vm2, %v6021_v20  ;;  %5317 = vmatprep.mubr.f32.mxu1 %v13412_v55 }
 0x67a   : > { %6235 = vmatprep.mubr.f32.mxu0 %v13412_v55 }
 0x67b   : > { %v5054_v14 = vpop.trf.xlu1 }
 0x67c   : > { %v6022_v25 = vpop.trf.xlu0  ;;  %7367 = vmatmul.mubr.msk.f32.gmra.mrb[104].mxu1 %vm3134_vm2, %v5054_v14 }
 0x67d   : > { %7389 = vmatmul.mubr.msk.f32.gmra.mrb[104].mxu0 %vm3134_vm2, %v6022_v25  ;;  %5323 = vmatprep.mubr.f32.mxu1 %v13412_v55 }
 0x67e   : > { %6241 = vmatprep.mubr.f32.mxu0 %v13412_v55 }
 0x67f   : > { %v5055_v63 = vpop.trf.xlu1 }
 0x680   : > { %v6023_v29 = vpop.trf.xlu0  ;;  %7368 = vmatmul.mubr.msk.f32.gmra.mrb[106].mxu1 %vm3134_vm2, %v5055_v63 }
 0x681   : > { %7390 = vmatmul.mubr.msk.f32.gmra.mrb[106].mxu0 %vm3134_vm2, %v6023_v29  ;;  %5329 = vmatprep.mubr.f32.mxu1 %v13412_v55 }
 0x682   : > { %6247 = vmatprep.mubr.f32.mxu0 %v13412_v55 }
 0x683   : > { %v5056_v18 = vpop.trf.xlu1 }
 0x684   : > { %v6024_v28 = vpop.trf.xlu0  ;;  %7369 = vmatmul.mubr.msk.f32.gmra.mrb[108].mxu1 %vm3134_vm2, %v5056_v18 }
 0x685   : > { %7391 = vmatmul.mubr.msk.f32.gmra.mrb[108].mxu0 %vm3134_vm2, %v6024_v28  ;;  %5335 = vmatprep.mubr.f32.mxu1 %v13412_v55 }
 0x686   : > { %6253 = vmatprep.mubr.f32.mxu0 %v13412_v55 }
 0x687   : > { %v5057_v5 = vpop.trf.xlu1 }
 0x688   : > { %v6025_v2 = vpop.trf.xlu0  ;;  %7370 = vmatmul.mubr.msk.f32.gmra.mrb[110].mxu1 %vm3134_vm2, %v5057_v5 }
 0x689   : > { %7392 = vmatmul.mubr.msk.f32.gmra.mrb[110].mxu0 %vm3134_vm2, %v6025_v2  ;;  %5341 = vmatprep.mubr.f32.mxu1 %v13412_v55 }
 0x68a   : > { %6259 = vmatprep.mubr.f32.mxu0 %v13412_v55 }
 0x68b   : > { %v5058_v50 = vpop.trf.xlu1 }
 0x68c   : > { %v6026_v37 = vpop.trf.xlu0  ;;  %7371 = vmatmul.mubr.msk.f32.gmra.mrb[112].mxu1 %vm3134_vm2, %v5058_v50 }
 0x68d   : > { %7393 = vmatmul.mubr.msk.f32.gmra.mrb[112].mxu0 %vm3134_vm2, %v6026_v37  ;;  %5347 = vmatprep.mubr.f32.mxu1 %v13412_v55 }
 0x68e   : > { %6265 = vmatprep.mubr.f32.mxu0 %v13412_v55 }
 0x68f   : > { %v6053_v38 = vpop.trf.xlu1 }
 0x690   : > { %v6027_v36 = vpop.trf.xlu0 }
 0x691   : > { %7394 = vmatmul.mubr.msk.f32.gmra.mrb[114].mxu0 %vm3134_vm2, %v6027_v36 }
 0x692   : > { %6271 = vmatprep.mubr.f32.mxu0 %v13412_v55 }
 0x693   : > { %v6054_v8 = vpop.trf.xlu1 }
 0x694   : > { %v6028_v34 = vpop.trf.xlu0 }
 0x695   : > { %7395 = vmatmul.mubr.msk.f32.gmra.mrb[116].mxu0 %vm3134_vm2, %v6028_v34 }
 0x696   : > { %6277 = vmatprep.mubr.f32.mxu0 %v13412_v55 }
 0x697   : > { %v6055_v19 = vpop.trf.xlu1 }
 0x698   : > { %v6029_v6 = vpop.trf.xlu0 }
 0x699   : > { %7396 = vmatmul.mubr.msk.f32.gmra.mrb[118].mxu0 %vm3134_vm2, %v6029_v6 }
 0x69a   : > { %6283 = vmatprep.mubr.f32.mxu0 %v13412_v55 }
 0x69b   : > { %v6056_v60 = vpop.trf.xlu1 }
 0x69c   : > { %v6030_v39 = vpop.trf.xlu0 }
 0x69d   : > { %7397 = vmatmul.mubr.msk.f32.gmra.mrb[120].mxu0 %vm3134_vm2, %v6030_v39 }
 0x69e   : > { %6289 = vmatprep.mubr.f32.mxu0 %v13412_v55 }
 0x69f   : > { %v6057_v7 = vpop.trf.xlu1 }
 0x6a0   : > { %v6031_v44 = vpop.trf.xlu0 }
 0x6a1   : > { %7398 = vmatmul.mubr.msk.f32.gmra.mrb[122].mxu0 %vm3134_vm2, %v6031_v44 }
 0x6a2   : > { %6295 = vmatprep.mubr.f32.mxu0 %v13412_v55 }
 0x6a3   : > { %v6058_v42 = vpop.trf.xlu1 }
 0x6a4   : > { %v6032_v49 = vpop.trf.xlu0 }
 0x6a5   : > { %7399 = vmatmul.mubr.msk.f32.gmra.mrb[124].mxu0 %vm3134_vm2, %v6032_v49 }
 0x6a6   : > { %6301 = vmatprep.mubr.f32.mxu0 %v13412_v55 }
 0x6a7   : > { %v6059_v4 = vpop.trf.xlu1 }
 0x6a8   : > { %v6033_v62 = vpop.trf.xlu0 }
 0x6a9   : > { %7400 = vmatmul.mubr.msk.f32.gmra.mrb[126].mxu0 %vm3134_vm2, %v6033_v62 }
 0x6aa   : > { %6307 = vmatprep.mubr.f32.mxu0 %v13412_v55 }
 0x6ab   : > { %v6060_v30 = vpop.trf.xlu1 }
 0x6ac   : > { %v6034_v57 = vpop.trf.xlu0 }
 0x6ad   : > { %7401 = vmatmul.mubr.msk.f32.gmra.mrb[128].mxu0 %vm3134_vm2, %v6034_v57 }
 0x6ae   : > { %6313 = vmatprep.mubr.f32.mxu0 %v13412_v55 }
 0x6af   : > { %v6061_v33 = vpop.trf.xlu1 }
 0x6b0   : > { %v6035_v15 = vpop.trf.xlu0 }
 0x6b1   : > { %7402 = vmatmul.mubr.msk.f32.gmra.mrb[130].mxu0 %vm3134_vm2, %v6035_v15 }
 0x6b2   : > { %6319 = vmatprep.mubr.f32.mxu0 %v13412_v55 }
 0x6b3   : > { %v6062_v56 = vpop.trf.xlu1 }
 0x6b4   : > { %v6036_v40 = vpop.trf.xlu0 }
 0x6b5   : > { %7403 = vmatmul.mubr.msk.f32.gmra.mrb[132].mxu0 %vm3134_vm2, %v6036_v40 }
 0x6b6   : > { %6325 = vmatprep.mubr.f32.mxu0 %v13412_v55 }
 0x6b7   : > { %v6063_v54 = vpop.trf.xlu1 }
 0x6b8   : > { %v5075_v48 = vpop.trf.xlu0 }
 0x6b9   : > { %7372 = vmatmul.mubr.msk.f32.gmra.mrb[114].mxu1 %vm3134_vm2, %v5075_v48  ;;  %7404 = vmatmul.mubr.msk.f32.gmra.mrb[134].mxu0 %vm3134_vm2, %v6053_v38 }
 0x6ba   : > { %5353 = vmatprep.mubr.f32.mxu1 %v13412_v55  ;;  %6331 = vmatprep.mubr.f32.mxu0 %v13412_v55 }
 0x6bb   : > { %v6064_v61 = vpop.trf.xlu1 }
 0x6bc   : > { %v5076_v11 = vpop.trf.xlu0 }
 0x6bd   : > { %7373 = vmatmul.mubr.msk.f32.gmra.mrb[116].mxu1 %vm3134_vm2, %v5076_v11  ;;  %7405 = vmatmul.mubr.msk.f32.gmra.mrb[136].mxu0 %vm3134_vm2, %v6054_v8 }
 0x6be   : > { %5359 = vmatprep.mubr.f32.mxu1 %v13412_v55  ;;  %6337 = vmatprep.mubr.f32.mxu0 %v13412_v55 }
 0x6bf   : > { %v6065_v53 = vpop.trf.xlu1 }
 0x6c0   : > { %v5077_v58 = vpop.trf.xlu0 }
 0x6c1   : > { %7374 = vmatmul.mubr.msk.f32.gmra.mrb[118].mxu1 %vm3134_vm2, %v5077_v58  ;;  %7406 = vmatmul.mubr.msk.f32.gmra.mrb[138].mxu0 %vm3134_vm2, %v6055_v19 }
 0x6c2   : > { %5365 = vmatprep.mubr.f32.mxu1 %v13412_v55  ;;  %6343 = vmatprep.mubr.f32.mxu0 %v13412_v55 }
 0x6c3   : > { %v6066_v32 = vpop.trf.xlu1 }
 0x6c4   : > { %v5078_v3 = vpop.trf.xlu0 }
 0x6c5   : > { %7375 = vmatmul.mubr.msk.f32.gmra.mrb[120].mxu1 %vm3134_vm2, %v5078_v3  ;;  %7407 = vmatmul.mubr.msk.f32.gmra.mrb[140].mxu0 %vm3134_vm2, %v6056_v60 }
 0x6c6   : > { %5371 = vmatprep.mubr.f32.mxu1 %v13412_v55  ;;  %6349 = vmatprep.mubr.f32.mxu0 %v13412_v55 }
 0x6c7   : > { %v6067_v43 = vpop.trf.xlu1 }
 0x6c8   : > { %v5079_v12 = vpop.trf.xlu0 }
 0x6c9   : > { %7376 = vmatmul.mubr.msk.f32.gmra.mrb[122].mxu1 %vm3134_vm2, %v5079_v12  ;;  %7408 = vmatmul.mubr.msk.f32.gmra.mrb[142].mxu0 %vm3134_vm2, %v6057_v7 }
 0x6ca   : > { %5377 = vmatprep.mubr.f32.mxu1 %v13412_v55  ;;  %6355 = vmatprep.mubr.f32.mxu0 %v13412_v55 }
 0x6cb   : > { %v6068_v0 = vpop.trf.xlu1 }
 0x6cc   : > { %v5080_v41 = vpop.trf.xlu0 }
 0x6cd   : > { %7377 = vmatmul.mubr.msk.f32.gmra.mrb[124].mxu1 %vm3134_vm2, %v5080_v41  ;;  %7409 = vmatmul.mubr.msk.f32.gmra.mrb[144].mxu0 %vm3134_vm2, %v6058_v42 }
 0x6ce   : > { %5383 = vmatprep.mubr.f32.mxu1 %v13412_v55  ;;  %6361 = vmatprep.mubr.f32.mxu0 %v13412_v55 }
 0x6d0   : > { %v5081_v35 = vpop.trf.xlu0 }
 0x6d1   : > { %7378 = vmatmul.mubr.msk.f32.gmra.mrb[126].mxu1 %vm3134_vm2, %v5081_v35  ;;  %7410 = vmatmul.mubr.msk.f32.gmra.mrb[146].mxu0 %vm3134_vm2, %v6059_v4 }
 0x6d2   : > { %5389 = vmatprep.mubr.f32.mxu1 %v13412_v55  ;;  %6367 = vmatprep.mubr.f32.mxu0 %v13412_v55 }
 0x6d4   : > { %v5082_v47 = vpop.trf.xlu0 }
 0x6d5   : > { %7379 = vmatmul.mubr.msk.f32.gmra.mrb[128].mxu1 %vm3134_vm2, %v5082_v47  ;;  %7411 = vmatmul.mubr.msk.f32.gmra.mrb[148].mxu0 %vm3134_vm2, %v6060_v30 }
 0x6d6   : > { %5395 = vmatprep.mubr.f32.mxu1 %v13412_v55  ;;  %6373 = vmatprep.mubr.f32.mxu0 %v13412_v55 }
 0x6d8   : > { %v5083_v52 = vpop.trf.xlu0 }
 0x6d9   : > { %7380 = vmatmul.mubr.msk.f32.gmra.mrb[130].mxu1 %vm3134_vm2, %v5083_v52  ;;  %7412 = vmatmul.mubr.msk.f32.gmra.mrb[150].mxu0 %vm3134_vm2, %v6061_v33 }
 0x6da   : > { %5401 = vmatprep.mubr.f32.mxu1 %v13412_v55  ;;  %6379 = vmatprep.mubr.f32.mxu0 %v13412_v55 }
 0x6dc   : > { %v5084_v9 = vpop.trf.xlu0 }
 0x6dd   : > { %7381 = vmatmul.mubr.msk.f32.gmra.mrb[132].mxu1 %vm3134_vm2, %v5084_v9  ;;  %7413 = vmatmul.mubr.msk.f32.gmra.mrb[152].mxu0 %vm3134_vm2, %v6062_v56 }
 0x6de   : > { %5407 = vmatprep.mubr.f32.mxu1 %v13412_v55  ;;  %6385 = vmatprep.mubr.f32.mxu0 %v13412_v55 }
 0x6e0   : > { %v5085_v16 = vpop.trf.xlu0 }
 0x6e1   : > { %7382 = vmatmul.mubr.msk.f32.gmra.mrb[134].mxu1 %vm3134_vm2, %v5085_v16  ;;  %7414 = vmatmul.mubr.msk.f32.gmra.mrb[154].mxu0 %vm3134_vm2, %v6063_v54 }
 0x6e2   : > { %5413 = vmatprep.mubr.f32.mxu1 %v13412_v55  ;;  %6391 = vmatprep.mubr.f32.mxu0 %v13412_v55 }
 0x6e4   : > { %v5086_v45 = vpop.trf.xlu0 }
 0x6e5   : > { %7383 = vmatmul.mubr.msk.f32.gmra.mrb[136].mxu1 %vm3134_vm2, %v5086_v45  ;;  %7415 = vmatmul.mubr.msk.f32.gmra.mrb[156].mxu0 %vm3134_vm2, %v6064_v61 }
 0x6e6   : > { %5419 = vmatprep.mubr.f32.mxu1 %v13412_v55  ;;  %6397 = vmatprep.mubr.f32.mxu0 %v13412_v55 }
 0x6e8   : > { %v5087_v24 = vpop.trf.xlu0 }
 0x6e9   : > { %7384 = vmatmul.mubr.msk.f32.gmra.mrb[138].mxu1 %vm3134_vm2, %v5087_v24  ;;  %7416 = vmatmul.mubr.msk.f32.gmra.mrb[158].mxu0 %vm3134_vm2, %v6065_v53 }
 0x6ea   : > { %5425 = vmatprep.mubr.f32.mxu1 %v13412_v55  ;;  %6403 = vmatprep.mubr.f32.mxu0 %v13412_v55 }
 0x6ec   : > { %v5088_v59 = vpop.trf.xlu0 }
 0x6ed   : > { %7385 = vmatmul.mubr.msk.f32.gmra.mrb[140].mxu1 %vm3134_vm2, %v5088_v59  ;;  %7417 = vmatmul.mubr.msk.f32.gmra.mrb[160].mxu0 %vm3134_vm2, %v6066_v32 }
 0x6ee   : > { %5431 = vmatprep.mubr.f32.mxu1 %v13412_v55  ;;  %6409 = vmatprep.mubr.f32.mxu0 %v13412_v55 }
 0x6f0   : > { %v5089_v13 = vpop.trf.xlu0 }
 0x6f1   : > { %7386 = vmatmul.mubr.msk.f32.gmra.mrb[142].mxu1 %vm3134_vm2, %v5089_v13  ;;  %7418 = vmatmul.mubr.msk.f32.gmra.mrb[162].mxu0 %vm3134_vm2, %v6067_v43 }
 0x6f2   : > { %5437 = vmatprep.mubr.f32.mxu1 %v13412_v55  ;;  %6415 = vmatprep.mubr.f32.mxu0 %v13412_v55 }
 0x6f4   : > { %v5090_v23 = vpop.trf.xlu0 }
 0x6f5   : > { %7387 = vmatmul.mubr.msk.f32.gmra.mrb[144].mxu1 %vm3134_vm2, %v5090_v23  ;;  %7419 = vmatmul.mubr.msk.f32.gmra.mrb[164].mxu0 %vm3134_vm2, %v6068_v0 }
 0x6ff   : > { %v11350_v31 = vpop.f32.mrb[78].mxu1 }
 0x700   : > { %13419 = vst [vmem:[#allocation105_spill] sm:$0xff] %v11350_v31  ;;  %v11352_v22 = vpop.f32.mrb[79].mxu1 }
 0x701   : > { %13420 = vst [vmem:[#allocation107_spill] sm:$0xff] %v11352_v22 }
 0x703   : > { %v11354_v27 = vpop.f32.mrb[80].mxu1 }
 0x704   : > { %13421 = vst [vmem:[#allocation109_spill] sm:$0xff] %v11354_v27  ;;  %v11358_v10 = vpop.f32.mrb[81].mxu1 }
 0x705   : > { %13422 = vst [vmem:[#allocation112_spill] sm:$0xff] %v11358_v10 }
 0x723   : > { %v11362_v51 = vpop.f32.mrb[82].mxu1 }
 0x724   : > { %v11364_v1 = vpop.f32.mrb[83].mxu1 }
 0x725   : > { %v5444_v17 = vmax.f32 %v11362_v51, %v11364_v1 }
 0x727   : > { %5445 = vmax.xlane.f32.xlu0 %v5444_v17  ;;  %v11368_v21 = vpop.f32.mrb[84].mxu1 }
 0x728   : > { %v11370_v20 = vpop.f32.mrb[85].mxu1 }
 0x729   : > { %v5447_v14 = vmax.f32 %v11368_v21, %v11370_v20 }
 0x72b   : > { %5448 = vmax.xlane.f32.xlu1 %v5447_v14  ;;  %v11374_v25 = vpop.f32.mrb[86].mxu1 }
 0x72c   : > { %v11376_v63 = vpop.f32.mrb[87].mxu1 }
 0x72d   : > { %v5450_v29 = vmax.f32 %v11374_v25, %v11376_v63 }
 0x72f   : > { %5451 = vmax.xlane.f32.xlu0 %v5450_v29  ;;  %v11380_v18 = vpop.f32.mrb[88].mxu1 }
 0x730   : > { %v11382_v28 = vpop.f32.mrb[89].mxu1 }
 0x731   : > { %v5453_v5 = vmax.f32 %v11380_v18, %v11382_v28 }
 0x733   : > { %5454 = vmax.xlane.f32.xlu1 %v5453_v5  ;;  %v11386_v2 = vpop.f32.mrb[90].mxu1 }
 0x734   : > { %v11388_v50 = vpop.f32.mrb[91].mxu1 }
 0x735   : > { %v5456_v37 = vmax.f32 %v11386_v2, %v11388_v50 }
 0x737   : > { %5457 = vmax.xlane.f32.xlu0 %v5456_v37  ;;  %v11392_v36 = vpop.f32.mrb[92].mxu1 }
 0x738   : > { %v11394_v34 = vpop.f32.mrb[93].mxu1 }
 0x739   : > { %v5459_v6 = vmax.f32 %v11392_v36, %v11394_v34 }
 0x73b   : > { %5460 = vmax.xlane.f32.xlu1 %v5459_v6  ;;  %v11398_v38 = vpop.f32.mrb[94].mxu1 }
 0x73c   : > { %v11400_v39 = vpop.f32.mrb[98].mxu0  ;;  %v11402_v8 = vpop.f32.mrb[95].mxu1 }
 0x73d   : > { %13423 = vst [vmem:[#allocation114_spill] sm:$0xff] %v11400_v39  ;;  %v11404_v44 = vpop.f32.mrb[99].mxu0  ;;  %v5462_v49 = vmax.f32 %v11398_v38, %v11402_v8 }
 0x73e   : > { %13424 = vst [vmem:[#allocation115_spill] sm:$0xff] %v11404_v44 }
 0x73f   : > { %v11408_v19 = vpop.f32.mrb[96].mxu1 }
 0x740   : > { %v11410_v62 = vpop.f32.mrb[100].mxu0  ;;  %v11412_v60 = vpop.f32.mrb[97].mxu1 }
 0x741   : > { %13425 = vst [vmem:[#allocation116_spill] sm:$0xff] %v11410_v62  ;;  %v11416_v15 = vpop.f32.mrb[101].mxu0  ;;  %v5465_v7 = vmax.f32 %v11408_v19, %v11412_v60 }
 0x742   : > { %13426 = vst [vmem:[#allocation38_spill] sm:$0xff] %v11416_v15 }
 0x743   : > { %v11422_v42 = vpop.f32.mrb[98].mxu1 }
 0x744   : > { %v11424_v48 = vpop.f32.mrb[99].mxu1 }
 0x745   : > { %v5468_v11 = vmax.f32 %v11422_v42, %v11424_v48 }
 0x747   : > { %v11428_v4 = vpop.f32.mrb[100].mxu1 }
 0x748   : > { %v11430_v58 = vpop.f32.mrb[101].mxu1 }
 0x749   : > { %v5471_v30 = vmax.f32 %v11428_v4, %v11430_v58 }
 0x74b   : > { %v11434_v3 = vpop.f32.mrb[102].mxu1 }
 0x74c   : > { %v11436_v12 = vpop.f32.mrb[102].mxu0  ;;  %v11438_v33 = vpop.f32.mrb[103].mxu1 }
 0x74d   : > { %v11440_v41 = vpop.f32.mrb[103].mxu0  ;;  %v5474_v56 = vmax.f32 %v11434_v3, %v11438_v33 }
 0x74e   : > { %v6422_v35 = vmax.f32 %v11436_v12, %v11440_v41 }
 0x74f   : > { %v11446_v47 = vpop.f32.mrb[104].mxu1 }
 0x750   : > { %6423 = vmax.xlane.f32.xlu0 %v6422_v35  ;;  %v11448_v54 = vpop.f32.mrb[104].mxu0  ;;  %v11450_v52 = vpop.f32.mrb[105].mxu1 }
 0x751   : > { %v11452_v61 = vpop.f32.mrb[105].mxu0  ;;  %v5477_v9 = vmax.f32 %v11446_v47, %v11450_v52 }
 0x752   : > { %v6425_v16 = vmax.f32 %v11448_v54, %v11452_v61 }
 0x753   : > { %v11458_v53 = vpop.f32.mrb[106].mxu1 }
 0x754   : > { %13427 = vst [vmem:[#allocation42_spill] sm:$0xff] %v11458_v53  ;;  %5463 = vmax.xlane.f32.xlu0 %v5462_v49  ;;  %6426 = vmax.xlane.f32.xlu1 %v6425_v16  ;;  %v11460_v45 = vpop.f32.mrb[106].mxu0  ;;  %v11462_v32 = vpop.f32.mrb[107].mxu1 }
 0x755   : > { %13428 = vst [vmem:[#allocation39_spill] sm:$0xff] %v11462_v32  ;;  %v11464_v24 = vpop.f32.mrb[107].mxu0  ;;  %v5480_v59 = vmax.f32 %v11458_v53, %v11462_v32 }
 0x756   : > { %v6428_v43 = vmax.f32 %v11460_v45, %v11464_v24 }
 0x757   : > { %v11470_v13 = vpop.f32.mrb[108].mxu1 }
 0x758   : > { %13429 = vst [vmem:[#allocation40_spill] sm:$0xff] %v11470_v13  ;;  %5466 = vmax.xlane.f32.xlu1 %v5465_v7  ;;  %6429 = vmax.xlane.f32.xlu0 %v6428_v43  ;;  %v11472_v0 = vpop.f32.mrb[108].mxu0  ;;  %v11474_v23 = vpop.f32.mrb[109].mxu1 }
 0x759   : > { %13430 = vst [vmem:[#allocation44_spill] sm:$0xff] %v11474_v23  ;;  %v11476_v17 = vpop.f32.mrb[109].mxu0  ;;  %v5483_v14 = vmax.f32 %v11470_v13, %v11474_v23 }
 0x75a   : > { %v6431_v29 = vmax.f32 %v11472_v0, %v11476_v17 }
 0x75b   : > { %v11482_v5 = vpop.f32.mrb[110].mxu1 }
 0x75c   : > { %13431 = vst [vmem:[#allocation43_spill] sm:$0xff] %v11482_v5  ;;  %5469 = vmax.xlane.f32.xlu0 %v5468_v11  ;;  %6432 = vmax.xlane.f32.xlu1 %v6431_v29  ;;  %v11484_v37 = vpop.f32.mrb[110].mxu0  ;;  %v11486_v6 = vpop.f32.mrb[111].mxu1 }
 0x75d   : > { %13432 = vst [vmem:[#allocation46_spill] sm:$0xff] %v11486_v6  ;;  %v11488_v49 = vpop.f32.mrb[111].mxu0  ;;  %v5486_v7 = vmax.f32 %v11482_v5, %v11486_v6 }
 0x75e   : > { %v6434_v35 = vmax.f32 %v11484_v37, %v11488_v49 }
 0x75f   : > { %v11494_v16 = vpop.f32.mrb[112].mxu1 }
 0x760   : > { %13433 = vst [vmem:[#allocation41_spill] sm:$0xff] %v11494_v16  ;;  %5472 = vmax.xlane.f32.xlu1 %v5471_v30  ;;  %6435 = vmax.xlane.f32.xlu0 %v6434_v35  ;;  %v11496_v43 = vpop.f32.mrb[112].mxu0  ;;  %v11498_v11 = vpop.f32.mrb[113].mxu1 }
 0x761   : > { %13434 = vst [vmem:[#allocation45_spill] sm:$0xff] %v11498_v11  ;;  %v11500_v29 = vpop.f32.mrb[113].mxu0  ;;  %v5489_v57 = vmax.f32 %v11494_v16, %v11498_v11 }
 0x762   : > { %v6437_v40 = vmax.f32 %v11496_v43, %v11500_v29 }
 0x764   : > { %5475 = vmax.xlane.f32.xlu0 %v5474_v56  ;;  %6438 = vmax.xlane.f32.xlu1 %v6437_v40  ;;  %v11506_v46 = vpop.f32.mrb[114].mxu0 }
 0x765   : > { %v11508_v26 = vpop.f32.mrb[115].mxu0 }
 0x766   : > { %v6440_v30 = vmax.f32 %v11506_v46, %v11508_v26 }
 0x768   : > { %5478 = vmax.xlane.f32.xlu1 %v5477_v9  ;;  %6441 = vmax.xlane.f32.xlu0 %v6440_v30  ;;  %v11512_v35 = vpop.f32.mrb[116].mxu0 }
 0x769   : > { %v11514_v55 = vpop.f32.mrb[117].mxu0 }
 0x76a   : > { %v6443_v39 = vmax.f32 %v11512_v35, %v11514_v55 }
 0x76c   : > { %5481 = vmax.xlane.f32.xlu0 %v5480_v59  ;;  %6444 = vmax.xlane.f32.xlu1 %v6443_v39  ;;  %v11518_v56 = vpop.f32.mrb[118].mxu0 }
 0x76d   : > { %13435 = vst [vmem:[#allocation35_spill] sm:$0xff] %v11518_v56  ;;  %v11520_v40 = vpop.f32.mrb[119].mxu0 }
 0x76e   : > { %13436 = vst [vmem:[#allocation9_spill] sm:$0xff] %v11520_v40  ;;  %v6446_v62 = vmax.f32 %v11518_v56, %v11520_v40 }
 0x770   : > { %5484 = vmax.xlane.f32.xlu1 %v5483_v14  ;;  %6447 = vmax.xlane.f32.xlu0 %v6446_v62  ;;  %v11524_v9 = vpop.f32.mrb[120].mxu0 }
 0x771   : > { %13437 = vst [vmem:[#allocation48_spill] sm:$0xff] %v11524_v9  ;;  %v11526_v30 = vpop.f32.mrb[121].mxu0 }
 0x772   : > { %13438 = vst [vmem:[#allocation117_spill] sm:$0xff] %v11526_v30  ;;  %v6449_v44 = vmax.f32 %v11524_v9, %v11526_v30 }
 0x774   : > { %5487 = vmax.xlane.f32.xlu0 %v5486_v7  ;;  %6450 = vmax.xlane.f32.xlu1 %v6449_v44  ;;  %v11530_v59 = vpop.f32.mrb[122].mxu0 }
 0x775   : > { %13439 = vst [vmem:[#allocation47_spill] sm:$0xff] %v11530_v59  ;;  %v11532_v39 = vpop.f32.mrb[123].mxu0 }
 0x776   : > { %13440 = vst [vmem:[#allocation49_spill] sm:$0xff] %v11532_v39  ;;  %v6452_v15 = vmax.f32 %v11530_v59, %v11532_v39 }
 0x778   : > { %5490 = vmax.xlane.f32.xlu1 %v5489_v57  ;;  %6453 = vmax.xlane.f32.xlu0 %v6452_v15  ;;  %v11536_v14 = vpop.f32.mrb[124].mxu0 }
 0x779   : > { %13441 = vst [vmem:[#allocation5_spill] sm:$0xff] %v11536_v14  ;;  %v11538_v62 = vpop.f32.mrb[125].mxu0 }
 0x77a   : > { %13442 = vst [vmem:[#allocation22_spill] sm:$0xff] %v11538_v62  ;;  %v6455_v31 = vmax.f32 %v11536_v14, %v11538_v62 }
 0x77c   : > { %6456 = vmax.xlane.f32.xlu1 %v6455_v31  ;;  %v11542_v27 = vpop.f32.mrb[126].mxu0 }
 0x77d   : > { %13443 = vst [vmem:[#allocation119_spill] sm:$0xff] %v11542_v27  ;;  %v11544_v44 = vpop.f32.mrb[127].mxu0 }
 0x77e   : > { %13444 = vst [vmem:[#allocation121_spill] sm:$0xff] %v11544_v44  ;;  %v6458_v7 = vmax.f32 %v11542_v27, %v11544_v44 }
 0x780   : > { %v11548_v22 = vpop.f32.mrb[128].mxu0 }
 0x781   : > { %13445 = vst [vmem:[#allocation118_spill] sm:$0xff] %v11548_v22  ;;  %v11550_v10 = vpop.f32.mrb[129].mxu0 }
 0x782   : > { %13446 = vst [vmem:[#allocation120_spill] sm:$0xff] %v11550_v10  ;;  %v6461_v57 = vmax.f32 %v11548_v22, %v11550_v10 }
 0x784   : > { %v11554_v15 = vpop.f32.mrb[130].mxu0 }
 0x785   : > { %13447 = vst [vmem:[#allocation123_spill] sm:$0xff] %v11554_v15  ;;  %v11556_v39 = vpop.f32.mrb[131].mxu0 }
 0x786   : > { %13448 = vst [vmem:[#allocation125_spill] sm:$0xff] %v11556_v39  ;;  %v6464_v31 = vmax.f32 %v11554_v15, %v11556_v39 }
 0x788   : > { %v11560_v62 = vpop.f32.mrb[132].mxu0 }
 0x789   : > { %13449 = vst [vmem:[#allocation122_spill] sm:$0xff] %v11560_v62  ;;  %v11562_v14 = vpop.f32.mrb[133].mxu0 }
 0x78a   : > { %13450 = vst [vmem:[#allocation124_spill] sm:$0xff] %v11562_v14  ;;  %v6467_v44 = vmax.f32 %v11560_v62, %v11562_v14 }
 0x78c   : > { %v11566_v27 = vpop.f32.mrb[114].mxu1  ;;  %v11568_v59 = vpop.f32.mrb[134].mxu0 }
 0x78d   : > { %13451 = vst [vmem:[#allocation60_spill] sm:$0xff] %v11566_v27  ;;  %13452 = vst [vmem:[#allocation64_spill] sm:$0xff] %v11568_v59  ;;  %v11570_v11 = vpop.f32.mrb[115].mxu1  ;;  %v11572_v10 = vpop.f32.mrb[135].mxu0 }
 0x78e   : > { %13453 = vst [vmem:[#allocation58_spill] sm:$0xff] %v11570_v11  ;;  %13454 = vst [vmem:[#allocation62_spill] sm:$0xff] %v11572_v10  ;;  %v5492_v22 = vmax.f32 %v11566_v27, %v11570_v11  ;;  %v6470_v39 = vmax.f32 %v11568_v59, %v11572_v10 }
 0x790   : > { %5493 = vmax.xlane.f32.xlu0 %v5492_v22  ;;  %v11578_v15 = vpop.f32.mrb[116].mxu1  ;;  %v11580_v16 = vpop.f32.mrb[136].mxu0 }
 0x791   : > { %13455 = vst [vmem:[#allocation51_spill] sm:$0xff] %v11578_v15  ;;  %13456 = vst [vmem:[#allocation53_spill] sm:$0xff] %v11580_v16  ;;  %v11582_v14 = vpop.f32.mrb[117].mxu1  ;;  %v11584_v62 = vpop.f32.mrb[137].mxu0 }
 0x792   : > { %13457 = vst [vmem:[#allocation50_spill] sm:$0xff] %v11582_v14  ;;  %13458 = vst [vmem:[#allocation52_spill] sm:$0xff] %v11584_v62  ;;  %v5495_v6 = vmax.f32 %v11578_v15, %v11582_v14  ;;  %v6473_v5 = vmax.f32 %v11580_v16, %v11584_v62 }
 0x794   : > { %6459 = vmax.xlane.f32.xlu0 %v6458_v7  ;;  %5496 = vmax.xlane.f32.xlu1 %v5495_v6  ;;  %v11590_v11 = vpop.f32.mrb[118].mxu1  ;;  %v11592_v10 = vpop.f32.mrb[138].mxu0 }
 0x795   : > { %13459 = vst [vmem:[#allocation68_spill] sm:$0xff] %v11590_v11  ;;  %13460 = vst [vmem:[#allocation72_spill] sm:$0xff] %v11592_v10  ;;  %v11594_v22 = vpop.f32.mrb[119].mxu1  ;;  %v11596_v59 = vpop.f32.mrb[139].mxu0 }
 0x796   : > { %13461 = vst [vmem:[#allocation66_spill] sm:$0xff] %v11594_v22  ;;  %13462 = vst [vmem:[#allocation70_spill] sm:$0xff] %v11596_v59  ;;  %v5498_v27 = vmax.f32 %v11590_v11, %v11594_v22  ;;  %v6476_v30 = vmax.f32 %v11592_v10, %v11596_v59 }
 0x798   : > { %6462 = vmax.xlane.f32.xlu1 %v6461_v57  ;;  %5499 = vmax.xlane.f32.xlu0 %v5498_v27  ;;  %v11602_v14 = vpop.f32.mrb[120].mxu1  ;;  %v11604_v7 = vpop.f32.mrb[140].mxu0 }
 0x799   : > { %13463 = vst [vmem:[#allocation36_spill] sm:$0xff] %v11602_v14  ;;  %13464 = vst [vmem:[#allocation24_spill] sm:$0xff] %v11604_v7  ;;  %v11606_v6 = vpop.f32.mrb[121].mxu1  ;;  %v11608_v62 = vpop.f32.mrb[141].mxu0 }
 0x79a   : > { %13465 = vst [vmem:[#allocation55_spill] sm:$0xff] %v11606_v6  ;;  %13466 = vst [vmem:[#allocation57_spill] sm:$0xff] %v11608_v62  ;;  %v5501_v16 = vmax.f32 %v11602_v14, %v11606_v6  ;;  %v6479_v15 = vmax.f32 %v11604_v7, %v11608_v62 }
 0x79c   : > { %6465 = vmax.xlane.f32.xlu0 %v6464_v31  ;;  %5502 = vmax.xlane.f32.xlu1 %v5501_v16  ;;  %v11614_v22 = vpop.f32.mrb[122].mxu1  ;;  %v11616_v57 = vpop.f32.mrb[142].mxu0 }
 0x79d   : > { %13467 = vst [vmem:[#allocation54_spill] sm:$0xff] %v11614_v22  ;;  %13468 = vst [vmem:[#allocation56_spill] sm:$0xff] %v11616_v57  ;;  %v11618_v27 = vpop.f32.mrb[123].mxu1  ;;  %v11620_v59 = vpop.f32.mrb[143].mxu0 }
 0x79e   : > { %13469 = vst [vmem:[#allocation2_spill] sm:$0xff] %v11618_v27  ;;  %13470 = vst [vmem:[#allocation10_spill] sm:$0xff] %v11620_v59  ;;  %v5504_v10 = vmax.f32 %v11614_v22, %v11618_v27  ;;  %v6482_v11 = vmax.f32 %v11616_v57, %v11620_v59 }
 0x7a0   : > { %6468 = vmax.xlane.f32.xlu1 %v6467_v44  ;;  %5505 = vmax.xlane.f32.xlu0 %v5504_v10  ;;  %v11626_v6 = vpop.f32.mrb[124].mxu1  ;;  %v11628_v31 = vpop.f32.mrb[144].mxu0 }
 0x7a1   : > { %13471 = vst [vmem:[#allocation76_spill] sm:$0xff] %v11626_v6  ;;  %13472 = vst [vmem:[#allocation80_spill] sm:$0xff] %v11628_v31  ;;  %v11630_v16 = vpop.f32.mrb[125].mxu1  ;;  %v11632_v62 = vpop.f32.mrb[145].mxu0 }
 0x7a2   : > { %13473 = vst [vmem:[#allocation74_spill] sm:$0xff] %v11630_v16  ;;  %13474 = vst [vmem:[#allocation78_spill] sm:$0xff] %v11632_v62  ;;  %v5507_v7 = vmax.f32 %v11626_v6, %v11630_v16  ;;  %v6485_v14 = vmax.f32 %v11628_v31, %v11632_v62 }
 0x7a4   : > { %6471 = vmax.xlane.f32.xlu0 %v6470_v39  ;;  %5508 = vmax.xlane.f32.xlu1 %v5507_v7  ;;  %v11638_v27 = vpop.f32.mrb[126].mxu1  ;;  %v11640_v44 = vpop.f32.mrb[146].mxu0 }
 0x7a5   : > { %13475 = vst [vmem:[#allocation61_spill] sm:$0xff] %v11638_v27  ;;  %13476 = vst [vmem:[#allocation65_spill] sm:$0xff] %v11640_v44  ;;  %v11642_v10 = vpop.f32.mrb[127].mxu1  ;;  %v11644_v59 = vpop.f32.mrb[147].mxu0 }
 0x7a6   : > { %13477 = vst [vmem:[#allocation59_spill] sm:$0xff] %v11642_v10  ;;  %13478 = vst [vmem:[#allocation63_spill] sm:$0xff] %v11644_v59  ;;  %v5510_v57 = vmax.f32 %v11638_v27, %v11642_v10  ;;  %v6488_v22 = vmax.f32 %v11640_v44, %v11644_v59 }
 0x7a8   : > { %6474 = vmax.xlane.f32.xlu1 %v6473_v5  ;;  %5511 = vmax.xlane.f32.xlu0 %v5510_v57  ;;  %v11650_v16 = vpop.f32.mrb[128].mxu1  ;;  %v11652_v39 = vpop.f32.mrb[148].mxu0 }
 0x7a9   : > { %13479 = vst [vmem:[#allocation84_spill] sm:$0xff] %v11650_v16  ;;  %13480 = vst [vmem:[#allocation88_spill] sm:$0xff] %v11652_v39  ;;  %v11654_v7 = vpop.f32.mrb[129].mxu1  ;;  %v11656_v62 = vpop.f32.mrb[149].mxu0 }
 0x7aa   : > { %13481 = vst [vmem:[#allocation82_spill] sm:$0xff] %v11654_v7  ;;  %13482 = vst [vmem:[#allocation86_spill] sm:$0xff] %v11656_v62  ;;  %v5513_v31 = vmax.f32 %v11650_v16, %v11654_v7  ;;  %v6491_v6 = vmax.f32 %v11652_v39, %v11656_v62 }
 0x7ac   : > { %6477 = vmax.xlane.f32.xlu0 %v6476_v30  ;;  %5514 = vmax.xlane.f32.xlu1 %v5513_v31  ;;  %v11662_v10 = vpop.f32.mrb[130].mxu1  ;;  %v11664_v5 = vpop.f32.mrb[150].mxu0 }
 0x7ad   : > { %13483 = vst [vmem:[#allocation69_spill] sm:$0xff] %v11662_v10  ;;  %13484 = vst [vmem:[#allocation73_spill] sm:$0xff] %v11664_v5  ;;  %v11666_v57 = vpop.f32.mrb[131].mxu1  ;;  %v11668_v59 = vpop.f32.mrb[151].mxu0 }
 0x7ae   : > { %13485 = vst [vmem:[#allocation67_spill] sm:$0xff] %v11666_v57  ;;  %13486 = vst [vmem:[#allocation71_spill] sm:$0xff] %v11668_v59  ;;  %v5516_v44 = vmax.f32 %v11662_v10, %v11666_v57  ;;  %v6494_v27 = vmax.f32 %v11664_v5, %v11668_v59 }
 0x7b0   : > { %6480 = vmax.xlane.f32.xlu1 %v6479_v15  ;;  %5517 = vmax.xlane.f32.xlu0 %v5516_v44  ;;  %v11674_v7 = vpop.f32.mrb[132].mxu1  ;;  %v11676_v30 = vpop.f32.mrb[152].mxu0 }
 0x7b1   : > { %13487 = vst [vmem:[#allocation14_spill] sm:$0xff] %v11674_v7  ;;  %13488 = vst [vmem:[#allocation92_spill] sm:$0xff] %v11676_v30  ;;  %v11678_v31 = vpop.f32.mrb[133].mxu1  ;;  %v11680_v62 = vpop.f32.mrb[153].mxu0 }
 0x7b2   : > { %13489 = vst [vmem:[#allocation90_spill] sm:$0xff] %v11678_v31  ;;  %13490 = vst [vmem:[#allocation94_spill] sm:$0xff] %v11680_v62  ;;  %v5519_v39 = vmax.f32 %v11674_v7, %v11678_v31  ;;  %v6497_v16 = vmax.f32 %v11676_v30, %v11680_v62 }
 0x7b4   : > { %6483 = vmax.xlane.f32.xlu0 %v6482_v11  ;;  %5520 = vmax.xlane.f32.xlu1 %v5519_v39  ;;  %v11686_v57 = vpop.f32.mrb[134].mxu1  ;;  %v11690_v44 = vpop.f32.mrb[154].mxu0 }
 0x7b5   : > { %13491 = vst [vmem:[#allocation12_spill] sm:$0xff] %v11686_v57  ;;  %v11688_v15 = vpop.f32.mrb[135].mxu1  ;;  %v11694_v5 = vpop.f32.mrb[155].mxu0 }
 0x7b6   : > { %13492 = vst [vmem:[#allocation96_spill] sm:$0xff] %v11688_v15  ;;  %v5522_v59 = vmax.f32 %v11686_v57, %v11688_v15  ;;  %v5446_v57 = vpop.xlane.xlu0 %5445 }
 0x7b7   : > { %v5540_v15 = vsub.f32 %v11362_v51, %v5446_v57 }
 0x7b8   : > { %6486 = vmax.xlane.f32.xlu1 %v6485_v14  ;;  %5523 = vmax.xlane.f32.xlu0 %v5522_v59  ;;  %v11698_v31 = vpop.f32.mrb[136].mxu1  ;;  %v11702_v39 = vpop.f32.mrb[156].mxu0 }
 0x7b9   : > { %13493 = vst [vmem:[#allocation77_spill] sm:$0xff] %v11698_v31  ;;  %v11700_v11 = vpop.f32.mrb[137].mxu1  ;;  %v11706_v30 = vpop.f32.mrb[157].mxu0 }
 0x7ba   : > { %13494 = vst [vmem:[#allocation81_spill] sm:$0xff] %v11700_v11  ;;  %v5525_v62 = vmax.f32 %v11698_v31, %v11700_v11  ;;  %v5449_v11 = vpop.xlane.xlu1 %5448 }
 0x7bb   : > { %v5543_v51 = vsub.f32 %v11370_v20, %v5449_v11 }
 0x7bc   : > { %6489 = vmax.xlane.f32.xlu0 %v6488_v22  ;;  %5526 = vmax.xlane.f32.xlu1 %v5525_v62  ;;  %v11710_v10 = vpop.f32.mrb[138].mxu1  ;;  %v11714_v14 = vpop.f32.mrb[158].mxu0  ;;  %v5541_v22 = vsub.f32 %v11364_v1, %v5446_v57 }
 0x7bd   : > { %13495 = vst [vmem:[#allocation75_spill] sm:$0xff] %v11710_v10  ;;  %v11712_v59 = vpop.f32.mrb[139].mxu1  ;;  %v11718_v9 = vpop.f32.mrb[159].mxu0 }
 0x7be   : > { %13496 = vst [vmem:[#allocation79_spill] sm:$0xff] %v11712_v59  ;;  %v5528_v7 = vmax.f32 %v11710_v10, %v11712_v59  ;;  %v5452_v40 = vpop.xlane.xlu0 %5451  ;;  %v5542_v59 = vsub.f32 %v11368_v21, %v5449_v11  ;;  %v5606_v21 = vmul.f32 1.442695, %v5541_v22 }
 0x7bf   : > { %v5544_v1 = vsub.f32 %v11374_v25, %v5452_v40  ;;  %v5545_v53 = vsub.f32 %v11376_v63, %v5452_v40  ;;  %v5610_v25 = vmul.f32 1.442695, %v5543_v51 }
 0x7c0   : > { %6492 = vmax.xlane.f32.xlu1 %v6491_v6  ;;  %5529 = vmax.xlane.f32.xlu0 %v5528_v7  ;;  %v11723_v62 = vpop.f32.mrb[140].mxu1  ;;  %v11728_v23 = vpop.f32.mrb[160].mxu0  ;;  %v5604_v7 = vmul.f32 1.442695, %v5540_v15  ;;  %v5608_v20 = vmul.f32 1.442695, %v5542_v59 }
 0x7c1   : > { %13497 = vst [vmem:[#allocation100_spill] sm:$0xff] %v11723_v62  ;;  %v11726_v56 = vpop.f32.mrb[141].mxu1  ;;  %13499 = vst [vmem:[#allocation98_spill] sm:$0xff] %v11728_v23  ;;  %v11733_v13 = vpop.f32.mrb[161].mxu0  ;;  %v5612_v63 = vmul.f32 1.442695, %v5544_v1 }
 0x7c2   : > { %13498 = vst [vmem:[#allocation104_spill] sm:$0xff] %v11726_v56  ;;  %v5531_v10 = vmax.f32 %v11723_v62, %v11726_v56  ;;  %13500 = vst [vmem:[#allocation102_spill] sm:$0xff] %v11733_v13  ;;  %v5455_v31 = vpop.xlane.xlu1 %5454  ;;  %v6509_v6 = vmax.f32 %v11728_v23, %v11733_v13  ;;  %8217 = vpow2.f32 %v5604_v7 }
 0x7c3   : > { %v5546_v11 = vsub.f32 %v11380_v18, %v5455_v31  ;;  %8219 = vpow2.f32 %v5606_v21  ;;  %v5614_v18 = vmul.f32 1.442695, %v5545_v53 }
 0x7c4   : > { %v5458_v57 = vpop.xlane.xlu0 %5457  ;;  %6495 = vmax.xlane.f32.xlu0 %v6494_v27  ;;  %5532 = vmax.xlane.f32.xlu1 %v5531_v10  ;;  %v11739_v32 = vpop.f32.mrb[142].mxu1  ;;  %v5547_v27 = vsub.f32 %v11382_v28, %v5455_v31  ;;  %8221 = vpow2.f32 %v5608_v20 }
 0x7c5   : > { %v11742_v56 = vpop.f32.mrb[143].mxu1  ;;  %v11744_v62 = vpop.f32.mrb[162].mxu0  ;;  %v5548_v40 = vsub.f32 %v11386_v2, %v5458_v57  ;;  %v5549_v23 = vsub.f32 %v11388_v50, %v5458_v57  ;;  %v5616_v28 = vmul.f32 1.442695, %v5546_v11  ;;  %8223 = vpow2.f32 %v5610_v25 }
 0x7c6   : > { %13501 = vst [vmem:[#allocation85_spill] sm:$0xff] %v11742_v56  ;;  %v5534_v15 = vmax.f32 %v11739_v32, %v11742_v56  ;;  %v11749_v13 = vpop.f32.mrb[163].mxu0  ;;  %v5618_v2 = vmul.f32 1.442695, %v5547_v27  ;;  %8225 = vpow2.f32 %v5612_v63  ;;  %v13504_v57 = vmax.f32 %v11690_v44, %v11694_v5 }
 0x7c7   : > { %v6512_v10 = vmax.f32 %v11744_v62, %v11749_v13  ;;  %v5620_v50 = vmul.f32 1.442695, %v5548_v40  ;;  %8227 = vpow2.f32 %v5614_v18  ;;  %v5622_v21 = vmul.f32 1.442695, %v5549_v23 }
 0x7c8   : > { %v5461_v22 = vpop.xlane.xlu1 %5460  ;;  %6498 = vmax.xlane.f32.xlu1 %v6497_v16  ;;  %5535 = vmax.xlane.f32.xlu0 %v5534_v15  ;;  %v11755_v59 = vpop.f32.mrb[144].mxu1  ;;  %8229 = vpow2.f32 %v5616_v28  ;;  %v13506_v15 = vmax.f32 %v11702_v39, %v11706_v30 }
 0x7c9   : > { %v11758_v56 = vpop.f32.mrb[145].mxu1  ;;  %v11760_v51 = vpop.f32.mrb[164].mxu0  ;;  %v5550_v16 = vsub.f32 %v11392_v36, %v5461_v22  ;;  %v5551_v1 = vsub.f32 %v11394_v34, %v5461_v22  ;;  %8231 = vpow2.f32 %v5618_v2  ;;  %v13505_v36 = vmax.f32 %v11714_v14, %v11718_v9 }
 0x7ca   : > { %13502 = vst [vmem:[#allocation83_spill] sm:$0xff] %v11760_v51  ;;  %v5537_v31 = vmax.f32 %v11755_v59, %v11758_v56  ;;  %v11764_v7 = vpop.f32.mrb[165].mxu0  ;;  %8233 = vpow2.f32 %v5620_v50 }
 0x7cb   : > { %13503 = vst [vmem:[#allocation89_spill] sm:$0xff] %v11764_v7  ;;  %v6515_v53 = vmax.f32 %v11760_v51, %v11764_v7  ;;  %v5624_v20 = vmul.f32 1.442695, %v5550_v16  ;;  %v5626_v11 = vmul.f32 1.442695, %v5551_v1  ;;  %8235 = vpow2.f32 %v5622_v21 }
 0x7cc   : > { %6501 = vmax.xlane.f32.xlu0 %v13504_v57  ;;  %5538 = vmax.xlane.f32.xlu1 %v5537_v31  ;;  %v11779_v34 = vpop.eup %8217 }
 0x7cd   : > { %v11781_v25 = vpop.eup %8219  ;;  %8237 = vpow2.f32 %v5624_v20 }
 0x7ce   : > { %v11783_v23 = vpop.eup %8221  ;;  %8239 = vpow2.f32 %v5626_v11  ;;  %v5732_v40 = vadd.f32 %v11781_v25, %v11779_v34 }
 0x7cf   : > { %v11785_v27 = vpop.eup %8223 }
 0x7d0   : > { %6507 = vmax.xlane.f32.xlu0 %v13505_v36  ;;  %6504 = vmax.xlane.f32.xlu1 %v13506_v15  ;;  %v11787_v63 = vpop.eup %8225 }
 0x7d1   : > { %v11791_v22 = vpop.eup %8227 }
 0x7d2   : > { %v11793_v18 = vpop.eup %8229 }
 0x7d3   : > { %v11795_v28 = vpop.eup %8231 }
 0x7d4   : > { %6513 = vmax.xlane.f32.xlu0 %v6512_v10  ;;  %6510 = vmax.xlane.f32.xlu1 %v6509_v6  ;;  %v11797_v31 = vpop.eup %8233  ;;  %v5735_v6 = vadd.f32 %v11785_v27, %v11783_v23  ;;  %v5738_v10 = vadd.f32 %v11791_v22, %v11787_v63  ;;  %v5741_v21 = vadd.f32 %v11795_v28, %v11793_v18 }
 0x7d5   : > { %13507 = vst [vmem:[#allocation87_spill] sm:$0xff] %v11797_v31  ;;  %v11803_v2 = vpop.eup %8235 }
 0x7d6   : > { %v5744_v20 = vadd.f32 %v11803_v2, %v11797_v31 }
 0x7d7   : > { %v11805_v16 = vpop.eup %8237 }
 0x7d8   : > { %6516 = vmax.xlane.f32.xlu1 %v6515_v53  ;;  %5733 = vadd.xlane.f32.xlu0 %v5732_v40  ;;  %v11807_v1 = vpop.eup %8239 }
 0x7dc   : > { %5736 = vadd.xlane.f32.xlu1 %v5735_v6  ;;  %5739 = vadd.xlane.f32.xlu0 %v5738_v10  ;;  %v5747_v6 = vadd.f32 %v11807_v1, %v11805_v16 }
 0x7dd   : > { %v6424_v50 = vpop.xlane.xlu0 %6423 }
 0x7de   : > { %v6518_v53 = vsub.f32 %v11436_v12, %v6424_v50  ;;  %v6519_v57 = vsub.f32 %v11440_v41, %v6424_v50 }
 0x7e0   : > { %v6582_v11 = vmul.f32 1.442695, %v6518_v53  ;;  %v6584_v36 = vmul.f32 1.442695, %v6519_v57  ;;  %5742 = vadd.xlane.f32.xlu1 %v5741_v21  ;;  %5745 = vadd.xlane.f32.xlu0 %v5744_v20 }
 0x7e1   : > { %v6427_v15 = vpop.xlane.xlu1 %6426  ;;  %v5464_v40 = vpop.xlane.xlu0 %5463 }
 0x7e2   : > { %8241 = vpow2.f32 %v6582_v11  ;;  %v6520_v12 = vsub.f32 %v11448_v54, %v6427_v15  ;;  %v6521_v41 = vsub.f32 %v11452_v61, %v6427_v15  ;;  %v5552_v10 = vsub.f32 %v11398_v38, %v5464_v40 }
 0x7e3   : > { %8243 = vpow2.f32 %v6584_v36  ;;  %v5553_v50 = vsub.f32 %v11402_v8, %v5464_v40 }
 0x7e4   : > { %v6586_v7 = vmul.f32 1.442695, %v6520_v12  ;;  %v6588_v53 = vmul.f32 1.442695, %v6521_v41  ;;  %v5628_v57 = vmul.f32 1.442695, %v5552_v10  ;;  %5748 = vadd.xlane.f32.xlu1 %v5747_v6 }
 0x7e5   : > { %v5630_v21 = vmul.f32 1.442695, %v5553_v50  ;;  %v5467_v20 = vpop.xlane.xlu1 %5466  ;;  %v6430_v51 = vpop.xlane.xlu0 %6429 }
 0x7e6   : > { %8245 = vpow2.f32 %v6586_v7  ;;  %v5554_v31 = vsub.f32 %v11408_v19, %v5467_v20  ;;  %v5555_v11 = vsub.f32 %v11412_v60, %v5467_v20  ;;  %v6522_v54 = vsub.f32 %v11460_v45, %v6430_v51 }
 0x7e7   : > { %8247 = vpow2.f32 %v6588_v53  ;;  %v6523_v38 = vsub.f32 %v11464_v24, %v6430_v51 }
 0x7e8   : > { %8249 = vpow2.f32 %v5628_v57  ;;  %v5632_v61 = vmul.f32 1.442695, %v5554_v31  ;;  %v5634_v8 = vmul.f32 1.442695, %v5555_v11  ;;  %v6590_v36 = vmul.f32 1.442695, %v6522_v54 }
 0x7e9   : > { %8251 = vpow2.f32 %v5630_v21  ;;  %v6592_v15 = vmul.f32 1.442695, %v6523_v38  ;;  %v6433_v40 = vpop.xlane.xlu1 %6432  ;;  %v5470_v6 = vpop.xlane.xlu0 %5469 }
 0x7ea   : > { %8253 = vpow2.f32 %v5632_v61  ;;  %v6524_v7 = vsub.f32 %v11472_v0, %v6433_v40  ;;  %v6525_v19 = vsub.f32 %v11476_v17, %v6433_v40  ;;  %v5556_v60 = vsub.f32 %v11422_v42, %v5470_v6 }
 0x7eb   : > { %8255 = vpow2.f32 %v5634_v8  ;;  %v5557_v45 = vsub.f32 %v11424_v48, %v5470_v6 }
 0x7ec   : > { %v11829_v12 = vpop.eup %8241  ;;  %8257 = vpow2.f32 %v6590_v36  ;;  %v6594_v24 = vmul.f32 1.442695, %v6524_v7  ;;  %v6596_v51 = vmul.f32 1.442695, %v6525_v19  ;;  %v5636_v31 = vmul.f32 1.442695, %v5556_v60 }
 0x7ed   : > { %v11831_v41 = vpop.eup %8243  ;;  %8259 = vpow2.f32 %v6592_v15  ;;  %v5638_v10 = vmul.f32 1.442695, %v5557_v45  ;;  %v5473_v50 = vpop.xlane.xlu1 %5472 }
 0x7ee   : > { %v6436_v53 = vpop.xlane.xlu0 %6435  ;;  %8261 = vpow2.f32 %v6594_v24  ;;  %v5558_v0 = vsub.f32 %v11428_v4, %v5473_v50  ;;  %v5559_v42 = vsub.f32 %v11430_v58, %v5473_v50  ;;  %v6710_v57 = vadd.f32 %v11831_v41, %v11829_v12 }
 0x7ef   : > { %v6526_v17 = vsub.f32 %v11484_v37, %v6436_v53  ;;  %8263 = vpow2.f32 %v6596_v51  ;;  %v6527_v48 = vsub.f32 %v11488_v49, %v6436_v53 }
 0x7f0   : > { %v11839_v21 = vpop.eup %8245  ;;  %8265 = vpow2.f32 %v5636_v31  ;;  %v5640_v20 = vmul.f32 1.442695, %v5558_v0  ;;  %v5642_v11 = vmul.f32 1.442695, %v5559_v42  ;;  %6711 = vadd.xlane.f32.xlu0 %v6710_v57 }
 0x7f1   : > { %v6598_v54 = vmul.f32 1.442695, %v6526_v17  ;;  %v11841_v38 = vpop.eup %8247  ;;  %8267 = vpow2.f32 %v5638_v10  ;;  %v6600_v4 = vmul.f32 1.442695, %v6527_v48  ;;  %v6439_v58 = vpop.xlane.xlu1 %6438 }
 0x7f2   : > { %v5476_v61 = vpop.xlane.xlu0 %5475  ;;  %v11843_v37 = vpop.eup %8249  ;;  %8269 = vpow2.f32 %v5640_v20  ;;  %v6528_v49 = vsub.f32 %v11496_v43, %v6439_v58  ;;  %v6529_v8 = vsub.f32 %v11500_v29, %v6439_v58  ;;  %v6713_v6 = vadd.f32 %v11841_v38, %v11839_v21 }
 0x7f3   : > { %v5560_v36 = vsub.f32 %v11434_v3, %v5476_v61  ;;  %v11848_v15 = vpop.eup %8251  ;;  %8271 = vpow2.f32 %v5642_v11  ;;  %v5561_v40 = vsub.f32 %v11438_v33, %v5476_v61  ;;  %v13508_v61 = vld [vmem:[#allocation42_spill] sm:$0xff] }
 0x7f4   : > { %v11853_v7 = vpop.eup %8253  ;;  %8273 = vpow2.f32 %v6598_v54  ;;  %v6602_v19 = vmul.f32 1.442695, %v6528_v49  ;;  %v6604_v60 = vmul.f32 1.442695, %v6529_v8  ;;  %6714 = vadd.xlane.f32.xlu1 %v6713_v6  ;;  %v5750_v3 = vadd.f32 %v11848_v15, %v11843_v37 }
 0x7f5   : > { %v5644_v45 = vmul.f32 1.442695, %v5560_v36  ;;  %v11855_v24 = vpop.eup %8255  ;;  %8275 = vpow2.f32 %v6600_v4  ;;  %v5646_v43 = vmul.f32 1.442695, %v5561_v40  ;;  %v5479_v29 = vpop.xlane.xlu1 %5478  ;;  %v13509_v36 = vld [vmem:[#allocation39_spill] sm:$0xff] }
 0x7f6   : > { %v6442_v51 = vpop.xlane.xlu0 %6441  ;;  %v11859_v33 = vpop.eup %8257  ;;  %8277 = vpow2.f32 %v6602_v19  ;;  %v5562_v31 = vsub.f32 %v11446_v47, %v5479_v29  ;;  %v5563_v10 = vsub.f32 %v11450_v52, %v5479_v29  ;;  %5751 = vadd.xlane.f32.xlu0 %v5750_v3  ;;  %v5753_v42 = vadd.f32 %v11855_v24, %v11853_v7 }
 0x7f7   : > { %v6530_v50 = vsub.f32 %v11506_v46, %v6442_v51  ;;  %v11864_v53 = vpop.eup %8259  ;;  %8279 = vpow2.f32 %v6604_v60  ;;  %v6531_v0 = vsub.f32 %v11508_v26, %v6442_v51 }
 0x7f8   : > { %v11869_v17 = vpop.eup %8261  ;;  %8281 = vpow2.f32 %v5644_v45  ;;  %v5648_v48 = vmul.f32 1.442695, %v5562_v31  ;;  %v5650_v57 = vmul.f32 1.442695, %v5563_v10  ;;  %5754 = vadd.xlane.f32.xlu1 %v5753_v42  ;;  %v6716_v46 = vadd.f32 %v11864_v53, %v11859_v33  ;;  %v13510_v10 = vld [vmem:[#allocation40_spill] sm:$0xff] }
 0x7f9   : > { %v6606_v20 = vmul.f32 1.442695, %v6530_v50  ;;  %v11871_v47 = vpop.eup %8263  ;;  %8283 = vpow2.f32 %v5646_v43  ;;  %v6608_v52 = vmul.f32 1.442695, %v6531_v0  ;;  %v6445_v11 = vpop.xlane.xlu1 %6444  ;;  %v13511_v0 = vld [vmem:[#allocation44_spill] sm:$0xff] }
 0x7fa   : > { %v5482_v54 = vpop.xlane.xlu0 %5481  ;;  %v11875_v26 = vpop.eup %8265  ;;  %8285 = vpow2.f32 %v5648_v48  ;;  %v6532_v4 = vsub.f32 %v11512_v35, %v6445_v11  ;;  %v6533_v58 = vsub.f32 %v11514_v55, %v6445_v11  ;;  %6717 = vadd.xlane.f32.xlu0 %v6716_v46  ;;  %v6719_v6 = vadd.f32 %v11871_v47, %v11869_v17  ;;  %v13512_v48 = vld [vmem:[#allocation35_spill] sm:$0xff] }
 0x7fb   : > { %v5564_v49 = vsub.f32 %v13508_v61, %v5482_v54  ;;  %v11880_v8 = vpop.eup %8267  ;;  %8287 = vpow2.f32 %v5650_v57  ;;  %v5565_v40 = vsub.f32 %v13509_v36, %v5482_v54 }
 0x7fc   : > { %v11885_v19 = vpop.eup %8269  ;;  %8289 = vpow2.f32 %v6606_v20  ;;  %v6610_v60 = vmul.f32 1.442695, %v6532_v4  ;;  %v6612_v45 = vmul.f32 1.442695, %v6533_v58  ;;  %6720 = vadd.xlane.f32.xlu1 %v6719_v6  ;;  %v5756_v3 = vadd.f32 %v11880_v8, %v11875_v26 }
 0x7fd   : > { %v5652_v43 = vmul.f32 1.442695, %v5564_v49  ;;  %v11887_v35 = vpop.eup %8271  ;;  %8291 = vpow2.f32 %v6608_v52  ;;  %v5654_v55 = vmul.f32 1.442695, %v5565_v40  ;;  %v5485_v29 = vpop.xlane.xlu1 %5484  ;;  %v13513_v52 = vld [vmem:[#allocation9_spill] sm:$0xff] }
 0x7fe   : > { %v6448_v51 = vpop.xlane.xlu0 %6447  ;;  %v11891_v31 = vpop.eup %8273  ;;  %8293 = vpow2.f32 %v6610_v60  ;;  %v5566_v50 = vsub.f32 %v13510_v10, %v5485_v29  ;;  %v5567_v42 = vsub.f32 %v13511_v0, %v5485_v29  ;;  %5757 = vadd.xlane.f32.xlu0 %v5756_v3  ;;  %v5759_v11 = vadd.f32 %v11887_v35, %v11885_v19  ;;  %v13516_v3 = vld [vmem:[#allocation48_spill] sm:$0xff]  ;;  %v13518_v10 = vld [vmem:[#allocation43_spill] sm:$0xff] }
 0x7ff   : > { %v6534_v57 = vsub.f32 %v13512_v48, %v6448_v51  ;;  %v11896_v20 = vpop.eup %8275  ;;  %8295 = vpow2.f32 %v6612_v45  ;;  %v6535_v46 = vsub.f32 %v13513_v52, %v6448_v51  ;;  %v13517_v51 = vld [vmem:[#allocation117_spill] sm:$0xff] }
 0x800   : > { %v11901_v54 = vpop.eup %8277  ;;  %8297 = vpow2.f32 %v5652_v43  ;;  %v5656_v4 = vmul.f32 1.442695, %v5566_v50  ;;  %v5658_v58 = vmul.f32 1.442695, %v5567_v42  ;;  %5760 = vadd.xlane.f32.xlu1 %v5759_v11  ;;  %v6722_v40 = vadd.f32 %v11896_v20, %v11891_v31 }
 0x801   : > { %13514 = vst [vmem:[#allocation108_spill] sm:$0xff] %v11901_v54  ;;  %v6614_v61 = vmul.f32 1.442695, %v6534_v57  ;;  %v11903_v49 = vpop.eup %8279  ;;  %8299 = vpow2.f32 %v5654_v55  ;;  %v6616_v36 = vmul.f32 1.442695, %v6535_v46  ;;  %v6451_v6 = vpop.xlane.xlu1 %6450  ;;  %v13520_v55 = vld [vmem:[#allocation46_spill] sm:$0xff] }
 0x802   : > { %v5488_v60 = vpop.xlane.xlu0 %5487  ;;  %v11907_v45 = vpop.eup %8281  ;;  %8301 = vpow2.f32 %v5656_v4  ;;  %v6536_v29 = vsub.f32 %v13516_v3, %v6451_v6  ;;  %v6537_v43 = vsub.f32 %v13517_v51, %v6451_v6  ;;  %6723 = vadd.xlane.f32.xlu0 %v6722_v40  ;;  %v6725_v48 = vadd.f32 %v11903_v49, %v11901_v54  ;;  %v13524_v51 = vld [vmem:[#allocation41_spill] sm:$0xff] }
 0x803   : > { %13515 = vst [vmem:[#allocation106_spill] sm:$0xff] %v11907_v45  ;;  %v5568_v50 = vsub.f32 %v13518_v10, %v5488_v60  ;;  %v11912_v0 = vpop.eup %8283  ;;  %8303 = vpow2.f32 %v5658_v58  ;;  %v5569_v42 = vsub.f32 %v13520_v55, %v5488_v60  ;;  %v13525_v55 = vld [vmem:[#allocation45_spill] sm:$0xff] }
 0x804   : > { %13519 = vst [vmem:[#allocation113_spill] sm:$0xff] %v11912_v0  ;;  %v11917_v57 = vpop.eup %8285  ;;  %8305 = vpow2.f32 %v6614_v61  ;;  %v6618_v52 = vmul.f32 1.442695, %v6536_v29  ;;  %v6620_v46 = vmul.f32 1.442695, %v6537_v43  ;;  %6726 = vadd.xlane.f32.xlu1 %v6725_v48  ;;  %v5762_v58 = vadd.f32 %v11912_v0, %v11907_v45  ;;  %v13526_v29 = vld [vmem:[#allocation47_spill] sm:$0xff] }
 0x805   : > { %13521 = vst [vmem:[#allocation16_spill] sm:$0xff] %v11917_v57  ;;  %v5660_v11 = vmul.f32 1.442695, %v5568_v50  ;;  %v11919_v4 = vpop.eup %8287  ;;  %8307 = vpow2.f32 %v6616_v36  ;;  %v5662_v6 = vmul.f32 1.442695, %v5569_v42  ;;  %v5491_v40 = vpop.xlane.xlu1 %5490  ;;  %v13528_v36 = vld [vmem:[#allocation49_spill] sm:$0xff] }
 0x806   : > { %13522 = vst [vmem:[#allocation25_spill] sm:$0xff] %v11919_v4  ;;  %v6454_v3 = vpop.xlane.xlu0 %6453  ;;  %v11923_v60 = vpop.eup %8289  ;;  %8309 = vpow2.f32 %v6618_v52  ;;  %v5570_v10 = vsub.f32 %v13524_v51, %v5491_v40  ;;  %v5571_v61 = vsub.f32 %v13525_v55, %v5491_v40  ;;  %5763 = vadd.xlane.f32.xlu0 %v5762_v58  ;;  %v5765_v48 = vadd.f32 %v11919_v4, %v11917_v57  ;;  %v13561_v4 = vld [vmem:[#allocation123_spill] sm:$0xff] }
 0x807   : > { %13523 = vst [vmem:[#allocation93_spill] sm:$0xff] %v11923_v60  ;;  %v6538_v43 = vsub.f32 %v13526_v29, %v6454_v3  ;;  %v11928_v50 = vpop.eup %8291  ;;  %8311 = vpow2.f32 %v6620_v46  ;;  %v6539_v42 = vsub.f32 %v13528_v36, %v6454_v3  ;;  %v13532_v3 = vld [vmem:[#allocation5_spill] sm:$0xff]  ;;  %v13533_v36 = vld [vmem:[#allocation22_spill] sm:$0xff] }
 0x808   : > { %13527 = vst [vmem:[#allocation20_spill] sm:$0xff] %v11928_v50  ;;  %v11933_v45 = vpop.eup %8293  ;;  %8313 = vpow2.f32 %v5660_v11  ;;  %v5664_v0 = vmul.f32 1.442695, %v5570_v10  ;;  %v5666_v52 = vmul.f32 1.442695, %v5571_v61  ;;  %5766 = vadd.xlane.f32.xlu1 %v5765_v48  ;;  %v6728_v46 = vadd.f32 %v11928_v50, %v11923_v60  ;;  %v13557_v50 = vld [vmem:[#allocation68_spill] sm:$0xff] }
 0x809   : > { %13529 = vst [vmem:[#allocation26_spill] sm:$0xff] %v11933_v45  ;;  %v6622_v54 = vmul.f32 1.442695, %v6538_v43  ;;  %v11935_v51 = vpop.eup %8295  ;;  %8315 = vpow2.f32 %v5662_v6  ;;  %v6624_v40 = vmul.f32 1.442695, %v6539_v42  ;;  %v6457_v58 = vpop.xlane.xlu1 %6456 }
 0x80a   : > { %13530 = vst [vmem:[#allocation33_spill] sm:$0xff] %v11935_v51  ;;  %v11939_v55 = vpop.eup %8297  ;;  %8317 = vpow2.f32 %v5664_v0  ;;  %v6540_v29 = vsub.f32 %v13532_v3, %v6457_v58  ;;  %v6541_v57 = vsub.f32 %v13533_v36, %v6457_v58  ;;  %v6731_v11 = vadd.f32 %v11935_v51, %v11933_v45  ;;  %6729 = vadd.xlane.f32.xlu0 %v6728_v46 }
 0x80b   : > { %13531 = vst [vmem:[#allocation31_spill] sm:$0xff] %v11939_v55  ;;  %v11945_v10 = vpop.eup %8299  ;;  %8319 = vpow2.f32 %v5666_v52 }
 0x80c   : > { %13534 = vst [vmem:[#allocation111_spill] sm:$0xff] %v11945_v10  ;;  %v11947_v6 = vpop.eup %8301  ;;  %8321 = vpow2.f32 %v6622_v54  ;;  %v6626_v61 = vmul.f32 1.442695, %v6540_v29  ;;  %v6628_v43 = vmul.f32 1.442695, %v6541_v57  ;;  %v5768_v42 = vadd.f32 %v11945_v10, %v11939_v55  ;;  %6732 = vadd.xlane.f32.xlu1 %v6731_v11 }
 0x80d   : > { %13535 = vst [vmem:[#allocation91_spill] sm:$0xff] %v11947_v6  ;;  %v11951_v0 = vpop.eup %8303  ;;  %8323 = vpow2.f32 %v6624_v40 }
 0x80e   : > { %13536 = vst [vmem:[#allocation97_spill] sm:$0xff] %v11951_v0  ;;  %v11953_v48 = vpop.eup %8305  ;;  %8325 = vpow2.f32 %v6626_v61  ;;  %v5771_v58 = vadd.f32 %v11951_v0, %v11947_v6  ;;  %5769 = vadd.xlane.f32.xlu0 %v5768_v42  ;;  %v13551_v0 = vld [vmem:[#allocation51_spill] sm:$0xff] }
 0x80f   : > { %13537 = vst [vmem:[#allocation101_spill] sm:$0xff] %v11953_v48  ;;  %v11957_v52 = vpop.eup %8307  ;;  %8327 = vpow2.f32 %v6628_v43 }
 0x810   : > { %13538 = vst [vmem:[#allocation37_spill] sm:$0xff] %v11957_v52  ;;  %v11959_v54 = vpop.eup %8309  ;;  %v6734_v57 = vadd.f32 %v11957_v52, %v11953_v48  ;;  %5772 = vadd.xlane.f32.xlu1 %v5771_v58 }
 0x811   : > { %13539 = vst [vmem:[#allocation8_spill] sm:$0xff] %v11959_v54  ;;  %v11963_v46 = vpop.eup %8311 }
 0x812   : > { %13540 = vst [vmem:[#allocation110_spill] sm:$0xff] %v11963_v46  ;;  %v11965_v40 = vpop.eup %8313  ;;  %v6737_v3 = vadd.f32 %v11963_v46, %v11959_v54  ;;  %6735 = vadd.xlane.f32.xlu0 %v6734_v57 }
 0x813   : > { %13541 = vst [vmem:[#allocation6_spill] sm:$0xff] %v11965_v40  ;;  %v11969_v29 = vpop.eup %8315 }
 0x814   : > { %13542 = vst [vmem:[#allocation32_spill] sm:$0xff] %v11969_v29  ;;  %v11971_v36 = vpop.eup %8317  ;;  %v5774_v11 = vadd.f32 %v11969_v29, %v11965_v40  ;;  %6738 = vadd.xlane.f32.xlu1 %v6737_v3  ;;  %v13549_v29 = vld [vmem:[#allocation60_spill] sm:$0xff] }
 0x815   : > { %13543 = vst [vmem:[#allocation30_spill] sm:$0xff] %v11971_v36  ;;  %v11975_v61 = vpop.eup %8319 }
 0x816   : > { %13544 = vst [vmem:[#allocation18_spill] sm:$0xff] %v11975_v61  ;;  %v11977_v43 = vpop.eup %8321  ;;  %v5777_v42 = vadd.f32 %v11975_v61, %v11971_v36  ;;  %5775 = vadd.xlane.f32.xlu0 %v5774_v11  ;;  %v13550_v36 = vld [vmem:[#allocation58_spill] sm:$0xff] }
 0x817   : > { %13545 = vst [vmem:[#allocation15_spill] sm:$0xff] %v11977_v43  ;;  %v11981_v58 = vpop.eup %8323 }
 0x818   : > { %13546 = vst [vmem:[#allocation95_spill] sm:$0xff] %v11981_v58  ;;  %v11983_v54 = vpop.eup %8325  ;;  %v6740_v57 = vadd.f32 %v11981_v58, %v11977_v43  ;;  %5778 = vadd.xlane.f32.xlu1 %v5777_v42  ;;  %v13552_v58 = vld [vmem:[#allocation50_spill] sm:$0xff]  ;;  %v13553_v42 = vld [vmem:[#allocation119_spill] sm:$0xff] }
 0x819   : > { %13547 = vst [vmem:[#allocation99_spill] sm:$0xff] %v11983_v54  ;;  %v11987_v48 = vpop.eup %8327 }
 0x81a   : > { %13548 = vst [vmem:[#allocation4_spill] sm:$0xff] %v11987_v48  ;;  %v6743_v40 = vadd.f32 %v11987_v48, %v11983_v54  ;;  %6741 = vadd.xlane.f32.xlu0 %v6740_v57  ;;  %v13554_v54 = vld [vmem:[#allocation121_spill] sm:$0xff] }
 0x81c   : > { %6744 = vadd.xlane.f32.xlu1 %v6743_v40 }
 0x81d   : > { %v5494_v3 = vpop.xlane.xlu0 %5493 }
 0x81e   : > { %v5572_v46 = vsub.f32 %v13549_v29, %v5494_v3  ;;  %v5573_v61 = vsub.f32 %v13550_v36, %v5494_v3  ;;  %v13556_v3 = vld [vmem:[#allocation120_spill] sm:$0xff] }
 0x820   : > { %v5668_v52 = vmul.f32 1.442695, %v5572_v46  ;;  %v5670_v11 = vmul.f32 1.442695, %v5573_v61  ;;  %v13555_v46 = vld [vmem:[#allocation118_spill] sm:$0xff] }
 0x821   : > { %v5497_v6 = vpop.xlane.xlu1 %5496  ;;  %v6460_v55 = vpop.xlane.xlu0 %6459 }
 0x822   : > { %8329 = vpow2.f32 %v5668_v52  ;;  %v5574_v43 = vsub.f32 %v13551_v0, %v5497_v6  ;;  %v5575_v10 = vsub.f32 %v13552_v58, %v5497_v6  ;;  %v6542_v45 = vsub.f32 %v13553_v42, %v6460_v55  ;;  %v13558_v6 = vld [vmem:[#allocation66_spill] sm:$0xff] }
 0x823   : > { %8331 = vpow2.f32 %v5670_v11  ;;  %v6543_v57 = vsub.f32 %v13554_v54, %v6460_v55 }
 0x824   : > { %v5672_v40 = vmul.f32 1.442695, %v5574_v43  ;;  %v5674_v48 = vmul.f32 1.442695, %v5575_v10  ;;  %v6630_v60 = vmul.f32 1.442695, %v6542_v45 }
 0x825   : > { %v6632_v29 = vmul.f32 1.442695, %v6543_v57  ;;  %v6463_v51 = vpop.xlane.xlu1 %6462  ;;  %v5500_v36 = vpop.xlane.xlu0 %5499  ;;  %v13559_v43 = vld [vmem:[#allocation36_spill] sm:$0xff] }
 0x826   : > { %8333 = vpow2.f32 %v5672_v40  ;;  %v6544_v61 = vsub.f32 %v13555_v46, %v6463_v51  ;;  %v6545_v52 = vsub.f32 %v13556_v3, %v6463_v51  ;;  %v5576_v0 = vsub.f32 %v13557_v50, %v5500_v36  ;;  %v13560_v40 = vld [vmem:[#allocation55_spill] sm:$0xff]  ;;  %v13562_v50 = vld [vmem:[#allocation125_spill] sm:$0xff] }
 0x827   : > { %8335 = vpow2.f32 %v5674_v48  ;;  %v5577_v58 = vsub.f32 %v13558_v6, %v5500_v36 }
 0x828   : > { %8337 = vpow2.f32 %v6630_v60  ;;  %v6634_v11 = vmul.f32 1.442695, %v6544_v61  ;;  %v6636_v42 = vmul.f32 1.442695, %v6545_v52  ;;  %v5676_v55 = vmul.f32 1.442695, %v5576_v0 }
 0x829   : > { %8339 = vpow2.f32 %v6632_v29  ;;  %v5678_v10 = vmul.f32 1.442695, %v5577_v58  ;;  %v5503_v45 = vpop.xlane.xlu1 %5502  ;;  %v6466_v54 = vpop.xlane.xlu0 %6465  ;;  %v13565_v58 = vld [vmem:[#allocation122_spill] sm:$0xff] }
 0x82a   : > { %8341 = vpow2.f32 %v6634_v11  ;;  %v5578_v57 = vsub.f32 %v13559_v43, %v5503_v45  ;;  %v5579_v46 = vsub.f32 %v13560_v40, %v5503_v45  ;;  %v6546_v51 = vsub.f32 %v13561_v4, %v6466_v54  ;;  %v13566_v45 = vld [vmem:[#allocation124_spill] sm:$0xff] }
 0x82b   : > { %8343 = vpow2.f32 %v6636_v42  ;;  %v6547_v48 = vsub.f32 %v13562_v50, %v6466_v54  ;;  %v13567_v42 = vld [vmem:[#allocation54_spill] sm:$0xff] }
 0x82c   : > { %v12005_v3 = vpop.eup %8329  ;;  %8345 = vpow2.f32 %v5676_v55  ;;  %v5680_v60 = vmul.f32 1.442695, %v5578_v57  ;;  %v5682_v36 = vmul.f32 1.442695, %v5579_v46  ;;  %v6638_v61 = vmul.f32 1.442695, %v6546_v51 }
 0x82d   : > { %13563 = vst [vmem:[#allocation103_spill] sm:$0xff] %v12005_v3  ;;  %v12007_v29 = vpop.eup %8331  ;;  %8347 = vpow2.f32 %v5678_v10  ;;  %v6640_v52 = vmul.f32 1.442695, %v6547_v48  ;;  %v6469_v0 = vpop.xlane.xlu1 %6468  ;;  %v13568_v54 = vld [vmem:[#allocation2_spill] sm:$0xff] }
 0x82e   : > { %13564 = vst [vmem:[#allocation34_spill] sm:$0xff] %v12007_v29  ;;  %v5506_v6 = vpop.xlane.xlu0 %5505  ;;  %8349 = vpow2.f32 %v5680_v60  ;;  %v6548_v11 = vsub.f32 %v13565_v58, %v6469_v0  ;;  %v6549_v4 = vsub.f32 %v13566_v45, %v6469_v0  ;;  %v5780_v55 = vadd.f32 %v12007_v29, %v12005_v3  ;;  %v13573_v45 = vld [vmem:[#allocation74_spill] sm:$0xff] }
 0x82f   : > { %v5580_v43 = vsub.f32 %v13567_v42, %v5506_v6  ;;  %8351 = vpow2.f32 %v5682_v36  ;;  %v5581_v40 = vsub.f32 %v13568_v54, %v5506_v6  ;;  %v13572_v36 = vld [vmem:[#allocation76_spill] sm:$0xff] }
 0x830   : > { %v12015_v57 = vpop.eup %8333  ;;  %8353 = vpow2.f32 %v6638_v61  ;;  %v6642_v10 = vmul.f32 1.442695, %v6548_v11  ;;  %v6644_v46 = vmul.f32 1.442695, %v6549_v4  ;;  %5781 = vadd.xlane.f32.xlu0 %v5780_v55  ;;  %v13574_v54 = vld [vmem:[#allocation64_spill] sm:$0xff]  ;;  %v13576_v11 = vld [vmem:[#allocation62_spill] sm:$0xff] }
 0x831   : > { %13569 = vst [vmem:[#allocation17_spill] sm:$0xff] %v12015_v57  ;;  %v5684_v51 = vmul.f32 1.442695, %v5580_v43  ;;  %v12017_v50 = vpop.eup %8335  ;;  %8355 = vpow2.f32 %v6640_v52  ;;  %v5686_v48 = vmul.f32 1.442695, %v5581_v40  ;;  %v5509_v60 = vpop.xlane.xlu1 %5508 }
 0x832   : > { %13570 = vst [vmem:[#allocation7_spill] sm:$0xff] %v12017_v50  ;;  %v6472_v0 = vpop.xlane.xlu0 %6471  ;;  %v12019_v58 = vpop.eup %8337  ;;  %8357 = vpow2.f32 %v6642_v10  ;;  %v5582_v6 = vsub.f32 %v13572_v36, %v5509_v60  ;;  %v5583_v42 = vsub.f32 %v13573_v45, %v5509_v60  ;;  %v5783_v52 = vadd.f32 %v12017_v50, %v12015_v57  ;;  %v13581_v57 = vld [vmem:[#allocation52_spill] sm:$0xff] }
 0x833   : > { %13571 = vst [vmem:[#allocation13_spill] sm:$0xff] %v12019_v58  ;;  %v6550_v3 = vsub.f32 %v13574_v54, %v6472_v0  ;;  %v12024_v61 = vpop.eup %8339  ;;  %8359 = vpow2.f32 %v6644_v46  ;;  %v6551_v4 = vsub.f32 %v13576_v11, %v6472_v0  ;;  %v13580_v54 = vld [vmem:[#allocation53_spill] sm:$0xff] }
 0x834   : > { %13575 = vst [vmem:[#allocation42_spill] sm:$0xff] %v12024_v61  ;;  %v12029_v43 = vpop.eup %8341  ;;  %8361 = vpow2.f32 %v5684_v51  ;;  %v5688_v40 = vmul.f32 1.442695, %v5582_v6  ;;  %v5690_v55 = vmul.f32 1.442695, %v5583_v42  ;;  %5784 = vadd.xlane.f32.xlu1 %v5783_v52  ;;  %v6746_v36 = vadd.f32 %v12024_v61, %v12019_v58  ;;  %v13582_v6 = vld [vmem:[#allocation61_spill] sm:$0xff] }
 0x835   : > { %13577 = vst [vmem:[#allocation39_spill] sm:$0xff] %v12029_v43  ;;  %v6646_v10 = vmul.f32 1.442695, %v6550_v3  ;;  %v12031_v29 = vpop.eup %8343  ;;  %8363 = vpow2.f32 %v5686_v48  ;;  %v6648_v60 = vmul.f32 1.442695, %v6551_v4  ;;  %v6475_v46 = vpop.xlane.xlu1 %6474  ;;  %v13584_v48 = vld [vmem:[#allocation59_spill] sm:$0xff] }
 0x836   : > { %13578 = vst [vmem:[#allocation40_spill] sm:$0xff] %v12031_v29  ;;  %v5512_v45 = vpop.xlane.xlu0 %5511  ;;  %v12035_v0 = vpop.eup %8345  ;;  %8365 = vpow2.f32 %v5688_v40  ;;  %v6552_v11 = vsub.f32 %v13580_v54, %v6475_v46  ;;  %v6553_v51 = vsub.f32 %v13581_v57, %v6475_v46  ;;  %6747 = vadd.xlane.f32.xlu0 %v6746_v36  ;;  %v6749_v52 = vadd.f32 %v12031_v29, %v12029_v43  ;;  %v13589_v43 = vld [vmem:[#allocation82_spill] sm:$0xff] }
 0x837   : > { %13579 = vst [vmem:[#allocation44_spill] sm:$0xff] %v12035_v0  ;;  %v5584_v42 = vsub.f32 %v13582_v6, %v5512_v45  ;;  %v12040_v3 = vpop.eup %8347  ;;  %8367 = vpow2.f32 %v5690_v55  ;;  %v5585_v4 = vsub.f32 %v13584_v48, %v5512_v45  ;;  %v13588_v6 = vld [vmem:[#allocation84_spill] sm:$0xff] }
 0x838   : > { %13583 = vst [vmem:[#allocation35_spill] sm:$0xff] %v12040_v3  ;;  %v12045_v58 = vpop.eup %8349  ;;  %8369 = vpow2.f32 %v6646_v10  ;;  %v6650_v61 = vmul.f32 1.442695, %v6552_v11  ;;  %v6652_v40 = vmul.f32 1.442695, %v6553_v51  ;;  %6750 = vadd.xlane.f32.xlu1 %v6749_v52  ;;  %v5786_v55 = vadd.f32 %v12040_v3, %v12035_v0  ;;  %v13590_v11 = vld [vmem:[#allocation72_spill] sm:$0xff] }
 0x839   : > { %13585 = vst [vmem:[#allocation9_spill] sm:$0xff] %v12045_v58  ;;  %v5692_v50 = vmul.f32 1.442695, %v5584_v42  ;;  %v12047_v54 = vpop.eup %8351  ;;  %8371 = vpow2.f32 %v6648_v60  ;;  %v5694_v57 = vmul.f32 1.442695, %v5585_v4  ;;  %v5515_v36 = vpop.xlane.xlu1 %5514  ;;  %v13592_v60 = vld [vmem:[#allocation70_spill] sm:$0xff] }
 0x83a   : > { %13586 = vst [vmem:[#allocation48_spill] sm:$0xff] %v12047_v54  ;;  %v6478_v46 = vpop.xlane.xlu0 %6477  ;;  %v12051_v45 = vpop.eup %8353  ;;  %8373 = vpow2.f32 %v6650_v61  ;;  %v5586_v48 = vsub.f32 %v13588_v6, %v5515_v36  ;;  %v5587_v10 = vsub.f32 %v13589_v43, %v5515_v36  ;;  %5787 = vadd.xlane.f32.xlu0 %v5786_v55  ;;  %v5789_v52 = vadd.f32 %v12047_v54, %v12045_v58  ;;  %v13597_v58 = vld [vmem:[#allocation57_spill] sm:$0xff] }
 0x83b   : > { %13587 = vst [vmem:[#allocation117_spill] sm:$0xff] %v12051_v45  ;;  %v6554_v51 = vsub.f32 %v13590_v11, %v6478_v46  ;;  %v12056_v42 = vpop.eup %8355  ;;  %8375 = vpow2.f32 %v6652_v40  ;;  %v6555_v4 = vsub.f32 %v13592_v60, %v6478_v46  ;;  %v13596_v11 = vld [vmem:[#allocation24_spill] sm:$0xff] }
 0x83c   : > { %13591 = vst [vmem:[#allocation43_spill] sm:$0xff] %v12056_v42  ;;  %v12061_v0 = vpop.eup %8357  ;;  %8377 = vpow2.f32 %v5692_v50  ;;  %v5696_v3 = vmul.f32 1.442695, %v5586_v48  ;;  %v5698_v61 = vmul.f32 1.442695, %v5587_v10  ;;  %5790 = vadd.xlane.f32.xlu1 %v5789_v52  ;;  %v6752_v40 = vadd.f32 %v12056_v42, %v12051_v45  ;;  %v13598_v48 = vld [vmem:[#allocation69_spill] sm:$0xff] }
 0x83d   : > { %13593 = vst [vmem:[#allocation46_spill] sm:$0xff] %v12061_v0  ;;  %v6654_v29 = vmul.f32 1.442695, %v6554_v51  ;;  %v12063_v6 = vpop.eup %8359  ;;  %8379 = vpow2.f32 %v5694_v57  ;;  %v6656_v43 = vmul.f32 1.442695, %v6555_v4  ;;  %v6481_v55 = vpop.xlane.xlu1 %6480  ;;  %v13600_v57 = vld [vmem:[#allocation67_spill] sm:$0xff] }
 0x83e   : > { %13594 = vst [vmem:[#allocation41_spill] sm:$0xff] %v12063_v6  ;;  %v5518_v36 = vpop.xlane.xlu0 %5517  ;;  %v12067_v46 = vpop.eup %8361  ;;  %8381 = vpow2.f32 %v5696_v3  ;;  %v6556_v60 = vsub.f32 %v13596_v11, %v6481_v55  ;;  %v6557_v50 = vsub.f32 %v13597_v58, %v6481_v55  ;;  %6753 = vadd.xlane.f32.xlu0 %v6752_v40  ;;  %v6755_v52 = vadd.f32 %v12063_v6, %v12061_v0  ;;  %v13605_v0 = vld [vmem:[#allocation90_spill] sm:$0xff] }
 0x83f   : > { %13595 = vst [vmem:[#allocation45_spill] sm:$0xff] %v12067_v46  ;;  %v5588_v10 = vsub.f32 %v13598_v48, %v5518_v36  ;;  %v12072_v51 = vpop.eup %8363  ;;  %8383 = vpow2.f32 %v5698_v61  ;;  %v5589_v4 = vsub.f32 %v13600_v57, %v5518_v36  ;;  %v13604_v48 = vld [vmem:[#allocation14_spill] sm:$0xff] }
 0x840   : > { %13599 = vst [vmem:[#allocation47_spill] sm:$0xff] %v12072_v51  ;;  %v12077_v45 = vpop.eup %8365  ;;  %8385 = vpow2.f32 %v6654_v29  ;;  %v6658_v42 = vmul.f32 1.442695, %v6556_v60  ;;  %v6660_v3 = vmul.f32 1.442695, %v6557_v50  ;;  %6756 = vadd.xlane.f32.xlu1 %v6755_v52  ;;  %v5792_v61 = vadd.f32 %v12072_v51, %v12067_v46  ;;  %v13606_v60 = vld [vmem:[#allocation56_spill] sm:$0xff] }
 0x841   : > { %13601 = vst [vmem:[#allocation49_spill] sm:$0xff] %v12077_v45  ;;  %v5700_v54 = vmul.f32 1.442695, %v5588_v10  ;;  %v12079_v11 = vpop.eup %8367  ;;  %8387 = vpow2.f32 %v6656_v43  ;;  %v5702_v58 = vmul.f32 1.442695, %v5589_v4  ;;  %v5521_v40 = vpop.xlane.xlu1 %5520  ;;  %v13608_v43 = vld [vmem:[#allocation10_spill] sm:$0xff] }
 0x842   : > { %13602 = vst [vmem:[#allocation5_spill] sm:$0xff] %v12079_v11  ;;  %v6484_v55 = vpop.xlane.xlu0 %6483  ;;  %v12083_v36 = vpop.eup %8369  ;;  %8389 = vpow2.f32 %v6658_v42  ;;  %v5590_v57 = vsub.f32 %v13604_v48, %v5521_v40  ;;  %v5591_v29 = vsub.f32 %v13605_v0, %v5521_v40  ;;  %5793 = vadd.xlane.f32.xlu0 %v5792_v61  ;;  %v5795_v52 = vadd.f32 %v12079_v11, %v12077_v45  ;;  %v13613_v45 = vld [vmem:[#allocation78_spill] sm:$0xff] }
 0x843   : > { %13603 = vst [vmem:[#allocation22_spill] sm:$0xff] %v12083_v36  ;;  %v6558_v50 = vsub.f32 %v13606_v60, %v6484_v55  ;;  %v12088_v10 = vpop.eup %8371  ;;  %8391 = vpow2.f32 %v6660_v3  ;;  %v6559_v4 = vsub.f32 %v13608_v43, %v6484_v55  ;;  %v13612_v60 = vld [vmem:[#allocation80_spill] sm:$0xff] }
 0x844   : > { %13607 = vst [vmem:[#allocation60_spill] sm:$0xff] %v12088_v10  ;;  %v12093_v46 = vpop.eup %8373  ;;  %8393 = vpow2.f32 %v5700_v54  ;;  %v5704_v51 = vmul.f32 1.442695, %v5590_v57  ;;  %v5706_v42 = vmul.f32 1.442695, %v5591_v29  ;;  %5796 = vadd.xlane.f32.xlu1 %v5795_v52  ;;  %v6758_v3 = vadd.f32 %v12088_v10, %v12083_v36  ;;  %v13614_v57 = vld [vmem:[#allocation12_spill] sm:$0xff] }
 0x845   : > { %13609 = vst [vmem:[#allocation58_spill] sm:$0xff] %v12093_v46  ;;  %v6662_v6 = vmul.f32 1.442695, %v6558_v50  ;;  %v12095_v48 = vpop.eup %8375  ;;  %8395 = vpow2.f32 %v5702_v58  ;;  %v6664_v0 = vmul.f32 1.442695, %v6559_v4  ;;  %v6487_v61 = vpop.xlane.xlu1 %6486  ;;  %v13616_v58 = vld [vmem:[#allocation96_spill] sm:$0xff] }
 0x846   : > { %13610 = vst [vmem:[#allocation51_spill] sm:$0xff] %v12095_v48  ;;  %v5524_v40 = vpop.xlane.xlu0 %5523  ;;  %v12099_v55 = vpop.eup %8377  ;;  %8397 = vpow2.f32 %v5704_v51  ;;  %v6560_v43 = vsub.f32 %v13612_v60, %v6487_v61  ;;  %v6561_v54 = vsub.f32 %v13613_v45, %v6487_v61  ;;  %6759 = vadd.xlane.f32.xlu0 %v6758_v3  ;;  %v6761_v52 = vadd.f32 %v12095_v48, %v12093_v46  ;;  %v13621_v46 = vld [vmem:[#allocation81_spill] sm:$0xff] }
 0x847   : > { %13611 = vst [vmem:[#allocation50_spill] sm:$0xff] %v12099_v55  ;;  %v5592_v29 = vsub.f32 %v13614_v57, %v5524_v40  ;;  %v12104_v50 = vpop.eup %8379  ;;  %8399 = vpow2.f32 %v5706_v42  ;;  %v5593_v4 = vsub.f32 %v13616_v58, %v5524_v40  ;;  %v13620_v57 = vld [vmem:[#allocation77_spill] sm:$0xff] }
 0x848   : > { %13615 = vst [vmem:[#allocation119_spill] sm:$0xff] %v12104_v50  ;;  %v12109_v36 = vpop.eup %8381  ;;  %8401 = vpow2.f32 %v6662_v6  ;;  %v6666_v10 = vmul.f32 1.442695, %v6560_v43  ;;  %v6668_v51 = vmul.f32 1.442695, %v6561_v54  ;;  %6762 = vadd.xlane.f32.xlu1 %v6761_v52  ;;  %v5798_v42 = vadd.f32 %v12104_v50, %v12099_v55  ;;  %v13622_v43 = vld [vmem:[#allocation65_spill] sm:$0xff] }
 0x849   : > { %13617 = vst [vmem:[#allocation121_spill] sm:$0xff] %v12109_v36  ;;  %v5708_v11 = vmul.f32 1.442695, %v5592_v29  ;;  %v12111_v60 = vpop.eup %8383  ;;  %8403 = vpow2.f32 %v6664_v0  ;;  %v5710_v45 = vmul.f32 1.442695, %v5593_v4  ;;  %v5527_v3 = vpop.xlane.xlu1 %5526  ;;  %v13624_v0 = vld [vmem:[#allocation63_spill] sm:$0xff] }
 0x84a   : > { %13618 = vst [vmem:[#allocation118_spill] sm:$0xff] %v12111_v60  ;;  %v6490_v61 = vpop.xlane.xlu0 %6489  ;;  %v12115_v40 = vpop.eup %8385  ;;  %8405 = vpow2.f32 %v6666_v10  ;;  %v5594_v58 = vsub.f32 %v13620_v57, %v5527_v3  ;;  %v5595_v6 = vsub.f32 %v13621_v46, %v5527_v3  ;;  %5799 = vadd.xlane.f32.xlu0 %v5798_v42  ;;  %v5801_v52 = vadd.f32 %v12111_v60, %v12109_v36  ;;  %v13629_v36 = vld [vmem:[#allocation86_spill] sm:$0xff] }
 0x84b   : > { %13619 = vst [vmem:[#allocation120_spill] sm:$0xff] %v12115_v40  ;;  %v6562_v54 = vsub.f32 %v13622_v43, %v6490_v61  ;;  %v12120_v29 = vpop.eup %8387  ;;  %8407 = vpow2.f32 %v6668_v51  ;;  %v6563_v4 = vsub.f32 %v13624_v0, %v6490_v61  ;;  %v13628_v43 = vld [vmem:[#allocation88_spill] sm:$0xff] }
 0x84c   : > { %13623 = vst [vmem:[#allocation68_spill] sm:$0xff] %v12120_v29  ;;  %v12125_v55 = vpop.eup %8389  ;;  %8409 = vpow2.f32 %v5708_v11  ;;  %v5712_v50 = vmul.f32 1.442695, %v5594_v58  ;;  %v5714_v10 = vmul.f32 1.442695, %v5595_v6  ;;  %5802 = vadd.xlane.f32.xlu1 %v5801_v52  ;;  %v6764_v51 = vadd.f32 %v12120_v29, %v12115_v40  ;;  %v13630_v58 = vld [vmem:[#allocation75_spill] sm:$0xff] }
 0x84d   : > { %13625 = vst [vmem:[#allocation66_spill] sm:$0xff] %v12125_v55  ;;  %v6670_v48 = vmul.f32 1.442695, %v6562_v54  ;;  %v12127_v57 = vpop.eup %8391  ;;  %8411 = vpow2.f32 %v5710_v45  ;;  %v6672_v46 = vmul.f32 1.442695, %v6563_v4  ;;  %v6493_v42 = vpop.xlane.xlu1 %6492  ;;  %v13632_v45 = vld [vmem:[#allocation79_spill] sm:$0xff] }
 0x84e   : > { %13626 = vst [vmem:[#allocation36_spill] sm:$0xff] %v12127_v57  ;;  %v5530_v3 = vpop.xlane.xlu0 %5529  ;;  %v12131_v61 = vpop.eup %8393  ;;  %8413 = vpow2.f32 %v5712_v50  ;;  %v6564_v0 = vsub.f32 %v13628_v43, %v6493_v42  ;;  %v6565_v11 = vsub.f32 %v13629_v36, %v6493_v42  ;;  %6765 = vadd.xlane.f32.xlu0 %v6764_v51  ;;  %v6767_v52 = vadd.f32 %v12127_v57, %v12125_v55  ;;  %v13636_v55 = vld [vmem:[#allocation104_spill] sm:$0xff] }
 0x84f   : > { %13627 = vst [vmem:[#allocation55_spill] sm:$0xff] %v12131_v61  ;;  %v5596_v6 = vsub.f32 %v13630_v58, %v5530_v3  ;;  %v12136_v54 = vpop.eup %8395  ;;  %8415 = vpow2.f32 %v5714_v10  ;;  %v5597_v4 = vsub.f32 %v13632_v45, %v5530_v3  ;;  %v13635_v58 = vld [vmem:[#allocation100_spill] sm:$0xff] }
 0x850   : > { %13631 = vst [vmem:[#allocation123_spill] sm:$0xff] %v12136_v54  ;;  %v12141_v40 = vpop.eup %8397  ;;  %8417 = vpow2.f32 %v6670_v48  ;;  %v6674_v29 = vmul.f32 1.442695, %v6564_v0  ;;  %v6676_v50 = vmul.f32 1.442695, %v6565_v11  ;;  %6768 = vadd.xlane.f32.xlu1 %v6767_v52  ;;  %v5804_v10 = vadd.f32 %v12136_v54, %v12131_v61  ;;  %v13637_v0 = vld [vmem:[#allocation73_spill] sm:$0xff] }
 0x851   : > { %13633 = vst [vmem:[#allocation125_spill] sm:$0xff] %v12141_v40  ;;  %v5716_v60 = vmul.f32 1.442695, %v5596_v6  ;;  %v12143_v43 = vpop.eup %8399  ;;  %8419 = vpow2.f32 %v6672_v46  ;;  %v5718_v36 = vmul.f32 1.442695, %v5597_v4  ;;  %v5533_v51 = vpop.xlane.xlu1 %5532  ;;  %v13639_v46 = vld [vmem:[#allocation71_spill] sm:$0xff] }
 0x852   : > { %v6496_v42 = vpop.xlane.xlu0 %6495  ;;  %v12147_v3 = vpop.eup %8401  ;;  %8421 = vpow2.f32 %v6674_v29  ;;  %v5598_v45 = vsub.f32 %v13635_v58, %v5533_v51  ;;  %v5599_v48 = vsub.f32 %v13636_v55, %v5533_v51  ;;  %5805 = vadd.xlane.f32.xlu0 %v5804_v10  ;;  %v5807_v52 = vadd.f32 %v12143_v43, %v12141_v40  ;;  %v13641_v40 = vld [vmem:[#allocation94_spill] sm:$0xff] }
 0x853   : > { %13634 = vst [vmem:[#allocation122_spill] sm:$0xff] %v12147_v3  ;;  %v6566_v11 = vsub.f32 %v13637_v0, %v6496_v42  ;;  %v12152_v6 = vpop.eup %8403  ;;  %8423 = vpow2.f32 %v6676_v50  ;;  %v6567_v4 = vsub.f32 %v13639_v46, %v6496_v42  ;;  %v13640_v0 = vld [vmem:[#allocation92_spill] sm:$0xff] }
 0x854   : > { %13638 = vst [vmem:[#allocation124_spill] sm:$0xff] %v12152_v6  ;;  %v12157_v61 = vpop.eup %8405  ;;  %8425 = vpow2.f32 %v5716_v60  ;;  %v5720_v54 = vmul.f32 1.442695, %v5598_v45  ;;  %v5722_v29 = vmul.f32 1.442695, %v5599_v48  ;;  %5808 = vadd.xlane.f32.xlu1 %v5807_v52  ;;  %v6770_v50 = vadd.f32 %v12152_v6, %v12147_v3 }
 0x855   : > { %v6678_v57 = vmul.f32 1.442695, %v6566_v11  ;;  %v12159_v58 = vpop.eup %8407  ;;  %8427 = vpow2.f32 %v5718_v36  ;;  %v6680_v55 = vmul.f32 1.442695, %v6567_v4  ;;  %v6499_v10 = vpop.xlane.xlu1 %6498  ;;  %v13642_v36 = vld [vmem:[#allocation85_spill] sm:$0xff] }
 0x856   : > { %v5536_v51 = vpop.xlane.xlu0 %5535  ;;  %v12163_v42 = vpop.eup %8409  ;;  %8429 = vpow2.f32 %v5720_v54  ;;  %v6568_v46 = vsub.f32 %v13640_v0, %v6499_v10  ;;  %v6569_v60 = vsub.f32 %v13641_v40, %v6499_v10  ;;  %6771 = vadd.xlane.f32.xlu0 %v6770_v50  ;;  %v6773_v4 = vadd.f32 %v12159_v58, %v12157_v61 }
 0x857   : > { %v5600_v45 = vsub.f32 %v11739_v32, %v5536_v51  ;;  %v12168_v48 = vpop.eup %8411  ;;  %8431 = vpow2.f32 %v5722_v29  ;;  %v5601_v11 = vsub.f32 %v13642_v36, %v5536_v51 }
 0x858   : > { %v12173_v52 = vpop.eup %8413  ;;  %8433 = vpow2.f32 %v6678_v57  ;;  %v6682_v3 = vmul.f32 1.442695, %v6568_v46  ;;  %v6684_v54 = vmul.f32 1.442695, %v6569_v60  ;;  %6774 = vadd.xlane.f32.xlu1 %v6773_v4  ;;  %v5810_v32 = vadd.f32 %v12168_v48, %v12163_v42 }
 0x859   : > { %v5724_v6 = vmul.f32 1.442695, %v5600_v45  ;;  %v12175_v0 = vpop.eup %8415  ;;  %8435 = vpow2.f32 %v6680_v55  ;;  %v5726_v40 = vmul.f32 1.442695, %v5601_v11  ;;  %v5539_v29 = vpop.xlane.xlu1 %5538 }
 0x85a   : > { %v6502_v50 = vpop.xlane.xlu0 %6501  ;;  %v12179_v10 = vpop.eup %8417  ;;  %8437 = vpow2.f32 %v6682_v3  ;;  %v5602_v51 = vsub.f32 %v11755_v59, %v5539_v29  ;;  %v5603_v57 = vsub.f32 %v11758_v56, %v5539_v29  ;;  %5811 = vadd.xlane.f32.xlu0 %v5810_v32  ;;  %v5813_v45 = vadd.f32 %v12175_v0, %v12173_v52 }
 0x85b   : > { %v6570_v46 = vsub.f32 %v11690_v44, %v6502_v50  ;;  %v12184_v60 = vpop.eup %8419  ;;  %8439 = vpow2.f32 %v6684_v54  ;;  %v6571_v55 = vsub.f32 %v11694_v5, %v6502_v50 }
 0x85c   : > { %v12189_v36 = vpop.eup %8421  ;;  %8441 = vpow2.f32 %v5724_v6  ;;  %v5728_v11 = vmul.f32 1.442695, %v5602_v51  ;;  %v5730_v3 = vmul.f32 1.442695, %v5603_v57  ;;  %5814 = vadd.xlane.f32.xlu1 %v5813_v45  ;;  %v6776_v44 = vadd.f32 %v12184_v60, %v12179_v10 }
 0x85d   : > { %v6686_v4 = vmul.f32 1.442695, %v6570_v46  ;;  %v12191_v59 = vpop.eup %8423  ;;  %8443 = vpow2.f32 %v5726_v40  ;;  %v6688_v56 = vmul.f32 1.442695, %v6571_v55  ;;  %v6505_v54 = vpop.xlane.xlu1 %6504 }
 0x85e   : > { %v6508_v32 = vpop.xlane.xlu0 %6507  ;;  %v12195_v5 = vpop.eup %8425  ;;  %8445 = vpow2.f32 %v5728_v11  ;;  %v6572_v29 = vsub.f32 %v11702_v39, %v6505_v54  ;;  %v6573_v6 = vsub.f32 %v11706_v30, %v6505_v54  ;;  %6777 = vadd.xlane.f32.xlu0 %v6776_v44  ;;  %v6779_v57 = vadd.f32 %v12191_v59, %v12189_v36 }
 0x85f   : > { %v6574_v50 = vsub.f32 %v11714_v14, %v6508_v32  ;;  %v12200_v51 = vpop.eup %8427  ;;  %8447 = vpow2.f32 %v5730_v3  ;;  %v6575_v40 = vsub.f32 %v11718_v9, %v6508_v32 }
 0x860   : > { %v12205_v46 = vpop.eup %8429  ;;  %8449 = vpow2.f32 %v6686_v4  ;;  %v6690_v55 = vmul.f32 1.442695, %v6572_v29  ;;  %v6692_v45 = vmul.f32 1.442695, %v6573_v6  ;;  %6780 = vadd.xlane.f32.xlu1 %v6779_v57  ;;  %v5816_v14 = vadd.f32 %v12200_v51, %v12195_v5 }
 0x861   : > { %13643 = vst [vmem:[#allocation54_spill] sm:$0xff] %v12205_v46  ;;  %v6694_v11 = vmul.f32 1.442695, %v6574_v50  ;;  %v12207_v39 = vpop.eup %8431  ;;  %8451 = vpow2.f32 %v6688_v56  ;;  %v6696_v30 = vmul.f32 1.442695, %v6575_v40  ;;  %v12211_v3 = vpop.xlane.xlu1 %6510 }
 0x862   : > { %v12213_v9 = vpop.xlane.xlu0 %6513  ;;  %v12215_v44 = vpop.eup %8433  ;;  %8453 = vpow2.f32 %v6690_v55  ;;  %5817 = vadd.xlane.f32.xlu0 %v5816_v14  ;;  %v5819_v4 = vadd.f32 %v12207_v39, %v12205_v46 }
 0x863   : > { %13644 = vst [vmem:[#allocation2_spill] sm:$0xff] %v12215_v44  ;;  %v12217_v54 = vpop.eup %8435  ;;  %8455 = vpow2.f32 %v6692_v45 }
 0x864   : > { %13645 = vst [vmem:[#allocation76_spill] sm:$0xff] %v12217_v54  ;;  %v12221_v56 = vpop.eup %8437  ;;  %8457 = vpow2.f32 %v6694_v11  ;;  %5820 = vadd.xlane.f32.xlu1 %v5819_v4  ;;  %v6782_v29 = vadd.f32 %v12217_v54, %v12215_v44 }
 0x865   : > { %13646 = vst [vmem:[#allocation74_spill] sm:$0xff] %v12221_v56  ;;  %v12223_v32 = vpop.eup %8439  ;;  %8459 = vpow2.f32 %v6696_v30  ;;  %v12227_v6 = vpop.xlane.xlu1 %6516 }
 0x866   : > { %13647 = vst [vmem:[#allocation64_spill] sm:$0xff] %v12223_v32  ;;  %v5734_v50 = vpop.xlane.xlu0 %5733  ;;  %v12229_v40 = vpop.eup %8441  ;;  %v6785_v57 = vadd.f32 %v12223_v32, %v12221_v56  ;;  %6783 = vadd.xlane.f32.xlu0 %v6782_v29 }
 0x867   : > { %13648 = vst [vmem:[#allocation62_spill] sm:$0xff] %v12229_v40  ;;  %v12233_v55 = vpop.eup %8443  ;;  %8461 = vrcp.f32 %v5734_v50 }
 0x868   : > { %13649 = vst [vmem:[#allocation53_spill] sm:$0xff] %v12233_v55  ;;  %v12235_v45 = vpop.eup %8445  ;;  %v5822_v11 = vadd.f32 %v12233_v55, %v12229_v40  ;;  %6786 = vadd.xlane.f32.xlu1 %v6785_v57 }
 0x869   : > { %13650 = vst [vmem:[#allocation52_spill] sm:$0xff] %v12235_v45  ;;  %v12239_v30 = vpop.eup %8447  ;;  %v5737_v14 = vpop.xlane.xlu1 %5736 }
 0x86a   : > { %13651 = vst [vmem:[#allocation61_spill] sm:$0xff] %v12239_v30  ;;  %v12241_v4 = vpop.eup %8449  ;;  %v5825_v44 = vadd.f32 %v12239_v30, %v12235_v45  ;;  %5823 = vadd.xlane.f32.xlu0 %v5822_v11  ;;  %v5740_v56 = vpop.xlane.xlu0 %5739  ;;  %8463 = vrcp.f32 %v5737_v14 }
 0x86b   : > { %13652 = vst [vmem:[#allocation59_spill] sm:$0xff] %v12241_v4  ;;  %v12245_v54 = vpop.eup %8451  ;;  %8465 = vrcp.f32 %v5740_v56 }
 0x86c   : > { %13653 = vst [vmem:[#allocation84_spill] sm:$0xff] %v12245_v54  ;;  %v12247_v32 = vpop.eup %8453  ;;  %v6788_v29 = vadd.f32 %v12245_v54, %v12241_v4  ;;  %5826 = vadd.xlane.f32.xlu1 %v5825_v44 }
 0x86d   : > { %13654 = vst [vmem:[#allocation82_spill] sm:$0xff] %v12247_v32  ;;  %v12251_v40 = vpop.eup %8455  ;;  %v5743_v57 = vpop.xlane.xlu1 %5742 }
 0x86e   : > { %13655 = vst [vmem:[#allocation72_spill] sm:$0xff] %v12251_v40  ;;  %v12253_v55 = vpop.eup %8457  ;;  %v6791_v45 = vadd.f32 %v12251_v40, %v12247_v32  ;;  %6789 = vadd.xlane.f32.xlu0 %v6788_v29  ;;  %8467 = vrcp.f32 %v5743_v57  ;;  %v5746_v4 = vpop.xlane.xlu0 %5745 }
 0x86f   : > { %13656 = vst [vmem:[#allocation70_spill] sm:$0xff] %v12253_v55  ;;  %v12257_v30 = vpop.eup %8459 }
 0x870   : > { %13657 = vst [vmem:[#allocation24_spill] sm:$0xff] %v12257_v30  ;;  %v6794_v50 = vadd.f32 %v12257_v30, %v12253_v55  ;;  %6792 = vadd.xlane.f32.xlu1 %v6791_v45 }
 0x871   : > { %v5749_v11 = vpop.xlane.xlu1 %5748  ;;  %v8462_v44 = vpop.eup %8461 }
 0x872   : > { %6795 = vadd.xlane.f32.xlu0 %v6794_v50  ;;  %8469 = vrcp.f32 %v5749_v11  ;;  %v5861_v56 = vmul.f32 %v8462_v44, %v11781_v25  ;;  %v5860_v40 = vmul.f32 %v8462_v44, %v11779_v34  ;;  %v2657_v34 = vld [vmem:[%s12561_s4 + $0x88] sm:$0xff] }
 0x873   : > { %8471 = vrcp.f32 %v5746_v4 }
 0x874   : > { %v8464_v14 = vpop.eup %8463 }
 0x875   : > { %v8466_v54 = vpop.eup %8465  ;;  %v5863_v32 = vmul.f32 %v8464_v14, %v11785_v27  ;;  %v5862_v29 = vmul.f32 %v8464_v14, %v11783_v23  ;;  %v13658_v27 = vld [vmem:[#allocation98_spill] sm:$0xff] }
 0x876   : > { %v5865_v45 = vmul.f32 %v8466_v54, %v11791_v22 }
 0x877   : > { %v7588_v46 = vpack.c.bf16 %v5863_v32, %v5861_v56  ;;  %v7590_v55 = vpack.c.bf16 %v5862_v29, %v5860_v40  ;;  %v6576_v32 = vsub.f32 %v13658_v27, %v12211_v3 }
 0x878   : > { %v8468_v57 = vpop.eup %8467 }
 0x879   : > { %v5867_v50 = vmul.f32 %v8468_v57, %v11795_v28  ;;  %7589 = vmatprep.subr.bf16.mxu1 %v7588_v46  ;;  %v5866_v23 = vmul.f32 %v8468_v57, %v11793_v18  ;;  %v5864_v28 = vmul.f32 %v8466_v54, %v11787_v63  ;;  %v13659_v46 = vld [vmem:[#allocation102_spill] sm:$0xff]  ;;  %v6698_v56 = vmul.f32 1.442695, %v6576_v32  ;;  %v13661_v32 = vld [vmem:[#allocation83_spill] sm:$0xff] }
 0x87a   : > { %7591 = vmatpush1.bf16.xpose.msra.mxu1 %v7590_v55  ;;  %v6577_v40 = vsub.f32 %v13659_v46, %v12211_v3  ;;  %v6578_v18 = vsub.f32 %v11744_v62, %v12213_v9  ;;  %v2656_v3 = vld [vmem:[%s12561_s4 + $0x80] sm:$0xff]  ;;  %v6579_v54 = vsub.f32 %v11749_v13, %v12213_v9 }
 0x87b   : > { %v7592_v4 = vpack.c.bf16 %v5867_v50, %v5865_v45  ;;  %v7594_v14 = vpack.c.bf16 %v5866_v23, %v5864_v28  ;;  %v13660_v45 = vld [vmem:[#allocation87_spill] sm:$0xff] }
 0x87c   : > { %v8470_v11 = vpop.eup %8469  ;;  %v6704_v27 = vmul.f32 1.442695, %v6579_v54 }
 0x87d   : > { %v6712_v30 = vpop.xlane.xlu0 %6711  ;;  %7593 = vmatprep.subr.bf16.mxu1 %v7592_v4  ;;  %v8472_v25 = vpop.eup %8471  ;;  %v5871_v22 = vmul.f32 %v8470_v11, %v11807_v1  ;;  %v6700_v1 = vmul.f32 1.442695, %v6577_v40 }
 0x87e   : > { %8473 = vrcp.f32 %v6712_v30  ;;  %v5869_v44 = vmul.f32 %v8472_v25, %v11803_v2  ;;  %v5870_v2 = vmul.f32 %v8470_v11, %v11805_v16  ;;  %v6702_v30 = vmul.f32 1.442695, %v6578_v18 }
 0x87f   : > { %v5868_v50 = vmul.f32 %v8472_v25, %v13660_v45  ;;  %v6580_v16 = vsub.f32 %v13661_v32, %v12227_v6 }
 0x880   : > { %v7596_v57 = vpack.c.bf16 %v5871_v22, %v5869_v44 }
 0x881   : > { %2751 = vperm.xlu1 %7760, %v2657_v34   ;;  %v6715_v55 = vpop.xlane.xlu1 %6714  ;;  %v7598_v23 = vpack.c.bf16 %v5870_v2, %v5868_v50 }
 0x882   : > { %8475 = vrcp.f32 %v6715_v55  ;;  %7595 = vmatpush1.bf16.xpose.msra.mxu1 %v7594_v14  ;;  %v13662_v55 = vld [vmem:[#allocation89_spill] sm:$0xff]  ;;  %v6706_v14 = vmul.f32 1.442695, %v6580_v16 }
 0x883   : > { %v5752_v29 = vpop.xlane.xlu0 %5751  ;;  %7597 = vmatprep.subr.bf16.mxu1 %v7596_v57  ;;  %v6581_v44 = vsub.f32 %v13662_v55, %v12227_v6 }
 0x884   : > { %8477 = vrcp.f32 %v5752_v29 }
 0x885   : > { %v5755_v63 = vpop.xlane.xlu1 %5754  ;;  %v6708_v2 = vmul.f32 1.442695, %v6581_v44  ;;  %v13663_v44 = vld [vmem:[#allocation108_spill] sm:$0xff] }
 0x886   : > { %8479 = vrcp.f32 %v5755_v63 }
 0x887   : > { %8481 = vpow2.f32 %v6698_v56  ;;  %v6718_v62 = vpop.xlane.xlu0 %6717 }
 0x888   : > { %8483 = vrcp.f32 %v6718_v62  ;;  %2746 = vperm.xlu0 %7759, %v2656_v3   ;;  %v8474_v34 = vpop.eup %8473 }
 0x889   : > { %8485 = vpow2.f32 %v6700_v1  ;;  %v6721_v4 = vpop.xlane.xlu1 %6720  ;;  %v6839_v9 = vmul.f32 %v8474_v34, %v11831_v41  ;;  %v6838_v25 = vmul.f32 %v8474_v34, %v11829_v12 }
 0x88a   : > { %8487 = vrcp.f32 %v6721_v4  ;;  %7599 = vmatpush1.bf16.xpose.msra.mxu1 %v7598_v23 }
 0x88b   : > { %8489 = vpow2.f32 %v6702_v30  ;;  %v5758_v11 = vpop.xlane.xlu0 %5757 }
 0x88c   : > { %v8476_v22 = vpop.eup %8475  ;;  %8491 = vrcp.f32 %v5758_v11 }
 0x88d   : > { %v5761_v13 = vpop.xlane.xlu1 %5760  ;;  %v6841_v28 = vmul.f32 %v8476_v22, %v11841_v38  ;;  %v6840_v46 = vmul.f32 %v8476_v22, %v11839_v21 }
 0x88e   : > { %v8478_v40 = vpop.eup %8477  ;;  %8493 = vrcp.f32 %v5761_v13 }
 0x88f   : > { %8495 = vpow2.f32 %v6704_v27  ;;  %v6724_v56 = vpop.xlane.xlu0 %6723  ;;  %v7656_v18 = vpack.c.bf16 %v6841_v28, %v6839_v9  ;;  %v7658_v29 = vpack.c.bf16 %v6840_v46, %v6838_v25  ;;  %v5873_v12 = vmul.f32 %v8478_v40, %v11848_v15 }
 0x890   : > { %v8480_v57 = vpop.eup %8479  ;;  %8497 = vrcp.f32 %v6724_v56  ;;  %v5872_v38 = vmul.f32 %v8478_v40, %v11843_v37 }
 0x891   : > { %v12295_v1 = vpop.eup %8481  ;;  %v6727_v41 = vpop.xlane.xlu1 %6726  ;;  %7657 = vmatprep.subr.bf16.mxu0 %v7656_v18  ;;  %v5875_v21 = vmul.f32 %v8480_v57, %v11855_v24  ;;  %v5874_v6 = vmul.f32 %v8480_v57, %v11853_v7 }
 0x892   : > { %v8484_v63 = vpop.eup %8483  ;;  %8499 = vrcp.f32 %v6727_v41  ;;  %7659 = vmatpush1.bf16.xpose.msra.mxu0 %v7658_v29 }
 0x893   : > { %v12301_v3 = vpop.eup %8485  ;;  %8501 = vpow2.f32 %v6706_v14  ;;  %v5764_v54 = vpop.xlane.xlu0 %5763  ;;  %v7600_v30 = vpack.c.bf16 %v5875_v21, %v5873_v12  ;;  %v7602_v62 = vpack.c.bf16 %v5874_v6, %v5872_v38  ;;  %v6843_v37 = vmul.f32 %v8484_v63, %v11864_v53  ;;  %v13664_v21 = vld [vmem:[#allocation113_spill] sm:$0xff]  ;;  %v13666_v6 = vld [vmem:[#allocation106_spill] sm:$0xff] }
 0x894   : > { %v8488_v45 = vpop.eup %8487  ;;  %8503 = vrcp.f32 %v5764_v54  ;;  %v6842_v24 = vmul.f32 %v8484_v63, %v11859_v33  ;;  %v13665_v38 = vld [vmem:[#allocation25_spill] sm:$0xff]  ;;  %v13667_v63 = vld [vmem:[#allocation16_spill] sm:$0xff] }
 0x895   : > { %v12303_v50 = vpop.eup %8489  ;;  %v5767_v15 = vpop.xlane.xlu1 %5766  ;;  %7601 = vmatprep.subr.bf16.mxu1 %v7600_v30  ;;  %v6845_v7 = vmul.f32 %v8488_v45, %v11871_v47  ;;  %v6844_v4 = vmul.f32 %v8488_v45, %v11869_v17 }
 0x896   : > { %v8492_v34 = vpop.eup %8491  ;;  %8505 = vrcp.f32 %v5767_v15  ;;  %7603 = vmatpush1.bf16.xpose.msra.mxu1 %v7602_v62  ;;  %v6797_v62 = vadd.f32 %v12301_v3, %v12295_v1 }
 0x897   : > { %8507 = vpow2.f32 %v6708_v2  ;;  %v6730_v23 = vpop.xlane.xlu0 %6729  ;;  %v7660_v27 = vpack.c.bf16 %v6845_v7, %v6843_v37  ;;  %v7662_v32 = vpack.c.bf16 %v6844_v4, %v6842_v24  ;;  %v5877_v53 = vmul.f32 %v8492_v34, %v11880_v8  ;;  %v13668_v24 = vld [vmem:[#allocation20_spill] sm:$0xff] }
 0x898   : > { %v8494_v16 = vpop.eup %8493  ;;  %8509 = vrcp.f32 %v6730_v23  ;;  %v5876_v33 = vmul.f32 %v8492_v34, %v11875_v26  ;;  %v13669_v23 = vld [vmem:[#allocation33_spill] sm:$0xff] }
 0x899   : > { %v12309_v11 = vpop.eup %8495  ;;  %v6733_v22 = vpop.xlane.xlu1 %6732  ;;  %7661 = vmatprep.subr.bf16.mxu0 %v7660_v27  ;;  %v5879_v47 = vmul.f32 %v8494_v16, %v11887_v35  ;;  %v5878_v17 = vmul.f32 %v8494_v16, %v11885_v19 }
 0x89a   : > { %v8498_v13 = vpop.eup %8497  ;;  %8511 = vrcp.f32 %v6733_v22  ;;  %7663 = vmatpush1.bf16.xpose.msra.mxu0 %v7662_v32  ;;  %v6800_v7 = vadd.f32 %v12309_v11, %v12303_v50  ;;  %v13670_v32 = vld [vmem:[#allocation93_spill] sm:$0xff]  ;;  %v13671_v22 = vld [vmem:[#allocation26_spill] sm:$0xff] }
 0x89b   : > { %v5770_v9 = vpop.xlane.xlu0 %5769  ;;  %v7604_v28 = vpack.c.bf16 %v5879_v47, %v5877_v53  ;;  %v7606_v25 = vpack.c.bf16 %v5878_v17, %v5876_v33  ;;  %v6847_v8 = vmul.f32 %v8498_v13, %v11896_v20  ;;  %v6846_v26 = vmul.f32 %v8498_v13, %v11891_v31 }
 0x89c   : > { %v8500_v46 = vpop.eup %8499  ;;  %8513 = vrcp.f32 %v5770_v9 }
 0x89d   : > { %v12315_v40 = vpop.eup %8501  ;;  %v5773_v55 = vpop.xlane.xlu1 %5772  ;;  %7605 = vmatprep.subr.bf16.mxu1 %v7604_v28  ;;  %v6849_v35 = vmul.f32 %v8500_v46, %v11903_v49  ;;  %v6848_v19 = vmul.f32 %v8500_v46, %v13663_v44 }
 0x89e   : > { %v8504_v14 = vpop.eup %8503  ;;  %8515 = vrcp.f32 %v5773_v55  ;;  %7607 = vmatpush1.bf16.xpose.msra.mxu1 %v7606_v25  ;;  %v13672_v25 = vld [vmem:[#allocation111_spill] sm:$0xff] }
 0x89f   : > { %v6736_v56 = vpop.xlane.xlu0 %6735  ;;  %v7664_v18 = vpack.c.bf16 %v6849_v35, %v6847_v8  ;;  %v7666_v29 = vpack.c.bf16 %v6848_v19, %v6846_v26  ;;  %v5881_v20 = vmul.f32 %v8504_v14, %v13664_v21  ;;  %v5880_v31 = vmul.f32 %v8504_v14, %v13666_v6  ;;  %v13673_v8 = vld [vmem:[#allocation97_spill] sm:$0xff]  ;;  %v13674_v26 = vld [vmem:[#allocation31_spill] sm:$0xff] }
 0x8a0   : > { %v8506_v57 = vpop.eup %8505  ;;  %8517 = vrcp.f32 %v6736_v56  ;;  %v13675_v19 = vld [vmem:[#allocation91_spill] sm:$0xff] }
 0x8a1   : > { %v12321_v41 = vpop.eup %8507  ;;  %v6739_v12 = vpop.xlane.xlu1 %6738  ;;  %7665 = vmatprep.subr.bf16.mxu0 %v7664_v18  ;;  %v5883_v49 = vmul.f32 %v8506_v57, %v13665_v38  ;;  %v5882_v2 = vmul.f32 %v8506_v57, %v13667_v63 }
 0x8a2   : > { %v8510_v54 = vpop.eup %8509  ;;  %8519 = vrcp.f32 %v6739_v12  ;;  %7667 = vmatpush1.bf16.xpose.msra.mxu0 %v7666_v29  ;;  %v6803_v17 = vadd.f32 %v12321_v41, %v12315_v40  ;;  %v13676_v12 = vld [vmem:[#allocation37_spill] sm:$0xff] }
 0x8a3   : > { %v5776_v30 = vpop.xlane.xlu0 %5775  ;;  %v7608_v45 = vpack.c.bf16 %v5883_v49, %v5881_v20  ;;  %v7610_v15 = vpack.c.bf16 %v5882_v2, %v5880_v31  ;;  %v6851_v4 = vmul.f32 %v8510_v54, %v13668_v24  ;;  %v6850_v16 = vmul.f32 %v8510_v54, %v13670_v32  ;;  %v13677_v20 = vld [vmem:[#allocation110_spill] sm:$0xff]  ;;  %v13678_v49 = vld [vmem:[#allocation101_spill] sm:$0xff]  ;;  %v13679_v31 = vld [vmem:[#allocation8_spill] sm:$0xff] }
 0x8a4   : > { %v8512_v37 = vpop.eup %8511  ;;  %8521 = vrcp.f32 %v5776_v30  ;;  %v13682_v24 = vld [vmem:[#allocation6_spill] sm:$0xff] }
 0x8a5   : > { %6798 = vadd.xlane.f32.xlu1 %v6797_v62  ;;  %v5779_v34 = vpop.xlane.xlu1 %5778  ;;  %7609 = vmatprep.subr.bf16.mxu1 %v7608_v45  ;;  %v6853_v27 = vmul.f32 %v8512_v37, %v13669_v23  ;;  %v6852_v53 = vmul.f32 %v8512_v37, %v13671_v22  ;;  %v13680_v45 = vld [vmem:[#allocation32_spill] sm:$0xff]  ;;  %v13681_v37 = vld [vmem:[#allocation18_spill] sm:$0xff] }
 0x8a6   : > { %v8514_v47 = vpop.eup %8513  ;;  %8523 = vrcp.f32 %v5779_v34  ;;  %7611 = vmatpush1.bf16.xpose.msra.mxu1 %v7610_v15  ;;  %v13683_v34 = vld [vmem:[#allocation30_spill] sm:$0xff] }
 0x8a7   : > { %6801 = vadd.xlane.f32.xlu0 %v6800_v7  ;;  %v6742_v33 = vpop.xlane.xlu0 %6741  ;;  %v7668_v13 = vpack.c.bf16 %v6853_v27, %v6851_v4  ;;  %v7670_v9 = vpack.c.bf16 %v6852_v53, %v6850_v16  ;;  %v5885_v46 = vmul.f32 %v8514_v47, %v13672_v25  ;;  %v5884_v44 = vmul.f32 %v8514_v47, %v13674_v26  ;;  %v13684_v53 = vld [vmem:[#allocation95_spill] sm:$0xff]  ;;  %v6987_v26 = vld [vmem:[%s12563_s6] sm:$0xff] }
 0x8a8   : > { %v8516_v28 = vpop.eup %8515  ;;  %8525 = vrcp.f32 %v6742_v33  ;;  %v13685_v33 = vld [vmem:[#allocation4_spill] sm:$0xff] }
 0x8a9   : > { %6804 = vadd.xlane.f32.xlu1 %v6803_v17  ;;  %v6745_v55 = vpop.xlane.xlu1 %6744  ;;  %7669 = vmatprep.subr.bf16.mxu0 %v7668_v13  ;;  %v5887_v35 = vmul.f32 %v8516_v28, %v13673_v8  ;;  %v5886_v14 = vmul.f32 %v8516_v28, %v13675_v19  ;;  %v13686_v13 = vld [vmem:[#allocation15_spill] sm:$0xff] }
 0x8aa   : > { %v8518_v56 = vpop.eup %8517  ;;  %8527 = vrcp.f32 %v6745_v55  ;;  %7671 = vmatpush1.bf16.xpose.msra.mxu0 %v7670_v9  ;;  %v13687_v28 = vld [vmem:[#allocation99_spill] sm:$0xff]  ;;  %v2662_v55 = vld [vmem:[%s12561_s4 + $0xb0] sm:$0xff] }
 0x8ab   : > { %v7612_v18 = vpack.c.bf16 %v5887_v35, %v5885_v46  ;;  %v7614_v29 = vpack.c.bf16 %v5886_v14, %v5884_v44  ;;  %v6855_v21 = vmul.f32 %v8518_v56, %v13676_v12  ;;  %v6854_v6 = vmul.f32 %v8518_v56, %v13678_v49  ;;  %v2663_v35 = vld [vmem:[%s12561_s4 + $0xb8] sm:$0xff]  ;;  %v6988_v19 = vld [vmem:[%s12563_s6 + $0x8] sm:$0xff]  ;;  %v6989_v14 = vld [vmem:[%s12563_s6 + $0x10] sm:$0xff] }
 0x8ac   : > { %v8520_v57 = vpop.eup %8519 }
 0x8ad   : > { %7613 = vmatprep.subr.bf16.mxu1 %v7612_v18  ;;  %v6857_v38 = vmul.f32 %v8520_v57, %v13677_v20  ;;  %v6856_v63 = vmul.f32 %v8520_v57, %v13679_v31  ;;  %v6990_v18 = vld [vmem:[%s12563_s6 + $0x18] sm:$0xff]  ;;  %v6991_v57 = vld [vmem:[%s12563_s6 + $0x20] sm:$0xff] }
 0x8ae   : > { %v8522_v2 = vpop.eup %8521  ;;  %7615 = vmatpush1.bf16.xpose.msra.mxu1 %v7614_v29  ;;  %v6994_v31 = vld [vmem:[%s12563_s6 + $0x38] sm:$0xff] }
 0x8af   : > { %v7672_v54 = vpack.c.bf16 %v6857_v38, %v6855_v21  ;;  %v7674_v30 = vpack.c.bf16 %v6856_v63, %v6854_v6  ;;  %v5889_v15 = vmul.f32 %v8522_v2, %v13680_v45  ;;  %v5888_v4 = vmul.f32 %v8522_v2, %v13682_v24  ;;  %v6992_v21 = vld [vmem:[%s12563_s6 + $0x28] sm:$0xff]  ;;  %v6993_v38 = vld [vmem:[%s12563_s6 + $0x30] sm:$0xff]  ;;  %v13691_v24 = vld [vmem:[#allocation17_spill] sm:$0xff] }
 0x8b0   : > { %v8524_v62 = vpop.eup %8523  ;;  %v13689_v45 = vld [vmem:[#allocation7_spill] sm:$0xff] }
 0x8b1   : > { %7673 = vmatprep.subr.bf16.mxu0 %v7672_v54  ;;  %v5891_v7 = vmul.f32 %v8524_v62, %v13681_v37  ;;  %v5890_v23 = vmul.f32 %v8524_v62, %v13683_v34  ;;  %v13690_v37 = vld [vmem:[#allocation103_spill] sm:$0xff] }
 0x8b2   : > { %v8526_v27 = vpop.eup %8525  ;;  %7675 = vmatpush1.bf16.xpose.msra.mxu0 %v7674_v30  ;;  %v13688_v30 = vld [vmem:[#allocation34_spill] sm:$0xff] }
 0x8b3   : > { %v7616_v32 = vpack.c.bf16 %v5891_v7, %v5889_v15  ;;  %v7618_v16 = vpack.c.bf16 %v5890_v23, %v5888_v4  ;;  %v6859_v47 = vmul.f32 %v8526_v27, %v13684_v53  ;;  %v6858_v9 = vmul.f32 %v8526_v27, %v13686_v13  ;;  %v13692_v53 = vld [vmem:[#allocation42_spill] sm:$0xff]  ;;  %v13694_v13 = vld [vmem:[#allocation13_spill] sm:$0xff] }
 0x8b4   : > { %v8528_v22 = vpop.eup %8527 }
 0x8b5   : > { %7617 = vmatprep.subr.bf16.mxu1 %v7616_v32  ;;  %v6861_v17 = vmul.f32 %v8528_v22, %v13685_v33  ;;  %v6860_v25 = vmul.f32 %v8528_v22, %v13687_v28  ;;  %v13693_v33 = vld [vmem:[#allocation40_spill] sm:$0xff]  ;;  %v13695_v28 = vld [vmem:[#allocation39_spill] sm:$0xff] }
 0x8b6   : > { %7619 = vmatpush1.bf16.xpose.msra.mxu1 %v7618_v16 }
 0x8b7   : > { %v7676_v46 = vpack.c.bf16 %v6861_v17, %v6859_v47  ;;  %v7678_v8 = vpack.c.bf16 %v6860_v25, %v6858_v9 }
 0x8b9   : > { %7677 = vmatprep.subr.bf16.mxu0 %v7676_v46 }
 0x8ba   : > { %2776 = vperm.xlu1 %7760, %v2662_v55   ;;  %7679 = vmatpush1.bf16.xpose.msra.mxu0 %v7678_v8 }
 0x8bd   : > { %2781 = vperm.xlu0 %7759, %v2663_v35   ;;  %v5782_v44 = vpop.xlane.xlu0 %5781 }
 0x8be   : > { %6997 = vperm.xlu1 %7760, %v6987_v26   ;;  %8529 = vrcp.f32 %v5782_v44 }
 0x8c1   : > { %7002 = vperm.xlu0 %7759, %v6988_v19   ;;  %v5785_v56 = vpop.xlane.xlu1 %5784  ;;  %v13696_v19 = vld [vmem:[#allocation35_spill] sm:$0xff] }
 0x8c2   : > { %8531 = vrcp.f32 %v5785_v56  ;;  %7007 = vperm.xlu1 %7760, %v6989_v14   ;;  %v13697_v56 = vld [vmem:[#allocation48_spill] sm:$0xff] }
 0x8c3   : > { %v6748_v29 = vpop.xlane.xlu0 %6747 }
 0x8c4   : > { %8533 = vrcp.f32 %v6748_v29  ;;  %v13698_v29 = vld [vmem:[#allocation44_spill] sm:$0xff] }
 0x8c5   : > { %7012 = vperm.xlu0 %7759, %v6990_v18   ;;  %v6751_v12 = vpop.xlane.xlu1 %6750 }
 0x8c6   : > { %8535 = vrcp.f32 %v6751_v12  ;;  %7017 = vperm.xlu1 %7760, %v6991_v57   ;;  %v13699_v12 = vld [vmem:[#allocation9_spill] sm:$0xff] }
 0x8c7   : > { %v5788_v20 = vpop.xlane.xlu0 %5787 }
 0x8c8   : > { %8537 = vrcp.f32 %v5788_v20  ;;  %v8530_v6 = vpop.eup %8529 }
 0x8c9   : > { %7022 = vperm.xlu0 %7759, %v6992_v21   ;;  %v5791_v49 = vpop.xlane.xlu1 %5790  ;;  %v5893_v62 = vmul.f32 %v8530_v6, %v13688_v30  ;;  %v5892_v7 = vmul.f32 %v8530_v6, %v13690_v37  ;;  %v13701_v30 = vld [vmem:[#allocation41_spill] sm:$0xff]  ;;  %v13703_v37 = vld [vmem:[#allocation46_spill] sm:$0xff] }
 0x8ca   : > { %8539 = vrcp.f32 %v5791_v49  ;;  %7027 = vperm.xlu1 %7760, %v6993_v38  }
 0x8cb   : > { %v6754_v63 = vpop.xlane.xlu0 %6753 }
 0x8cc   : > { %v8532_v2 = vpop.eup %8531  ;;  %8541 = vrcp.f32 %v6754_v63 }
 0x8cd   : > { %7032 = vperm.xlu0 %7759, %v6994_v31   ;;  %v6757_v54 = vpop.xlane.xlu1 %6756  ;;  %v5895_v15 = vmul.f32 %v8532_v2, %v13689_v45  ;;  %v5894_v4 = vmul.f32 %v8532_v2, %v13691_v24  ;;  %v13700_v2 = vld [vmem:[#allocation43_spill] sm:$0xff]  ;;  %v13702_v45 = vld [vmem:[#allocation117_spill] sm:$0xff] }
 0x8ce   : > { %v8534_v34 = vpop.eup %8533  ;;  %8543 = vrcp.f32 %v6757_v54 }
 0x8cf   : > { %v5794_v23 = vpop.xlane.xlu0 %5793  ;;  %v7620_v27 = vpack.c.bf16 %v5895_v15, %v5893_v62  ;;  %v7622_v32 = vpack.c.bf16 %v5894_v4, %v5892_v7  ;;  %v6863_v47 = vmul.f32 %v8534_v34, %v13692_v53  ;;  %v6862_v9 = vmul.f32 %v8534_v34, %v13694_v13  ;;  %v13705_v53 = vld [vmem:[#allocation5_spill] sm:$0xff] }
 0x8d0   : > { %v8536_v16 = vpop.eup %8535  ;;  %8545 = vrcp.f32 %v5794_v23  ;;  %v13707_v13 = vld [vmem:[#allocation49_spill] sm:$0xff] }
 0x8d1   : > { %v5797_v22 = vpop.xlane.xlu1 %5796  ;;  %7621 = vmatprep.subr.bf16.mxu1 %v7620_v27  ;;  %v6865_v17 = vmul.f32 %v8536_v16, %v13693_v33  ;;  %v6864_v25 = vmul.f32 %v8536_v16, %v13695_v28  ;;  %v13704_v16 = vld [vmem:[#allocation47_spill] sm:$0xff]  ;;  %v13706_v33 = vld [vmem:[#allocation45_spill] sm:$0xff] }
 0x8d2   : > { %v8538_v46 = vpop.eup %8537  ;;  %8547 = vrcp.f32 %v5797_v22  ;;  %7623 = vmatpush1.bf16.xpose.msra.mxu1 %v7622_v32 }
 0x8d3   : > { %v6760_v55 = vpop.xlane.xlu0 %6759  ;;  %v7680_v8 = vpack.c.bf16 %v6865_v17, %v6863_v47  ;;  %v7682_v35 = vpack.c.bf16 %v6864_v25, %v6862_v9  ;;  %v5897_v14 = vmul.f32 %v8538_v46, %v13696_v19  ;;  %v5896_v57 = vmul.f32 %v8538_v46, %v13698_v29  ;;  %v13709_v19 = vld [vmem:[#allocation51_spill] sm:$0xff]  ;;  %v13711_v29 = vld [vmem:[#allocation58_spill] sm:$0xff] }
 0x8d4   : > { %v8540_v26 = vpop.eup %8539  ;;  %8549 = vrcp.f32 %v6760_v55 }
 0x8d5   : > { %v6763_v44 = vpop.xlane.xlu1 %6762  ;;  %7681 = vmatprep.subr.bf16.mxu0 %v7680_v8  ;;  %v5899_v18 = vmul.f32 %v8540_v26, %v13697_v56  ;;  %v5898_v21 = vmul.f32 %v8540_v26, %v13699_v12  ;;  %v13708_v26 = vld [vmem:[#allocation60_spill] sm:$0xff]  ;;  %v13710_v56 = vld [vmem:[#allocation22_spill] sm:$0xff] }
 0x8d6   : > { %v8542_v20 = vpop.eup %8541  ;;  %8551 = vrcp.f32 %v6763_v44  ;;  %7683 = vmatpush1.bf16.xpose.msra.mxu0 %v7682_v35 }
 0x8d7   : > { %v5800_v38 = vpop.xlane.xlu0 %5799  ;;  %v7624_v49 = vpack.c.bf16 %v5899_v18, %v5897_v14  ;;  %v7626_v6 = vpack.c.bf16 %v5898_v21, %v5896_v57  ;;  %v6867_v54 = vmul.f32 %v8542_v20, %v13700_v2  ;;  %v6866_v15 = vmul.f32 %v8542_v20, %v13702_v45  ;;  %v13713_v2 = vld [vmem:[#allocation118_spill] sm:$0xff]  ;;  %v13715_v45 = vld [vmem:[#allocation121_spill] sm:$0xff] }
 0x8d8   : > { %v8544_v31 = vpop.eup %8543  ;;  %8553 = vrcp.f32 %v5800_v38 }
 0x8d9   : > { %v5803_v63 = vpop.xlane.xlu1 %5802  ;;  %7625 = vmatprep.subr.bf16.mxu1 %v7624_v49  ;;  %v6869_v62 = vmul.f32 %v8544_v31, %v13701_v30  ;;  %v6868_v7 = vmul.f32 %v8544_v31, %v13703_v37  ;;  %v13712_v31 = vld [vmem:[#allocation119_spill] sm:$0xff]  ;;  %v13714_v30 = vld [vmem:[#allocation50_spill] sm:$0xff] }
 0x8da   : > { %v8546_v24 = vpop.eup %8545  ;;  %8555 = vrcp.f32 %v5803_v63  ;;  %7627 = vmatpush1.bf16.xpose.msra.mxu1 %v7626_v6 }
 0x8db   : > { %v6766_v4 = vpop.xlane.xlu0 %6765  ;;  %v7684_v34 = vpack.c.bf16 %v6869_v62, %v6867_v54  ;;  %v7686_v23 = vpack.c.bf16 %v6868_v7, %v6866_v15  ;;  %v5901_v22 = vmul.f32 %v8546_v24, %v13704_v16  ;;  %v5900_v17 = vmul.f32 %v8546_v24, %v13706_v33  ;;  %v13717_v16 = vld [vmem:[#allocation36_spill] sm:$0xff]  ;;  %v13719_v33 = vld [vmem:[#allocation66_spill] sm:$0xff] }
 0x8dc   : > { %v8548_v27 = vpop.eup %8547  ;;  %8557 = vrcp.f32 %v6766_v4 }
 0x8dd   : > { %v6769_v32 = vpop.xlane.xlu1 %6768  ;;  %7685 = vmatprep.subr.bf16.mxu0 %v7684_v34  ;;  %v5903_v47 = vmul.f32 %v8548_v27, %v13705_v53  ;;  %v5902_v9 = vmul.f32 %v8548_v27, %v13707_v13  ;;  %v13716_v27 = vld [vmem:[#allocation68_spill] sm:$0xff] }
 0x8de   : > { %v8550_v28 = vpop.eup %8549  ;;  %8559 = vrcp.f32 %v6769_v32  ;;  %7687 = vmatpush1.bf16.xpose.msra.mxu0 %v7686_v23  ;;  %v13718_v53 = vld [vmem:[#allocation120_spill] sm:$0xff] }
 0x8df   : > { %v5806_v25 = vpop.xlane.xlu0 %5805  ;;  %v7628_v46 = vpack.c.bf16 %v5903_v47, %v5901_v22  ;;  %v7630_v55 = vpack.c.bf16 %v5902_v9, %v5900_v17  ;;  %v6871_v44 = vmul.f32 %v8550_v28, %v13708_v26  ;;  %v6870_v18 = vmul.f32 %v8550_v28, %v13710_v56 }
 0x8e0   : > { %v8552_v8 = vpop.eup %8551  ;;  %8561 = vrcp.f32 %v5806_v25 }
 0x8e1   : > { %v5809_v35 = vpop.xlane.xlu1 %5808  ;;  %7629 = vmatprep.subr.bf16.mxu1 %v7628_v46  ;;  %v6873_v14 = vmul.f32 %v8552_v8, %v13709_v19  ;;  %v6872_v57 = vmul.f32 %v8552_v8, %v13711_v29  ;;  %v13720_v8 = vld [vmem:[#allocation123_spill] sm:$0xff] }
 0x8e2   : > { %v8554_v12 = vpop.eup %8553  ;;  %8563 = vrcp.f32 %v5809_v35  ;;  %7631 = vmatpush1.bf16.xpose.msra.mxu1 %v7630_v55 }
 0x8e3   : > { %v6772_v21 = vpop.xlane.xlu0 %6771  ;;  %v7688_v20 = vpack.c.bf16 %v6873_v14, %v6871_v44  ;;  %v7690_v38 = vpack.c.bf16 %v6872_v57, %v6870_v18  ;;  %v5905_v63 = vmul.f32 %v8554_v12, %v13712_v31  ;;  %v5904_v62 = vmul.f32 %v8554_v12, %v13714_v30  ;;  %v13721_v44 = vld [vmem:[#allocation55_spill] sm:$0xff]  ;;  %v13722_v14 = vld [vmem:[#allocation125_spill] sm:$0xff]  ;;  %v13724_v31 = vld [vmem:[#allocation122_spill] sm:$0xff] }
 0x8e4   : > { %v8556_v49 = vpop.eup %8555  ;;  %8565 = vrcp.f32 %v6772_v21 }
 0x8e5   : > { %v6775_v6 = vpop.xlane.xlu1 %6774  ;;  %7689 = vmatprep.subr.bf16.mxu0 %v7688_v20  ;;  %v5907_v54 = vmul.f32 %v8556_v49, %v13713_v2  ;;  %v5906_v15 = vmul.f32 %v8556_v49, %v13715_v45 }
 0x8e6   : > { %v8558_v37 = vpop.eup %8557  ;;  %8567 = vrcp.f32 %v6775_v6  ;;  %7691 = vmatpush1.bf16.xpose.msra.mxu0 %v7690_v38  ;;  %v13723_v38 = vld [vmem:[#allocation124_spill] sm:$0xff] }
 0x8e7   : > { %v5812_v7 = vpop.xlane.xlu0 %5811  ;;  %v7632_v24 = vpack.c.bf16 %v5907_v54, %v5905_v63  ;;  %v7634_v4 = vpack.c.bf16 %v5906_v15, %v5904_v62  ;;  %v6875_v32 = vmul.f32 %v8558_v37, %v13716_v27  ;;  %v6874_v47 = vmul.f32 %v8558_v37, %v13718_v53 }
 0x8e8   : > { %v8560_v34 = vpop.eup %8559  ;;  %8569 = vrcp.f32 %v5812_v7 }
 0x8e9   : > { %v5815_v23 = vpop.xlane.xlu1 %5814  ;;  %7633 = vmatprep.subr.bf16.mxu1 %v7632_v24  ;;  %v6877_v22 = vmul.f32 %v8560_v34, %v13717_v16  ;;  %v6876_v17 = vmul.f32 %v8560_v34, %v13719_v33 }
 0x8ea   : > { %v8562_v13 = vpop.eup %8561  ;;  %8571 = vrcp.f32 %v5815_v23  ;;  %7635 = vmatpush1.bf16.xpose.msra.mxu1 %v7634_v4 }
 0x8eb   : > { %v6778_v9 = vpop.xlane.xlu0 %6777  ;;  %v7692_v28 = vpack.c.bf16 %v6877_v22, %v6875_v32  ;;  %v7694_v25 = vpack.c.bf16 %v6876_v17, %v6874_v47  ;;  %v5909_v35 = vmul.f32 %v8562_v13, %v13720_v8  ;;  %v5908_v19 = vmul.f32 %v8562_v13, %v13721_v44  ;;  %v13728_v44 = vld [vmem:[#allocation2_spill] sm:$0xff] }
 0x8ec   : > { %v8564_v46 = vpop.eup %8563  ;;  %8573 = vrcp.f32 %v6778_v9  ;;  %v13725_v9 = vld [vmem:[#allocation54_spill] sm:$0xff] }
 0x8ed   : > { %v6781_v55 = vpop.xlane.xlu1 %6780  ;;  %7693 = vmatprep.subr.bf16.mxu0 %v7692_v28  ;;  %v5911_v26 = vmul.f32 %v8564_v46, %v12143_v43  ;;  %v5910_v56 = vmul.f32 %v8564_v46, %v13722_v14 }
 0x8ee   : > { %v8566_v18 = vpop.eup %8565  ;;  %8575 = vrcp.f32 %v6781_v55  ;;  %7695 = vmatpush1.bf16.xpose.msra.mxu0 %v7694_v25  ;;  %v13726_v55 = vld [vmem:[#allocation76_spill] sm:$0xff] }
 0x8ef   : > { %v5818_v29 = vpop.xlane.xlu0 %5817  ;;  %v7636_v57 = vpack.c.bf16 %v5911_v26, %v5909_v35  ;;  %v7638_v12 = vpack.c.bf16 %v5910_v56, %v5908_v19  ;;  %v6879_v49 = vmul.f32 %v8566_v18, %v13723_v38  ;;  %v6878_v43 = vmul.f32 %v8566_v18, %v13724_v31  ;;  %v13727_v35 = vld [vmem:[#allocation64_spill] sm:$0xff]  ;;  %v13732_v38 = vld [vmem:[#allocation62_spill] sm:$0xff] }
 0x8f0   : > { %v8568_v21 = vpop.eup %8567  ;;  %8577 = vrcp.f32 %v5818_v29 }
 0x8f1   : > { %v5821_v20 = vpop.xlane.xlu1 %5820  ;;  %7637 = vmatprep.subr.bf16.mxu1 %v7636_v57  ;;  %v6881_v6 = vmul.f32 %v8568_v21, %v12159_v58  ;;  %v6880_v63 = vmul.f32 %v8568_v21, %v12157_v61  ;;  %v13730_v57 = vld [vmem:[#allocation53_spill] sm:$0xff] }
 0x8f2   : > { %v8570_v2 = vpop.eup %8569  ;;  %8579 = vrcp.f32 %v5821_v20  ;;  %7639 = vmatpush1.bf16.xpose.msra.mxu1 %v7638_v12  ;;  %v13731_v21 = vld [vmem:[#allocation61_spill] sm:$0xff] }
 0x8f3   : > { %v6784_v54 = vpop.xlane.xlu0 %6783  ;;  %v7696_v30 = vpack.c.bf16 %v6881_v6, %v6879_v49  ;;  %v7698_v62 = vpack.c.bf16 %v6880_v63, %v6878_v43  ;;  %v5913_v37 = vmul.f32 %v8570_v2, %v12168_v48  ;;  %v5912_v58 = vmul.f32 %v8570_v2, %v12163_v42  ;;  %v13733_v6 = vld [vmem:[#allocation52_spill] sm:$0xff] }
 0x8f4   : > { %v8572_v45 = vpop.eup %8571  ;;  %8581 = vrcp.f32 %v6784_v54 }
 0x8f5   : > { %v6787_v15 = vpop.xlane.xlu1 %6786  ;;  %7697 = vmatprep.subr.bf16.mxu0 %v7696_v30  ;;  %v5915_v7 = vmul.f32 %v8572_v45, %v12175_v0  ;;  %v5914_v24 = vmul.f32 %v8572_v45, %v12173_v52 }
 0x8f6   : > { %v8574_v4 = vpop.eup %8573  ;;  %8583 = vrcp.f32 %v6787_v15  ;;  %7699 = vmatpush1.bf16.xpose.msra.mxu0 %v7698_v62  ;;  %v13734_v62 = vld [vmem:[#allocation11_spill] sm:$0xff]  ;;  %v13735_v15 = vld [vmem:[#allocation84_spill] sm:$0xff] }
 0x8f7   : > { %v5824_v61 = vpop.xlane.xlu0 %5823  ;;  %v7640_v34 = vpack.c.bf16 %v5915_v7, %v5913_v37  ;;  %v7642_v23 = vpack.c.bf16 %v5914_v24, %v5912_v58  ;;  %v6883_v16 = vmul.f32 %v8574_v4, %v12184_v60  ;;  %v6882_v0 = vmul.f32 %v8574_v4, %v12179_v10  ;;  %v13736_v7 = vld [vmem:[#allocation72_spill] sm:$0xff]  ;;  %v13737_v24 = vld [vmem:[#allocation59_spill] sm:$0xff] }
 0x8f8   : > { %v8576_v27 = vpop.eup %8575  ;;  %8585 = vrcp.f32 %v5824_v61  ;;  %v13738_v61 = vld [vmem:[#allocation82_spill] sm:$0xff] }
 0x8f9   : > { %v5827_v32 = vpop.xlane.xlu1 %5826  ;;  %7641 = vmatprep.subr.bf16.mxu1 %v7640_v34  ;;  %v6885_v48 = vmul.f32 %v8576_v27, %v12191_v59  ;;  %v6884_v42 = vmul.f32 %v8576_v27, %v12189_v36  ;;  %v13740_v27 = vld [vmem:[#allocation107_spill] sm:$0xff] }
 0x8fa   : > { %v8578_v22 = vpop.eup %8577  ;;  %8587 = vrcp.f32 %v5827_v32  ;;  %7643 = vmatpush1.bf16.xpose.msra.mxu1 %v7642_v23  ;;  %v13739_v23 = vld [vmem:[#allocation112_spill] sm:$0xff] }
 0x8fb   : > { %v6790_v52 = vpop.xlane.xlu0 %6789  ;;  %v7700_v53 = vpack.c.bf16 %v6885_v48, %v6883_v16  ;;  %v7702_v47 = vpack.c.bf16 %v6884_v42, %v6882_v0  ;;  %v5917_v13 = vmul.f32 %v8578_v22, %v12200_v51  ;;  %v5916_v59 = vmul.f32 %v8578_v22, %v12195_v5  ;;  %v13729_v51 = vld [vmem:[#allocation74_spill] sm:$0xff]  ;;  %v13742_v42 = vld [vmem:[#allocation29_spill] sm:$0xff] }
 0x8fc   : > { %v8580_v33 = vpop.eup %8579  ;;  %8589 = vrcp.f32 %v6790_v52  ;;  %v13741_v32 = vpack.c.bf16 %v13739_v23, %v13740_v27  ;;  %v13743_v52 = vld [vmem:[#allocation19_spill] sm:$0xff]  ;;  %v6979_v27 = vld [vmem:[%s12562_s5] sm:$0xff] }
 0x8fd   : > { %v6793_v17 = vpop.xlane.xlu1 %6792  ;;  %7701 = vmatprep.subr.bf16.mxu0 %v7700_v53  ;;  %v5919_v60 = vmul.f32 %v8580_v33, %v12207_v39  ;;  %v5918_v10 = vmul.f32 %v8580_v33, %v13725_v9  ;;  %v13745_v33 = vld [vmem:[#allocation105_spill] sm:$0xff]  ;;  %v13749_v9 = vld [vmem:[#allocation115_spill] sm:$0xff] }
 0x8fe   : > { %v8582_v28 = vpop.eup %8581  ;;  %8591 = vrcp.f32 %v6793_v17  ;;  %7703 = vmatpush1.bf16.xpose.msra.mxu0 %v7702_v47  ;;  %v13744_v47 = vld [vmem:[#allocation109_spill] sm:$0xff] }
 0x8ff   : > { %v7644_v36 = vpack.c.bf16 %v5919_v60, %v5917_v13  ;;  %v7646_v25 = vpack.c.bf16 %v5918_v10, %v5916_v59  ;;  %v6887_v8 = vmul.f32 %v8582_v28, %v13726_v55  ;;  %v6886_v19 = vmul.f32 %v8582_v28, %v13728_v44  ;;  %v6796_v5 = vpop.xlane.xlu0 %6795  ;;  %v13747_v13 = vld [vmem:[#allocation3_spill] sm:$0xff]  ;;  %v13748_v59 = vld [vmem:[#allocation38_spill] sm:$0xff]  ;;  %v13751_v28 = vld [vmem:[#allocation116_spill] sm:$0xff] }
 0x900   : > { %v8584_v46 = vpop.eup %8583  ;;  %v13746_v17 = vpack.c.bf16 %v13744_v47, %v13745_v33  ;;  %v13750_v10 = vpack.c.bf16 %v13748_v59, %v13749_v9  ;;  %8593 = vrcp.f32 %v6796_v5 }
 0x901   : > { %7645 = vmatprep.subr.bf16.mxu1 %v7644_v36  ;;  %v6889_v26 = vmul.f32 %v8584_v46, %v13727_v35  ;;  %v6888_v14 = vmul.f32 %v8584_v46, %v13729_v51  ;;  %v2752_v0 = vpop.permute.xlu1 %2751  ;;  %v13752_v36 = vld [vmem:[#allocation114_spill] sm:$0xff]  ;;  %v13754_v46 = vmov 0.0  }
 0x902   : > { %v8586_v39 = vpop.eup %8585  ;;  %7647 = vmatpush1.bf16.xpose.msra.mxu1 %v7646_v25  ;;  %v3028_v53 = vadd.f32 %v13743_v52, %v2752_v0  ;;  %v3026_v60 = vadd.f32 %v13747_v13, %v2752_v0  ;;  %v13753_v25 = vpack.c.bf16 %v13751_v28, %v13752_v36  ;;  %v6983_v0 = vld [vmem:[%s12562_s5 + $0x20] sm:$0xff]  ;;  %v6986_v52 = vld [vmem:[%s12562_s5 + $0x38] sm:$0xff] }
 0x903   : > { %v7704_v56 = vpack.c.bf16 %v6889_v26, %v6887_v8  ;;  %v7706_v18 = vpack.c.bf16 %v6888_v14, %v6886_v19  ;;  %v5921_v12 = vmul.f32 %v8586_v39, %v13730_v57  ;;  %v5920_v49 = vmul.f32 %v8586_v39, %v13732_v38  ;;  %v13755_v19 = vld [vmem:[#allocation23_spill] sm:$0xff]  ;;  %v13756_v39 = vld [vmem:[#allocation24_spill] sm:$0xff] }
 0x904   : > { %v8588_v29 = vpop.eup %8587 }
 0x905   : > { %7705 = vmatprep.subr.bf16.mxu0 %v7704_v56  ;;  %v5923_v20 = vmul.f32 %v8588_v29, %v13731_v21  ;;  %v5922_v31 = vmul.f32 %v8588_v29, %v13733_v6  ;;  %v13757_v29 = vld [vmem:[#allocation70_spill] sm:$0xff] }
 0x906   : > { %v8590_v43 = vpop.eup %8589  ;;  %7707 = vmatpush1.bf16.xpose.msra.mxu0 %v7706_v18 }
 0x907   : > { %v2747_v63 = vpop.permute.xlu0 %2746  ;;  %v7648_v2 = vpack.c.bf16 %v5923_v20, %v5921_v12  ;;  %v7650_v54 = vpack.c.bf16 %v5922_v31, %v5920_v49  ;;  %v6891_v37 = vmul.f32 %v8590_v43, %v13735_v15  ;;  %v6890_v4 = vmul.f32 %v8590_v43, %v13737_v24 }
 0x908   : > { %v8592_v30 = vpop.eup %8591  ;;  %v3022_v45 = vadd.f32 %v13734_v62, %v2747_v63  ;;  %v3020_v22 = vadd.f32 %v13742_v42, %v2747_v63  ;;  %v6984_v42 = vld [vmem:[%s12562_s5 + $0x28] sm:$0xff] }
 0x909   : > { %7649 = vmatprep.subr.bf16.mxu1 %v7648_v2  ;;  %v6893_v58 = vmul.f32 %v8592_v30, %v13736_v7  ;;  %v6892_v34 = vmul.f32 %v8592_v30, %v13738_v61  ;;  %v13759_v30 = vld [vmem:[#allocation28_spill] sm:$0xff] }
 0x90a   : > { %5988 = vmatprep.mubr.f32.mxu1 %v3022_v45  ;;  %7651 = vmatpush1.bf16.xpose.msra.mxu1 %v7650_v54  ;;  %v8594_v44 = vpop.eup %8593  ;;  %v13760_v45 = vld [vmem:[#allocation27_spill] sm:$0xff] }
 0x90b   : > { %7721 = vmatprep.subr.bf16.mxu1 %v13741_v32  ;;  %v7708_v16 = vpack.c.bf16 %v6893_v58, %v6891_v37  ;;  %v7710_v48 = vpack.c.bf16 %v6892_v34, %v6890_v4  ;;  %v6895_v56 = vmul.f32 %v8594_v44, %v13756_v39  ;;  %v6894_v57 = vmul.f32 %v8594_v44, %v13757_v29  ;;  %v6980_v32 = vld [vmem:[%s12562_s5 + $0x8] sm:$0xff]  ;;  %v8620_v44 = vld [vmem:[%s8704_s29 + $0x18] sm:$0xff] }
 0x90d   : > { %7709 = vmatprep.subr.bf16.mxu0 %v7708_v16  ;;  %v6981_v16 = vld [vmem:[%s12562_s5 + $0x10] sm:$0xff] }
 0x90e   : > { %7711 = vmatpush1.bf16.xpose.msra.mxu0 %v7710_v48  ;;  %v6982_v48 = vld [vmem:[%s12562_s5 + $0x18] sm:$0xff] }
 0x911   : > { %5989 = vmatmul.mubr.f32.vlgmr.msra.gmra.mrb[146].mxu1 %v3020_v22  ;;  %v6985_v22 = vld [vmem:[%s12562_s5 + $0x30] sm:$0xff] }
 0x912   : > { %5994 = vmatprep.mubr.f32.mxu1 %v3028_v53  ;;  %7723 = vmatpush1.bf16.msra.mxu1 %v13746_v17 }
 0x913   : > { %7725 = vmatprep.subr.bf16.mxu1 %v13750_v10  ;;  %v8618_v10 = vld [vmem:[%s8704_s29 + $0x8] sm:$0xff] }
 0x915   : > { %5995 = vmatmul.mubr.f32.gmra.mrb[148].mxu1 %v3026_v60  ;;  %v8617_v60 = vld [vmem:[%s8704_s29] sm:$0xff] }
 0x916   : > { %7727 = vmatpush1.bf16.msra.mxu1 %v13753_v25  ;;  %7123 = vmatprep.mubr.f32.mxu1 %v13754_v46 }
 0x932   : > { %v6799_v55 = vpop.xlane.xlu1 %6798 }
 0x933   : > { %8595 = vrcp.f32 %v6799_v55 }
 0x934   : > { %v6802_v8 = vpop.xlane.xlu0 %6801 }
 0x935   : > { %8597 = vrcp.f32 %v6802_v8  ;;  %v8619_v8 = vld [vmem:[%s8704_s29 + $0x10] sm:$0xff] }
 0x936   : > { %v6805_v35 = vpop.xlane.xlu1 %6804 }
 0x937   : > { %8599 = vrcp.f32 %v6805_v35 }
 0x93a   : > { %v2777_v26 = vpop.permute.xlu1 %2776 }
 0x93b   : > { %v3058_v51 = vadd.f32 %v13755_v19, %v2777_v26 }
 0x93c   : > { %v2782_v2 = vpop.permute.xlu0 %2781 }
 0x93d   : > { %v8596_v14 = vpop.eup %8595  ;;  %6966 = vmatprep.mubr.f32.mxu0 %v3058_v51  ;;  %v3064_v62 = vadd.f32 %v13759_v30, %v2782_v2 }
 0x93e   : > { %v6897_v18 = vmul.f32 %v8596_v14, %v12301_v3  ;;  %v6896_v5 = vmul.f32 %v8596_v14, %v12295_v1  ;;  %v13758_v1 = vld [vmem:[#allocation21_spill] sm:$0xff]  ;;  %v6998_v53 = vpop.permute.xlu1 %6997 }
 0x93f   : > { %v8598_v12 = vpop.eup %8597  ;;  %v3056_v54 = vadd.f32 %v13758_v1, %v2777_v26 }
 0x940   : > { %v7712_v21 = vpack.c.bf16 %v6897_v18, %v6895_v56  ;;  %v7714_v20 = vpack.c.bf16 %v6896_v5, %v6894_v57  ;;  %v6899_v49 = vmul.f32 %v8598_v12, %v12309_v11  ;;  %v6898_v3 = vmul.f32 %v8598_v12, %v12303_v50  ;;  %v7003_v9 = vpop.permute.xlu0 %7002  ;;  %v8621_v18 = vld [vmem:[%s8704_s29 + $0x20] sm:$0xff]  ;;  %v8622_v5 = vld [vmem:[%s8704_s29 + $0x28] sm:$0xff] }
 0x941   : > { %v8600_v38 = vpop.eup %8599  ;;  %v3062_v11 = vadd.f32 %v13760_v45, %v2782_v2 }
 0x942   : > { %7713 = vmatprep.subr.bf16.mxu0 %v7712_v21  ;;  %v6901_v6 = vmul.f32 %v8600_v38, %v12321_v41  ;;  %v6900_v43 = vmul.f32 %v8600_v38, %v12315_v40  ;;  %v7008_v26 = vpop.permute.xlu1 %7007 }
 0x943   : > { %7715 = vmatpush1.bf16.xpose.msra.mxu0 %v7714_v20 }
 0x944   : > { %v7716_v31 = vpack.c.bf16 %v6901_v6, %v6899_v49  ;;  %v7718_v63 = vpack.c.bf16 %v6900_v43, %v6898_v3  ;;  %v7013_v57 = vpop.permute.xlu0 %7012  ;;  %v8623_v6 = vld [vmem:[%s8704_s29 + $0x30] sm:$0xff]  ;;  %v8624_v3 = vld [vmem:[%s8704_s29 + $0x38] sm:$0xff] }
 0x946   : > { %7717 = vmatprep.subr.bf16.mxu0 %v7716_v31  ;;  %v7018_v43 = vpop.permute.xlu1 %7017 }
 0x94b   : > { %7719 = vmatpush1.bf16.xpose.msra.mxu0 %v7718_v63 }
 0x952   : > { %6967 = vmatmul.mubr.f32.vlgmr.msra.gmra.mrb[166].mxu0 %v3056_v54 }
 0x953   : > { %6972 = vmatprep.mubr.f32.mxu0 %v3064_v62  ;;  %v8625_v62 = vld [vmem:[%s8704_s29 + $0x40] sm:$0xff] }
 0x956   : > { %6973 = vmatmul.mubr.f32.gmra.mrb[168].mxu0 %v3062_v11  ;;  %v7023_v11 = vpop.permute.xlu0 %7022 }
 0x9e4   : > { %v5990_v41 = vpop.f32.mrb[146].mxu1 }
 0x9e5   : > { %v5992_v15 = vpop.f32.mrb[147].mxu1 }
 0x9e8   : > { %v5996_v37 = vpop.f32.mrb[148].mxu1 }
 0x9e9   : > { %v7730_v7 = vpack.c.bf16 %v5996_v37, %v5990_v41  ;;  %v5998_v40 = vpop.f32.mrb[149].mxu1  ;;  %v8626_v41 = vld [vmem:[%s8704_s29 + $0x48] sm:$0xff] }
 0x9ea   : > { %v7728_v58 = vpack.c.bf16 %v5998_v40, %v5992_v15 }
 0x9ec   : > { %7729 = vmatprep.subr.bf16.mxu1 %v7728_v58 }
 0x9ed   : > { %7731 = vmatpush1.bf16.msra.mxu1 %v7730_v7 }
 0xa25   : > { %v6968_v50 = vpop.f32.mrb[166].mxu0 }
 0xa26   : > { %v6970_v24 = vpop.f32.mrb[167].mxu0 }
 0xa29   : > { %v6974_v4 = vpop.f32.mrb[168].mxu0 }
 0xa2a   : > { %v7734_v61 = vpack.c.bf16 %v6974_v4, %v6968_v50  ;;  %v6976_v34 = vpop.f32.mrb[169].mxu0  ;;  %v8627_v50 = vld [vmem:[%s8704_s29 + $0x50] sm:$0xff]  ;;  %v7028_v4 = vpop.permute.xlu1 %7027 }
 0xa2b   : > { %v7732_v23 = vpack.c.bf16 %v6976_v34, %v6970_v24 }
 0xa2d   : > { %7733 = vmatprep.subr.bf16.mxu1 %v7732_v23 }
 0xa2e   : > { %7735 = vmatpush1.bf16.msra.mxu1 %v7734_v61  ;;  %v8628_v61 = vld [vmem:[%s8704_s29 + $0x58] sm:$0xff] }
 0xa31   : > { %7420 = vmatmul.mubr.msk.f32.vlgmr.msra.gmra.mrb[150].mxu1 %vm2784_vm1, %v6979_v27 }
 0xa32   : > { %7129 = vmatprep.mubr.f32.mxu1 %v13754_v46 }
 0xa35   : > { %7421 = vmatmul.mubr.msk.f32.gmra.mrb[152].mxu1 %vm2784_vm1, %v6980_v32 }
 0xa36   : > { %7135 = vmatprep.mubr.f32.mxu1 %v13754_v46 }
 0xa39   : > { %7422 = vmatmul.mubr.msk.f32.gmra.mrb[154].mxu1 %vm2784_vm1, %v6981_v16 }
 0xa3a   : > { %7141 = vmatprep.mubr.f32.mxu1 %v13754_v46 }
 0xa3d   : > { %7423 = vmatmul.mubr.msk.f32.gmra.mrb[156].mxu1 %vm2784_vm1, %v6982_v48  ;;  %v8629_v48 = vld [vmem:[%s8704_s29 + $0x60] sm:$0xff] }
 0xa3e   : > { %7147 = vmatprep.mubr.f32.mxu1 %v13754_v46 }
 0xa41   : > { %7424 = vmatmul.mubr.msk.f32.gmra.mrb[158].mxu1 %vm2784_vm1, %v6983_v0 }
 0xa42   : > { %7153 = vmatprep.mubr.f32.mxu1 %v13754_v46 }
 0xa45   : > { %7425 = vmatmul.mubr.msk.f32.gmra.mrb[160].mxu1 %vm2784_vm1, %v6984_v42  ;;  %v7033_v42 = vpop.permute.xlu0 %7032 }
 0xa46   : > { %7159 = vmatprep.mubr.f32.mxu1 %v13754_v46 }
 0xa49   : > { %7426 = vmatmul.mubr.msk.f32.gmra.mrb[162].mxu1 %vm2784_vm1, %v6985_v22  ;;  %v8630_v22 = vld [vmem:[%s8704_s29 + $0x68] sm:$0xff] }
 0xa4a   : > { %7165 = vmatprep.mubr.f32.mxu1 %v13754_v46 }
 0xa4d   : > { %7427 = vmatmul.mubr.msk.f32.gmra.mrb[164].mxu1 %vm2784_vm1, %v6986_v52 }
 0xb04   : > { %v7125_v47 = vpop.f32.mrb[150].mxu1 }
 0xb05   : > { %v7126_v33 = vadd.f32 %v7125_v47, %v6998_v53  ;;  %v7127_v17 = vpop.f32.mrb[151].mxu1 }
 0xb06   : > { %v7128_v13 = vadd.f32 %v7127_v17, %v6998_v53 }
 0xb07   : > { %v7172_v59 = vadd.f32 %v8617_v60, %v7126_v33 }
 0xb08   : > { %v7173_v28 = vadd.f32 %v8618_v10, %v7128_v13  ;;  %v7131_v36 = vpop.f32.mrb[152].mxu1  ;;  %v8631_v13 = vld [vmem:[%s8704_s29 + $0x70] sm:$0xff] }
 0xb09   : > { %7188 = vst [vmem:[%s12520_s17] sm:$0xff] %v7172_v59  ;;  %v7132_v25 = vadd.f32 %v7131_v36, %v7003_v9  ;;  %v7133_v46 = vpop.f32.mrb[153].mxu1  ;;  %v8632_v59 = vld [vmem:[%s8704_s29 + $0x78] sm:$0xff] }
 0xb0a   : > { %7189 = vst [vmem:[%s12520_s17 + $0x8] sm:$0xff] %v7173_v28  ;;  %v7134_v55 = vadd.f32 %v7133_v46, %v7003_v9 }
 0xb0b   : > { %v7174_v35 = vadd.f32 %v8619_v8, %v7132_v25 }
 0xb0c   : > { %v7175_v19 = vadd.f32 %v8620_v44, %v7134_v55  ;;  %v7137_v51 = vpop.f32.mrb[154].mxu1 }
 0xb0d   : > { %7190 = vst [vmem:[%s12520_s17 + $0x10] sm:$0xff] %v7174_v35  ;;  %v7138_v14 = vadd.f32 %v7137_v51, %v7008_v26  ;;  %v7139_v39 = vpop.f32.mrb[155].mxu1 }
 0xb0e   : > { %7191 = vst [vmem:[%s12520_s17 + $0x18] sm:$0xff] %v7175_v19  ;;  %v7140_v56 = vadd.f32 %v7139_v39, %v7008_v26 }
 0xb0f   : > { %v7176_v29 = vadd.f32 %v8621_v18, %v7138_v14 }
 0xb10   : > { %v7177_v12 = vadd.f32 %v8622_v5, %v7140_v56  ;;  %v7143_v21 = vpop.f32.mrb[156].mxu1 }
 0xb11   : > { %7192 = vst [vmem:[%s12520_s17 + $0x20] sm:$0xff] %v7176_v29  ;;  %v7144_v20 = vadd.f32 %v7143_v21, %v7013_v57  ;;  %v7145_v38 = vpop.f32.mrb[157].mxu1 }
 0xb12   : > { %7193 = vst [vmem:[%s12520_s17 + $0x28] sm:$0xff] %v7177_v12  ;;  %v7146_v49 = vadd.f32 %v7145_v38, %v7013_v57 }
 0xb13   : > { %v7178_v31 = vadd.f32 %v8623_v6, %v7144_v20 }
 0xb14   : > { %v7179_v63 = vadd.f32 %v8624_v3, %v7146_v49  ;;  %v7149_v2 = vpop.f32.mrb[158].mxu1 }
 0xb15   : > { %7194 = vst [vmem:[%s12520_s17 + $0x30] sm:$0xff] %v7178_v31  ;;  %v7150_v1 = vadd.f32 %v7149_v2, %v7018_v43  ;;  %v7151_v54 = vpop.f32.mrb[159].mxu1 }
 0xb16   : > { %7195 = vst [vmem:[%s12520_s17 + $0x38] sm:$0xff] %v7179_v63  ;;  %v7152_v30 = vadd.f32 %v7151_v54, %v7018_v43 }
 0xb17   : > { %v7180_v45 = vadd.f32 %v8625_v62, %v7150_v1 }
 0xb18   : > { %v7181_v15 = vadd.f32 %v8626_v41, %v7152_v30  ;;  %v7155_v37 = vpop.f32.mrb[160].mxu1 }
 0xb19   : > { %7196 = vst [vmem:[%s12520_s17 + $0x40] sm:$0xff] %v7180_v45  ;;  %v7156_v7 = vadd.f32 %v7155_v37, %v7023_v11  ;;  %v7157_v40 = vpop.f32.mrb[161].mxu1 }
 0xb1a   : > { %7197 = vst [vmem:[%s12520_s17 + $0x48] sm:$0xff] %v7181_v15  ;;  %v7158_v58 = vadd.f32 %v7157_v40, %v7023_v11 }
 0xb1b   : > { %v7182_v24 = vadd.f32 %v8627_v50, %v7156_v7 }
 0xb1c   : > { %v7183_v34 = vadd.f32 %v8628_v61, %v7158_v58  ;;  %v7161_v23 = vpop.f32.mrb[162].mxu1 }
 0xb1d   : > { %7198 = vst [vmem:[%s12520_s17 + $0x50] sm:$0xff] %v7182_v24  ;;  %v7162_v27 = vadd.f32 %v7161_v23, %v7028_v4  ;;  %v7163_v32 = vpop.f32.mrb[163].mxu1 }
 0xb1e   : > { %7199 = vst [vmem:[%s12520_s17 + $0x58] sm:$0xff] %v7183_v34  ;;  %v7164_v16 = vadd.f32 %v7163_v32, %v7028_v4 }
 0xb1f   : > { %v7184_v0 = vadd.f32 %v8629_v48, %v7162_v27 }
 0xb20   : > { %v7185_v52 = vadd.f32 %v8630_v22, %v7164_v16  ;;  %v7167_v53 = vpop.f32.mrb[164].mxu1 }
 0xb21   : > { %7200 = vst [vmem:[%s12520_s17 + $0x60] sm:$0xff] %v7184_v0  ;;  %v7168_v47 = vadd.f32 %v7167_v53, %v7033_v42  ;;  %v7169_v33 = vpop.f32.mrb[165].mxu1 }
 0xb22   : > { %7201 = vst [vmem:[%s12520_s17 + $0x68] sm:$0xff] %v7185_v52  ;;  %v7170_v17 = vadd.f32 %v7169_v33, %v7033_v42 }
 0xb23   : > { %v7186_v60 = vadd.f32 %v8631_v13, %v7168_v47 }
 0xb24   : > { %v7187_v9 = vadd.f32 %v8632_v59, %v7170_v17 }
 0xb25   : > { %7202 = vst [vmem:[%s12520_s17 + $0x70] sm:$0xff] %v7186_v60 }
 0xb26   : > { %7203 = vst [vmem:[%s12520_s17 + $0x78] sm:$0xff] %v7187_v9 }
 0xb27 PF: > { %s17_s24 = sadd.s32 1, %s8639_s24  }
 0xb28   : > { %p14_p4 = scmp.ge.s32.totalorder %s17_s24, 4  }
 0xb2a   :  { %16 = sbr.rel (!%p14_p4) target bundleno = 1 (0x1), region = 78 }

</bundles_post_ra>
